<compile_context>
chip_gen: v5e
topology: v5e:2x2
jax: 0.10.0
libtpu: 0.0.40
codegen_flags: <defaults>
</compile_context>

<pallas_src>
import functools

import jax
import jax.numpy as jnp
from jax.experimental import pallas as pl
from jax.experimental.pallas import tpu as pltpu

LN_EPS = 1e-5
PACK_WIDTH = 128      # lane width of the packed parameter slab
PACK_SUBLANE = 8      # every param starts at an 8-aligned sublane row


# ------------------------- in-kernel building blocks -------------------------
# Everything is 2-D (rows, features) with the feature dim on the lane axis.

def _layer_norm(x, g, b):
    x = x.astype(jnp.float32)
    mu = jnp.mean(x, axis=-1, keepdims=True)
    ms = jnp.mean(x * x, axis=-1, keepdims=True)   # independent reduce
    var = ms - mu * mu
    return (x - mu) * jax.lax.rsqrt(var + LN_EPS) * g + b


def _lin(x, w, b):
    return jnp.dot(x, w, preferred_element_type=jnp.float32) + b


def _gelu(x):
    # TODO(synk): tanh approximation (PyTorch nn.GELU defaults to exact erf).
    return jax.nn.gelu(x, approximate=True)


def _attention(q, k, v, heads):
    """q: (Nq, D) with 1/sqrt(dh) already folded in, k/v: (Nk, D).

    Per head: lane-mask Q and contract over all D lanes for scores (equivalent
    to q_h @ k_h^T), then P @ (lane-masked V) so the head's output lands at
    its final lane offset.  Heads combine with adds -> no concatenates.
    """
    nq, d = q.shape
    dh = d // heads
    lane = jax.lax.broadcasted_iota(jnp.int32, (1, d), 1)
    out = None
    for h in range(heads):
        lo = h * dh
        m = ((lane >= lo) & (lane < lo + dh)).astype(jnp.float32)   # (1, D)
        s = jax.lax.dot_general(q * m, k, (((1,), (1,)), ((), ())),
                                preferred_element_type=jnp.float32)  # (Nq, Nk)
        s = s - jnp.max(s, axis=-1, keepdims=True)
        p = jnp.exp(s)
        p = p * pl.reciprocal(jnp.sum(p, axis=-1, keepdims=True), approx=True)
        contrib = jnp.dot(p, v * m, preferred_element_type=jnp.float32)
        out = contrib if out is None else out + contrib
    return out                                                       # (Nq, D)


def _encoder_block(rd, pfx, x, heads):
    d = x.shape[-1]
    xn = _layer_norm(x, rd(pfx + "ln1_g"), rd(pfx + "ln1_b"))
    qkv = _lin(xn, rd(pfx + "wqkv"), rd(pfx + "bqkv"))    # fused QKV (N, 3D)
    q, k, v = qkv[:, :d], qkv[:, d:2 * d], qkv[:, 2 * d:]
    o = _attention(q, k, v, heads)
    x = x + _lin(o, rd(pfx + "wo"), rd(pfx + "bo"))
    xn = _layer_norm(x, rd(pfx + "ln2_g"), rd(pfx + "ln2_b"))
    h = _gelu(_lin(xn, rd(pfx + "ff1_w"), rd(pfx + "ff1_b")))
    return x + _lin(h, rd(pfx + "ff2_w"), rd(pfx + "ff2_b"))


def _cross_block(rd, pfx, xq, xkv, heads):
    d = xq.shape[-1]
    qn = _layer_norm(xq, rd(pfx + "ln_q_g"), rd(pfx + "ln_q_b"))
    kn = _layer_norm(xkv, rd(pfx + "ln_kv_g"), rd(pfx + "ln_kv_b"))
    q = _lin(qn, rd(pfx + "wq"), rd(pfx + "bq"))
    kv = _lin(kn, rd(pfx + "wkv"), rd(pfx + "bkv"))       # fused KV (N, 2D)
    k, v = kv[:, :d], kv[:, d:]
    o = _attention(q, k, v, heads)
    xq = xq + _lin(o, rd(pfx + "wo"), rd(pfx + "bo"))
    xn = _layer_norm(xq, rd(pfx + "ln2_g"), rd(pfx + "ln2_b"))
    h = _gelu(_lin(xn, rd(pfx + "ff1_w"), rd(pfx + "ff1_b")))
    return xq + _lin(h, rd(pfx + "ff2_w"), rd(pfx + "ff2_b"))


def _patch_embed(rd, pfx, y):
    # LayerNorm(W) -> Linear(W, D) -> LayerNorm(D)
    y = _layer_norm(y, rd(pfx + "ln1_g"), rd(pfx + "ln1_b"))
    h = _lin(y, rd(pfx + "w"), rd(pfx + "b"))
    return _layer_norm(h, rd(pfx + "ln2_g"), rd(pfx + "ln2_b"))


def _final_head(rd, pfx, x):
    xn = _layer_norm(x, rd(pfx + "ln_g"), rd(pfx + "ln_b"))
    return _lin(xn, rd(pfx + "w"), rd(pfx + "b"))          # (N, 1)


# ------------------------------ fused kernel --------------------------------

def _fused_forward_kernel(y_sym_ref, y_state_ref, slab_ref, out_ref, *,
                          idx, cfg):
    # Lazy weight reader: static slice of the packed slab at point of use.
    def rd(name):
        ro, r, c = idx[name]
        return slab_ref[ro:ro + r, :c]

    # Patch embeddings + positional embeddings (batch == 1 per grid step, so
    # the pos-embed add needs no concatenation / broadcast copy).
    x_sym = _patch_embed(rd, "pe_sym_", y_sym_ref[0]) + rd("bit_pos_embed")
    x_state = _patch_embed(rd, "pe_state_", y_state_ref[0]) + rd("state_pos_embed")
    # emb_dropout / dropout = 0 -> identity

    for di in range(cfg["N_dec"]):
        for lj in range(cfg["N_dec_symbol"]):
            x_sym = _encoder_block(rd, f"d{di}_s{lj}_", x_sym, cfg["h_symbol"])
        for lj in range(cfg["N_dec_state"]):
            x_state = _encoder_block(rd, f"d{di}_t{lj}_", x_state,
                                     cfg["h_state"])
        for cj in range(cfg["N_dec_cross"]):
            x_sym = _cross_block(rd, f"d{di}_c{cj}_s2t_", x_sym, x_state,
                                 cfg["h_symbol_to_state"])
            x_state = _cross_block(rd, f"d{di}_c{cj}_t2s_", x_state, x_sym,
                                   cfg["h_state_to_symbol"])

    y_s = _final_head(rd, "final_sym_", x_sym)        # (ns, 1)
    y_t = _final_head(rd, "final_state_", x_state)    # (nt, 1)
    # One sublane concat + one dense store per grid step.
    out_ref[0] = jnp.concatenate([y_s, y_t], axis=0).astype(out_ref.dtype)


# ------------------------------ model wrapper --------------------------------

def conv_bcjrformer_forward(param_slab, idx, cfg, y_symbol, y_state):
    bs = y_symbol.shape[0]
    ns, nt = cfg["symbol_n"], cfg["state_n"]
    ws, wt = cfg["symbol_window"], cfg["state_window"]

    # PyTorch forward only does .view(bs, P1*P2, W).
    y_symbol3 = y_symbol.reshape(bs, ns, ws)
    y_state3 = y_state.reshape(bs, nt, wt)

    rows = param_slab.shape[0]
    kernel = functools.partial(_fused_forward_kernel, idx=idx, cfg=cfg)

    out = pl.pallas_call(
        kernel,
        out_shape=jax.ShapeDtypeStruct((bs, ns + nt, 1), jnp.float32),
        grid=(bs,),
        in_specs=[
            pl.BlockSpec((1, ns, ws), lambda b: (b, 0, 0)),
            pl.BlockSpec((1, nt, wt), lambda b: (b, 0, 0)),
            # Whole weight slab, constant block index -> fetched once, resident.
            pl.BlockSpec((rows, PACK_WIDTH), lambda b: (0, 0)),
        ],
        out_specs=pl.BlockSpec((1, ns + nt, 1), lambda b: (b, 0, 0)),
        compiler_params=pltpu.CompilerParams(
            # Batch axis is embarrassingly parallel -> split across the two
            # TensorCores on v7x (no effect on single-TC v5e/v6e).
            dimension_semantics=("parallel",),
            vmem_limit_bytes=32 * 1024 * 1024,
        ),
    )(y_symbol3, y_state3, param_slab)
    return jnp.squeeze(out, axis=-1)


# --------------------- parameter creation + host-side packing ----------------

def xavier_uniform(key, shape):
    fan_in, fan_out = shape[0], shape[1]
    lim = (6.0 / (fan_in + fan_out)) ** 0.5
    return jax.random.uniform(key, shape, jnp.float32, -lim, lim)


class KeyGen:
    def __init__(self, key):
        self.key = key

    def __call__(self):
        self.key, sub = jax.random.split(self.key)
        return sub


def build_params(key, cfg):
    """Create all parameters (f32) and pack them into ONE (rows, 128) slab.

    Returns (slab, idx) where idx[name] = (row_offset, rows, cols); every
    param starts at an 8-aligned row so in-kernel static slices stay cheap.
    """
    kg = KeyGen(key)
    d = cfg["d_model"]
    chunks, idx = [], {}
    row = 0

    def add(name, arr):
        nonlocal row
        arr = jnp.asarray(arr, jnp.float32)
        if arr.ndim == 1:
            arr = arr.reshape(1, -1)
        r, c = arr.shape
        # TODO(synk): configs with 4*d_model > 128 would need multi-column
        # packing; not required for this config.
        assert c <= PACK_WIDTH, "param wider than the 128-lane slab"
        pr = -(-r // PACK_SUBLANE) * PACK_SUBLANE
        buf = jnp.zeros((pr, PACK_WIDTH), jnp.float32).at[:r, :c].set(arr)
        chunks.append(buf)
        idx[name] = (row, r, c)
        row += pr

    def add_ln(name, dim):
        add(name + "_g", jnp.ones((dim,), jnp.float32))
        add(name + "_b", jnp.zeros((dim,), jnp.float32))

    def lin(din, dout):
        return xavier_uniform(kg(), (din, dout)), jnp.zeros((dout,), jnp.float32)

    def add_encoder(pfx, heads):
        scale = 1.0 / ((d // heads) ** 0.5)
        add_ln(pfx + "ln1", d)
        wq, bq = lin(d, d); wk, bk = lin(d, d); wv, bv = lin(d, d)
        # Fused QKV; 1/sqrt(dh) folded into the Q projection (f32-equivalent).
        add(pfx + "wqkv", jnp.concatenate([wq * scale, wk, wv], axis=1))
        add(pfx + "bqkv", jnp.concatenate([bq * scale, bk, bv], axis=0))
        wo, bo = lin(d, d); add(pfx + "wo", wo); add(pfx + "bo", bo)
        add_ln(pfx + "ln2", d)
        w1, b1 = lin(d, 4 * d); add(pfx + "ff1_w", w1); add(pfx + "ff1_b", b1)
        w2, b2 = lin(4 * d, d); add(pfx + "ff2_w", w2); add(pfx + "ff2_b", b2)

    def add_cross(pfx, heads):
        scale = 1.0 / ((d // heads) ** 0.5)
        add_ln(pfx + "ln_q", d)
        add_ln(pfx + "ln_kv", d)
        wq, bq = lin(d, d)
        add(pfx + "wq", wq * scale); add(pfx + "bq", bq * scale)
        wk, bk = lin(d, d); wv, bv = lin(d, d)
        add(pfx + "wkv", jnp.concatenate([wk, wv], axis=1))
        add(pfx + "bkv", jnp.concatenate([bk, bv], axis=0))
        wo, bo = lin(d, d); add(pfx + "wo", wo); add(pfx + "bo", bo)
        add_ln(pfx + "ln2", d)
        w1, b1 = lin(d, 4 * d); add(pfx + "ff1_w", w1); add(pfx + "ff1_b", b1)
        w2, b2 = lin(4 * d, d); add(pfx + "ff2_w", w2); add(pfx + "ff2_b", b2)

    def add_patch(pfx, win):
        add_ln(pfx + "ln1", win)
        w, b = lin(win, d); add(pfx + "w", w); add(pfx + "b", b)
        add_ln(pfx + "ln2", d)

    def add_final(pfx):
        add_ln(pfx + "ln", d)
        w, b = lin(d, 1); add(pfx + "w", w); add(pfx + "b", b)

    add_patch("pe_sym_", cfg["symbol_window"])
    add_patch("pe_state_", cfg["state_window"])
    add("bit_pos_embed", xavier_uniform(kg(), (cfg["symbol_n"], d)))
    add("state_pos_embed", xavier_uniform(kg(), (cfg["state_n"], d)))
    for di in range(cfg["N_dec"]):
        for lj in range(cfg["N_dec_symbol"]):
            add_encoder(f"d{di}_s{lj}_", cfg["h_symbol"])
        for lj in range(cfg["N_dec_state"]):
            add_encoder(f"d{di}_t{lj}_", cfg["h_state"])
        for cj in range(cfg["N_dec_cross"]):
            add_cross(f"d{di}_c{cj}_s2t_", cfg["h_symbol_to_state"])
            add_cross(f"d{di}_c{cj}_t2s_", cfg["h_state_to_symbol"])
    add_final("final_sym_")
    add_final("final_state_")

    slab = jnp.concatenate(chunks, axis=0)
    return slab, idx


# ---------------------------------- main -------------------------------------

if __name__ == "__main__":
    cfg = dict(d_model=32, N_dec=2,
               N_dec_symbol=1, h_symbol=4,
               N_dec_state=1, h_state=4,
               h_symbol_to_state=4, h_state_to_symbol=4, N_dec_cross=1,
               symbol_window=16, state_window=16,
               symbol_n=8, state_n=8)

    root = jax.random.PRNGKey(0)
    kp, ks, kt = jax.random.split(root, 3)
    param_slab, idx = build_params(kp, cfg)

    # y_symbol: (B, P1, P2, symbol_window) -> viewed as (B, symbol_n=P1*P2, W)
    y_symbol = jax.random.normal(ks, (2, 2, 4, cfg["symbol_window"]), jnp.float32)
    y_state = jax.random.normal(kt, (2, 2, 4, cfg["state_window"]), jnp.float32)

    fwd = jax.jit(lambda s, a, b: conv_bcjrformer_forward(s, idx, cfg, a, b))
    out = jax.block_until_ready(fwd(param_slab, y_symbol, y_state))

    assert out.shape == (2, cfg["symbol_n"] + cfg["state_n"]), out.shape
    assert bool(jnp.all(jnp.isfinite(out)))
    print("KERNEL_OK")
</pallas_src>

<mosaic_0001>
module attributes {stable_mosaic.version = 11 : i64} {
  func.func @_fused_forward_kernel(%arg0: i32, %arg1: memref<1x8x16xf32, #tpu.memory_space<vmem>>, %arg2: memref<1x8x16xf32, #tpu.memory_space<vmem>>, %arg3: memref<2768x128xf32, #tpu.memory_space<vmem>>, %arg4: memref<1x16x1xf32, #tpu.memory_space<vmem>>) attributes {dimension_semantics = [#tpu.dimension_semantics<parallel>], iteration_bounds = array<i64: 2>, scalar_prefetch = 0 : i64, scratch_operands = 0 : i64, tpu.core_type = #tpu.core_type<tc>, window_params = [{transform_indices = @transform_0, window_bounds = array<i64: 1, 8, 16>}, {transform_indices = @transform_1, window_bounds = array<i64: 1, 8, 16>}, {pipeline_mode = #tpu.pipeline_mode<synchronous>, transform_indices = @transform_2, window_bounds = array<i64: 2768, 128>}, {transform_indices = @transform_3, window_bounds = array<i64: 1, 16, 1>}]} {
    %c0 = arith.constant 0 : index
    %c0_0 = arith.constant 0 : index
    %c0_1 = arith.constant 0 : index
    %0 = vector.load %arg1[%c0, %c0_0, %c0_1] : memref<1x8x16xf32, #tpu.memory_space<vmem>>, vector<1x8x16xf32>
    %1 = vector.shape_cast %0 : vector<1x8x16xf32> to vector<8x16xf32>
    %c0_2 = arith.constant 0 : index
    %c0_3 = arith.constant 0 : index
    %2 = vector.load %arg3[%c0_2, %c0_3] : memref<2768x128xf32, #tpu.memory_space<vmem>>, vector<1x16xf32>
    %c8 = arith.constant 8 : index
    %c0_4 = arith.constant 0 : index
    %3 = vector.load %arg3[%c8, %c0_4] : memref<2768x128xf32, #tpu.memory_space<vmem>>, vector<1x16xf32>
    %cst = arith.constant dense<0.000000e+00> : vector<8xf32>
    %4 = vector.multi_reduction <add>, %1, %cst [1] : vector<8x16xf32> to vector<8xf32>
    %5 = vector.shape_cast %4 : vector<8xf32> to vector<8x1xf32>
    %cst_5 = arith.constant 1.600000e+01 : f32
    %6 = vector.broadcast %cst_5 : f32 to vector<8x1xf32>
    %7 = arith.divf %5, %6 : vector<8x1xf32>
    %8 = arith.mulf %1, %1 : vector<8x16xf32>
    %cst_6 = arith.constant dense<0.000000e+00> : vector<8xf32>
    %9 = vector.multi_reduction <add>, %8, %cst_6 [1] : vector<8x16xf32> to vector<8xf32>
    %10 = vector.shape_cast %9 : vector<8xf32> to vector<8x1xf32>
    %cst_7 = arith.constant 1.600000e+01 : f32
    %11 = vector.broadcast %cst_7 : f32 to vector<8x1xf32>
    %12 = arith.divf %10, %11 : vector<8x1xf32>
    %13 = arith.mulf %7, %7 : vector<8x1xf32>
    %14 = arith.subf %12, %13 : vector<8x1xf32>
    %15 = vector.broadcast %7 : vector<8x1xf32> to vector<8x16xf32>
    %16 = arith.subf %1, %15 : vector<8x16xf32>
    %cst_8 = arith.constant 9.99999974E-6 : f32
    %17 = vector.broadcast %cst_8 : f32 to vector<8x1xf32>
    %18 = arith.addf %14, %17 : vector<8x1xf32>
    %19 = math.rsqrt %18 : vector<8x1xf32>
    %20 = vector.broadcast %19 : vector<8x1xf32> to vector<8x16xf32>
    %21 = arith.mulf %16, %20 : vector<8x16xf32>
    %22 = vector.broadcast %2 : vector<1x16xf32> to vector<8x16xf32>
    %23 = arith.mulf %21, %22 : vector<8x16xf32>
    %24 = vector.broadcast %3 : vector<1x16xf32> to vector<8x16xf32>
    %25 = arith.addf %23, %24 : vector<8x16xf32>
    %c16 = arith.constant 16 : index
    %c0_9 = arith.constant 0 : index
    %26 = vector.load %arg3[%c16, %c0_9] : memref<2768x128xf32, #tpu.memory_space<vmem>>, vector<16x32xf32>
    %c32 = arith.constant 32 : index
    %c0_10 = arith.constant 0 : index
    %27 = vector.load %arg3[%c32, %c0_10] : memref<2768x128xf32, #tpu.memory_space<vmem>>, vector<1x32xf32>
    %cst_11 = arith.constant dense<0.000000e+00> : vector<8x32xf32>
    %28 = tpu.matmul %25, %26, %cst_11 {dimension_numbers = #tpu.dot_dimension_numbers<[1], [0], [0], [1], [0, 0, 1, 1], [], []>} : vector<8x16xf32>, vector<16x32xf32>, vector<8x32xf32> -> vector<8x32xf32>
    %29 = vector.broadcast %27 : vector<1x32xf32> to vector<8x32xf32>
    %30 = arith.addf %28, %29 : vector<8x32xf32>
    %c40 = arith.constant 40 : index
    %c0_12 = arith.constant 0 : index
    %31 = vector.load %arg3[%c40, %c0_12] : memref<2768x128xf32, #tpu.memory_space<vmem>>, vector<1x32xf32>
    %c48 = arith.constant 48 : index
    %c0_13 = arith.constant 0 : index
    %32 = vector.load %arg3[%c48, %c0_13] : memref<2768x128xf32, #tpu.memory_space<vmem>>, vector<1x32xf32>
    %cst_14 = arith.constant dense<0.000000e+00> : vector<8xf32>
    %33 = vector.multi_reduction <add>, %30, %cst_14 [1] : vector<8x32xf32> to vector<8xf32>
    %34 = vector.shape_cast %33 : vector<8xf32> to vector<8x1xf32>
    %cst_15 = arith.constant 3.200000e+01 : f32
    %35 = vector.broadcast %cst_15 : f32 to vector<8x1xf32>
    %36 = arith.divf %34, %35 : vector<8x1xf32>
    %37 = arith.mulf %30, %30 : vector<8x32xf32>
    %cst_16 = arith.constant dense<0.000000e+00> : vector<8xf32>
    %38 = vector.multi_reduction <add>, %37, %cst_16 [1] : vector<8x32xf32> to vector<8xf32>
    %39 = vector.shape_cast %38 : vector<8xf32> to vector<8x1xf32>
    %cst_17 = arith.constant 3.200000e+01 : f32
    %40 = vector.broadcast %cst_17 : f32 to vector<8x1xf32>
    %41 = arith.divf %39, %40 : vector<8x1xf32>
    %42 = arith.mulf %36, %36 : vector<8x1xf32>
    %43 = arith.subf %41, %42 : vector<8x1xf32>
    %44 = vector.broadcast %36 : vector<8x1xf32> to vector<8x32xf32>
    %45 = arith.subf %30, %44 : vector<8x32xf32>
    %cst_18 = arith.constant 9.99999974E-6 : f32
    %46 = vector.broadcast %cst_18 : f32 to vector<8x1xf32>
    %47 = arith.addf %43, %46 : vector<8x1xf32>
    %48 = math.rsqrt %47 : vector<8x1xf32>
    %49 = vector.broadcast %48 : vector<8x1xf32> to vector<8x32xf32>
    %50 = arith.mulf %45, %49 : vector<8x32xf32>
    %51 = vector.broadcast %31 : vector<1x32xf32> to vector<8x32xf32>
    %52 = arith.mulf %50, %51 : vector<8x32xf32>
    %53 = vector.broadcast %32 : vector<1x32xf32> to vector<8x32xf32>
    %54 = arith.addf %52, %53 : vector<8x32xf32>
    %c112 = arith.constant 112 : index
    %c0_19 = arith.constant 0 : index
    %55 = vector.load %arg3[%c112, %c0_19] : memref<2768x128xf32, #tpu.memory_space<vmem>>, vector<8x32xf32>
    %56 = arith.addf %54, %55 : vector<8x32xf32>
    %c0_20 = arith.constant 0 : index
    %c0_21 = arith.constant 0 : index
    %c0_22 = arith.constant 0 : index
    %57 = vector.load %arg2[%c0_20, %c0_21, %c0_22] : memref<1x8x16xf32, #tpu.memory_space<vmem>>, vector<1x8x16xf32>
    %58 = vector.shape_cast %57 : vector<1x8x16xf32> to vector<8x16xf32>
    %c56 = arith.constant 56 : index
    %c0_23 = arith.constant 0 : index
    %59 = vector.load %arg3[%c56, %c0_23] : memref<2768x128xf32, #tpu.memory_space<vmem>>, vector<1x16xf32>
    %c64 = arith.constant 64 : index
    %c0_24 = arith.constant 0 : index
    %60 = vector.load %arg3[%c64, %c0_24] : memref<2768x128xf32, #tpu.memory_space<vmem>>, vector<1x16xf32>
    %cst_25 = arith.constant dense<0.000000e+00> : vector<8xf32>
    %61 = vector.multi_reduction <add>, %58, %cst_25 [1] : vector<8x16xf32> to vector<8xf32>
    %62 = vector.shape_cast %61 : vector<8xf32> to vector<8x1xf32>
    %cst_26 = arith.constant 1.600000e+01 : f32
    %63 = vector.broadcast %cst_26 : f32 to vector<8x1xf32>
    %64 = arith.divf %62, %63 : vector<8x1xf32>
    %65 = arith.mulf %58, %58 : vector<8x16xf32>
    %cst_27 = arith.constant dense<0.000000e+00> : vector<8xf32>
    %66 = vector.multi_reduction <add>, %65, %cst_27 [1] : vector<8x16xf32> to vector<8xf32>
    %67 = vector.shape_cast %66 : vector<8xf32> to vector<8x1xf32>
    %cst_28 = arith.constant 1.600000e+01 : f32
    %68 = vector.broadcast %cst_28 : f32 to vector<8x1xf32>
    %69 = arith.divf %67, %68 : vector<8x1xf32>
    %70 = arith.mulf %64, %64 : vector<8x1xf32>
    %71 = arith.subf %69, %70 : vector<8x1xf32>
    %72 = vector.broadcast %64 : vector<8x1xf32> to vector<8x16xf32>
    %73 = arith.subf %58, %72 : vector<8x16xf32>
    %cst_29 = arith.constant 9.99999974E-6 : f32
    %74 = vector.broadcast %cst_29 : f32 to vector<8x1xf32>
    %75 = arith.addf %71, %74 : vector<8x1xf32>
    %76 = math.rsqrt %75 : vector<8x1xf32>
    %77 = vector.broadcast %76 : vector<8x1xf32> to vector<8x16xf32>
    %78 = arith.mulf %73, %77 : vector<8x16xf32>
    %79 = vector.broadcast %59 : vector<1x16xf32> to vector<8x16xf32>
    %80 = arith.mulf %78, %79 : vector<8x16xf32>
    %81 = vector.broadcast %60 : vector<1x16xf32> to vector<8x16xf32>
    %82 = arith.addf %80, %81 : vector<8x16xf32>
    %c72 = arith.constant 72 : index
    %c0_30 = arith.constant 0 : index
    %83 = vector.load %arg3[%c72, %c0_30] : memref<2768x128xf32, #tpu.memory_space<vmem>>, vector<16x32xf32>
    %c88 = arith.constant 88 : index
    %c0_31 = arith.constant 0 : index
    %84 = vector.load %arg3[%c88, %c0_31] : memref<2768x128xf32, #tpu.memory_space<vmem>>, vector<1x32xf32>
    %cst_32 = arith.constant dense<0.000000e+00> : vector<8x32xf32>
    %85 = tpu.matmul %82, %83, %cst_32 {dimension_numbers = #tpu.dot_dimension_numbers<[1], [0], [0], [1], [0, 0, 1, 1], [], []>} : vector<8x16xf32>, vector<16x32xf32>, vector<8x32xf32> -> vector<8x32xf32>
    %86 = vector.broadcast %84 : vector<1x32xf32> to vector<8x32xf32>
    %87 = arith.addf %85, %86 : vector<8x32xf32>
    %c96 = arith.constant 96 : index
    %c0_33 = arith.constant 0 : index
    %88 = vector.load %arg3[%c96, %c0_33] : memref<2768x128xf32, #tpu.memory_space<vmem>>, vector<1x32xf32>
    %c104 = arith.constant 104 : index
    %c0_34 = arith.constant 0 : index
    %89 = vector.load %arg3[%c104, %c0_34] : memref<2768x128xf32, #tpu.memory_space<vmem>>, vector<1x32xf32>
    %cst_35 = arith.constant dense<0.000000e+00> : vector<8xf32>
    %90 = vector.multi_reduction <add>, %87, %cst_35 [1] : vector<8x32xf32> to vector<8xf32>
    %91 = vector.shape_cast %90 : vector<8xf32> to vector<8x1xf32>
    %cst_36 = arith.constant 3.200000e+01 : f32
    %92 = vector.broadcast %cst_36 : f32 to vector<8x1xf32>
    %93 = arith.divf %91, %92 : vector<8x1xf32>
    %94 = arith.mulf %87, %87 : vector<8x32xf32>
    %cst_37 = arith.constant dense<0.000000e+00> : vector<8xf32>
    %95 = vector.multi_reduction <add>, %94, %cst_37 [1] : vector<8x32xf32> to vector<8xf32>
    %96 = vector.shape_cast %95 : vector<8xf32> to vector<8x1xf32>
    %cst_38 = arith.constant 3.200000e+01 : f32
    %97 = vector.broadcast %cst_38 : f32 to vector<8x1xf32>
    %98 = arith.divf %96, %97 : vector<8x1xf32>
    %99 = arith.mulf %93, %93 : vector<8x1xf32>
    %100 = arith.subf %98, %99 : vector<8x1xf32>
    %101 = vector.broadcast %93 : vector<8x1xf32> to vector<8x32xf32>
    %102 = arith.subf %87, %101 : vector<8x32xf32>
    %cst_39 = arith.constant 9.99999974E-6 : f32
    %103 = vector.broadcast %cst_39 : f32 to vector<8x1xf32>
    %104 = arith.addf %100, %103 : vector<8x1xf32>
    %105 = math.rsqrt %104 : vector<8x1xf32>
    %106 = vector.broadcast %105 : vector<8x1xf32> to vector<8x32xf32>
    %107 = arith.mulf %102, %106 : vector<8x32xf32>
    %108 = vector.broadcast %88 : vector<1x32xf32> to vector<8x32xf32>
    %109 = arith.mulf %107, %108 : vector<8x32xf32>
    %110 = vector.broadcast %89 : vector<1x32xf32> to vector<8x32xf32>
    %111 = arith.addf %109, %110 : vector<8x32xf32>
    %c120 = arith.constant 120 : index
    %c0_40 = arith.constant 0 : index
    %112 = vector.load %arg3[%c120, %c0_40] : memref<2768x128xf32, #tpu.memory_space<vmem>>, vector<8x32xf32>
    %113 = arith.addf %111, %112 : vector<8x32xf32>
    %c128 = arith.constant 128 : index
    %c0_41 = arith.constant 0 : index
    %114 = vector.load %arg3[%c128, %c0_41] : memref<2768x128xf32, #tpu.memory_space<vmem>>, vector<1x32xf32>
    %c136 = arith.constant 136 : index
    %c0_42 = arith.constant 0 : index
    %115 = vector.load %arg3[%c136, %c0_42] : memref<2768x128xf32, #tpu.memory_space<vmem>>, vector<1x32xf32>
    %cst_43 = arith.constant dense<0.000000e+00> : vector<8xf32>
    %116 = vector.multi_reduction <add>, %56, %cst_43 [1] : vector<8x32xf32> to vector<8xf32>
    %117 = vector.shape_cast %116 : vector<8xf32> to vector<8x1xf32>
    %cst_44 = arith.constant 3.200000e+01 : f32
    %118 = vector.broadcast %cst_44 : f32 to vector<8x1xf32>
    %119 = arith.divf %117, %118 : vector<8x1xf32>
    %120 = arith.mulf %56, %56 : vector<8x32xf32>
    %cst_45 = arith.constant dense<0.000000e+00> : vector<8xf32>
    %121 = vector.multi_reduction <add>, %120, %cst_45 [1] : vector<8x32xf32> to vector<8xf32>
    %122 = vector.shape_cast %121 : vector<8xf32> to vector<8x1xf32>
    %cst_46 = arith.constant 3.200000e+01 : f32
    %123 = vector.broadcast %cst_46 : f32 to vector<8x1xf32>
    %124 = arith.divf %122, %123 : vector<8x1xf32>
    %125 = arith.mulf %119, %119 : vector<8x1xf32>
    %126 = arith.subf %124, %125 : vector<8x1xf32>
    %127 = vector.broadcast %119 : vector<8x1xf32> to vector<8x32xf32>
    %128 = arith.subf %56, %127 : vector<8x32xf32>
    %cst_47 = arith.constant 9.99999974E-6 : f32
    %129 = vector.broadcast %cst_47 : f32 to vector<8x1xf32>
    %130 = arith.addf %126, %129 : vector<8x1xf32>
    %131 = math.rsqrt %130 : vector<8x1xf32>
    %132 = vector.broadcast %131 : vector<8x1xf32> to vector<8x32xf32>
    %133 = arith.mulf %128, %132 : vector<8x32xf32>
    %134 = vector.broadcast %114 : vector<1x32xf32> to vector<8x32xf32>
    %135 = arith.mulf %133, %134 : vector<8x32xf32>
    %136 = vector.broadcast %115 : vector<1x32xf32> to vector<8x32xf32>
    %137 = arith.addf %135, %136 : vector<8x32xf32>
    %c144 = arith.constant 144 : index
    %c0_48 = arith.constant 0 : index
    %138 = vector.load %arg3[%c144, %c0_48] : memref<2768x128xf32, #tpu.memory_space<vmem>>, vector<32x96xf32>
    %c176 = arith.constant 176 : index
    %c0_49 = arith.constant 0 : index
    %139 = vector.load %arg3[%c176, %c0_49] : memref<2768x128xf32, #tpu.memory_space<vmem>>, vector<1x96xf32>
    %cst_50 = arith.constant dense<0.000000e+00> : vector<8x96xf32>
    %140 = tpu.matmul %137, %138, %cst_50 {dimension_numbers = #tpu.dot_dimension_numbers<[1], [0], [0], [1], [0, 0, 1, 1], [], []>} : vector<8x32xf32>, vector<32x96xf32>, vector<8x96xf32> -> vector<8x96xf32>
    %141 = vector.broadcast %139 : vector<1x96xf32> to vector<8x96xf32>
    %142 = arith.addf %140, %141 : vector<8x96xf32>
    %143 = vector.extract_strided_slice %142 {offsets = [0, 0], sizes = [8, 32], strides = [1, 1]} : vector<8x96xf32> to vector<8x32xf32>
    %144 = vector.extract_strided_slice %142 {offsets = [0, 32], sizes = [8, 32], strides = [1, 1]} : vector<8x96xf32> to vector<8x32xf32>
    %145 = vector.extract_strided_slice %142 {offsets = [0, 64], sizes = [8, 32], strides = [1, 1]} : vector<8x96xf32> to vector<8x32xf32>
    %146 = tpu.iota {dimensions = array<i32: 1>} : vector<1x32xi32>
    %c0_i32 = arith.constant 0 : i32
    %147 = vector.broadcast %c0_i32 : i32 to vector<1x32xi32>
    %148 = arith.cmpi sge, %146, %147 : vector<1x32xi32>
    %c8_i32 = arith.constant 8 : i32
    %149 = vector.broadcast %c8_i32 : i32 to vector<1x32xi32>
    %150 = arith.cmpi slt, %146, %149 : vector<1x32xi32>
    %151 = arith.andi %148, %150 : vector<1x32xi1>
    %152 = arith.extui %151 : vector<1x32xi1> to vector<1x32xi32>
    %153 = arith.sitofp %152 : vector<1x32xi32> to vector<1x32xf32>
    %154 = vector.broadcast %153 : vector<1x32xf32> to vector<8x32xf32>
    %155 = arith.mulf %143, %154 : vector<8x32xf32>
    %cst_51 = arith.constant dense<0.000000e+00> : vector<8x8xf32>
    %156 = tpu.matmul %155, %144, %cst_51 {dimension_numbers = #tpu.dot_dimension_numbers<[1], [1], [0], [0], [0, 0, 1, 0], [], []>} : vector<8x32xf32>, vector<8x32xf32>, vector<8x8xf32> -> vector<8x8xf32>
    %cst_52 = arith.constant dense<0xFF800000> : vector<8xf32>
    %157 = vector.multi_reduction <maximumf>, %156, %cst_52 [1] : vector<8x8xf32> to vector<8xf32>
    %158 = vector.shape_cast %157 : vector<8xf32> to vector<8x1xf32>
    %159 = vector.broadcast %158 : vector<8x1xf32> to vector<8x8xf32>
    %160 = arith.subf %156, %159 : vector<8x8xf32>
    %161 = math.exp %160 : vector<8x8xf32>
    %cst_53 = arith.constant dense<0.000000e+00> : vector<8xf32>
    %162 = vector.multi_reduction <add>, %161, %cst_53 [1] : vector<8x8xf32> to vector<8xf32>
    %163 = vector.shape_cast %162 : vector<8xf32> to vector<8x1xf32>
    %164 = tpu.reciprocal %163 {approx = true} : vector<8x1xf32> -> vector<8x1xf32>
    %165 = vector.broadcast %164 : vector<8x1xf32> to vector<8x8xf32>
    %166 = arith.mulf %161, %165 : vector<8x8xf32>
    %167 = vector.broadcast %153 : vector<1x32xf32> to vector<8x32xf32>
    %168 = arith.mulf %145, %167 : vector<8x32xf32>
    %cst_54 = arith.constant dense<0.000000e+00> : vector<8x32xf32>
    %169 = tpu.matmul %166, %168, %cst_54 {dimension_numbers = #tpu.dot_dimension_numbers<[1], [0], [0], [1], [0, 0, 1, 1], [], []>} : vector<8x8xf32>, vector<8x32xf32>, vector<8x32xf32> -> vector<8x32xf32>
    %c8_i32_55 = arith.constant 8 : i32
    %170 = vector.broadcast %c8_i32_55 : i32 to vector<1x32xi32>
    %171 = arith.cmpi sge, %146, %170 : vector<1x32xi32>
    %c16_i32 = arith.constant 16 : i32
    %172 = vector.broadcast %c16_i32 : i32 to vector<1x32xi32>
    %173 = arith.cmpi slt, %146, %172 : vector<1x32xi32>
    %174 = arith.andi %171, %173 : vector<1x32xi1>
    %175 = arith.extui %174 : vector<1x32xi1> to vector<1x32xi32>
    %176 = arith.sitofp %175 : vector<1x32xi32> to vector<1x32xf32>
    %177 = vector.broadcast %176 : vector<1x32xf32> to vector<8x32xf32>
    %178 = arith.mulf %143, %177 : vector<8x32xf32>
    %cst_56 = arith.constant dense<0.000000e+00> : vector<8x8xf32>
    %179 = tpu.matmul %178, %144, %cst_56 {dimension_numbers = #tpu.dot_dimension_numbers<[1], [1], [0], [0], [0, 0, 1, 0], [], []>} : vector<8x32xf32>, vector<8x32xf32>, vector<8x8xf32> -> vector<8x8xf32>
    %cst_57 = arith.constant dense<0xFF800000> : vector<8xf32>
    %180 = vector.multi_reduction <maximumf>, %179, %cst_57 [1] : vector<8x8xf32> to vector<8xf32>
    %181 = vector.shape_cast %180 : vector<8xf32> to vector<8x1xf32>
    %182 = vector.broadcast %181 : vector<8x1xf32> to vector<8x8xf32>
    %183 = arith.subf %179, %182 : vector<8x8xf32>
    %184 = math.exp %183 : vector<8x8xf32>
    %cst_58 = arith.constant dense<0.000000e+00> : vector<8xf32>
    %185 = vector.multi_reduction <add>, %184, %cst_58 [1] : vector<8x8xf32> to vector<8xf32>
    %186 = vector.shape_cast %185 : vector<8xf32> to vector<8x1xf32>
    %187 = tpu.reciprocal %186 {approx = true} : vector<8x1xf32> -> vector<8x1xf32>
    %188 = vector.broadcast %187 : vector<8x1xf32> to vector<8x8xf32>
    %189 = arith.mulf %184, %188 : vector<8x8xf32>
    %190 = vector.broadcast %176 : vector<1x32xf32> to vector<8x32xf32>
    %191 = arith.mulf %145, %190 : vector<8x32xf32>
    %cst_59 = arith.constant dense<0.000000e+00> : vector<8x32xf32>
    %192 = tpu.matmul %189, %191, %cst_59 {dimension_numbers = #tpu.dot_dimension_numbers<[1], [0], [0], [1], [0, 0, 1, 1], [], []>} : vector<8x8xf32>, vector<8x32xf32>, vector<8x32xf32> -> vector<8x32xf32>
    %193 = arith.addf %169, %192 : vector<8x32xf32>
    %c16_i32_60 = arith.constant 16 : i32
    %194 = vector.broadcast %c16_i32_60 : i32 to vector<1x32xi32>
    %195 = arith.cmpi sge, %146, %194 : vector<1x32xi32>
    %c24_i32 = arith.constant 24 : i32
    %196 = vector.broadcast %c24_i32 : i32 to vector<1x32xi32>
    %197 = arith.cmpi slt, %146, %196 : vector<1x32xi32>
    %198 = arith.andi %195, %197 : vector<1x32xi1>
    %199 = arith.extui %198 : vector<1x32xi1> to vector<1x32xi32>
    %200 = arith.sitofp %199 : vector<1x32xi32> to vector<1x32xf32>
    %201 = vector.broadcast %200 : vector<1x32xf32> to vector<8x32xf32>
    %202 = arith.mulf %143, %201 : vector<8x32xf32>
    %cst_61 = arith.constant dense<0.000000e+00> : vector<8x8xf32>
    %203 = tpu.matmul %202, %144, %cst_61 {dimension_numbers = #tpu.dot_dimension_numbers<[1], [1], [0], [0], [0, 0, 1, 0], [], []>} : vector<8x32xf32>, vector<8x32xf32>, vector<8x8xf32> -> vector<8x8xf32>
    %cst_62 = arith.constant dense<0xFF800000> : vector<8xf32>
    %204 = vector.multi_reduction <maximumf>, %203, %cst_62 [1] : vector<8x8xf32> to vector<8xf32>
    %205 = vector.shape_cast %204 : vector<8xf32> to vector<8x1xf32>
    %206 = vector.broadcast %205 : vector<8x1xf32> to vector<8x8xf32>
    %207 = arith.subf %203, %206 : vector<8x8xf32>
    %208 = math.exp %207 : vector<8x8xf32>
    %cst_63 = arith.constant dense<0.000000e+00> : vector<8xf32>
    %209 = vector.multi_reduction <add>, %208, %cst_63 [1] : vector<8x8xf32> to vector<8xf32>
    %210 = vector.shape_cast %209 : vector<8xf32> to vector<8x1xf32>
    %211 = tpu.reciprocal %210 {approx = true} : vector<8x1xf32> -> vector<8x1xf32>
    %212 = vector.broadcast %211 : vector<8x1xf32> to vector<8x8xf32>
    %213 = arith.mulf %208, %212 : vector<8x8xf32>
    %214 = vector.broadcast %200 : vector<1x32xf32> to vector<8x32xf32>
    %215 = arith.mulf %145, %214 : vector<8x32xf32>
    %cst_64 = arith.constant dense<0.000000e+00> : vector<8x32xf32>
    %216 = tpu.matmul %213, %215, %cst_64 {dimension_numbers = #tpu.dot_dimension_numbers<[1], [0], [0], [1], [0, 0, 1, 1], [], []>} : vector<8x8xf32>, vector<8x32xf32>, vector<8x32xf32> -> vector<8x32xf32>
    %217 = arith.addf %193, %216 : vector<8x32xf32>
    %c24_i32_65 = arith.constant 24 : i32
    %218 = vector.broadcast %c24_i32_65 : i32 to vector<1x32xi32>
    %219 = arith.cmpi sge, %146, %218 : vector<1x32xi32>
    %c32_i32 = arith.constant 32 : i32
    %220 = vector.broadcast %c32_i32 : i32 to vector<1x32xi32>
    %221 = arith.cmpi slt, %146, %220 : vector<1x32xi32>
    %222 = arith.andi %219, %221 : vector<1x32xi1>
    %223 = arith.extui %222 : vector<1x32xi1> to vector<1x32xi32>
    %224 = arith.sitofp %223 : vector<1x32xi32> to vector<1x32xf32>
    %225 = vector.broadcast %224 : vector<1x32xf32> to vector<8x32xf32>
    %226 = arith.mulf %143, %225 : vector<8x32xf32>
    %cst_66 = arith.constant dense<0.000000e+00> : vector<8x8xf32>
    %227 = tpu.matmul %226, %144, %cst_66 {dimension_numbers = #tpu.dot_dimension_numbers<[1], [1], [0], [0], [0, 0, 1, 0], [], []>} : vector<8x32xf32>, vector<8x32xf32>, vector<8x8xf32> -> vector<8x8xf32>
    %cst_67 = arith.constant dense<0xFF800000> : vector<8xf32>
    %228 = vector.multi_reduction <maximumf>, %227, %cst_67 [1] : vector<8x8xf32> to vector<8xf32>
    %229 = vector.shape_cast %228 : vector<8xf32> to vector<8x1xf32>
    %230 = vector.broadcast %229 : vector<8x1xf32> to vector<8x8xf32>
    %231 = arith.subf %227, %230 : vector<8x8xf32>
    %232 = math.exp %231 : vector<8x8xf32>
    %cst_68 = arith.constant dense<0.000000e+00> : vector<8xf32>
    %233 = vector.multi_reduction <add>, %232, %cst_68 [1] : vector<8x8xf32> to vector<8xf32>
    %234 = vector.shape_cast %233 : vector<8xf32> to vector<8x1xf32>
    %235 = tpu.reciprocal %234 {approx = true} : vector<8x1xf32> -> vector<8x1xf32>
    %236 = vector.broadcast %235 : vector<8x1xf32> to vector<8x8xf32>
    %237 = arith.mulf %232, %236 : vector<8x8xf32>
    %238 = vector.broadcast %224 : vector<1x32xf32> to vector<8x32xf32>
    %239 = arith.mulf %145, %238 : vector<8x32xf32>
    %cst_69 = arith.constant dense<0.000000e+00> : vector<8x32xf32>
    %240 = tpu.matmul %237, %239, %cst_69 {dimension_numbers = #tpu.dot_dimension_numbers<[1], [0], [0], [1], [0, 0, 1, 1], [], []>} : vector<8x8xf32>, vector<8x32xf32>, vector<8x32xf32> -> vector<8x32xf32>
    %241 = arith.addf %217, %240 : vector<8x32xf32>
    %c184 = arith.constant 184 : index
    %c0_70 = arith.constant 0 : index
    %242 = vector.load %arg3[%c184, %c0_70] : memref<2768x128xf32, #tpu.memory_space<vmem>>, vector<32x32xf32>
    %c216 = arith.constant 216 : index
    %c0_71 = arith.constant 0 : index
    %243 = vector.load %arg3[%c216, %c0_71] : memref<2768x128xf32, #tpu.memory_space<vmem>>, vector<1x32xf32>
    %cst_72 = arith.constant dense<0.000000e+00> : vector<8x32xf32>
    %244 = tpu.matmul %241, %242, %cst_72 {dimension_numbers = #tpu.dot_dimension_numbers<[1], [0], [0], [1], [0, 0, 1, 1], [], []>} : vector<8x32xf32>, vector<32x32xf32>, vector<8x32xf32> -> vector<8x32xf32>
    %245 = vector.broadcast %243 : vector<1x32xf32> to vector<8x32xf32>
    %246 = arith.addf %244, %245 : vector<8x32xf32>
    %247 = arith.addf %56, %246 : vector<8x32xf32>
    %c224 = arith.constant 224 : index
    %c0_73 = arith.constant 0 : index
    %248 = vector.load %arg3[%c224, %c0_73] : memref<2768x128xf32, #tpu.memory_space<vmem>>, vector<1x32xf32>
    %c232 = arith.constant 232 : index
    %c0_74 = arith.constant 0 : index
    %249 = vector.load %arg3[%c232, %c0_74] : memref<2768x128xf32, #tpu.memory_space<vmem>>, vector<1x32xf32>
    %cst_75 = arith.constant dense<0.000000e+00> : vector<8xf32>
    %250 = vector.multi_reduction <add>, %247, %cst_75 [1] : vector<8x32xf32> to vector<8xf32>
    %251 = vector.shape_cast %250 : vector<8xf32> to vector<8x1xf32>
    %cst_76 = arith.constant 3.200000e+01 : f32
    %252 = vector.broadcast %cst_76 : f32 to vector<8x1xf32>
    %253 = arith.divf %251, %252 : vector<8x1xf32>
    %254 = arith.mulf %247, %247 : vector<8x32xf32>
    %cst_77 = arith.constant dense<0.000000e+00> : vector<8xf32>
    %255 = vector.multi_reduction <add>, %254, %cst_77 [1] : vector<8x32xf32> to vector<8xf32>
    %256 = vector.shape_cast %255 : vector<8xf32> to vector<8x1xf32>
    %cst_78 = arith.constant 3.200000e+01 : f32
    %257 = vector.broadcast %cst_78 : f32 to vector<8x1xf32>
    %258 = arith.divf %256, %257 : vector<8x1xf32>
    %259 = arith.mulf %253, %253 : vector<8x1xf32>
    %260 = arith.subf %258, %259 : vector<8x1xf32>
    %261 = vector.broadcast %253 : vector<8x1xf32> to vector<8x32xf32>
    %262 = arith.subf %247, %261 : vector<8x32xf32>
    %cst_79 = arith.constant 9.99999974E-6 : f32
    %263 = vector.broadcast %cst_79 : f32 to vector<8x1xf32>
    %264 = arith.addf %260, %263 : vector<8x1xf32>
    %265 = math.rsqrt %264 : vector<8x1xf32>
    %266 = vector.broadcast %265 : vector<8x1xf32> to vector<8x32xf32>
    %267 = arith.mulf %262, %266 : vector<8x32xf32>
    %268 = vector.broadcast %248 : vector<1x32xf32> to vector<8x32xf32>
    %269 = arith.mulf %267, %268 : vector<8x32xf32>
    %270 = vector.broadcast %249 : vector<1x32xf32> to vector<8x32xf32>
    %271 = arith.addf %269, %270 : vector<8x32xf32>
    %c240 = arith.constant 240 : index
    %c0_80 = arith.constant 0 : index
    %272 = vector.load %arg3[%c240, %c0_80] : memref<2768x128xf32, #tpu.memory_space<vmem>>, vector<32x128xf32>
    %c272 = arith.constant 272 : index
    %c0_81 = arith.constant 0 : index
    %273 = vector.load %arg3[%c272, %c0_81] : memref<2768x128xf32, #tpu.memory_space<vmem>>, vector<1x128xf32>
    %cst_82 = arith.constant dense<0.000000e+00> : vector<8x128xf32>
    %274 = tpu.matmul %271, %272, %cst_82 {dimension_numbers = #tpu.dot_dimension_numbers<[1], [0], [0], [1], [0, 0, 1, 1], [], []>} : vector<8x32xf32>, vector<32x128xf32>, vector<8x128xf32> -> vector<8x128xf32>
    %275 = vector.broadcast %273 : vector<1x128xf32> to vector<8x128xf32>
    %276 = arith.addf %274, %275 : vector<8x128xf32>
    %277 = arith.mulf %276, %276 : vector<8x128xf32>
    %278 = arith.mulf %276, %277 : vector<8x128xf32>
    %cst_83 = arith.constant 4.471500e-02 : f32
    %279 = vector.broadcast %cst_83 : f32 to vector<8x128xf32>
    %280 = arith.mulf %279, %278 : vector<8x128xf32>
    %281 = arith.addf %276, %280 : vector<8x128xf32>
    %cst_84 = arith.constant 0.797884583 : f32
    %282 = vector.broadcast %cst_84 : f32 to vector<8x128xf32>
    %283 = arith.mulf %282, %281 : vector<8x128xf32>
    %284 = math.tanh %283 : vector<8x128xf32>
    %cst_85 = arith.constant 1.000000e+00 : f32
    %285 = vector.broadcast %cst_85 : f32 to vector<8x128xf32>
    %286 = arith.addf %285, %284 : vector<8x128xf32>
    %cst_86 = arith.constant 5.000000e-01 : f32
    %287 = vector.broadcast %cst_86 : f32 to vector<8x128xf32>
    %288 = arith.mulf %287, %286 : vector<8x128xf32>
    %289 = arith.mulf %276, %288 : vector<8x128xf32>
    %c280 = arith.constant 280 : index
    %c0_87 = arith.constant 0 : index
    %290 = vector.load %arg3[%c280, %c0_87] : memref<2768x128xf32, #tpu.memory_space<vmem>>, vector<128x32xf32>
    %c408 = arith.constant 408 : index
    %c0_88 = arith.constant 0 : index
    %291 = vector.load %arg3[%c408, %c0_88] : memref<2768x128xf32, #tpu.memory_space<vmem>>, vector<1x32xf32>
    %cst_89 = arith.constant dense<0.000000e+00> : vector<8x32xf32>
    %292 = tpu.matmul %289, %290, %cst_89 {dimension_numbers = #tpu.dot_dimension_numbers<[1], [0], [0], [1], [0, 0, 1, 1], [], []>} : vector<8x128xf32>, vector<128x32xf32>, vector<8x32xf32> -> vector<8x32xf32>
    %293 = vector.broadcast %291 : vector<1x32xf32> to vector<8x32xf32>
    %294 = arith.addf %292, %293 : vector<8x32xf32>
    %295 = arith.addf %247, %294 : vector<8x32xf32>
    %c416 = arith.constant 416 : index
    %c0_90 = arith.constant 0 : index
    %296 = vector.load %arg3[%c416, %c0_90] : memref<2768x128xf32, #tpu.memory_space<vmem>>, vector<1x32xf32>
    %c424 = arith.constant 424 : index
    %c0_91 = arith.constant 0 : index
    %297 = vector.load %arg3[%c424, %c0_91] : memref<2768x128xf32, #tpu.memory_space<vmem>>, vector<1x32xf32>
    %cst_92 = arith.constant dense<0.000000e+00> : vector<8xf32>
    %298 = vector.multi_reduction <add>, %113, %cst_92 [1] : vector<8x32xf32> to vector<8xf32>
    %299 = vector.shape_cast %298 : vector<8xf32> to vector<8x1xf32>
    %cst_93 = arith.constant 3.200000e+01 : f32
    %300 = vector.broadcast %cst_93 : f32 to vector<8x1xf32>
    %301 = arith.divf %299, %300 : vector<8x1xf32>
    %302 = arith.mulf %113, %113 : vector<8x32xf32>
    %cst_94 = arith.constant dense<0.000000e+00> : vector<8xf32>
    %303 = vector.multi_reduction <add>, %302, %cst_94 [1] : vector<8x32xf32> to vector<8xf32>
    %304 = vector.shape_cast %303 : vector<8xf32> to vector<8x1xf32>
    %cst_95 = arith.constant 3.200000e+01 : f32
    %305 = vector.broadcast %cst_95 : f32 to vector<8x1xf32>
    %306 = arith.divf %304, %305 : vector<8x1xf32>
    %307 = arith.mulf %301, %301 : vector<8x1xf32>
    %308 = arith.subf %306, %307 : vector<8x1xf32>
    %309 = vector.broadcast %301 : vector<8x1xf32> to vector<8x32xf32>
    %310 = arith.subf %113, %309 : vector<8x32xf32>
    %cst_96 = arith.constant 9.99999974E-6 : f32
    %311 = vector.broadcast %cst_96 : f32 to vector<8x1xf32>
    %312 = arith.addf %308, %311 : vector<8x1xf32>
    %313 = math.rsqrt %312 : vector<8x1xf32>
    %314 = vector.broadcast %313 : vector<8x1xf32> to vector<8x32xf32>
    %315 = arith.mulf %310, %314 : vector<8x32xf32>
    %316 = vector.broadcast %296 : vector<1x32xf32> to vector<8x32xf32>
    %317 = arith.mulf %315, %316 : vector<8x32xf32>
    %318 = vector.broadcast %297 : vector<1x32xf32> to vector<8x32xf32>
    %319 = arith.addf %317, %318 : vector<8x32xf32>
    %c432 = arith.constant 432 : index
    %c0_97 = arith.constant 0 : index
    %320 = vector.load %arg3[%c432, %c0_97] : memref<2768x128xf32, #tpu.memory_space<vmem>>, vector<32x96xf32>
    %c464 = arith.constant 464 : index
    %c0_98 = arith.constant 0 : index
    %321 = vector.load %arg3[%c464, %c0_98] : memref<2768x128xf32, #tpu.memory_space<vmem>>, vector<1x96xf32>
    %cst_99 = arith.constant dense<0.000000e+00> : vector<8x96xf32>
    %322 = tpu.matmul %319, %320, %cst_99 {dimension_numbers = #tpu.dot_dimension_numbers<[1], [0], [0], [1], [0, 0, 1, 1], [], []>} : vector<8x32xf32>, vector<32x96xf32>, vector<8x96xf32> -> vector<8x96xf32>
    %323 = vector.broadcast %321 : vector<1x96xf32> to vector<8x96xf32>
    %324 = arith.addf %322, %323 : vector<8x96xf32>
    %325 = vector.extract_strided_slice %324 {offsets = [0, 0], sizes = [8, 32], strides = [1, 1]} : vector<8x96xf32> to vector<8x32xf32>
    %326 = vector.extract_strided_slice %324 {offsets = [0, 32], sizes = [8, 32], strides = [1, 1]} : vector<8x96xf32> to vector<8x32xf32>
    %327 = vector.extract_strided_slice %324 {offsets = [0, 64], sizes = [8, 32], strides = [1, 1]} : vector<8x96xf32> to vector<8x32xf32>
    %328 = tpu.iota {dimensions = array<i32: 1>} : vector<1x32xi32>
    %c0_i32_100 = arith.constant 0 : i32
    %329 = vector.broadcast %c0_i32_100 : i32 to vector<1x32xi32>
    %330 = arith.cmpi sge, %328, %329 : vector<1x32xi32>
    %c8_i32_101 = arith.constant 8 : i32
    %331 = vector.broadcast %c8_i32_101 : i32 to vector<1x32xi32>
    %332 = arith.cmpi slt, %328, %331 : vector<1x32xi32>
    %333 = arith.andi %330, %332 : vector<1x32xi1>
    %334 = arith.extui %333 : vector<1x32xi1> to vector<1x32xi32>
    %335 = arith.sitofp %334 : vector<1x32xi32> to vector<1x32xf32>
    %336 = vector.broadcast %335 : vector<1x32xf32> to vector<8x32xf32>
    %337 = arith.mulf %325, %336 : vector<8x32xf32>
    %cst_102 = arith.constant dense<0.000000e+00> : vector<8x8xf32>
    %338 = tpu.matmul %337, %326, %cst_102 {dimension_numbers = #tpu.dot_dimension_numbers<[1], [1], [0], [0], [0, 0, 1, 0], [], []>} : vector<8x32xf32>, vector<8x32xf32>, vector<8x8xf32> -> vector<8x8xf32>
    %cst_103 = arith.constant dense<0xFF800000> : vector<8xf32>
    %339 = vector.multi_reduction <maximumf>, %338, %cst_103 [1] : vector<8x8xf32> to vector<8xf32>
    %340 = vector.shape_cast %339 : vector<8xf32> to vector<8x1xf32>
    %341 = vector.broadcast %340 : vector<8x1xf32> to vector<8x8xf32>
    %342 = arith.subf %338, %341 : vector<8x8xf32>
    %343 = math.exp %342 : vector<8x8xf32>
    %cst_104 = arith.constant dense<0.000000e+00> : vector<8xf32>
    %344 = vector.multi_reduction <add>, %343, %cst_104 [1] : vector<8x8xf32> to vector<8xf32>
    %345 = vector.shape_cast %344 : vector<8xf32> to vector<8x1xf32>
    %346 = tpu.reciprocal %345 {approx = true} : vector<8x1xf32> -> vector<8x1xf32>
    %347 = vector.broadcast %346 : vector<8x1xf32> to vector<8x8xf32>
    %348 = arith.mulf %343, %347 : vector<8x8xf32>
    %349 = vector.broadcast %335 : vector<1x32xf32> to vector<8x32xf32>
    %350 = arith.mulf %327, %349 : vector<8x32xf32>
    %cst_105 = arith.constant dense<0.000000e+00> : vector<8x32xf32>
    %351 = tpu.matmul %348, %350, %cst_105 {dimension_numbers = #tpu.dot_dimension_numbers<[1], [0], [0], [1], [0, 0, 1, 1], [], []>} : vector<8x8xf32>, vector<8x32xf32>, vector<8x32xf32> -> vector<8x32xf32>
    %c8_i32_106 = arith.constant 8 : i32
    %352 = vector.broadcast %c8_i32_106 : i32 to vector<1x32xi32>
    %353 = arith.cmpi sge, %328, %352 : vector<1x32xi32>
    %c16_i32_107 = arith.constant 16 : i32
    %354 = vector.broadcast %c16_i32_107 : i32 to vector<1x32xi32>
    %355 = arith.cmpi slt, %328, %354 : vector<1x32xi32>
    %356 = arith.andi %353, %355 : vector<1x32xi1>
    %357 = arith.extui %356 : vector<1x32xi1> to vector<1x32xi32>
    %358 = arith.sitofp %357 : vector<1x32xi32> to vector<1x32xf32>
    %359 = vector.broadcast %358 : vector<1x32xf32> to vector<8x32xf32>
    %360 = arith.mulf %325, %359 : vector<8x32xf32>
    %cst_108 = arith.constant dense<0.000000e+00> : vector<8x8xf32>
    %361 = tpu.matmul %360, %326, %cst_108 {dimension_numbers = #tpu.dot_dimension_numbers<[1], [1], [0], [0], [0, 0, 1, 0], [], []>} : vector<8x32xf32>, vector<8x32xf32>, vector<8x8xf32> -> vector<8x8xf32>
    %cst_109 = arith.constant dense<0xFF800000> : vector<8xf32>
    %362 = vector.multi_reduction <maximumf>, %361, %cst_109 [1] : vector<8x8xf32> to vector<8xf32>
    %363 = vector.shape_cast %362 : vector<8xf32> to vector<8x1xf32>
    %364 = vector.broadcast %363 : vector<8x1xf32> to vector<8x8xf32>
    %365 = arith.subf %361, %364 : vector<8x8xf32>
    %366 = math.exp %365 : vector<8x8xf32>
    %cst_110 = arith.constant dense<0.000000e+00> : vector<8xf32>
    %367 = vector.multi_reduction <add>, %366, %cst_110 [1] : vector<8x8xf32> to vector<8xf32>
    %368 = vector.shape_cast %367 : vector<8xf32> to vector<8x1xf32>
    %369 = tpu.reciprocal %368 {approx = true} : vector<8x1xf32> -> vector<8x1xf32>
    %370 = vector.broadcast %369 : vector<8x1xf32> to vector<8x8xf32>
    %371 = arith.mulf %366, %370 : vector<8x8xf32>
    %372 = vector.broadcast %358 : vector<1x32xf32> to vector<8x32xf32>
    %373 = arith.mulf %327, %372 : vector<8x32xf32>
    %cst_111 = arith.constant dense<0.000000e+00> : vector<8x32xf32>
    %374 = tpu.matmul %371, %373, %cst_111 {dimension_numbers = #tpu.dot_dimension_numbers<[1], [0], [0], [1], [0, 0, 1, 1], [], []>} : vector<8x8xf32>, vector<8x32xf32>, vector<8x32xf32> -> vector<8x32xf32>
    %375 = arith.addf %351, %374 : vector<8x32xf32>
    %c16_i32_112 = arith.constant 16 : i32
    %376 = vector.broadcast %c16_i32_112 : i32 to vector<1x32xi32>
    %377 = arith.cmpi sge, %328, %376 : vector<1x32xi32>
    %c24_i32_113 = arith.constant 24 : i32
    %378 = vector.broadcast %c24_i32_113 : i32 to vector<1x32xi32>
    %379 = arith.cmpi slt, %328, %378 : vector<1x32xi32>
    %380 = arith.andi %377, %379 : vector<1x32xi1>
    %381 = arith.extui %380 : vector<1x32xi1> to vector<1x32xi32>
    %382 = arith.sitofp %381 : vector<1x32xi32> to vector<1x32xf32>
    %383 = vector.broadcast %382 : vector<1x32xf32> to vector<8x32xf32>
    %384 = arith.mulf %325, %383 : vector<8x32xf32>
    %cst_114 = arith.constant dense<0.000000e+00> : vector<8x8xf32>
    %385 = tpu.matmul %384, %326, %cst_114 {dimension_numbers = #tpu.dot_dimension_numbers<[1], [1], [0], [0], [0, 0, 1, 0], [], []>} : vector<8x32xf32>, vector<8x32xf32>, vector<8x8xf32> -> vector<8x8xf32>
    %cst_115 = arith.constant dense<0xFF800000> : vector<8xf32>
    %386 = vector.multi_reduction <maximumf>, %385, %cst_115 [1] : vector<8x8xf32> to vector<8xf32>
    %387 = vector.shape_cast %386 : vector<8xf32> to vector<8x1xf32>
    %388 = vector.broadcast %387 : vector<8x1xf32> to vector<8x8xf32>
    %389 = arith.subf %385, %388 : vector<8x8xf32>
    %390 = math.exp %389 : vector<8x8xf32>
    %cst_116 = arith.constant dense<0.000000e+00> : vector<8xf32>
    %391 = vector.multi_reduction <add>, %390, %cst_116 [1] : vector<8x8xf32> to vector<8xf32>
    %392 = vector.shape_cast %391 : vector<8xf32> to vector<8x1xf32>
    %393 = tpu.reciprocal %392 {approx = true} : vector<8x1xf32> -> vector<8x1xf32>
    %394 = vector.broadcast %393 : vector<8x1xf32> to vector<8x8xf32>
    %395 = arith.mulf %390, %394 : vector<8x8xf32>
    %396 = vector.broadcast %382 : vector<1x32xf32> to vector<8x32xf32>
    %397 = arith.mulf %327, %396 : vector<8x32xf32>
    %cst_117 = arith.constant dense<0.000000e+00> : vector<8x32xf32>
    %398 = tpu.matmul %395, %397, %cst_117 {dimension_numbers = #tpu.dot_dimension_numbers<[1], [0], [0], [1], [0, 0, 1, 1], [], []>} : vector<8x8xf32>, vector<8x32xf32>, vector<8x32xf32> -> vector<8x32xf32>
    %399 = arith.addf %375, %398 : vector<8x32xf32>
    %c24_i32_118 = arith.constant 24 : i32
    %400 = vector.broadcast %c24_i32_118 : i32 to vector<1x32xi32>
    %401 = arith.cmpi sge, %328, %400 : vector<1x32xi32>
    %c32_i32_119 = arith.constant 32 : i32
    %402 = vector.broadcast %c32_i32_119 : i32 to vector<1x32xi32>
    %403 = arith.cmpi slt, %328, %402 : vector<1x32xi32>
    %404 = arith.andi %401, %403 : vector<1x32xi1>
    %405 = arith.extui %404 : vector<1x32xi1> to vector<1x32xi32>
    %406 = arith.sitofp %405 : vector<1x32xi32> to vector<1x32xf32>
    %407 = vector.broadcast %406 : vector<1x32xf32> to vector<8x32xf32>
    %408 = arith.mulf %325, %407 : vector<8x32xf32>
    %cst_120 = arith.constant dense<0.000000e+00> : vector<8x8xf32>
    %409 = tpu.matmul %408, %326, %cst_120 {dimension_numbers = #tpu.dot_dimension_numbers<[1], [1], [0], [0], [0, 0, 1, 0], [], []>} : vector<8x32xf32>, vector<8x32xf32>, vector<8x8xf32> -> vector<8x8xf32>
    %cst_121 = arith.constant dense<0xFF800000> : vector<8xf32>
    %410 = vector.multi_reduction <maximumf>, %409, %cst_121 [1] : vector<8x8xf32> to vector<8xf32>
    %411 = vector.shape_cast %410 : vector<8xf32> to vector<8x1xf32>
    %412 = vector.broadcast %411 : vector<8x1xf32> to vector<8x8xf32>
    %413 = arith.subf %409, %412 : vector<8x8xf32>
    %414 = math.exp %413 : vector<8x8xf32>
    %cst_122 = arith.constant dense<0.000000e+00> : vector<8xf32>
    %415 = vector.multi_reduction <add>, %414, %cst_122 [1] : vector<8x8xf32> to vector<8xf32>
    %416 = vector.shape_cast %415 : vector<8xf32> to vector<8x1xf32>
    %417 = tpu.reciprocal %416 {approx = true} : vector<8x1xf32> -> vector<8x1xf32>
    %418 = vector.broadcast %417 : vector<8x1xf32> to vector<8x8xf32>
    %419 = arith.mulf %414, %418 : vector<8x8xf32>
    %420 = vector.broadcast %406 : vector<1x32xf32> to vector<8x32xf32>
    %421 = arith.mulf %327, %420 : vector<8x32xf32>
    %cst_123 = arith.constant dense<0.000000e+00> : vector<8x32xf32>
    %422 = tpu.matmul %419, %421, %cst_123 {dimension_numbers = #tpu.dot_dimension_numbers<[1], [0], [0], [1], [0, 0, 1, 1], [], []>} : vector<8x8xf32>, vector<8x32xf32>, vector<8x32xf32> -> vector<8x32xf32>
    %423 = arith.addf %399, %422 : vector<8x32xf32>
    %c472 = arith.constant 472 : index
    %c0_124 = arith.constant 0 : index
    %424 = vector.load %arg3[%c472, %c0_124] : memref<2768x128xf32, #tpu.memory_space<vmem>>, vector<32x32xf32>
    %c504 = arith.constant 504 : index
    %c0_125 = arith.constant 0 : index
    %425 = vector.load %arg3[%c504, %c0_125] : memref<2768x128xf32, #tpu.memory_space<vmem>>, vector<1x32xf32>
    %cst_126 = arith.constant dense<0.000000e+00> : vector<8x32xf32>
    %426 = tpu.matmul %423, %424, %cst_126 {dimension_numbers = #tpu.dot_dimension_numbers<[1], [0], [0], [1], [0, 0, 1, 1], [], []>} : vector<8x32xf32>, vector<32x32xf32>, vector<8x32xf32> -> vector<8x32xf32>
    %427 = vector.broadcast %425 : vector<1x32xf32> to vector<8x32xf32>
    %428 = arith.addf %426, %427 : vector<8x32xf32>
    %429 = arith.addf %113, %428 : vector<8x32xf32>
    %c512 = arith.constant 512 : index
    %c0_127 = arith.constant 0 : index
    %430 = vector.load %arg3[%c512, %c0_127] : memref<2768x128xf32, #tpu.memory_space<vmem>>, vector<1x32xf32>
    %c520 = arith.constant 520 : index
    %c0_128 = arith.constant 0 : index
    %431 = vector.load %arg3[%c520, %c0_128] : memref<2768x128xf32, #tpu.memory_space<vmem>>, vector<1x32xf32>
    %cst_129 = arith.constant dense<0.000000e+00> : vector<8xf32>
    %432 = vector.multi_reduction <add>, %429, %cst_129 [1] : vector<8x32xf32> to vector<8xf32>
    %433 = vector.shape_cast %432 : vector<8xf32> to vector<8x1xf32>
    %cst_130 = arith.constant 3.200000e+01 : f32
    %434 = vector.broadcast %cst_130 : f32 to vector<8x1xf32>
    %435 = arith.divf %433, %434 : vector<8x1xf32>
    %436 = arith.mulf %429, %429 : vector<8x32xf32>
    %cst_131 = arith.constant dense<0.000000e+00> : vector<8xf32>
    %437 = vector.multi_reduction <add>, %436, %cst_131 [1] : vector<8x32xf32> to vector<8xf32>
    %438 = vector.shape_cast %437 : vector<8xf32> to vector<8x1xf32>
    %cst_132 = arith.constant 3.200000e+01 : f32
    %439 = vector.broadcast %cst_132 : f32 to vector<8x1xf32>
    %440 = arith.divf %438, %439 : vector<8x1xf32>
    %441 = arith.mulf %435, %435 : vector<8x1xf32>
    %442 = arith.subf %440, %441 : vector<8x1xf32>
    %443 = vector.broadcast %435 : vector<8x1xf32> to vector<8x32xf32>
    %444 = arith.subf %429, %443 : vector<8x32xf32>
    %cst_133 = arith.constant 9.99999974E-6 : f32
    %445 = vector.broadcast %cst_133 : f32 to vector<8x1xf32>
    %446 = arith.addf %442, %445 : vector<8x1xf32>
    %447 = math.rsqrt %446 : vector<8x1xf32>
    %448 = vector.broadcast %447 : vector<8x1xf32> to vector<8x32xf32>
    %449 = arith.mulf %444, %448 : vector<8x32xf32>
    %450 = vector.broadcast %430 : vector<1x32xf32> to vector<8x32xf32>
    %451 = arith.mulf %449, %450 : vector<8x32xf32>
    %452 = vector.broadcast %431 : vector<1x32xf32> to vector<8x32xf32>
    %453 = arith.addf %451, %452 : vector<8x32xf32>
    %c528 = arith.constant 528 : index
    %c0_134 = arith.constant 0 : index
    %454 = vector.load %arg3[%c528, %c0_134] : memref<2768x128xf32, #tpu.memory_space<vmem>>, vector<32x128xf32>
    %c560 = arith.constant 560 : index
    %c0_135 = arith.constant 0 : index
    %455 = vector.load %arg3[%c560, %c0_135] : memref<2768x128xf32, #tpu.memory_space<vmem>>, vector<1x128xf32>
    %cst_136 = arith.constant dense<0.000000e+00> : vector<8x128xf32>
    %456 = tpu.matmul %453, %454, %cst_136 {dimension_numbers = #tpu.dot_dimension_numbers<[1], [0], [0], [1], [0, 0, 1, 1], [], []>} : vector<8x32xf32>, vector<32x128xf32>, vector<8x128xf32> -> vector<8x128xf32>
    %457 = vector.broadcast %455 : vector<1x128xf32> to vector<8x128xf32>
    %458 = arith.addf %456, %457 : vector<8x128xf32>
    %459 = arith.mulf %458, %458 : vector<8x128xf32>
    %460 = arith.mulf %458, %459 : vector<8x128xf32>
    %cst_137 = arith.constant 4.471500e-02 : f32
    %461 = vector.broadcast %cst_137 : f32 to vector<8x128xf32>
    %462 = arith.mulf %461, %460 : vector<8x128xf32>
    %463 = arith.addf %458, %462 : vector<8x128xf32>
    %cst_138 = arith.constant 0.797884583 : f32
    %464 = vector.broadcast %cst_138 : f32 to vector<8x128xf32>
    %465 = arith.mulf %464, %463 : vector<8x128xf32>
    %466 = math.tanh %465 : vector<8x128xf32>
    %cst_139 = arith.constant 1.000000e+00 : f32
    %467 = vector.broadcast %cst_139 : f32 to vector<8x128xf32>
    %468 = arith.addf %467, %466 : vector<8x128xf32>
    %cst_140 = arith.constant 5.000000e-01 : f32
    %469 = vector.broadcast %cst_140 : f32 to vector<8x128xf32>
    %470 = arith.mulf %469, %468 : vector<8x128xf32>
    %471 = arith.mulf %458, %470 : vector<8x128xf32>
    %c568 = arith.constant 568 : index
    %c0_141 = arith.constant 0 : index
    %472 = vector.load %arg3[%c568, %c0_141] : memref<2768x128xf32, #tpu.memory_space<vmem>>, vector<128x32xf32>
    %c696 = arith.constant 696 : index
    %c0_142 = arith.constant 0 : index
    %473 = vector.load %arg3[%c696, %c0_142] : memref<2768x128xf32, #tpu.memory_space<vmem>>, vector<1x32xf32>
    %cst_143 = arith.constant dense<0.000000e+00> : vector<8x32xf32>
    %474 = tpu.matmul %471, %472, %cst_143 {dimension_numbers = #tpu.dot_dimension_numbers<[1], [0], [0], [1], [0, 0, 1, 1], [], []>} : vector<8x128xf32>, vector<128x32xf32>, vector<8x32xf32> -> vector<8x32xf32>
    %475 = vector.broadcast %473 : vector<1x32xf32> to vector<8x32xf32>
    %476 = arith.addf %474, %475 : vector<8x32xf32>
    %477 = arith.addf %429, %476 : vector<8x32xf32>
    %c704 = arith.constant 704 : index
    %c0_144 = arith.constant 0 : index
    %478 = vector.load %arg3[%c704, %c0_144] : memref<2768x128xf32, #tpu.memory_space<vmem>>, vector<1x32xf32>
    %c712 = arith.constant 712 : index
    %c0_145 = arith.constant 0 : index
    %479 = vector.load %arg3[%c712, %c0_145] : memref<2768x128xf32, #tpu.memory_space<vmem>>, vector<1x32xf32>
    %cst_146 = arith.constant dense<0.000000e+00> : vector<8xf32>
    %480 = vector.multi_reduction <add>, %295, %cst_146 [1] : vector<8x32xf32> to vector<8xf32>
    %481 = vector.shape_cast %480 : vector<8xf32> to vector<8x1xf32>
    %cst_147 = arith.constant 3.200000e+01 : f32
    %482 = vector.broadcast %cst_147 : f32 to vector<8x1xf32>
    %483 = arith.divf %481, %482 : vector<8x1xf32>
    %484 = arith.mulf %295, %295 : vector<8x32xf32>
    %cst_148 = arith.constant dense<0.000000e+00> : vector<8xf32>
    %485 = vector.multi_reduction <add>, %484, %cst_148 [1] : vector<8x32xf32> to vector<8xf32>
    %486 = vector.shape_cast %485 : vector<8xf32> to vector<8x1xf32>
    %cst_149 = arith.constant 3.200000e+01 : f32
    %487 = vector.broadcast %cst_149 : f32 to vector<8x1xf32>
    %488 = arith.divf %486, %487 : vector<8x1xf32>
    %489 = arith.mulf %483, %483 : vector<8x1xf32>
    %490 = arith.subf %488, %489 : vector<8x1xf32>
    %491 = vector.broadcast %483 : vector<8x1xf32> to vector<8x32xf32>
    %492 = arith.subf %295, %491 : vector<8x32xf32>
    %cst_150 = arith.constant 9.99999974E-6 : f32
    %493 = vector.broadcast %cst_150 : f32 to vector<8x1xf32>
    %494 = arith.addf %490, %493 : vector<8x1xf32>
    %495 = math.rsqrt %494 : vector<8x1xf32>
    %496 = vector.broadcast %495 : vector<8x1xf32> to vector<8x32xf32>
    %497 = arith.mulf %492, %496 : vector<8x32xf32>
    %498 = vector.broadcast %478 : vector<1x32xf32> to vector<8x32xf32>
    %499 = arith.mulf %497, %498 : vector<8x32xf32>
    %500 = vector.broadcast %479 : vector<1x32xf32> to vector<8x32xf32>
    %501 = arith.addf %499, %500 : vector<8x32xf32>
    %c720 = arith.constant 720 : index
    %c0_151 = arith.constant 0 : index
    %502 = vector.load %arg3[%c720, %c0_151] : memref<2768x128xf32, #tpu.memory_space<vmem>>, vector<1x32xf32>
    %c728 = arith.constant 728 : index
    %c0_152 = arith.constant 0 : index
    %503 = vector.load %arg3[%c728, %c0_152] : memref<2768x128xf32, #tpu.memory_space<vmem>>, vector<1x32xf32>
    %cst_153 = arith.constant dense<0.000000e+00> : vector<8xf32>
    %504 = vector.multi_reduction <add>, %477, %cst_153 [1] : vector<8x32xf32> to vector<8xf32>
    %505 = vector.shape_cast %504 : vector<8xf32> to vector<8x1xf32>
    %cst_154 = arith.constant 3.200000e+01 : f32
    %506 = vector.broadcast %cst_154 : f32 to vector<8x1xf32>
    %507 = arith.divf %505, %506 : vector<8x1xf32>
    %508 = arith.mulf %477, %477 : vector<8x32xf32>
    %cst_155 = arith.constant dense<0.000000e+00> : vector<8xf32>
    %509 = vector.multi_reduction <add>, %508, %cst_155 [1] : vector<8x32xf32> to vector<8xf32>
    %510 = vector.shape_cast %509 : vector<8xf32> to vector<8x1xf32>
    %cst_156 = arith.constant 3.200000e+01 : f32
    %511 = vector.broadcast %cst_156 : f32 to vector<8x1xf32>
    %512 = arith.divf %510, %511 : vector<8x1xf32>
    %513 = arith.mulf %507, %507 : vector<8x1xf32>
    %514 = arith.subf %512, %513 : vector<8x1xf32>
    %515 = vector.broadcast %507 : vector<8x1xf32> to vector<8x32xf32>
    %516 = arith.subf %477, %515 : vector<8x32xf32>
    %cst_157 = arith.constant 9.99999974E-6 : f32
    %517 = vector.broadcast %cst_157 : f32 to vector<8x1xf32>
    %518 = arith.addf %514, %517 : vector<8x1xf32>
    %519 = math.rsqrt %518 : vector<8x1xf32>
    %520 = vector.broadcast %519 : vector<8x1xf32> to vector<8x32xf32>
    %521 = arith.mulf %516, %520 : vector<8x32xf32>
    %522 = vector.broadcast %502 : vector<1x32xf32> to vector<8x32xf32>
    %523 = arith.mulf %521, %522 : vector<8x32xf32>
    %524 = vector.broadcast %503 : vector<1x32xf32> to vector<8x32xf32>
    %525 = arith.addf %523, %524 : vector<8x32xf32>
    %c736 = arith.constant 736 : index
    %c0_158 = arith.constant 0 : index
    %526 = vector.load %arg3[%c736, %c0_158] : memref<2768x128xf32, #tpu.memory_space<vmem>>, vector<32x32xf32>
    %c768 = arith.constant 768 : index
    %c0_159 = arith.constant 0 : index
    %527 = vector.load %arg3[%c768, %c0_159] : memref<2768x128xf32, #tpu.memory_space<vmem>>, vector<1x32xf32>
    %cst_160 = arith.constant dense<0.000000e+00> : vector<8x32xf32>
    %528 = tpu.matmul %501, %526, %cst_160 {dimension_numbers = #tpu.dot_dimension_numbers<[1], [0], [0], [1], [0, 0, 1, 1], [], []>} : vector<8x32xf32>, vector<32x32xf32>, vector<8x32xf32> -> vector<8x32xf32>
    %529 = vector.broadcast %527 : vector<1x32xf32> to vector<8x32xf32>
    %530 = arith.addf %528, %529 : vector<8x32xf32>
    %c776 = arith.constant 776 : index
    %c0_161 = arith.constant 0 : index
    %531 = vector.load %arg3[%c776, %c0_161] : memref<2768x128xf32, #tpu.memory_space<vmem>>, vector<32x64xf32>
    %c808 = arith.constant 808 : index
    %c0_162 = arith.constant 0 : index
    %532 = vector.load %arg3[%c808, %c0_162] : memref<2768x128xf32, #tpu.memory_space<vmem>>, vector<1x64xf32>
    %cst_163 = arith.constant dense<0.000000e+00> : vector<8x64xf32>
    %533 = tpu.matmul %525, %531, %cst_163 {dimension_numbers = #tpu.dot_dimension_numbers<[1], [0], [0], [1], [0, 0, 1, 1], [], []>} : vector<8x32xf32>, vector<32x64xf32>, vector<8x64xf32> -> vector<8x64xf32>
    %534 = vector.broadcast %532 : vector<1x64xf32> to vector<8x64xf32>
    %535 = arith.addf %533, %534 : vector<8x64xf32>
    %536 = vector.extract_strided_slice %535 {offsets = [0, 0], sizes = [8, 32], strides = [1, 1]} : vector<8x64xf32> to vector<8x32xf32>
    %537 = vector.extract_strided_slice %535 {offsets = [0, 32], sizes = [8, 32], strides = [1, 1]} : vector<8x64xf32> to vector<8x32xf32>
    %538 = tpu.iota {dimensions = array<i32: 1>} : vector<1x32xi32>
    %c0_i32_164 = arith.constant 0 : i32
    %539 = vector.broadcast %c0_i32_164 : i32 to vector<1x32xi32>
    %540 = arith.cmpi sge, %538, %539 : vector<1x32xi32>
    %c8_i32_165 = arith.constant 8 : i32
    %541 = vector.broadcast %c8_i32_165 : i32 to vector<1x32xi32>
    %542 = arith.cmpi slt, %538, %541 : vector<1x32xi32>
    %543 = arith.andi %540, %542 : vector<1x32xi1>
    %544 = arith.extui %543 : vector<1x32xi1> to vector<1x32xi32>
    %545 = arith.sitofp %544 : vector<1x32xi32> to vector<1x32xf32>
    %546 = vector.broadcast %545 : vector<1x32xf32> to vector<8x32xf32>
    %547 = arith.mulf %530, %546 : vector<8x32xf32>
    %cst_166 = arith.constant dense<0.000000e+00> : vector<8x8xf32>
    %548 = tpu.matmul %547, %536, %cst_166 {dimension_numbers = #tpu.dot_dimension_numbers<[1], [1], [0], [0], [0, 0, 1, 0], [], []>} : vector<8x32xf32>, vector<8x32xf32>, vector<8x8xf32> -> vector<8x8xf32>
    %cst_167 = arith.constant dense<0xFF800000> : vector<8xf32>
    %549 = vector.multi_reduction <maximumf>, %548, %cst_167 [1] : vector<8x8xf32> to vector<8xf32>
    %550 = vector.shape_cast %549 : vector<8xf32> to vector<8x1xf32>
    %551 = vector.broadcast %550 : vector<8x1xf32> to vector<8x8xf32>
    %552 = arith.subf %548, %551 : vector<8x8xf32>
    %553 = math.exp %552 : vector<8x8xf32>
    %cst_168 = arith.constant dense<0.000000e+00> : vector<8xf32>
    %554 = vector.multi_reduction <add>, %553, %cst_168 [1] : vector<8x8xf32> to vector<8xf32>
    %555 = vector.shape_cast %554 : vector<8xf32> to vector<8x1xf32>
    %556 = tpu.reciprocal %555 {approx = true} : vector<8x1xf32> -> vector<8x1xf32>
    %557 = vector.broadcast %556 : vector<8x1xf32> to vector<8x8xf32>
    %558 = arith.mulf %553, %557 : vector<8x8xf32>
    %559 = vector.broadcast %545 : vector<1x32xf32> to vector<8x32xf32>
    %560 = arith.mulf %537, %559 : vector<8x32xf32>
    %cst_169 = arith.constant dense<0.000000e+00> : vector<8x32xf32>
    %561 = tpu.matmul %558, %560, %cst_169 {dimension_numbers = #tpu.dot_dimension_numbers<[1], [0], [0], [1], [0, 0, 1, 1], [], []>} : vector<8x8xf32>, vector<8x32xf32>, vector<8x32xf32> -> vector<8x32xf32>
    %c8_i32_170 = arith.constant 8 : i32
    %562 = vector.broadcast %c8_i32_170 : i32 to vector<1x32xi32>
    %563 = arith.cmpi sge, %538, %562 : vector<1x32xi32>
    %c16_i32_171 = arith.constant 16 : i32
    %564 = vector.broadcast %c16_i32_171 : i32 to vector<1x32xi32>
    %565 = arith.cmpi slt, %538, %564 : vector<1x32xi32>
    %566 = arith.andi %563, %565 : vector<1x32xi1>
    %567 = arith.extui %566 : vector<1x32xi1> to vector<1x32xi32>
    %568 = arith.sitofp %567 : vector<1x32xi32> to vector<1x32xf32>
    %569 = vector.broadcast %568 : vector<1x32xf32> to vector<8x32xf32>
    %570 = arith.mulf %530, %569 : vector<8x32xf32>
    %cst_172 = arith.constant dense<0.000000e+00> : vector<8x8xf32>
    %571 = tpu.matmul %570, %536, %cst_172 {dimension_numbers = #tpu.dot_dimension_numbers<[1], [1], [0], [0], [0, 0, 1, 0], [], []>} : vector<8x32xf32>, vector<8x32xf32>, vector<8x8xf32> -> vector<8x8xf32>
    %cst_173 = arith.constant dense<0xFF800000> : vector<8xf32>
    %572 = vector.multi_reduction <maximumf>, %571, %cst_173 [1] : vector<8x8xf32> to vector<8xf32>
    %573 = vector.shape_cast %572 : vector<8xf32> to vector<8x1xf32>
    %574 = vector.broadcast %573 : vector<8x1xf32> to vector<8x8xf32>
    %575 = arith.subf %571, %574 : vector<8x8xf32>
    %576 = math.exp %575 : vector<8x8xf32>
    %cst_174 = arith.constant dense<0.000000e+00> : vector<8xf32>
    %577 = vector.multi_reduction <add>, %576, %cst_174 [1] : vector<8x8xf32> to vector<8xf32>
    %578 = vector.shape_cast %577 : vector<8xf32> to vector<8x1xf32>
    %579 = tpu.reciprocal %578 {approx = true} : vector<8x1xf32> -> vector<8x1xf32>
    %580 = vector.broadcast %579 : vector<8x1xf32> to vector<8x8xf32>
    %581 = arith.mulf %576, %580 : vector<8x8xf32>
    %582 = vector.broadcast %568 : vector<1x32xf32> to vector<8x32xf32>
    %583 = arith.mulf %537, %582 : vector<8x32xf32>
    %cst_175 = arith.constant dense<0.000000e+00> : vector<8x32xf32>
    %584 = tpu.matmul %581, %583, %cst_175 {dimension_numbers = #tpu.dot_dimension_numbers<[1], [0], [0], [1], [0, 0, 1, 1], [], []>} : vector<8x8xf32>, vector<8x32xf32>, vector<8x32xf32> -> vector<8x32xf32>
    %585 = arith.addf %561, %584 : vector<8x32xf32>
    %c16_i32_176 = arith.constant 16 : i32
    %586 = vector.broadcast %c16_i32_176 : i32 to vector<1x32xi32>
    %587 = arith.cmpi sge, %538, %586 : vector<1x32xi32>
    %c24_i32_177 = arith.constant 24 : i32
    %588 = vector.broadcast %c24_i32_177 : i32 to vector<1x32xi32>
    %589 = arith.cmpi slt, %538, %588 : vector<1x32xi32>
    %590 = arith.andi %587, %589 : vector<1x32xi1>
    %591 = arith.extui %590 : vector<1x32xi1> to vector<1x32xi32>
    %592 = arith.sitofp %591 : vector<1x32xi32> to vector<1x32xf32>
    %593 = vector.broadcast %592 : vector<1x32xf32> to vector<8x32xf32>
    %594 = arith.mulf %530, %593 : vector<8x32xf32>
    %cst_178 = arith.constant dense<0.000000e+00> : vector<8x8xf32>
    %595 = tpu.matmul %594, %536, %cst_178 {dimension_numbers = #tpu.dot_dimension_numbers<[1], [1], [0], [0], [0, 0, 1, 0], [], []>} : vector<8x32xf32>, vector<8x32xf32>, vector<8x8xf32> -> vector<8x8xf32>
    %cst_179 = arith.constant dense<0xFF800000> : vector<8xf32>
    %596 = vector.multi_reduction <maximumf>, %595, %cst_179 [1] : vector<8x8xf32> to vector<8xf32>
    %597 = vector.shape_cast %596 : vector<8xf32> to vector<8x1xf32>
    %598 = vector.broadcast %597 : vector<8x1xf32> to vector<8x8xf32>
    %599 = arith.subf %595, %598 : vector<8x8xf32>
    %600 = math.exp %599 : vector<8x8xf32>
    %cst_180 = arith.constant dense<0.000000e+00> : vector<8xf32>
    %601 = vector.multi_reduction <add>, %600, %cst_180 [1] : vector<8x8xf32> to vector<8xf32>
    %602 = vector.shape_cast %601 : vector<8xf32> to vector<8x1xf32>
    %603 = tpu.reciprocal %602 {approx = true} : vector<8x1xf32> -> vector<8x1xf32>
    %604 = vector.broadcast %603 : vector<8x1xf32> to vector<8x8xf32>
    %605 = arith.mulf %600, %604 : vector<8x8xf32>
    %606 = vector.broadcast %592 : vector<1x32xf32> to vector<8x32xf32>
    %607 = arith.mulf %537, %606 : vector<8x32xf32>
    %cst_181 = arith.constant dense<0.000000e+00> : vector<8x32xf32>
    %608 = tpu.matmul %605, %607, %cst_181 {dimension_numbers = #tpu.dot_dimension_numbers<[1], [0], [0], [1], [0, 0, 1, 1], [], []>} : vector<8x8xf32>, vector<8x32xf32>, vector<8x32xf32> -> vector<8x32xf32>
    %609 = arith.addf %585, %608 : vector<8x32xf32>
    %c24_i32_182 = arith.constant 24 : i32
    %610 = vector.broadcast %c24_i32_182 : i32 to vector<1x32xi32>
    %611 = arith.cmpi sge, %538, %610 : vector<1x32xi32>
    %c32_i32_183 = arith.constant 32 : i32
    %612 = vector.broadcast %c32_i32_183 : i32 to vector<1x32xi32>
    %613 = arith.cmpi slt, %538, %612 : vector<1x32xi32>
    %614 = arith.andi %611, %613 : vector<1x32xi1>
    %615 = arith.extui %614 : vector<1x32xi1> to vector<1x32xi32>
    %616 = arith.sitofp %615 : vector<1x32xi32> to vector<1x32xf32>
    %617 = vector.broadcast %616 : vector<1x32xf32> to vector<8x32xf32>
    %618 = arith.mulf %530, %617 : vector<8x32xf32>
    %cst_184 = arith.constant dense<0.000000e+00> : vector<8x8xf32>
    %619 = tpu.matmul %618, %536, %cst_184 {dimension_numbers = #tpu.dot_dimension_numbers<[1], [1], [0], [0], [0, 0, 1, 0], [], []>} : vector<8x32xf32>, vector<8x32xf32>, vector<8x8xf32> -> vector<8x8xf32>
    %cst_185 = arith.constant dense<0xFF800000> : vector<8xf32>
    %620 = vector.multi_reduction <maximumf>, %619, %cst_185 [1] : vector<8x8xf32> to vector<8xf32>
    %621 = vector.shape_cast %620 : vector<8xf32> to vector<8x1xf32>
    %622 = vector.broadcast %621 : vector<8x1xf32> to vector<8x8xf32>
    %623 = arith.subf %619, %622 : vector<8x8xf32>
    %624 = math.exp %623 : vector<8x8xf32>
    %cst_186 = arith.constant dense<0.000000e+00> : vector<8xf32>
    %625 = vector.multi_reduction <add>, %624, %cst_186 [1] : vector<8x8xf32> to vector<8xf32>
    %626 = vector.shape_cast %625 : vector<8xf32> to vector<8x1xf32>
    %627 = tpu.reciprocal %626 {approx = true} : vector<8x1xf32> -> vector<8x1xf32>
    %628 = vector.broadcast %627 : vector<8x1xf32> to vector<8x8xf32>
    %629 = arith.mulf %624, %628 : vector<8x8xf32>
    %630 = vector.broadcast %616 : vector<1x32xf32> to vector<8x32xf32>
    %631 = arith.mulf %537, %630 : vector<8x32xf32>
    %cst_187 = arith.constant dense<0.000000e+00> : vector<8x32xf32>
    %632 = tpu.matmul %629, %631, %cst_187 {dimension_numbers = #tpu.dot_dimension_numbers<[1], [0], [0], [1], [0, 0, 1, 1], [], []>} : vector<8x8xf32>, vector<8x32xf32>, vector<8x32xf32> -> vector<8x32xf32>
    %633 = arith.addf %609, %632 : vector<8x32xf32>
    %c816 = arith.constant 816 : index
    %c0_188 = arith.constant 0 : index
    %634 = vector.load %arg3[%c816, %c0_188] : memref<2768x128xf32, #tpu.memory_space<vmem>>, vector<32x32xf32>
    %c848 = arith.constant 848 : index
    %c0_189 = arith.constant 0 : index
    %635 = vector.load %arg3[%c848, %c0_189] : memref<2768x128xf32, #tpu.memory_space<vmem>>, vector<1x32xf32>
    %cst_190 = arith.constant dense<0.000000e+00> : vector<8x32xf32>
    %636 = tpu.matmul %633, %634, %cst_190 {dimension_numbers = #tpu.dot_dimension_numbers<[1], [0], [0], [1], [0, 0, 1, 1], [], []>} : vector<8x32xf32>, vector<32x32xf32>, vector<8x32xf32> -> vector<8x32xf32>
    %637 = vector.broadcast %635 : vector<1x32xf32> to vector<8x32xf32>
    %638 = arith.addf %636, %637 : vector<8x32xf32>
    %639 = arith.addf %295, %638 : vector<8x32xf32>
    %c856 = arith.constant 856 : index
    %c0_191 = arith.constant 0 : index
    %640 = vector.load %arg3[%c856, %c0_191] : memref<2768x128xf32, #tpu.memory_space<vmem>>, vector<1x32xf32>
    %c864 = arith.constant 864 : index
    %c0_192 = arith.constant 0 : index
    %641 = vector.load %arg3[%c864, %c0_192] : memref<2768x128xf32, #tpu.memory_space<vmem>>, vector<1x32xf32>
    %cst_193 = arith.constant dense<0.000000e+00> : vector<8xf32>
    %642 = vector.multi_reduction <add>, %639, %cst_193 [1] : vector<8x32xf32> to vector<8xf32>
    %643 = vector.shape_cast %642 : vector<8xf32> to vector<8x1xf32>
    %cst_194 = arith.constant 3.200000e+01 : f32
    %644 = vector.broadcast %cst_194 : f32 to vector<8x1xf32>
    %645 = arith.divf %643, %644 : vector<8x1xf32>
    %646 = arith.mulf %639, %639 : vector<8x32xf32>
    %cst_195 = arith.constant dense<0.000000e+00> : vector<8xf32>
    %647 = vector.multi_reduction <add>, %646, %cst_195 [1] : vector<8x32xf32> to vector<8xf32>
    %648 = vector.shape_cast %647 : vector<8xf32> to vector<8x1xf32>
    %cst_196 = arith.constant 3.200000e+01 : f32
    %649 = vector.broadcast %cst_196 : f32 to vector<8x1xf32>
    %650 = arith.divf %648, %649 : vector<8x1xf32>
    %651 = arith.mulf %645, %645 : vector<8x1xf32>
    %652 = arith.subf %650, %651 : vector<8x1xf32>
    %653 = vector.broadcast %645 : vector<8x1xf32> to vector<8x32xf32>
    %654 = arith.subf %639, %653 : vector<8x32xf32>
    %cst_197 = arith.constant 9.99999974E-6 : f32
    %655 = vector.broadcast %cst_197 : f32 to vector<8x1xf32>
    %656 = arith.addf %652, %655 : vector<8x1xf32>
    %657 = math.rsqrt %656 : vector<8x1xf32>
    %658 = vector.broadcast %657 : vector<8x1xf32> to vector<8x32xf32>
    %659 = arith.mulf %654, %658 : vector<8x32xf32>
    %660 = vector.broadcast %640 : vector<1x32xf32> to vector<8x32xf32>
    %661 = arith.mulf %659, %660 : vector<8x32xf32>
    %662 = vector.broadcast %641 : vector<1x32xf32> to vector<8x32xf32>
    %663 = arith.addf %661, %662 : vector<8x32xf32>
    %c872 = arith.constant 872 : index
    %c0_198 = arith.constant 0 : index
    %664 = vector.load %arg3[%c872, %c0_198] : memref<2768x128xf32, #tpu.memory_space<vmem>>, vector<32x128xf32>
    %c904 = arith.constant 904 : index
    %c0_199 = arith.constant 0 : index
    %665 = vector.load %arg3[%c904, %c0_199] : memref<2768x128xf32, #tpu.memory_space<vmem>>, vector<1x128xf32>
    %cst_200 = arith.constant dense<0.000000e+00> : vector<8x128xf32>
    %666 = tpu.matmul %663, %664, %cst_200 {dimension_numbers = #tpu.dot_dimension_numbers<[1], [0], [0], [1], [0, 0, 1, 1], [], []>} : vector<8x32xf32>, vector<32x128xf32>, vector<8x128xf32> -> vector<8x128xf32>
    %667 = vector.broadcast %665 : vector<1x128xf32> to vector<8x128xf32>
    %668 = arith.addf %666, %667 : vector<8x128xf32>
    %669 = arith.mulf %668, %668 : vector<8x128xf32>
    %670 = arith.mulf %668, %669 : vector<8x128xf32>
    %cst_201 = arith.constant 4.471500e-02 : f32
    %671 = vector.broadcast %cst_201 : f32 to vector<8x128xf32>
    %672 = arith.mulf %671, %670 : vector<8x128xf32>
    %673 = arith.addf %668, %672 : vector<8x128xf32>
    %cst_202 = arith.constant 0.797884583 : f32
    %674 = vector.broadcast %cst_202 : f32 to vector<8x128xf32>
    %675 = arith.mulf %674, %673 : vector<8x128xf32>
    %676 = math.tanh %675 : vector<8x128xf32>
    %cst_203 = arith.constant 1.000000e+00 : f32
    %677 = vector.broadcast %cst_203 : f32 to vector<8x128xf32>
    %678 = arith.addf %677, %676 : vector<8x128xf32>
    %cst_204 = arith.constant 5.000000e-01 : f32
    %679 = vector.broadcast %cst_204 : f32 to vector<8x128xf32>
    %680 = arith.mulf %679, %678 : vector<8x128xf32>
    %681 = arith.mulf %668, %680 : vector<8x128xf32>
    %c912 = arith.constant 912 : index
    %c0_205 = arith.constant 0 : index
    %682 = vector.load %arg3[%c912, %c0_205] : memref<2768x128xf32, #tpu.memory_space<vmem>>, vector<128x32xf32>
    %c1040 = arith.constant 1040 : index
    %c0_206 = arith.constant 0 : index
    %683 = vector.load %arg3[%c1040, %c0_206] : memref<2768x128xf32, #tpu.memory_space<vmem>>, vector<1x32xf32>
    %cst_207 = arith.constant dense<0.000000e+00> : vector<8x32xf32>
    %684 = tpu.matmul %681, %682, %cst_207 {dimension_numbers = #tpu.dot_dimension_numbers<[1], [0], [0], [1], [0, 0, 1, 1], [], []>} : vector<8x128xf32>, vector<128x32xf32>, vector<8x32xf32> -> vector<8x32xf32>
    %685 = vector.broadcast %683 : vector<1x32xf32> to vector<8x32xf32>
    %686 = arith.addf %684, %685 : vector<8x32xf32>
    %687 = arith.addf %639, %686 : vector<8x32xf32>
    %c1048 = arith.constant 1048 : index
    %c0_208 = arith.constant 0 : index
    %688 = vector.load %arg3[%c1048, %c0_208] : memref<2768x128xf32, #tpu.memory_space<vmem>>, vector<1x32xf32>
    %c1056 = arith.constant 1056 : index
    %c0_209 = arith.constant 0 : index
    %689 = vector.load %arg3[%c1056, %c0_209] : memref<2768x128xf32, #tpu.memory_space<vmem>>, vector<1x32xf32>
    %cst_210 = arith.constant dense<0.000000e+00> : vector<8xf32>
    %690 = vector.multi_reduction <add>, %477, %cst_210 [1] : vector<8x32xf32> to vector<8xf32>
    %691 = vector.shape_cast %690 : vector<8xf32> to vector<8x1xf32>
    %cst_211 = arith.constant 3.200000e+01 : f32
    %692 = vector.broadcast %cst_211 : f32 to vector<8x1xf32>
    %693 = arith.divf %691, %692 : vector<8x1xf32>
    %694 = arith.mulf %477, %477 : vector<8x32xf32>
    %cst_212 = arith.constant dense<0.000000e+00> : vector<8xf32>
    %695 = vector.multi_reduction <add>, %694, %cst_212 [1] : vector<8x32xf32> to vector<8xf32>
    %696 = vector.shape_cast %695 : vector<8xf32> to vector<8x1xf32>
    %cst_213 = arith.constant 3.200000e+01 : f32
    %697 = vector.broadcast %cst_213 : f32 to vector<8x1xf32>
    %698 = arith.divf %696, %697 : vector<8x1xf32>
    %699 = arith.mulf %693, %693 : vector<8x1xf32>
    %700 = arith.subf %698, %699 : vector<8x1xf32>
    %701 = vector.broadcast %693 : vector<8x1xf32> to vector<8x32xf32>
    %702 = arith.subf %477, %701 : vector<8x32xf32>
    %cst_214 = arith.constant 9.99999974E-6 : f32
    %703 = vector.broadcast %cst_214 : f32 to vector<8x1xf32>
    %704 = arith.addf %700, %703 : vector<8x1xf32>
    %705 = math.rsqrt %704 : vector<8x1xf32>
    %706 = vector.broadcast %705 : vector<8x1xf32> to vector<8x32xf32>
    %707 = arith.mulf %702, %706 : vector<8x32xf32>
    %708 = vector.broadcast %688 : vector<1x32xf32> to vector<8x32xf32>
    %709 = arith.mulf %707, %708 : vector<8x32xf32>
    %710 = vector.broadcast %689 : vector<1x32xf32> to vector<8x32xf32>
    %711 = arith.addf %709, %710 : vector<8x32xf32>
    %c1064 = arith.constant 1064 : index
    %c0_215 = arith.constant 0 : index
    %712 = vector.load %arg3[%c1064, %c0_215] : memref<2768x128xf32, #tpu.memory_space<vmem>>, vector<1x32xf32>
    %c1072 = arith.constant 1072 : index
    %c0_216 = arith.constant 0 : index
    %713 = vector.load %arg3[%c1072, %c0_216] : memref<2768x128xf32, #tpu.memory_space<vmem>>, vector<1x32xf32>
    %cst_217 = arith.constant dense<0.000000e+00> : vector<8xf32>
    %714 = vector.multi_reduction <add>, %687, %cst_217 [1] : vector<8x32xf32> to vector<8xf32>
    %715 = vector.shape_cast %714 : vector<8xf32> to vector<8x1xf32>
    %cst_218 = arith.constant 3.200000e+01 : f32
    %716 = vector.broadcast %cst_218 : f32 to vector<8x1xf32>
    %717 = arith.divf %715, %716 : vector<8x1xf32>
    %718 = arith.mulf %687, %687 : vector<8x32xf32>
    %cst_219 = arith.constant dense<0.000000e+00> : vector<8xf32>
    %719 = vector.multi_reduction <add>, %718, %cst_219 [1] : vector<8x32xf32> to vector<8xf32>
    %720 = vector.shape_cast %719 : vector<8xf32> to vector<8x1xf32>
    %cst_220 = arith.constant 3.200000e+01 : f32
    %721 = vector.broadcast %cst_220 : f32 to vector<8x1xf32>
    %722 = arith.divf %720, %721 : vector<8x1xf32>
    %723 = arith.mulf %717, %717 : vector<8x1xf32>
    %724 = arith.subf %722, %723 : vector<8x1xf32>
    %725 = vector.broadcast %717 : vector<8x1xf32> to vector<8x32xf32>
    %726 = arith.subf %687, %725 : vector<8x32xf32>
    %cst_221 = arith.constant 9.99999974E-6 : f32
    %727 = vector.broadcast %cst_221 : f32 to vector<8x1xf32>
    %728 = arith.addf %724, %727 : vector<8x1xf32>
    %729 = math.rsqrt %728 : vector<8x1xf32>
    %730 = vector.broadcast %729 : vector<8x1xf32> to vector<8x32xf32>
    %731 = arith.mulf %726, %730 : vector<8x32xf32>
    %732 = vector.broadcast %712 : vector<1x32xf32> to vector<8x32xf32>
    %733 = arith.mulf %731, %732 : vector<8x32xf32>
    %734 = vector.broadcast %713 : vector<1x32xf32> to vector<8x32xf32>
    %735 = arith.addf %733, %734 : vector<8x32xf32>
    %c1080 = arith.constant 1080 : index
    %c0_222 = arith.constant 0 : index
    %736 = vector.load %arg3[%c1080, %c0_222] : memref<2768x128xf32, #tpu.memory_space<vmem>>, vector<32x32xf32>
    %c1112 = arith.constant 1112 : index
    %c0_223 = arith.constant 0 : index
    %737 = vector.load %arg3[%c1112, %c0_223] : memref<2768x128xf32, #tpu.memory_space<vmem>>, vector<1x32xf32>
    %cst_224 = arith.constant dense<0.000000e+00> : vector<8x32xf32>
    %738 = tpu.matmul %711, %736, %cst_224 {dimension_numbers = #tpu.dot_dimension_numbers<[1], [0], [0], [1], [0, 0, 1, 1], [], []>} : vector<8x32xf32>, vector<32x32xf32>, vector<8x32xf32> -> vector<8x32xf32>
    %739 = vector.broadcast %737 : vector<1x32xf32> to vector<8x32xf32>
    %740 = arith.addf %738, %739 : vector<8x32xf32>
    %c1120 = arith.constant 1120 : index
    %c0_225 = arith.constant 0 : index
    %741 = vector.load %arg3[%c1120, %c0_225] : memref<2768x128xf32, #tpu.memory_space<vmem>>, vector<32x64xf32>
    %c1152 = arith.constant 1152 : index
    %c0_226 = arith.constant 0 : index
    %742 = vector.load %arg3[%c1152, %c0_226] : memref<2768x128xf32, #tpu.memory_space<vmem>>, vector<1x64xf32>
    %cst_227 = arith.constant dense<0.000000e+00> : vector<8x64xf32>
    %743 = tpu.matmul %735, %741, %cst_227 {dimension_numbers = #tpu.dot_dimension_numbers<[1], [0], [0], [1], [0, 0, 1, 1], [], []>} : vector<8x32xf32>, vector<32x64xf32>, vector<8x64xf32> -> vector<8x64xf32>
    %744 = vector.broadcast %742 : vector<1x64xf32> to vector<8x64xf32>
    %745 = arith.addf %743, %744 : vector<8x64xf32>
    %746 = vector.extract_strided_slice %745 {offsets = [0, 0], sizes = [8, 32], strides = [1, 1]} : vector<8x64xf32> to vector<8x32xf32>
    %747 = vector.extract_strided_slice %745 {offsets = [0, 32], sizes = [8, 32], strides = [1, 1]} : vector<8x64xf32> to vector<8x32xf32>
    %748 = tpu.iota {dimensions = array<i32: 1>} : vector<1x32xi32>
    %c0_i32_228 = arith.constant 0 : i32
    %749 = vector.broadcast %c0_i32_228 : i32 to vector<1x32xi32>
    %750 = arith.cmpi sge, %748, %749 : vector<1x32xi32>
    %c8_i32_229 = arith.constant 8 : i32
    %751 = vector.broadcast %c8_i32_229 : i32 to vector<1x32xi32>
    %752 = arith.cmpi slt, %748, %751 : vector<1x32xi32>
    %753 = arith.andi %750, %752 : vector<1x32xi1>
    %754 = arith.extui %753 : vector<1x32xi1> to vector<1x32xi32>
    %755 = arith.sitofp %754 : vector<1x32xi32> to vector<1x32xf32>
    %756 = vector.broadcast %755 : vector<1x32xf32> to vector<8x32xf32>
    %757 = arith.mulf %740, %756 : vector<8x32xf32>
    %cst_230 = arith.constant dense<0.000000e+00> : vector<8x8xf32>
    %758 = tpu.matmul %757, %746, %cst_230 {dimension_numbers = #tpu.dot_dimension_numbers<[1], [1], [0], [0], [0, 0, 1, 0], [], []>} : vector<8x32xf32>, vector<8x32xf32>, vector<8x8xf32> -> vector<8x8xf32>
    %cst_231 = arith.constant dense<0xFF800000> : vector<8xf32>
    %759 = vector.multi_reduction <maximumf>, %758, %cst_231 [1] : vector<8x8xf32> to vector<8xf32>
    %760 = vector.shape_cast %759 : vector<8xf32> to vector<8x1xf32>
    %761 = vector.broadcast %760 : vector<8x1xf32> to vector<8x8xf32>
    %762 = arith.subf %758, %761 : vector<8x8xf32>
    %763 = math.exp %762 : vector<8x8xf32>
    %cst_232 = arith.constant dense<0.000000e+00> : vector<8xf32>
    %764 = vector.multi_reduction <add>, %763, %cst_232 [1] : vector<8x8xf32> to vector<8xf32>
    %765 = vector.shape_cast %764 : vector<8xf32> to vector<8x1xf32>
    %766 = tpu.reciprocal %765 {approx = true} : vector<8x1xf32> -> vector<8x1xf32>
    %767 = vector.broadcast %766 : vector<8x1xf32> to vector<8x8xf32>
    %768 = arith.mulf %763, %767 : vector<8x8xf32>
    %769 = vector.broadcast %755 : vector<1x32xf32> to vector<8x32xf32>
    %770 = arith.mulf %747, %769 : vector<8x32xf32>
    %cst_233 = arith.constant dense<0.000000e+00> : vector<8x32xf32>
    %771 = tpu.matmul %768, %770, %cst_233 {dimension_numbers = #tpu.dot_dimension_numbers<[1], [0], [0], [1], [0, 0, 1, 1], [], []>} : vector<8x8xf32>, vector<8x32xf32>, vector<8x32xf32> -> vector<8x32xf32>
    %c8_i32_234 = arith.constant 8 : i32
    %772 = vector.broadcast %c8_i32_234 : i32 to vector<1x32xi32>
    %773 = arith.cmpi sge, %748, %772 : vector<1x32xi32>
    %c16_i32_235 = arith.constant 16 : i32
    %774 = vector.broadcast %c16_i32_235 : i32 to vector<1x32xi32>
    %775 = arith.cmpi slt, %748, %774 : vector<1x32xi32>
    %776 = arith.andi %773, %775 : vector<1x32xi1>
    %777 = arith.extui %776 : vector<1x32xi1> to vector<1x32xi32>
    %778 = arith.sitofp %777 : vector<1x32xi32> to vector<1x32xf32>
    %779 = vector.broadcast %778 : vector<1x32xf32> to vector<8x32xf32>
    %780 = arith.mulf %740, %779 : vector<8x32xf32>
    %cst_236 = arith.constant dense<0.000000e+00> : vector<8x8xf32>
    %781 = tpu.matmul %780, %746, %cst_236 {dimension_numbers = #tpu.dot_dimension_numbers<[1], [1], [0], [0], [0, 0, 1, 0], [], []>} : vector<8x32xf32>, vector<8x32xf32>, vector<8x8xf32> -> vector<8x8xf32>
    %cst_237 = arith.constant dense<0xFF800000> : vector<8xf32>
    %782 = vector.multi_reduction <maximumf>, %781, %cst_237 [1] : vector<8x8xf32> to vector<8xf32>
    %783 = vector.shape_cast %782 : vector<8xf32> to vector<8x1xf32>
    %784 = vector.broadcast %783 : vector<8x1xf32> to vector<8x8xf32>
    %785 = arith.subf %781, %784 : vector<8x8xf32>
    %786 = math.exp %785 : vector<8x8xf32>
    %cst_238 = arith.constant dense<0.000000e+00> : vector<8xf32>
    %787 = vector.multi_reduction <add>, %786, %cst_238 [1] : vector<8x8xf32> to vector<8xf32>
    %788 = vector.shape_cast %787 : vector<8xf32> to vector<8x1xf32>
    %789 = tpu.reciprocal %788 {approx = true} : vector<8x1xf32> -> vector<8x1xf32>
    %790 = vector.broadcast %789 : vector<8x1xf32> to vector<8x8xf32>
    %791 = arith.mulf %786, %790 : vector<8x8xf32>
    %792 = vector.broadcast %778 : vector<1x32xf32> to vector<8x32xf32>
    %793 = arith.mulf %747, %792 : vector<8x32xf32>
    %cst_239 = arith.constant dense<0.000000e+00> : vector<8x32xf32>
    %794 = tpu.matmul %791, %793, %cst_239 {dimension_numbers = #tpu.dot_dimension_numbers<[1], [0], [0], [1], [0, 0, 1, 1], [], []>} : vector<8x8xf32>, vector<8x32xf32>, vector<8x32xf32> -> vector<8x32xf32>
    %795 = arith.addf %771, %794 : vector<8x32xf32>
    %c16_i32_240 = arith.constant 16 : i32
    %796 = vector.broadcast %c16_i32_240 : i32 to vector<1x32xi32>
    %797 = arith.cmpi sge, %748, %796 : vector<1x32xi32>
    %c24_i32_241 = arith.constant 24 : i32
    %798 = vector.broadcast %c24_i32_241 : i32 to vector<1x32xi32>
    %799 = arith.cmpi slt, %748, %798 : vector<1x32xi32>
    %800 = arith.andi %797, %799 : vector<1x32xi1>
    %801 = arith.extui %800 : vector<1x32xi1> to vector<1x32xi32>
    %802 = arith.sitofp %801 : vector<1x32xi32> to vector<1x32xf32>
    %803 = vector.broadcast %802 : vector<1x32xf32> to vector<8x32xf32>
    %804 = arith.mulf %740, %803 : vector<8x32xf32>
    %cst_242 = arith.constant dense<0.000000e+00> : vector<8x8xf32>
    %805 = tpu.matmul %804, %746, %cst_242 {dimension_numbers = #tpu.dot_dimension_numbers<[1], [1], [0], [0], [0, 0, 1, 0], [], []>} : vector<8x32xf32>, vector<8x32xf32>, vector<8x8xf32> -> vector<8x8xf32>
    %cst_243 = arith.constant dense<0xFF800000> : vector<8xf32>
    %806 = vector.multi_reduction <maximumf>, %805, %cst_243 [1] : vector<8x8xf32> to vector<8xf32>
    %807 = vector.shape_cast %806 : vector<8xf32> to vector<8x1xf32>
    %808 = vector.broadcast %807 : vector<8x1xf32> to vector<8x8xf32>
    %809 = arith.subf %805, %808 : vector<8x8xf32>
    %810 = math.exp %809 : vector<8x8xf32>
    %cst_244 = arith.constant dense<0.000000e+00> : vector<8xf32>
    %811 = vector.multi_reduction <add>, %810, %cst_244 [1] : vector<8x8xf32> to vector<8xf32>
    %812 = vector.shape_cast %811 : vector<8xf32> to vector<8x1xf32>
    %813 = tpu.reciprocal %812 {approx = true} : vector<8x1xf32> -> vector<8x1xf32>
    %814 = vector.broadcast %813 : vector<8x1xf32> to vector<8x8xf32>
    %815 = arith.mulf %810, %814 : vector<8x8xf32>
    %816 = vector.broadcast %802 : vector<1x32xf32> to vector<8x32xf32>
    %817 = arith.mulf %747, %816 : vector<8x32xf32>
    %cst_245 = arith.constant dense<0.000000e+00> : vector<8x32xf32>
    %818 = tpu.matmul %815, %817, %cst_245 {dimension_numbers = #tpu.dot_dimension_numbers<[1], [0], [0], [1], [0, 0, 1, 1], [], []>} : vector<8x8xf32>, vector<8x32xf32>, vector<8x32xf32> -> vector<8x32xf32>
    %819 = arith.addf %795, %818 : vector<8x32xf32>
    %c24_i32_246 = arith.constant 24 : i32
    %820 = vector.broadcast %c24_i32_246 : i32 to vector<1x32xi32>
    %821 = arith.cmpi sge, %748, %820 : vector<1x32xi32>
    %c32_i32_247 = arith.constant 32 : i32
    %822 = vector.broadcast %c32_i32_247 : i32 to vector<1x32xi32>
    %823 = arith.cmpi slt, %748, %822 : vector<1x32xi32>
    %824 = arith.andi %821, %823 : vector<1x32xi1>
    %825 = arith.extui %824 : vector<1x32xi1> to vector<1x32xi32>
    %826 = arith.sitofp %825 : vector<1x32xi32> to vector<1x32xf32>
    %827 = vector.broadcast %826 : vector<1x32xf32> to vector<8x32xf32>
    %828 = arith.mulf %740, %827 : vector<8x32xf32>
    %cst_248 = arith.constant dense<0.000000e+00> : vector<8x8xf32>
    %829 = tpu.matmul %828, %746, %cst_248 {dimension_numbers = #tpu.dot_dimension_numbers<[1], [1], [0], [0], [0, 0, 1, 0], [], []>} : vector<8x32xf32>, vector<8x32xf32>, vector<8x8xf32> -> vector<8x8xf32>
    %cst_249 = arith.constant dense<0xFF800000> : vector<8xf32>
    %830 = vector.multi_reduction <maximumf>, %829, %cst_249 [1] : vector<8x8xf32> to vector<8xf32>
    %831 = vector.shape_cast %830 : vector<8xf32> to vector<8x1xf32>
    %832 = vector.broadcast %831 : vector<8x1xf32> to vector<8x8xf32>
    %833 = arith.subf %829, %832 : vector<8x8xf32>
    %834 = math.exp %833 : vector<8x8xf32>
    %cst_250 = arith.constant dense<0.000000e+00> : vector<8xf32>
    %835 = vector.multi_reduction <add>, %834, %cst_250 [1] : vector<8x8xf32> to vector<8xf32>
    %836 = vector.shape_cast %835 : vector<8xf32> to vector<8x1xf32>
    %837 = tpu.reciprocal %836 {approx = true} : vector<8x1xf32> -> vector<8x1xf32>
    %838 = vector.broadcast %837 : vector<8x1xf32> to vector<8x8xf32>
    %839 = arith.mulf %834, %838 : vector<8x8xf32>
    %840 = vector.broadcast %826 : vector<1x32xf32> to vector<8x32xf32>
    %841 = arith.mulf %747, %840 : vector<8x32xf32>
    %cst_251 = arith.constant dense<0.000000e+00> : vector<8x32xf32>
    %842 = tpu.matmul %839, %841, %cst_251 {dimension_numbers = #tpu.dot_dimension_numbers<[1], [0], [0], [1], [0, 0, 1, 1], [], []>} : vector<8x8xf32>, vector<8x32xf32>, vector<8x32xf32> -> vector<8x32xf32>
    %843 = arith.addf %819, %842 : vector<8x32xf32>
    %c1160 = arith.constant 1160 : index
    %c0_252 = arith.constant 0 : index
    %844 = vector.load %arg3[%c1160, %c0_252] : memref<2768x128xf32, #tpu.memory_space<vmem>>, vector<32x32xf32>
    %c1192 = arith.constant 1192 : index
    %c0_253 = arith.constant 0 : index
    %845 = vector.load %arg3[%c1192, %c0_253] : memref<2768x128xf32, #tpu.memory_space<vmem>>, vector<1x32xf32>
    %cst_254 = arith.constant dense<0.000000e+00> : vector<8x32xf32>
    %846 = tpu.matmul %843, %844, %cst_254 {dimension_numbers = #tpu.dot_dimension_numbers<[1], [0], [0], [1], [0, 0, 1, 1], [], []>} : vector<8x32xf32>, vector<32x32xf32>, vector<8x32xf32> -> vector<8x32xf32>
    %847 = vector.broadcast %845 : vector<1x32xf32> to vector<8x32xf32>
    %848 = arith.addf %846, %847 : vector<8x32xf32>
    %849 = arith.addf %477, %848 : vector<8x32xf32>
    %c1200 = arith.constant 1200 : index
    %c0_255 = arith.constant 0 : index
    %850 = vector.load %arg3[%c1200, %c0_255] : memref<2768x128xf32, #tpu.memory_space<vmem>>, vector<1x32xf32>
    %c1208 = arith.constant 1208 : index
    %c0_256 = arith.constant 0 : index
    %851 = vector.load %arg3[%c1208, %c0_256] : memref<2768x128xf32, #tpu.memory_space<vmem>>, vector<1x32xf32>
    %cst_257 = arith.constant dense<0.000000e+00> : vector<8xf32>
    %852 = vector.multi_reduction <add>, %849, %cst_257 [1] : vector<8x32xf32> to vector<8xf32>
    %853 = vector.shape_cast %852 : vector<8xf32> to vector<8x1xf32>
    %cst_258 = arith.constant 3.200000e+01 : f32
    %854 = vector.broadcast %cst_258 : f32 to vector<8x1xf32>
    %855 = arith.divf %853, %854 : vector<8x1xf32>
    %856 = arith.mulf %849, %849 : vector<8x32xf32>
    %cst_259 = arith.constant dense<0.000000e+00> : vector<8xf32>
    %857 = vector.multi_reduction <add>, %856, %cst_259 [1] : vector<8x32xf32> to vector<8xf32>
    %858 = vector.shape_cast %857 : vector<8xf32> to vector<8x1xf32>
    %cst_260 = arith.constant 3.200000e+01 : f32
    %859 = vector.broadcast %cst_260 : f32 to vector<8x1xf32>
    %860 = arith.divf %858, %859 : vector<8x1xf32>
    %861 = arith.mulf %855, %855 : vector<8x1xf32>
    %862 = arith.subf %860, %861 : vector<8x1xf32>
    %863 = vector.broadcast %855 : vector<8x1xf32> to vector<8x32xf32>
    %864 = arith.subf %849, %863 : vector<8x32xf32>
    %cst_261 = arith.constant 9.99999974E-6 : f32
    %865 = vector.broadcast %cst_261 : f32 to vector<8x1xf32>
    %866 = arith.addf %862, %865 : vector<8x1xf32>
    %867 = math.rsqrt %866 : vector<8x1xf32>
    %868 = vector.broadcast %867 : vector<8x1xf32> to vector<8x32xf32>
    %869 = arith.mulf %864, %868 : vector<8x32xf32>
    %870 = vector.broadcast %850 : vector<1x32xf32> to vector<8x32xf32>
    %871 = arith.mulf %869, %870 : vector<8x32xf32>
    %872 = vector.broadcast %851 : vector<1x32xf32> to vector<8x32xf32>
    %873 = arith.addf %871, %872 : vector<8x32xf32>
    %c1216 = arith.constant 1216 : index
    %c0_262 = arith.constant 0 : index
    %874 = vector.load %arg3[%c1216, %c0_262] : memref<2768x128xf32, #tpu.memory_space<vmem>>, vector<32x128xf32>
    %c1248 = arith.constant 1248 : index
    %c0_263 = arith.constant 0 : index
    %875 = vector.load %arg3[%c1248, %c0_263] : memref<2768x128xf32, #tpu.memory_space<vmem>>, vector<1x128xf32>
    %cst_264 = arith.constant dense<0.000000e+00> : vector<8x128xf32>
    %876 = tpu.matmul %873, %874, %cst_264 {dimension_numbers = #tpu.dot_dimension_numbers<[1], [0], [0], [1], [0, 0, 1, 1], [], []>} : vector<8x32xf32>, vector<32x128xf32>, vector<8x128xf32> -> vector<8x128xf32>
    %877 = vector.broadcast %875 : vector<1x128xf32> to vector<8x128xf32>
    %878 = arith.addf %876, %877 : vector<8x128xf32>
    %879 = arith.mulf %878, %878 : vector<8x128xf32>
    %880 = arith.mulf %878, %879 : vector<8x128xf32>
    %cst_265 = arith.constant 4.471500e-02 : f32
    %881 = vector.broadcast %cst_265 : f32 to vector<8x128xf32>
    %882 = arith.mulf %881, %880 : vector<8x128xf32>
    %883 = arith.addf %878, %882 : vector<8x128xf32>
    %cst_266 = arith.constant 0.797884583 : f32
    %884 = vector.broadcast %cst_266 : f32 to vector<8x128xf32>
    %885 = arith.mulf %884, %883 : vector<8x128xf32>
    %886 = math.tanh %885 : vector<8x128xf32>
    %cst_267 = arith.constant 1.000000e+00 : f32
    %887 = vector.broadcast %cst_267 : f32 to vector<8x128xf32>
    %888 = arith.addf %887, %886 : vector<8x128xf32>
    %cst_268 = arith.constant 5.000000e-01 : f32
    %889 = vector.broadcast %cst_268 : f32 to vector<8x128xf32>
    %890 = arith.mulf %889, %888 : vector<8x128xf32>
    %891 = arith.mulf %878, %890 : vector<8x128xf32>
    %c1256 = arith.constant 1256 : index
    %c0_269 = arith.constant 0 : index
    %892 = vector.load %arg3[%c1256, %c0_269] : memref<2768x128xf32, #tpu.memory_space<vmem>>, vector<128x32xf32>
    %c1384 = arith.constant 1384 : index
    %c0_270 = arith.constant 0 : index
    %893 = vector.load %arg3[%c1384, %c0_270] : memref<2768x128xf32, #tpu.memory_space<vmem>>, vector<1x32xf32>
    %cst_271 = arith.constant dense<0.000000e+00> : vector<8x32xf32>
    %894 = tpu.matmul %891, %892, %cst_271 {dimension_numbers = #tpu.dot_dimension_numbers<[1], [0], [0], [1], [0, 0, 1, 1], [], []>} : vector<8x128xf32>, vector<128x32xf32>, vector<8x32xf32> -> vector<8x32xf32>
    %895 = vector.broadcast %893 : vector<1x32xf32> to vector<8x32xf32>
    %896 = arith.addf %894, %895 : vector<8x32xf32>
    %897 = arith.addf %849, %896 : vector<8x32xf32>
    %c1392 = arith.constant 1392 : index
    %c0_272 = arith.constant 0 : index
    %898 = vector.load %arg3[%c1392, %c0_272] : memref<2768x128xf32, #tpu.memory_space<vmem>>, vector<1x32xf32>
    %c1400 = arith.constant 1400 : index
    %c0_273 = arith.constant 0 : index
    %899 = vector.load %arg3[%c1400, %c0_273] : memref<2768x128xf32, #tpu.memory_space<vmem>>, vector<1x32xf32>
    %cst_274 = arith.constant dense<0.000000e+00> : vector<8xf32>
    %900 = vector.multi_reduction <add>, %687, %cst_274 [1] : vector<8x32xf32> to vector<8xf32>
    %901 = vector.shape_cast %900 : vector<8xf32> to vector<8x1xf32>
    %cst_275 = arith.constant 3.200000e+01 : f32
    %902 = vector.broadcast %cst_275 : f32 to vector<8x1xf32>
    %903 = arith.divf %901, %902 : vector<8x1xf32>
    %904 = arith.mulf %687, %687 : vector<8x32xf32>
    %cst_276 = arith.constant dense<0.000000e+00> : vector<8xf32>
    %905 = vector.multi_reduction <add>, %904, %cst_276 [1] : vector<8x32xf32> to vector<8xf32>
    %906 = vector.shape_cast %905 : vector<8xf32> to vector<8x1xf32>
    %cst_277 = arith.constant 3.200000e+01 : f32
    %907 = vector.broadcast %cst_277 : f32 to vector<8x1xf32>
    %908 = arith.divf %906, %907 : vector<8x1xf32>
    %909 = arith.mulf %903, %903 : vector<8x1xf32>
    %910 = arith.subf %908, %909 : vector<8x1xf32>
    %911 = vector.broadcast %903 : vector<8x1xf32> to vector<8x32xf32>
    %912 = arith.subf %687, %911 : vector<8x32xf32>
    %cst_278 = arith.constant 9.99999974E-6 : f32
    %913 = vector.broadcast %cst_278 : f32 to vector<8x1xf32>
    %914 = arith.addf %910, %913 : vector<8x1xf32>
    %915 = math.rsqrt %914 : vector<8x1xf32>
    %916 = vector.broadcast %915 : vector<8x1xf32> to vector<8x32xf32>
    %917 = arith.mulf %912, %916 : vector<8x32xf32>
    %918 = vector.broadcast %898 : vector<1x32xf32> to vector<8x32xf32>
    %919 = arith.mulf %917, %918 : vector<8x32xf32>
    %920 = vector.broadcast %899 : vector<1x32xf32> to vector<8x32xf32>
    %921 = arith.addf %919, %920 : vector<8x32xf32>
    %c1408 = arith.constant 1408 : index
    %c0_279 = arith.constant 0 : index
    %922 = vector.load %arg3[%c1408, %c0_279] : memref<2768x128xf32, #tpu.memory_space<vmem>>, vector<32x96xf32>
    %c1440 = arith.constant 1440 : index
    %c0_280 = arith.constant 0 : index
    %923 = vector.load %arg3[%c1440, %c0_280] : memref<2768x128xf32, #tpu.memory_space<vmem>>, vector<1x96xf32>
    %cst_281 = arith.constant dense<0.000000e+00> : vector<8x96xf32>
    %924 = tpu.matmul %921, %922, %cst_281 {dimension_numbers = #tpu.dot_dimension_numbers<[1], [0], [0], [1], [0, 0, 1, 1], [], []>} : vector<8x32xf32>, vector<32x96xf32>, vector<8x96xf32> -> vector<8x96xf32>
    %925 = vector.broadcast %923 : vector<1x96xf32> to vector<8x96xf32>
    %926 = arith.addf %924, %925 : vector<8x96xf32>
    %927 = vector.extract_strided_slice %926 {offsets = [0, 0], sizes = [8, 32], strides = [1, 1]} : vector<8x96xf32> to vector<8x32xf32>
    %928 = vector.extract_strided_slice %926 {offsets = [0, 32], sizes = [8, 32], strides = [1, 1]} : vector<8x96xf32> to vector<8x32xf32>
    %929 = vector.extract_strided_slice %926 {offsets = [0, 64], sizes = [8, 32], strides = [1, 1]} : vector<8x96xf32> to vector<8x32xf32>
    %930 = tpu.iota {dimensions = array<i32: 1>} : vector<1x32xi32>
    %c0_i32_282 = arith.constant 0 : i32
    %931 = vector.broadcast %c0_i32_282 : i32 to vector<1x32xi32>
    %932 = arith.cmpi sge, %930, %931 : vector<1x32xi32>
    %c8_i32_283 = arith.constant 8 : i32
    %933 = vector.broadcast %c8_i32_283 : i32 to vector<1x32xi32>
    %934 = arith.cmpi slt, %930, %933 : vector<1x32xi32>
    %935 = arith.andi %932, %934 : vector<1x32xi1>
    %936 = arith.extui %935 : vector<1x32xi1> to vector<1x32xi32>
    %937 = arith.sitofp %936 : vector<1x32xi32> to vector<1x32xf32>
    %938 = vector.broadcast %937 : vector<1x32xf32> to vector<8x32xf32>
    %939 = arith.mulf %927, %938 : vector<8x32xf32>
    %cst_284 = arith.constant dense<0.000000e+00> : vector<8x8xf32>
    %940 = tpu.matmul %939, %928, %cst_284 {dimension_numbers = #tpu.dot_dimension_numbers<[1], [1], [0], [0], [0, 0, 1, 0], [], []>} : vector<8x32xf32>, vector<8x32xf32>, vector<8x8xf32> -> vector<8x8xf32>
    %cst_285 = arith.constant dense<0xFF800000> : vector<8xf32>
    %941 = vector.multi_reduction <maximumf>, %940, %cst_285 [1] : vector<8x8xf32> to vector<8xf32>
    %942 = vector.shape_cast %941 : vector<8xf32> to vector<8x1xf32>
    %943 = vector.broadcast %942 : vector<8x1xf32> to vector<8x8xf32>
    %944 = arith.subf %940, %943 : vector<8x8xf32>
    %945 = math.exp %944 : vector<8x8xf32>
    %cst_286 = arith.constant dense<0.000000e+00> : vector<8xf32>
    %946 = vector.multi_reduction <add>, %945, %cst_286 [1] : vector<8x8xf32> to vector<8xf32>
    %947 = vector.shape_cast %946 : vector<8xf32> to vector<8x1xf32>
    %948 = tpu.reciprocal %947 {approx = true} : vector<8x1xf32> -> vector<8x1xf32>
    %949 = vector.broadcast %948 : vector<8x1xf32> to vector<8x8xf32>
    %950 = arith.mulf %945, %949 : vector<8x8xf32>
    %951 = vector.broadcast %937 : vector<1x32xf32> to vector<8x32xf32>
    %952 = arith.mulf %929, %951 : vector<8x32xf32>
    %cst_287 = arith.constant dense<0.000000e+00> : vector<8x32xf32>
    %953 = tpu.matmul %950, %952, %cst_287 {dimension_numbers = #tpu.dot_dimension_numbers<[1], [0], [0], [1], [0, 0, 1, 1], [], []>} : vector<8x8xf32>, vector<8x32xf32>, vector<8x32xf32> -> vector<8x32xf32>
    %c8_i32_288 = arith.constant 8 : i32
    %954 = vector.broadcast %c8_i32_288 : i32 to vector<1x32xi32>
    %955 = arith.cmpi sge, %930, %954 : vector<1x32xi32>
    %c16_i32_289 = arith.constant 16 : i32
    %956 = vector.broadcast %c16_i32_289 : i32 to vector<1x32xi32>
    %957 = arith.cmpi slt, %930, %956 : vector<1x32xi32>
    %958 = arith.andi %955, %957 : vector<1x32xi1>
    %959 = arith.extui %958 : vector<1x32xi1> to vector<1x32xi32>
    %960 = arith.sitofp %959 : vector<1x32xi32> to vector<1x32xf32>
    %961 = vector.broadcast %960 : vector<1x32xf32> to vector<8x32xf32>
    %962 = arith.mulf %927, %961 : vector<8x32xf32>
    %cst_290 = arith.constant dense<0.000000e+00> : vector<8x8xf32>
    %963 = tpu.matmul %962, %928, %cst_290 {dimension_numbers = #tpu.dot_dimension_numbers<[1], [1], [0], [0], [0, 0, 1, 0], [], []>} : vector<8x32xf32>, vector<8x32xf32>, vector<8x8xf32> -> vector<8x8xf32>
    %cst_291 = arith.constant dense<0xFF800000> : vector<8xf32>
    %964 = vector.multi_reduction <maximumf>, %963, %cst_291 [1] : vector<8x8xf32> to vector<8xf32>
    %965 = vector.shape_cast %964 : vector<8xf32> to vector<8x1xf32>
    %966 = vector.broadcast %965 : vector<8x1xf32> to vector<8x8xf32>
    %967 = arith.subf %963, %966 : vector<8x8xf32>
    %968 = math.exp %967 : vector<8x8xf32>
    %cst_292 = arith.constant dense<0.000000e+00> : vector<8xf32>
    %969 = vector.multi_reduction <add>, %968, %cst_292 [1] : vector<8x8xf32> to vector<8xf32>
    %970 = vector.shape_cast %969 : vector<8xf32> to vector<8x1xf32>
    %971 = tpu.reciprocal %970 {approx = true} : vector<8x1xf32> -> vector<8x1xf32>
    %972 = vector.broadcast %971 : vector<8x1xf32> to vector<8x8xf32>
    %973 = arith.mulf %968, %972 : vector<8x8xf32>
    %974 = vector.broadcast %960 : vector<1x32xf32> to vector<8x32xf32>
    %975 = arith.mulf %929, %974 : vector<8x32xf32>
    %cst_293 = arith.constant dense<0.000000e+00> : vector<8x32xf32>
    %976 = tpu.matmul %973, %975, %cst_293 {dimension_numbers = #tpu.dot_dimension_numbers<[1], [0], [0], [1], [0, 0, 1, 1], [], []>} : vector<8x8xf32>, vector<8x32xf32>, vector<8x32xf32> -> vector<8x32xf32>
    %977 = arith.addf %953, %976 : vector<8x32xf32>
    %c16_i32_294 = arith.constant 16 : i32
    %978 = vector.broadcast %c16_i32_294 : i32 to vector<1x32xi32>
    %979 = arith.cmpi sge, %930, %978 : vector<1x32xi32>
    %c24_i32_295 = arith.constant 24 : i32
    %980 = vector.broadcast %c24_i32_295 : i32 to vector<1x32xi32>
    %981 = arith.cmpi slt, %930, %980 : vector<1x32xi32>
    %982 = arith.andi %979, %981 : vector<1x32xi1>
    %983 = arith.extui %982 : vector<1x32xi1> to vector<1x32xi32>
    %984 = arith.sitofp %983 : vector<1x32xi32> to vector<1x32xf32>
    %985 = vector.broadcast %984 : vector<1x32xf32> to vector<8x32xf32>
    %986 = arith.mulf %927, %985 : vector<8x32xf32>
    %cst_296 = arith.constant dense<0.000000e+00> : vector<8x8xf32>
    %987 = tpu.matmul %986, %928, %cst_296 {dimension_numbers = #tpu.dot_dimension_numbers<[1], [1], [0], [0], [0, 0, 1, 0], [], []>} : vector<8x32xf32>, vector<8x32xf32>, vector<8x8xf32> -> vector<8x8xf32>
    %cst_297 = arith.constant dense<0xFF800000> : vector<8xf32>
    %988 = vector.multi_reduction <maximumf>, %987, %cst_297 [1] : vector<8x8xf32> to vector<8xf32>
    %989 = vector.shape_cast %988 : vector<8xf32> to vector<8x1xf32>
    %990 = vector.broadcast %989 : vector<8x1xf32> to vector<8x8xf32>
    %991 = arith.subf %987, %990 : vector<8x8xf32>
    %992 = math.exp %991 : vector<8x8xf32>
    %cst_298 = arith.constant dense<0.000000e+00> : vector<8xf32>
    %993 = vector.multi_reduction <add>, %992, %cst_298 [1] : vector<8x8xf32> to vector<8xf32>
    %994 = vector.shape_cast %993 : vector<8xf32> to vector<8x1xf32>
    %995 = tpu.reciprocal %994 {approx = true} : vector<8x1xf32> -> vector<8x1xf32>
    %996 = vector.broadcast %995 : vector<8x1xf32> to vector<8x8xf32>
    %997 = arith.mulf %992, %996 : vector<8x8xf32>
    %998 = vector.broadcast %984 : vector<1x32xf32> to vector<8x32xf32>
    %999 = arith.mulf %929, %998 : vector<8x32xf32>
    %cst_299 = arith.constant dense<0.000000e+00> : vector<8x32xf32>
    %1000 = tpu.matmul %997, %999, %cst_299 {dimension_numbers = #tpu.dot_dimension_numbers<[1], [0], [0], [1], [0, 0, 1, 1], [], []>} : vector<8x8xf32>, vector<8x32xf32>, vector<8x32xf32> -> vector<8x32xf32>
    %1001 = arith.addf %977, %1000 : vector<8x32xf32>
    %c24_i32_300 = arith.constant 24 : i32
    %1002 = vector.broadcast %c24_i32_300 : i32 to vector<1x32xi32>
    %1003 = arith.cmpi sge, %930, %1002 : vector<1x32xi32>
    %c32_i32_301 = arith.constant 32 : i32
    %1004 = vector.broadcast %c32_i32_301 : i32 to vector<1x32xi32>
    %1005 = arith.cmpi slt, %930, %1004 : vector<1x32xi32>
    %1006 = arith.andi %1003, %1005 : vector<1x32xi1>
    %1007 = arith.extui %1006 : vector<1x32xi1> to vector<1x32xi32>
    %1008 = arith.sitofp %1007 : vector<1x32xi32> to vector<1x32xf32>
    %1009 = vector.broadcast %1008 : vector<1x32xf32> to vector<8x32xf32>
    %1010 = arith.mulf %927, %1009 : vector<8x32xf32>
    %cst_302 = arith.constant dense<0.000000e+00> : vector<8x8xf32>
    %1011 = tpu.matmul %1010, %928, %cst_302 {dimension_numbers = #tpu.dot_dimension_numbers<[1], [1], [0], [0], [0, 0, 1, 0], [], []>} : vector<8x32xf32>, vector<8x32xf32>, vector<8x8xf32> -> vector<8x8xf32>
    %cst_303 = arith.constant dense<0xFF800000> : vector<8xf32>
    %1012 = vector.multi_reduction <maximumf>, %1011, %cst_303 [1] : vector<8x8xf32> to vector<8xf32>
    %1013 = vector.shape_cast %1012 : vector<8xf32> to vector<8x1xf32>
    %1014 = vector.broadcast %1013 : vector<8x1xf32> to vector<8x8xf32>
    %1015 = arith.subf %1011, %1014 : vector<8x8xf32>
    %1016 = math.exp %1015 : vector<8x8xf32>
    %cst_304 = arith.constant dense<0.000000e+00> : vector<8xf32>
    %1017 = vector.multi_reduction <add>, %1016, %cst_304 [1] : vector<8x8xf32> to vector<8xf32>
    %1018 = vector.shape_cast %1017 : vector<8xf32> to vector<8x1xf32>
    %1019 = tpu.reciprocal %1018 {approx = true} : vector<8x1xf32> -> vector<8x1xf32>
    %1020 = vector.broadcast %1019 : vector<8x1xf32> to vector<8x8xf32>
    %1021 = arith.mulf %1016, %1020 : vector<8x8xf32>
    %1022 = vector.broadcast %1008 : vector<1x32xf32> to vector<8x32xf32>
    %1023 = arith.mulf %929, %1022 : vector<8x32xf32>
    %cst_305 = arith.constant dense<0.000000e+00> : vector<8x32xf32>
    %1024 = tpu.matmul %1021, %1023, %cst_305 {dimension_numbers = #tpu.dot_dimension_numbers<[1], [0], [0], [1], [0, 0, 1, 1], [], []>} : vector<8x8xf32>, vector<8x32xf32>, vector<8x32xf32> -> vector<8x32xf32>
    %1025 = arith.addf %1001, %1024 : vector<8x32xf32>
    %c1448 = arith.constant 1448 : index
    %c0_306 = arith.constant 0 : index
    %1026 = vector.load %arg3[%c1448, %c0_306] : memref<2768x128xf32, #tpu.memory_space<vmem>>, vector<32x32xf32>
    %c1480 = arith.constant 1480 : index
    %c0_307 = arith.constant 0 : index
    %1027 = vector.load %arg3[%c1480, %c0_307] : memref<2768x128xf32, #tpu.memory_space<vmem>>, vector<1x32xf32>
    %cst_308 = arith.constant dense<0.000000e+00> : vector<8x32xf32>
    %1028 = tpu.matmul %1025, %1026, %cst_308 {dimension_numbers = #tpu.dot_dimension_numbers<[1], [0], [0], [1], [0, 0, 1, 1], [], []>} : vector<8x32xf32>, vector<32x32xf32>, vector<8x32xf32> -> vector<8x32xf32>
    %1029 = vector.broadcast %1027 : vector<1x32xf32> to vector<8x32xf32>
    %1030 = arith.addf %1028, %1029 : vector<8x32xf32>
    %1031 = arith.addf %687, %1030 : vector<8x32xf32>
    %c1488 = arith.constant 1488 : index
    %c0_309 = arith.constant 0 : index
    %1032 = vector.load %arg3[%c1488, %c0_309] : memref<2768x128xf32, #tpu.memory_space<vmem>>, vector<1x32xf32>
    %c1496 = arith.constant 1496 : index
    %c0_310 = arith.constant 0 : index
    %1033 = vector.load %arg3[%c1496, %c0_310] : memref<2768x128xf32, #tpu.memory_space<vmem>>, vector<1x32xf32>
    %cst_311 = arith.constant dense<0.000000e+00> : vector<8xf32>
    %1034 = vector.multi_reduction <add>, %1031, %cst_311 [1] : vector<8x32xf32> to vector<8xf32>
    %1035 = vector.shape_cast %1034 : vector<8xf32> to vector<8x1xf32>
    %cst_312 = arith.constant 3.200000e+01 : f32
    %1036 = vector.broadcast %cst_312 : f32 to vector<8x1xf32>
    %1037 = arith.divf %1035, %1036 : vector<8x1xf32>
    %1038 = arith.mulf %1031, %1031 : vector<8x32xf32>
    %cst_313 = arith.constant dense<0.000000e+00> : vector<8xf32>
    %1039 = vector.multi_reduction <add>, %1038, %cst_313 [1] : vector<8x32xf32> to vector<8xf32>
    %1040 = vector.shape_cast %1039 : vector<8xf32> to vector<8x1xf32>
    %cst_314 = arith.constant 3.200000e+01 : f32
    %1041 = vector.broadcast %cst_314 : f32 to vector<8x1xf32>
    %1042 = arith.divf %1040, %1041 : vector<8x1xf32>
    %1043 = arith.mulf %1037, %1037 : vector<8x1xf32>
    %1044 = arith.subf %1042, %1043 : vector<8x1xf32>
    %1045 = vector.broadcast %1037 : vector<8x1xf32> to vector<8x32xf32>
    %1046 = arith.subf %1031, %1045 : vector<8x32xf32>
    %cst_315 = arith.constant 9.99999974E-6 : f32
    %1047 = vector.broadcast %cst_315 : f32 to vector<8x1xf32>
    %1048 = arith.addf %1044, %1047 : vector<8x1xf32>
    %1049 = math.rsqrt %1048 : vector<8x1xf32>
    %1050 = vector.broadcast %1049 : vector<8x1xf32> to vector<8x32xf32>
    %1051 = arith.mulf %1046, %1050 : vector<8x32xf32>
    %1052 = vector.broadcast %1032 : vector<1x32xf32> to vector<8x32xf32>
    %1053 = arith.mulf %1051, %1052 : vector<8x32xf32>
    %1054 = vector.broadcast %1033 : vector<1x32xf32> to vector<8x32xf32>
    %1055 = arith.addf %1053, %1054 : vector<8x32xf32>
    %c1504 = arith.constant 1504 : index
    %c0_316 = arith.constant 0 : index
    %1056 = vector.load %arg3[%c1504, %c0_316] : memref<2768x128xf32, #tpu.memory_space<vmem>>, vector<32x128xf32>
    %c1536 = arith.constant 1536 : index
    %c0_317 = arith.constant 0 : index
    %1057 = vector.load %arg3[%c1536, %c0_317] : memref<2768x128xf32, #tpu.memory_space<vmem>>, vector<1x128xf32>
    %cst_318 = arith.constant dense<0.000000e+00> : vector<8x128xf32>
    %1058 = tpu.matmul %1055, %1056, %cst_318 {dimension_numbers = #tpu.dot_dimension_numbers<[1], [0], [0], [1], [0, 0, 1, 1], [], []>} : vector<8x32xf32>, vector<32x128xf32>, vector<8x128xf32> -> vector<8x128xf32>
    %1059 = vector.broadcast %1057 : vector<1x128xf32> to vector<8x128xf32>
    %1060 = arith.addf %1058, %1059 : vector<8x128xf32>
    %1061 = arith.mulf %1060, %1060 : vector<8x128xf32>
    %1062 = arith.mulf %1060, %1061 : vector<8x128xf32>
    %cst_319 = arith.constant 4.471500e-02 : f32
    %1063 = vector.broadcast %cst_319 : f32 to vector<8x128xf32>
    %1064 = arith.mulf %1063, %1062 : vector<8x128xf32>
    %1065 = arith.addf %1060, %1064 : vector<8x128xf32>
    %cst_320 = arith.constant 0.797884583 : f32
    %1066 = vector.broadcast %cst_320 : f32 to vector<8x128xf32>
    %1067 = arith.mulf %1066, %1065 : vector<8x128xf32>
    %1068 = math.tanh %1067 : vector<8x128xf32>
    %cst_321 = arith.constant 1.000000e+00 : f32
    %1069 = vector.broadcast %cst_321 : f32 to vector<8x128xf32>
    %1070 = arith.addf %1069, %1068 : vector<8x128xf32>
    %cst_322 = arith.constant 5.000000e-01 : f32
    %1071 = vector.broadcast %cst_322 : f32 to vector<8x128xf32>
    %1072 = arith.mulf %1071, %1070 : vector<8x128xf32>
    %1073 = arith.mulf %1060, %1072 : vector<8x128xf32>
    %c1544 = arith.constant 1544 : index
    %c0_323 = arith.constant 0 : index
    %1074 = vector.load %arg3[%c1544, %c0_323] : memref<2768x128xf32, #tpu.memory_space<vmem>>, vector<128x32xf32>
    %c1672 = arith.constant 1672 : index
    %c0_324 = arith.constant 0 : index
    %1075 = vector.load %arg3[%c1672, %c0_324] : memref<2768x128xf32, #tpu.memory_space<vmem>>, vector<1x32xf32>
    %cst_325 = arith.constant dense<0.000000e+00> : vector<8x32xf32>
    %1076 = tpu.matmul %1073, %1074, %cst_325 {dimension_numbers = #tpu.dot_dimension_numbers<[1], [0], [0], [1], [0, 0, 1, 1], [], []>} : vector<8x128xf32>, vector<128x32xf32>, vector<8x32xf32> -> vector<8x32xf32>
    %1077 = vector.broadcast %1075 : vector<1x32xf32> to vector<8x32xf32>
    %1078 = arith.addf %1076, %1077 : vector<8x32xf32>
    %1079 = arith.addf %1031, %1078 : vector<8x32xf32>
    %c1680 = arith.constant 1680 : index
    %c0_326 = arith.constant 0 : index
    %1080 = vector.load %arg3[%c1680, %c0_326] : memref<2768x128xf32, #tpu.memory_space<vmem>>, vector<1x32xf32>
    %c1688 = arith.constant 1688 : index
    %c0_327 = arith.constant 0 : index
    %1081 = vector.load %arg3[%c1688, %c0_327] : memref<2768x128xf32, #tpu.memory_space<vmem>>, vector<1x32xf32>
    %cst_328 = arith.constant dense<0.000000e+00> : vector<8xf32>
    %1082 = vector.multi_reduction <add>, %897, %cst_328 [1] : vector<8x32xf32> to vector<8xf32>
    %1083 = vector.shape_cast %1082 : vector<8xf32> to vector<8x1xf32>
    %cst_329 = arith.constant 3.200000e+01 : f32
    %1084 = vector.broadcast %cst_329 : f32 to vector<8x1xf32>
    %1085 = arith.divf %1083, %1084 : vector<8x1xf32>
    %1086 = arith.mulf %897, %897 : vector<8x32xf32>
    %cst_330 = arith.constant dense<0.000000e+00> : vector<8xf32>
    %1087 = vector.multi_reduction <add>, %1086, %cst_330 [1] : vector<8x32xf32> to vector<8xf32>
    %1088 = vector.shape_cast %1087 : vector<8xf32> to vector<8x1xf32>
    %cst_331 = arith.constant 3.200000e+01 : f32
    %1089 = vector.broadcast %cst_331 : f32 to vector<8x1xf32>
    %1090 = arith.divf %1088, %1089 : vector<8x1xf32>
    %1091 = arith.mulf %1085, %1085 : vector<8x1xf32>
    %1092 = arith.subf %1090, %1091 : vector<8x1xf32>
    %1093 = vector.broadcast %1085 : vector<8x1xf32> to vector<8x32xf32>
    %1094 = arith.subf %897, %1093 : vector<8x32xf32>
    %cst_332 = arith.constant 9.99999974E-6 : f32
    %1095 = vector.broadcast %cst_332 : f32 to vector<8x1xf32>
    %1096 = arith.addf %1092, %1095 : vector<8x1xf32>
    %1097 = math.rsqrt %1096 : vector<8x1xf32>
    %1098 = vector.broadcast %1097 : vector<8x1xf32> to vector<8x32xf32>
    %1099 = arith.mulf %1094, %1098 : vector<8x32xf32>
    %1100 = vector.broadcast %1080 : vector<1x32xf32> to vector<8x32xf32>
    %1101 = arith.mulf %1099, %1100 : vector<8x32xf32>
    %1102 = vector.broadcast %1081 : vector<1x32xf32> to vector<8x32xf32>
    %1103 = arith.addf %1101, %1102 : vector<8x32xf32>
    %c1696 = arith.constant 1696 : index
    %c0_333 = arith.constant 0 : index
    %1104 = vector.load %arg3[%c1696, %c0_333] : memref<2768x128xf32, #tpu.memory_space<vmem>>, vector<32x96xf32>
    %c1728 = arith.constant 1728 : index
    %c0_334 = arith.constant 0 : index
    %1105 = vector.load %arg3[%c1728, %c0_334] : memref<2768x128xf32, #tpu.memory_space<vmem>>, vector<1x96xf32>
    %cst_335 = arith.constant dense<0.000000e+00> : vector<8x96xf32>
    %1106 = tpu.matmul %1103, %1104, %cst_335 {dimension_numbers = #tpu.dot_dimension_numbers<[1], [0], [0], [1], [0, 0, 1, 1], [], []>} : vector<8x32xf32>, vector<32x96xf32>, vector<8x96xf32> -> vector<8x96xf32>
    %1107 = vector.broadcast %1105 : vector<1x96xf32> to vector<8x96xf32>
    %1108 = arith.addf %1106, %1107 : vector<8x96xf32>
    %1109 = vector.extract_strided_slice %1108 {offsets = [0, 0], sizes = [8, 32], strides = [1, 1]} : vector<8x96xf32> to vector<8x32xf32>
    %1110 = vector.extract_strided_slice %1108 {offsets = [0, 32], sizes = [8, 32], strides = [1, 1]} : vector<8x96xf32> to vector<8x32xf32>
    %1111 = vector.extract_strided_slice %1108 {offsets = [0, 64], sizes = [8, 32], strides = [1, 1]} : vector<8x96xf32> to vector<8x32xf32>
    %1112 = tpu.iota {dimensions = array<i32: 1>} : vector<1x32xi32>
    %c0_i32_336 = arith.constant 0 : i32
    %1113 = vector.broadcast %c0_i32_336 : i32 to vector<1x32xi32>
    %1114 = arith.cmpi sge, %1112, %1113 : vector<1x32xi32>
    %c8_i32_337 = arith.constant 8 : i32
    %1115 = vector.broadcast %c8_i32_337 : i32 to vector<1x32xi32>
    %1116 = arith.cmpi slt, %1112, %1115 : vector<1x32xi32>
    %1117 = arith.andi %1114, %1116 : vector<1x32xi1>
    %1118 = arith.extui %1117 : vector<1x32xi1> to vector<1x32xi32>
    %1119 = arith.sitofp %1118 : vector<1x32xi32> to vector<1x32xf32>
    %1120 = vector.broadcast %1119 : vector<1x32xf32> to vector<8x32xf32>
    %1121 = arith.mulf %1109, %1120 : vector<8x32xf32>
    %cst_338 = arith.constant dense<0.000000e+00> : vector<8x8xf32>
    %1122 = tpu.matmul %1121, %1110, %cst_338 {dimension_numbers = #tpu.dot_dimension_numbers<[1], [1], [0], [0], [0, 0, 1, 0], [], []>} : vector<8x32xf32>, vector<8x32xf32>, vector<8x8xf32> -> vector<8x8xf32>
    %cst_339 = arith.constant dense<0xFF800000> : vector<8xf32>
    %1123 = vector.multi_reduction <maximumf>, %1122, %cst_339 [1] : vector<8x8xf32> to vector<8xf32>
    %1124 = vector.shape_cast %1123 : vector<8xf32> to vector<8x1xf32>
    %1125 = vector.broadcast %1124 : vector<8x1xf32> to vector<8x8xf32>
    %1126 = arith.subf %1122, %1125 : vector<8x8xf32>
    %1127 = math.exp %1126 : vector<8x8xf32>
    %cst_340 = arith.constant dense<0.000000e+00> : vector<8xf32>
    %1128 = vector.multi_reduction <add>, %1127, %cst_340 [1] : vector<8x8xf32> to vector<8xf32>
    %1129 = vector.shape_cast %1128 : vector<8xf32> to vector<8x1xf32>
    %1130 = tpu.reciprocal %1129 {approx = true} : vector<8x1xf32> -> vector<8x1xf32>
    %1131 = vector.broadcast %1130 : vector<8x1xf32> to vector<8x8xf32>
    %1132 = arith.mulf %1127, %1131 : vector<8x8xf32>
    %1133 = vector.broadcast %1119 : vector<1x32xf32> to vector<8x32xf32>
    %1134 = arith.mulf %1111, %1133 : vector<8x32xf32>
    %cst_341 = arith.constant dense<0.000000e+00> : vector<8x32xf32>
    %1135 = tpu.matmul %1132, %1134, %cst_341 {dimension_numbers = #tpu.dot_dimension_numbers<[1], [0], [0], [1], [0, 0, 1, 1], [], []>} : vector<8x8xf32>, vector<8x32xf32>, vector<8x32xf32> -> vector<8x32xf32>
    %c8_i32_342 = arith.constant 8 : i32
    %1136 = vector.broadcast %c8_i32_342 : i32 to vector<1x32xi32>
    %1137 = arith.cmpi sge, %1112, %1136 : vector<1x32xi32>
    %c16_i32_343 = arith.constant 16 : i32
    %1138 = vector.broadcast %c16_i32_343 : i32 to vector<1x32xi32>
    %1139 = arith.cmpi slt, %1112, %1138 : vector<1x32xi32>
    %1140 = arith.andi %1137, %1139 : vector<1x32xi1>
    %1141 = arith.extui %1140 : vector<1x32xi1> to vector<1x32xi32>
    %1142 = arith.sitofp %1141 : vector<1x32xi32> to vector<1x32xf32>
    %1143 = vector.broadcast %1142 : vector<1x32xf32> to vector<8x32xf32>
    %1144 = arith.mulf %1109, %1143 : vector<8x32xf32>
    %cst_344 = arith.constant dense<0.000000e+00> : vector<8x8xf32>
    %1145 = tpu.matmul %1144, %1110, %cst_344 {dimension_numbers = #tpu.dot_dimension_numbers<[1], [1], [0], [0], [0, 0, 1, 0], [], []>} : vector<8x32xf32>, vector<8x32xf32>, vector<8x8xf32> -> vector<8x8xf32>
    %cst_345 = arith.constant dense<0xFF800000> : vector<8xf32>
    %1146 = vector.multi_reduction <maximumf>, %1145, %cst_345 [1] : vector<8x8xf32> to vector<8xf32>
    %1147 = vector.shape_cast %1146 : vector<8xf32> to vector<8x1xf32>
    %1148 = vector.broadcast %1147 : vector<8x1xf32> to vector<8x8xf32>
    %1149 = arith.subf %1145, %1148 : vector<8x8xf32>
    %1150 = math.exp %1149 : vector<8x8xf32>
    %cst_346 = arith.constant dense<0.000000e+00> : vector<8xf32>
    %1151 = vector.multi_reduction <add>, %1150, %cst_346 [1] : vector<8x8xf32> to vector<8xf32>
    %1152 = vector.shape_cast %1151 : vector<8xf32> to vector<8x1xf32>
    %1153 = tpu.reciprocal %1152 {approx = true} : vector<8x1xf32> -> vector<8x1xf32>
    %1154 = vector.broadcast %1153 : vector<8x1xf32> to vector<8x8xf32>
    %1155 = arith.mulf %1150, %1154 : vector<8x8xf32>
    %1156 = vector.broadcast %1142 : vector<1x32xf32> to vector<8x32xf32>
    %1157 = arith.mulf %1111, %1156 : vector<8x32xf32>
    %cst_347 = arith.constant dense<0.000000e+00> : vector<8x32xf32>
    %1158 = tpu.matmul %1155, %1157, %cst_347 {dimension_numbers = #tpu.dot_dimension_numbers<[1], [0], [0], [1], [0, 0, 1, 1], [], []>} : vector<8x8xf32>, vector<8x32xf32>, vector<8x32xf32> -> vector<8x32xf32>
    %1159 = arith.addf %1135, %1158 : vector<8x32xf32>
    %c16_i32_348 = arith.constant 16 : i32
    %1160 = vector.broadcast %c16_i32_348 : i32 to vector<1x32xi32>
    %1161 = arith.cmpi sge, %1112, %1160 : vector<1x32xi32>
    %c24_i32_349 = arith.constant 24 : i32
    %1162 = vector.broadcast %c24_i32_349 : i32 to vector<1x32xi32>
    %1163 = arith.cmpi slt, %1112, %1162 : vector<1x32xi32>
    %1164 = arith.andi %1161, %1163 : vector<1x32xi1>
    %1165 = arith.extui %1164 : vector<1x32xi1> to vector<1x32xi32>
    %1166 = arith.sitofp %1165 : vector<1x32xi32> to vector<1x32xf32>
    %1167 = vector.broadcast %1166 : vector<1x32xf32> to vector<8x32xf32>
    %1168 = arith.mulf %1109, %1167 : vector<8x32xf32>
    %cst_350 = arith.constant dense<0.000000e+00> : vector<8x8xf32>
    %1169 = tpu.matmul %1168, %1110, %cst_350 {dimension_numbers = #tpu.dot_dimension_numbers<[1], [1], [0], [0], [0, 0, 1, 0], [], []>} : vector<8x32xf32>, vector<8x32xf32>, vector<8x8xf32> -> vector<8x8xf32>
    %cst_351 = arith.constant dense<0xFF800000> : vector<8xf32>
    %1170 = vector.multi_reduction <maximumf>, %1169, %cst_351 [1] : vector<8x8xf32> to vector<8xf32>
    %1171 = vector.shape_cast %1170 : vector<8xf32> to vector<8x1xf32>
    %1172 = vector.broadcast %1171 : vector<8x1xf32> to vector<8x8xf32>
    %1173 = arith.subf %1169, %1172 : vector<8x8xf32>
    %1174 = math.exp %1173 : vector<8x8xf32>
    %cst_352 = arith.constant dense<0.000000e+00> : vector<8xf32>
    %1175 = vector.multi_reduction <add>, %1174, %cst_352 [1] : vector<8x8xf32> to vector<8xf32>
    %1176 = vector.shape_cast %1175 : vector<8xf32> to vector<8x1xf32>
    %1177 = tpu.reciprocal %1176 {approx = true} : vector<8x1xf32> -> vector<8x1xf32>
    %1178 = vector.broadcast %1177 : vector<8x1xf32> to vector<8x8xf32>
    %1179 = arith.mulf %1174, %1178 : vector<8x8xf32>
    %1180 = vector.broadcast %1166 : vector<1x32xf32> to vector<8x32xf32>
    %1181 = arith.mulf %1111, %1180 : vector<8x32xf32>
    %cst_353 = arith.constant dense<0.000000e+00> : vector<8x32xf32>
    %1182 = tpu.matmul %1179, %1181, %cst_353 {dimension_numbers = #tpu.dot_dimension_numbers<[1], [0], [0], [1], [0, 0, 1, 1], [], []>} : vector<8x8xf32>, vector<8x32xf32>, vector<8x32xf32> -> vector<8x32xf32>
    %1183 = arith.addf %1159, %1182 : vector<8x32xf32>
    %c24_i32_354 = arith.constant 24 : i32
    %1184 = vector.broadcast %c24_i32_354 : i32 to vector<1x32xi32>
    %1185 = arith.cmpi sge, %1112, %1184 : vector<1x32xi32>
    %c32_i32_355 = arith.constant 32 : i32
    %1186 = vector.broadcast %c32_i32_355 : i32 to vector<1x32xi32>
    %1187 = arith.cmpi slt, %1112, %1186 : vector<1x32xi32>
    %1188 = arith.andi %1185, %1187 : vector<1x32xi1>
    %1189 = arith.extui %1188 : vector<1x32xi1> to vector<1x32xi32>
    %1190 = arith.sitofp %1189 : vector<1x32xi32> to vector<1x32xf32>
    %1191 = vector.broadcast %1190 : vector<1x32xf32> to vector<8x32xf32>
    %1192 = arith.mulf %1109, %1191 : vector<8x32xf32>
    %cst_356 = arith.constant dense<0.000000e+00> : vector<8x8xf32>
    %1193 = tpu.matmul %1192, %1110, %cst_356 {dimension_numbers = #tpu.dot_dimension_numbers<[1], [1], [0], [0], [0, 0, 1, 0], [], []>} : vector<8x32xf32>, vector<8x32xf32>, vector<8x8xf32> -> vector<8x8xf32>
    %cst_357 = arith.constant dense<0xFF800000> : vector<8xf32>
    %1194 = vector.multi_reduction <maximumf>, %1193, %cst_357 [1] : vector<8x8xf32> to vector<8xf32>
    %1195 = vector.shape_cast %1194 : vector<8xf32> to vector<8x1xf32>
    %1196 = vector.broadcast %1195 : vector<8x1xf32> to vector<8x8xf32>
    %1197 = arith.subf %1193, %1196 : vector<8x8xf32>
    %1198 = math.exp %1197 : vector<8x8xf32>
    %cst_358 = arith.constant dense<0.000000e+00> : vector<8xf32>
    %1199 = vector.multi_reduction <add>, %1198, %cst_358 [1] : vector<8x8xf32> to vector<8xf32>
    %1200 = vector.shape_cast %1199 : vector<8xf32> to vector<8x1xf32>
    %1201 = tpu.reciprocal %1200 {approx = true} : vector<8x1xf32> -> vector<8x1xf32>
    %1202 = vector.broadcast %1201 : vector<8x1xf32> to vector<8x8xf32>
    %1203 = arith.mulf %1198, %1202 : vector<8x8xf32>
    %1204 = vector.broadcast %1190 : vector<1x32xf32> to vector<8x32xf32>
    %1205 = arith.mulf %1111, %1204 : vector<8x32xf32>
    %cst_359 = arith.constant dense<0.000000e+00> : vector<8x32xf32>
    %1206 = tpu.matmul %1203, %1205, %cst_359 {dimension_numbers = #tpu.dot_dimension_numbers<[1], [0], [0], [1], [0, 0, 1, 1], [], []>} : vector<8x8xf32>, vector<8x32xf32>, vector<8x32xf32> -> vector<8x32xf32>
    %1207 = arith.addf %1183, %1206 : vector<8x32xf32>
    %c1736 = arith.constant 1736 : index
    %c0_360 = arith.constant 0 : index
    %1208 = vector.load %arg3[%c1736, %c0_360] : memref<2768x128xf32, #tpu.memory_space<vmem>>, vector<32x32xf32>
    %c1768 = arith.constant 1768 : index
    %c0_361 = arith.constant 0 : index
    %1209 = vector.load %arg3[%c1768, %c0_361] : memref<2768x128xf32, #tpu.memory_space<vmem>>, vector<1x32xf32>
    %cst_362 = arith.constant dense<0.000000e+00> : vector<8x32xf32>
    %1210 = tpu.matmul %1207, %1208, %cst_362 {dimension_numbers = #tpu.dot_dimension_numbers<[1], [0], [0], [1], [0, 0, 1, 1], [], []>} : vector<8x32xf32>, vector<32x32xf32>, vector<8x32xf32> -> vector<8x32xf32>
    %1211 = vector.broadcast %1209 : vector<1x32xf32> to vector<8x32xf32>
    %1212 = arith.addf %1210, %1211 : vector<8x32xf32>
    %1213 = arith.addf %897, %1212 : vector<8x32xf32>
    %c1776 = arith.constant 1776 : index
    %c0_363 = arith.constant 0 : index
    %1214 = vector.load %arg3[%c1776, %c0_363] : memref<2768x128xf32, #tpu.memory_space<vmem>>, vector<1x32xf32>
    %c1784 = arith.constant 1784 : index
    %c0_364 = arith.constant 0 : index
    %1215 = vector.load %arg3[%c1784, %c0_364] : memref<2768x128xf32, #tpu.memory_space<vmem>>, vector<1x32xf32>
    %cst_365 = arith.constant dense<0.000000e+00> : vector<8xf32>
    %1216 = vector.multi_reduction <add>, %1213, %cst_365 [1] : vector<8x32xf32> to vector<8xf32>
    %1217 = vector.shape_cast %1216 : vector<8xf32> to vector<8x1xf32>
    %cst_366 = arith.constant 3.200000e+01 : f32
    %1218 = vector.broadcast %cst_366 : f32 to vector<8x1xf32>
    %1219 = arith.divf %1217, %1218 : vector<8x1xf32>
    %1220 = arith.mulf %1213, %1213 : vector<8x32xf32>
    %cst_367 = arith.constant dense<0.000000e+00> : vector<8xf32>
    %1221 = vector.multi_reduction <add>, %1220, %cst_367 [1] : vector<8x32xf32> to vector<8xf32>
    %1222 = vector.shape_cast %1221 : vector<8xf32> to vector<8x1xf32>
    %cst_368 = arith.constant 3.200000e+01 : f32
    %1223 = vector.broadcast %cst_368 : f32 to vector<8x1xf32>
    %1224 = arith.divf %1222, %1223 : vector<8x1xf32>
    %1225 = arith.mulf %1219, %1219 : vector<8x1xf32>
    %1226 = arith.subf %1224, %1225 : vector<8x1xf32>
    %1227 = vector.broadcast %1219 : vector<8x1xf32> to vector<8x32xf32>
    %1228 = arith.subf %1213, %1227 : vector<8x32xf32>
    %cst_369 = arith.constant 9.99999974E-6 : f32
    %1229 = vector.broadcast %cst_369 : f32 to vector<8x1xf32>
    %1230 = arith.addf %1226, %1229 : vector<8x1xf32>
    %1231 = math.rsqrt %1230 : vector<8x1xf32>
    %1232 = vector.broadcast %1231 : vector<8x1xf32> to vector<8x32xf32>
    %1233 = arith.mulf %1228, %1232 : vector<8x32xf32>
    %1234 = vector.broadcast %1214 : vector<1x32xf32> to vector<8x32xf32>
    %1235 = arith.mulf %1233, %1234 : vector<8x32xf32>
    %1236 = vector.broadcast %1215 : vector<1x32xf32> to vector<8x32xf32>
    %1237 = arith.addf %1235, %1236 : vector<8x32xf32>
    %c1792 = arith.constant 1792 : index
    %c0_370 = arith.constant 0 : index
    %1238 = vector.load %arg3[%c1792, %c0_370] : memref<2768x128xf32, #tpu.memory_space<vmem>>, vector<32x128xf32>
    %c1824 = arith.constant 1824 : index
    %c0_371 = arith.constant 0 : index
    %1239 = vector.load %arg3[%c1824, %c0_371] : memref<2768x128xf32, #tpu.memory_space<vmem>>, vector<1x128xf32>
    %cst_372 = arith.constant dense<0.000000e+00> : vector<8x128xf32>
    %1240 = tpu.matmul %1237, %1238, %cst_372 {dimension_numbers = #tpu.dot_dimension_numbers<[1], [0], [0], [1], [0, 0, 1, 1], [], []>} : vector<8x32xf32>, vector<32x128xf32>, vector<8x128xf32> -> vector<8x128xf32>
    %1241 = vector.broadcast %1239 : vector<1x128xf32> to vector<8x128xf32>
    %1242 = arith.addf %1240, %1241 : vector<8x128xf32>
    %1243 = arith.mulf %1242, %1242 : vector<8x128xf32>
    %1244 = arith.mulf %1242, %1243 : vector<8x128xf32>
    %cst_373 = arith.constant 4.471500e-02 : f32
    %1245 = vector.broadcast %cst_373 : f32 to vector<8x128xf32>
    %1246 = arith.mulf %1245, %1244 : vector<8x128xf32>
    %1247 = arith.addf %1242, %1246 : vector<8x128xf32>
    %cst_374 = arith.constant 0.797884583 : f32
    %1248 = vector.broadcast %cst_374 : f32 to vector<8x128xf32>
    %1249 = arith.mulf %1248, %1247 : vector<8x128xf32>
    %1250 = math.tanh %1249 : vector<8x128xf32>
    %cst_375 = arith.constant 1.000000e+00 : f32
    %1251 = vector.broadcast %cst_375 : f32 to vector<8x128xf32>
    %1252 = arith.addf %1251, %1250 : vector<8x128xf32>
    %cst_376 = arith.constant 5.000000e-01 : f32
    %1253 = vector.broadcast %cst_376 : f32 to vector<8x128xf32>
    %1254 = arith.mulf %1253, %1252 : vector<8x128xf32>
    %1255 = arith.mulf %1242, %1254 : vector<8x128xf32>
    %c1832 = arith.constant 1832 : index
    %c0_377 = arith.constant 0 : index
    %1256 = vector.load %arg3[%c1832, %c0_377] : memref<2768x128xf32, #tpu.memory_space<vmem>>, vector<128x32xf32>
    %c1960 = arith.constant 1960 : index
    %c0_378 = arith.constant 0 : index
    %1257 = vector.load %arg3[%c1960, %c0_378] : memref<2768x128xf32, #tpu.memory_space<vmem>>, vector<1x32xf32>
    %cst_379 = arith.constant dense<0.000000e+00> : vector<8x32xf32>
    %1258 = tpu.matmul %1255, %1256, %cst_379 {dimension_numbers = #tpu.dot_dimension_numbers<[1], [0], [0], [1], [0, 0, 1, 1], [], []>} : vector<8x128xf32>, vector<128x32xf32>, vector<8x32xf32> -> vector<8x32xf32>
    %1259 = vector.broadcast %1257 : vector<1x32xf32> to vector<8x32xf32>
    %1260 = arith.addf %1258, %1259 : vector<8x32xf32>
    %1261 = arith.addf %1213, %1260 : vector<8x32xf32>
    %c1968 = arith.constant 1968 : index
    %c0_380 = arith.constant 0 : index
    %1262 = vector.load %arg3[%c1968, %c0_380] : memref<2768x128xf32, #tpu.memory_space<vmem>>, vector<1x32xf32>
    %c1976 = arith.constant 1976 : index
    %c0_381 = arith.constant 0 : index
    %1263 = vector.load %arg3[%c1976, %c0_381] : memref<2768x128xf32, #tpu.memory_space<vmem>>, vector<1x32xf32>
    %cst_382 = arith.constant dense<0.000000e+00> : vector<8xf32>
    %1264 = vector.multi_reduction <add>, %1079, %cst_382 [1] : vector<8x32xf32> to vector<8xf32>
    %1265 = vector.shape_cast %1264 : vector<8xf32> to vector<8x1xf32>
    %cst_383 = arith.constant 3.200000e+01 : f32
    %1266 = vector.broadcast %cst_383 : f32 to vector<8x1xf32>
    %1267 = arith.divf %1265, %1266 : vector<8x1xf32>
    %1268 = arith.mulf %1079, %1079 : vector<8x32xf32>
    %cst_384 = arith.constant dense<0.000000e+00> : vector<8xf32>
    %1269 = vector.multi_reduction <add>, %1268, %cst_384 [1] : vector<8x32xf32> to vector<8xf32>
    %1270 = vector.shape_cast %1269 : vector<8xf32> to vector<8x1xf32>
    %cst_385 = arith.constant 3.200000e+01 : f32
    %1271 = vector.broadcast %cst_385 : f32 to vector<8x1xf32>
    %1272 = arith.divf %1270, %1271 : vector<8x1xf32>
    %1273 = arith.mulf %1267, %1267 : vector<8x1xf32>
    %1274 = arith.subf %1272, %1273 : vector<8x1xf32>
    %1275 = vector.broadcast %1267 : vector<8x1xf32> to vector<8x32xf32>
    %1276 = arith.subf %1079, %1275 : vector<8x32xf32>
    %cst_386 = arith.constant 9.99999974E-6 : f32
    %1277 = vector.broadcast %cst_386 : f32 to vector<8x1xf32>
    %1278 = arith.addf %1274, %1277 : vector<8x1xf32>
    %1279 = math.rsqrt %1278 : vector<8x1xf32>
    %1280 = vector.broadcast %1279 : vector<8x1xf32> to vector<8x32xf32>
    %1281 = arith.mulf %1276, %1280 : vector<8x32xf32>
    %1282 = vector.broadcast %1262 : vector<1x32xf32> to vector<8x32xf32>
    %1283 = arith.mulf %1281, %1282 : vector<8x32xf32>
    %1284 = vector.broadcast %1263 : vector<1x32xf32> to vector<8x32xf32>
    %1285 = arith.addf %1283, %1284 : vector<8x32xf32>
    %c1984 = arith.constant 1984 : index
    %c0_387 = arith.constant 0 : index
    %1286 = vector.load %arg3[%c1984, %c0_387] : memref<2768x128xf32, #tpu.memory_space<vmem>>, vector<1x32xf32>
    %c1992 = arith.constant 1992 : index
    %c0_388 = arith.constant 0 : index
    %1287 = vector.load %arg3[%c1992, %c0_388] : memref<2768x128xf32, #tpu.memory_space<vmem>>, vector<1x32xf32>
    %cst_389 = arith.constant dense<0.000000e+00> : vector<8xf32>
    %1288 = vector.multi_reduction <add>, %1261, %cst_389 [1] : vector<8x32xf32> to vector<8xf32>
    %1289 = vector.shape_cast %1288 : vector<8xf32> to vector<8x1xf32>
    %cst_390 = arith.constant 3.200000e+01 : f32
    %1290 = vector.broadcast %cst_390 : f32 to vector<8x1xf32>
    %1291 = arith.divf %1289, %1290 : vector<8x1xf32>
    %1292 = arith.mulf %1261, %1261 : vector<8x32xf32>
    %cst_391 = arith.constant dense<0.000000e+00> : vector<8xf32>
    %1293 = vector.multi_reduction <add>, %1292, %cst_391 [1] : vector<8x32xf32> to vector<8xf32>
    %1294 = vector.shape_cast %1293 : vector<8xf32> to vector<8x1xf32>
    %cst_392 = arith.constant 3.200000e+01 : f32
    %1295 = vector.broadcast %cst_392 : f32 to vector<8x1xf32>
    %1296 = arith.divf %1294, %1295 : vector<8x1xf32>
    %1297 = arith.mulf %1291, %1291 : vector<8x1xf32>
    %1298 = arith.subf %1296, %1297 : vector<8x1xf32>
    %1299 = vector.broadcast %1291 : vector<8x1xf32> to vector<8x32xf32>
    %1300 = arith.subf %1261, %1299 : vector<8x32xf32>
    %cst_393 = arith.constant 9.99999974E-6 : f32
    %1301 = vector.broadcast %cst_393 : f32 to vector<8x1xf32>
    %1302 = arith.addf %1298, %1301 : vector<8x1xf32>
    %1303 = math.rsqrt %1302 : vector<8x1xf32>
    %1304 = vector.broadcast %1303 : vector<8x1xf32> to vector<8x32xf32>
    %1305 = arith.mulf %1300, %1304 : vector<8x32xf32>
    %1306 = vector.broadcast %1286 : vector<1x32xf32> to vector<8x32xf32>
    %1307 = arith.mulf %1305, %1306 : vector<8x32xf32>
    %1308 = vector.broadcast %1287 : vector<1x32xf32> to vector<8x32xf32>
    %1309 = arith.addf %1307, %1308 : vector<8x32xf32>
    %c2000 = arith.constant 2000 : index
    %c0_394 = arith.constant 0 : index
    %1310 = vector.load %arg3[%c2000, %c0_394] : memref<2768x128xf32, #tpu.memory_space<vmem>>, vector<32x32xf32>
    %c2032 = arith.constant 2032 : index
    %c0_395 = arith.constant 0 : index
    %1311 = vector.load %arg3[%c2032, %c0_395] : memref<2768x128xf32, #tpu.memory_space<vmem>>, vector<1x32xf32>
    %cst_396 = arith.constant dense<0.000000e+00> : vector<8x32xf32>
    %1312 = tpu.matmul %1285, %1310, %cst_396 {dimension_numbers = #tpu.dot_dimension_numbers<[1], [0], [0], [1], [0, 0, 1, 1], [], []>} : vector<8x32xf32>, vector<32x32xf32>, vector<8x32xf32> -> vector<8x32xf32>
    %1313 = vector.broadcast %1311 : vector<1x32xf32> to vector<8x32xf32>
    %1314 = arith.addf %1312, %1313 : vector<8x32xf32>
    %c2040 = arith.constant 2040 : index
    %c0_397 = arith.constant 0 : index
    %1315 = vector.load %arg3[%c2040, %c0_397] : memref<2768x128xf32, #tpu.memory_space<vmem>>, vector<32x64xf32>
    %c2072 = arith.constant 2072 : index
    %c0_398 = arith.constant 0 : index
    %1316 = vector.load %arg3[%c2072, %c0_398] : memref<2768x128xf32, #tpu.memory_space<vmem>>, vector<1x64xf32>
    %cst_399 = arith.constant dense<0.000000e+00> : vector<8x64xf32>
    %1317 = tpu.matmul %1309, %1315, %cst_399 {dimension_numbers = #tpu.dot_dimension_numbers<[1], [0], [0], [1], [0, 0, 1, 1], [], []>} : vector<8x32xf32>, vector<32x64xf32>, vector<8x64xf32> -> vector<8x64xf32>
    %1318 = vector.broadcast %1316 : vector<1x64xf32> to vector<8x64xf32>
    %1319 = arith.addf %1317, %1318 : vector<8x64xf32>
    %1320 = vector.extract_strided_slice %1319 {offsets = [0, 0], sizes = [8, 32], strides = [1, 1]} : vector<8x64xf32> to vector<8x32xf32>
    %1321 = vector.extract_strided_slice %1319 {offsets = [0, 32], sizes = [8, 32], strides = [1, 1]} : vector<8x64xf32> to vector<8x32xf32>
    %1322 = tpu.iota {dimensions = array<i32: 1>} : vector<1x32xi32>
    %c0_i32_400 = arith.constant 0 : i32
    %1323 = vector.broadcast %c0_i32_400 : i32 to vector<1x32xi32>
    %1324 = arith.cmpi sge, %1322, %1323 : vector<1x32xi32>
    %c8_i32_401 = arith.constant 8 : i32
    %1325 = vector.broadcast %c8_i32_401 : i32 to vector<1x32xi32>
    %1326 = arith.cmpi slt, %1322, %1325 : vector<1x32xi32>
    %1327 = arith.andi %1324, %1326 : vector<1x32xi1>
    %1328 = arith.extui %1327 : vector<1x32xi1> to vector<1x32xi32>
    %1329 = arith.sitofp %1328 : vector<1x32xi32> to vector<1x32xf32>
    %1330 = vector.broadcast %1329 : vector<1x32xf32> to vector<8x32xf32>
    %1331 = arith.mulf %1314, %1330 : vector<8x32xf32>
    %cst_402 = arith.constant dense<0.000000e+00> : vector<8x8xf32>
    %1332 = tpu.matmul %1331, %1320, %cst_402 {dimension_numbers = #tpu.dot_dimension_numbers<[1], [1], [0], [0], [0, 0, 1, 0], [], []>} : vector<8x32xf32>, vector<8x32xf32>, vector<8x8xf32> -> vector<8x8xf32>
    %cst_403 = arith.constant dense<0xFF800000> : vector<8xf32>
    %1333 = vector.multi_reduction <maximumf>, %1332, %cst_403 [1] : vector<8x8xf32> to vector<8xf32>
    %1334 = vector.shape_cast %1333 : vector<8xf32> to vector<8x1xf32>
    %1335 = vector.broadcast %1334 : vector<8x1xf32> to vector<8x8xf32>
    %1336 = arith.subf %1332, %1335 : vector<8x8xf32>
    %1337 = math.exp %1336 : vector<8x8xf32>
    %cst_404 = arith.constant dense<0.000000e+00> : vector<8xf32>
    %1338 = vector.multi_reduction <add>, %1337, %cst_404 [1] : vector<8x8xf32> to vector<8xf32>
    %1339 = vector.shape_cast %1338 : vector<8xf32> to vector<8x1xf32>
    %1340 = tpu.reciprocal %1339 {approx = true} : vector<8x1xf32> -> vector<8x1xf32>
    %1341 = vector.broadcast %1340 : vector<8x1xf32> to vector<8x8xf32>
    %1342 = arith.mulf %1337, %1341 : vector<8x8xf32>
    %1343 = vector.broadcast %1329 : vector<1x32xf32> to vector<8x32xf32>
    %1344 = arith.mulf %1321, %1343 : vector<8x32xf32>
    %cst_405 = arith.constant dense<0.000000e+00> : vector<8x32xf32>
    %1345 = tpu.matmul %1342, %1344, %cst_405 {dimension_numbers = #tpu.dot_dimension_numbers<[1], [0], [0], [1], [0, 0, 1, 1], [], []>} : vector<8x8xf32>, vector<8x32xf32>, vector<8x32xf32> -> vector<8x32xf32>
    %c8_i32_406 = arith.constant 8 : i32
    %1346 = vector.broadcast %c8_i32_406 : i32 to vector<1x32xi32>
    %1347 = arith.cmpi sge, %1322, %1346 : vector<1x32xi32>
    %c16_i32_407 = arith.constant 16 : i32
    %1348 = vector.broadcast %c16_i32_407 : i32 to vector<1x32xi32>
    %1349 = arith.cmpi slt, %1322, %1348 : vector<1x32xi32>
    %1350 = arith.andi %1347, %1349 : vector<1x32xi1>
    %1351 = arith.extui %1350 : vector<1x32xi1> to vector<1x32xi32>
    %1352 = arith.sitofp %1351 : vector<1x32xi32> to vector<1x32xf32>
    %1353 = vector.broadcast %1352 : vector<1x32xf32> to vector<8x32xf32>
    %1354 = arith.mulf %1314, %1353 : vector<8x32xf32>
    %cst_408 = arith.constant dense<0.000000e+00> : vector<8x8xf32>
    %1355 = tpu.matmul %1354, %1320, %cst_408 {dimension_numbers = #tpu.dot_dimension_numbers<[1], [1], [0], [0], [0, 0, 1, 0], [], []>} : vector<8x32xf32>, vector<8x32xf32>, vector<8x8xf32> -> vector<8x8xf32>
    %cst_409 = arith.constant dense<0xFF800000> : vector<8xf32>
    %1356 = vector.multi_reduction <maximumf>, %1355, %cst_409 [1] : vector<8x8xf32> to vector<8xf32>
    %1357 = vector.shape_cast %1356 : vector<8xf32> to vector<8x1xf32>
    %1358 = vector.broadcast %1357 : vector<8x1xf32> to vector<8x8xf32>
    %1359 = arith.subf %1355, %1358 : vector<8x8xf32>
    %1360 = math.exp %1359 : vector<8x8xf32>
    %cst_410 = arith.constant dense<0.000000e+00> : vector<8xf32>
    %1361 = vector.multi_reduction <add>, %1360, %cst_410 [1] : vector<8x8xf32> to vector<8xf32>
    %1362 = vector.shape_cast %1361 : vector<8xf32> to vector<8x1xf32>
    %1363 = tpu.reciprocal %1362 {approx = true} : vector<8x1xf32> -> vector<8x1xf32>
    %1364 = vector.broadcast %1363 : vector<8x1xf32> to vector<8x8xf32>
    %1365 = arith.mulf %1360, %1364 : vector<8x8xf32>
    %1366 = vector.broadcast %1352 : vector<1x32xf32> to vector<8x32xf32>
    %1367 = arith.mulf %1321, %1366 : vector<8x32xf32>
    %cst_411 = arith.constant dense<0.000000e+00> : vector<8x32xf32>
    %1368 = tpu.matmul %1365, %1367, %cst_411 {dimension_numbers = #tpu.dot_dimension_numbers<[1], [0], [0], [1], [0, 0, 1, 1], [], []>} : vector<8x8xf32>, vector<8x32xf32>, vector<8x32xf32> -> vector<8x32xf32>
    %1369 = arith.addf %1345, %1368 : vector<8x32xf32>
    %c16_i32_412 = arith.constant 16 : i32
    %1370 = vector.broadcast %c16_i32_412 : i32 to vector<1x32xi32>
    %1371 = arith.cmpi sge, %1322, %1370 : vector<1x32xi32>
    %c24_i32_413 = arith.constant 24 : i32
    %1372 = vector.broadcast %c24_i32_413 : i32 to vector<1x32xi32>
    %1373 = arith.cmpi slt, %1322, %1372 : vector<1x32xi32>
    %1374 = arith.andi %1371, %1373 : vector<1x32xi1>
    %1375 = arith.extui %1374 : vector<1x32xi1> to vector<1x32xi32>
    %1376 = arith.sitofp %1375 : vector<1x32xi32> to vector<1x32xf32>
    %1377 = vector.broadcast %1376 : vector<1x32xf32> to vector<8x32xf32>
    %1378 = arith.mulf %1314, %1377 : vector<8x32xf32>
    %cst_414 = arith.constant dense<0.000000e+00> : vector<8x8xf32>
    %1379 = tpu.matmul %1378, %1320, %cst_414 {dimension_numbers = #tpu.dot_dimension_numbers<[1], [1], [0], [0], [0, 0, 1, 0], [], []>} : vector<8x32xf32>, vector<8x32xf32>, vector<8x8xf32> -> vector<8x8xf32>
    %cst_415 = arith.constant dense<0xFF800000> : vector<8xf32>
    %1380 = vector.multi_reduction <maximumf>, %1379, %cst_415 [1] : vector<8x8xf32> to vector<8xf32>
    %1381 = vector.shape_cast %1380 : vector<8xf32> to vector<8x1xf32>
    %1382 = vector.broadcast %1381 : vector<8x1xf32> to vector<8x8xf32>
    %1383 = arith.subf %1379, %1382 : vector<8x8xf32>
    %1384 = math.exp %1383 : vector<8x8xf32>
    %cst_416 = arith.constant dense<0.000000e+00> : vector<8xf32>
    %1385 = vector.multi_reduction <add>, %1384, %cst_416 [1] : vector<8x8xf32> to vector<8xf32>
    %1386 = vector.shape_cast %1385 : vector<8xf32> to vector<8x1xf32>
    %1387 = tpu.reciprocal %1386 {approx = true} : vector<8x1xf32> -> vector<8x1xf32>
    %1388 = vector.broadcast %1387 : vector<8x1xf32> to vector<8x8xf32>
    %1389 = arith.mulf %1384, %1388 : vector<8x8xf32>
    %1390 = vector.broadcast %1376 : vector<1x32xf32> to vector<8x32xf32>
    %1391 = arith.mulf %1321, %1390 : vector<8x32xf32>
    %cst_417 = arith.constant dense<0.000000e+00> : vector<8x32xf32>
    %1392 = tpu.matmul %1389, %1391, %cst_417 {dimension_numbers = #tpu.dot_dimension_numbers<[1], [0], [0], [1], [0, 0, 1, 1], [], []>} : vector<8x8xf32>, vector<8x32xf32>, vector<8x32xf32> -> vector<8x32xf32>
    %1393 = arith.addf %1369, %1392 : vector<8x32xf32>
    %c24_i32_418 = arith.constant 24 : i32
    %1394 = vector.broadcast %c24_i32_418 : i32 to vector<1x32xi32>
    %1395 = arith.cmpi sge, %1322, %1394 : vector<1x32xi32>
    %c32_i32_419 = arith.constant 32 : i32
    %1396 = vector.broadcast %c32_i32_419 : i32 to vector<1x32xi32>
    %1397 = arith.cmpi slt, %1322, %1396 : vector<1x32xi32>
    %1398 = arith.andi %1395, %1397 : vector<1x32xi1>
    %1399 = arith.extui %1398 : vector<1x32xi1> to vector<1x32xi32>
    %1400 = arith.sitofp %1399 : vector<1x32xi32> to vector<1x32xf32>
    %1401 = vector.broadcast %1400 : vector<1x32xf32> to vector<8x32xf32>
    %1402 = arith.mulf %1314, %1401 : vector<8x32xf32>
    %cst_420 = arith.constant dense<0.000000e+00> : vector<8x8xf32>
    %1403 = tpu.matmul %1402, %1320, %cst_420 {dimension_numbers = #tpu.dot_dimension_numbers<[1], [1], [0], [0], [0, 0, 1, 0], [], []>} : vector<8x32xf32>, vector<8x32xf32>, vector<8x8xf32> -> vector<8x8xf32>
    %cst_421 = arith.constant dense<0xFF800000> : vector<8xf32>
    %1404 = vector.multi_reduction <maximumf>, %1403, %cst_421 [1] : vector<8x8xf32> to vector<8xf32>
    %1405 = vector.shape_cast %1404 : vector<8xf32> to vector<8x1xf32>
    %1406 = vector.broadcast %1405 : vector<8x1xf32> to vector<8x8xf32>
    %1407 = arith.subf %1403, %1406 : vector<8x8xf32>
    %1408 = math.exp %1407 : vector<8x8xf32>
    %cst_422 = arith.constant dense<0.000000e+00> : vector<8xf32>
    %1409 = vector.multi_reduction <add>, %1408, %cst_422 [1] : vector<8x8xf32> to vector<8xf32>
    %1410 = vector.shape_cast %1409 : vector<8xf32> to vector<8x1xf32>
    %1411 = tpu.reciprocal %1410 {approx = true} : vector<8x1xf32> -> vector<8x1xf32>
    %1412 = vector.broadcast %1411 : vector<8x1xf32> to vector<8x8xf32>
    %1413 = arith.mulf %1408, %1412 : vector<8x8xf32>
    %1414 = vector.broadcast %1400 : vector<1x32xf32> to vector<8x32xf32>
    %1415 = arith.mulf %1321, %1414 : vector<8x32xf32>
    %cst_423 = arith.constant dense<0.000000e+00> : vector<8x32xf32>
    %1416 = tpu.matmul %1413, %1415, %cst_423 {dimension_numbers = #tpu.dot_dimension_numbers<[1], [0], [0], [1], [0, 0, 1, 1], [], []>} : vector<8x8xf32>, vector<8x32xf32>, vector<8x32xf32> -> vector<8x32xf32>
    %1417 = arith.addf %1393, %1416 : vector<8x32xf32>
    %c2080 = arith.constant 2080 : index
    %c0_424 = arith.constant 0 : index
    %1418 = vector.load %arg3[%c2080, %c0_424] : memref<2768x128xf32, #tpu.memory_space<vmem>>, vector<32x32xf32>
    %c2112 = arith.constant 2112 : index
    %c0_425 = arith.constant 0 : index
    %1419 = vector.load %arg3[%c2112, %c0_425] : memref<2768x128xf32, #tpu.memory_space<vmem>>, vector<1x32xf32>
    %cst_426 = arith.constant dense<0.000000e+00> : vector<8x32xf32>
    %1420 = tpu.matmul %1417, %1418, %cst_426 {dimension_numbers = #tpu.dot_dimension_numbers<[1], [0], [0], [1], [0, 0, 1, 1], [], []>} : vector<8x32xf32>, vector<32x32xf32>, vector<8x32xf32> -> vector<8x32xf32>
    %1421 = vector.broadcast %1419 : vector<1x32xf32> to vector<8x32xf32>
    %1422 = arith.addf %1420, %1421 : vector<8x32xf32>
    %1423 = arith.addf %1079, %1422 : vector<8x32xf32>
    %c2120 = arith.constant 2120 : index
    %c0_427 = arith.constant 0 : index
    %1424 = vector.load %arg3[%c2120, %c0_427] : memref<2768x128xf32, #tpu.memory_space<vmem>>, vector<1x32xf32>
    %c2128 = arith.constant 2128 : index
    %c0_428 = arith.constant 0 : index
    %1425 = vector.load %arg3[%c2128, %c0_428] : memref<2768x128xf32, #tpu.memory_space<vmem>>, vector<1x32xf32>
    %cst_429 = arith.constant dense<0.000000e+00> : vector<8xf32>
    %1426 = vector.multi_reduction <add>, %1423, %cst_429 [1] : vector<8x32xf32> to vector<8xf32>
    %1427 = vector.shape_cast %1426 : vector<8xf32> to vector<8x1xf32>
    %cst_430 = arith.constant 3.200000e+01 : f32
    %1428 = vector.broadcast %cst_430 : f32 to vector<8x1xf32>
    %1429 = arith.divf %1427, %1428 : vector<8x1xf32>
    %1430 = arith.mulf %1423, %1423 : vector<8x32xf32>
    %cst_431 = arith.constant dense<0.000000e+00> : vector<8xf32>
    %1431 = vector.multi_reduction <add>, %1430, %cst_431 [1] : vector<8x32xf32> to vector<8xf32>
    %1432 = vector.shape_cast %1431 : vector<8xf32> to vector<8x1xf32>
    %cst_432 = arith.constant 3.200000e+01 : f32
    %1433 = vector.broadcast %cst_432 : f32 to vector<8x1xf32>
    %1434 = arith.divf %1432, %1433 : vector<8x1xf32>
    %1435 = arith.mulf %1429, %1429 : vector<8x1xf32>
    %1436 = arith.subf %1434, %1435 : vector<8x1xf32>
    %1437 = vector.broadcast %1429 : vector<8x1xf32> to vector<8x32xf32>
    %1438 = arith.subf %1423, %1437 : vector<8x32xf32>
    %cst_433 = arith.constant 9.99999974E-6 : f32
    %1439 = vector.broadcast %cst_433 : f32 to vector<8x1xf32>
    %1440 = arith.addf %1436, %1439 : vector<8x1xf32>
    %1441 = math.rsqrt %1440 : vector<8x1xf32>
    %1442 = vector.broadcast %1441 : vector<8x1xf32> to vector<8x32xf32>
    %1443 = arith.mulf %1438, %1442 : vector<8x32xf32>
    %1444 = vector.broadcast %1424 : vector<1x32xf32> to vector<8x32xf32>
    %1445 = arith.mulf %1443, %1444 : vector<8x32xf32>
    %1446 = vector.broadcast %1425 : vector<1x32xf32> to vector<8x32xf32>
    %1447 = arith.addf %1445, %1446 : vector<8x32xf32>
    %c2136 = arith.constant 2136 : index
    %c0_434 = arith.constant 0 : index
    %1448 = vector.load %arg3[%c2136, %c0_434] : memref<2768x128xf32, #tpu.memory_space<vmem>>, vector<32x128xf32>
    %c2168 = arith.constant 2168 : index
    %c0_435 = arith.constant 0 : index
    %1449 = vector.load %arg3[%c2168, %c0_435] : memref<2768x128xf32, #tpu.memory_space<vmem>>, vector<1x128xf32>
    %cst_436 = arith.constant dense<0.000000e+00> : vector<8x128xf32>
    %1450 = tpu.matmul %1447, %1448, %cst_436 {dimension_numbers = #tpu.dot_dimension_numbers<[1], [0], [0], [1], [0, 0, 1, 1], [], []>} : vector<8x32xf32>, vector<32x128xf32>, vector<8x128xf32> -> vector<8x128xf32>
    %1451 = vector.broadcast %1449 : vector<1x128xf32> to vector<8x128xf32>
    %1452 = arith.addf %1450, %1451 : vector<8x128xf32>
    %1453 = arith.mulf %1452, %1452 : vector<8x128xf32>
    %1454 = arith.mulf %1452, %1453 : vector<8x128xf32>
    %cst_437 = arith.constant 4.471500e-02 : f32
    %1455 = vector.broadcast %cst_437 : f32 to vector<8x128xf32>
    %1456 = arith.mulf %1455, %1454 : vector<8x128xf32>
    %1457 = arith.addf %1452, %1456 : vector<8x128xf32>
    %cst_438 = arith.constant 0.797884583 : f32
    %1458 = vector.broadcast %cst_438 : f32 to vector<8x128xf32>
    %1459 = arith.mulf %1458, %1457 : vector<8x128xf32>
    %1460 = math.tanh %1459 : vector<8x128xf32>
    %cst_439 = arith.constant 1.000000e+00 : f32
    %1461 = vector.broadcast %cst_439 : f32 to vector<8x128xf32>
    %1462 = arith.addf %1461, %1460 : vector<8x128xf32>
    %cst_440 = arith.constant 5.000000e-01 : f32
    %1463 = vector.broadcast %cst_440 : f32 to vector<8x128xf32>
    %1464 = arith.mulf %1463, %1462 : vector<8x128xf32>
    %1465 = arith.mulf %1452, %1464 : vector<8x128xf32>
    %c2176 = arith.constant 2176 : index
    %c0_441 = arith.constant 0 : index
    %1466 = vector.load %arg3[%c2176, %c0_441] : memref<2768x128xf32, #tpu.memory_space<vmem>>, vector<128x32xf32>
    %c2304 = arith.constant 2304 : index
    %c0_442 = arith.constant 0 : index
    %1467 = vector.load %arg3[%c2304, %c0_442] : memref<2768x128xf32, #tpu.memory_space<vmem>>, vector<1x32xf32>
    %cst_443 = arith.constant dense<0.000000e+00> : vector<8x32xf32>
    %1468 = tpu.matmul %1465, %1466, %cst_443 {dimension_numbers = #tpu.dot_dimension_numbers<[1], [0], [0], [1], [0, 0, 1, 1], [], []>} : vector<8x128xf32>, vector<128x32xf32>, vector<8x32xf32> -> vector<8x32xf32>
    %1469 = vector.broadcast %1467 : vector<1x32xf32> to vector<8x32xf32>
    %1470 = arith.addf %1468, %1469 : vector<8x32xf32>
    %1471 = arith.addf %1423, %1470 : vector<8x32xf32>
    %c2312 = arith.constant 2312 : index
    %c0_444 = arith.constant 0 : index
    %1472 = vector.load %arg3[%c2312, %c0_444] : memref<2768x128xf32, #tpu.memory_space<vmem>>, vector<1x32xf32>
    %c2320 = arith.constant 2320 : index
    %c0_445 = arith.constant 0 : index
    %1473 = vector.load %arg3[%c2320, %c0_445] : memref<2768x128xf32, #tpu.memory_space<vmem>>, vector<1x32xf32>
    %cst_446 = arith.constant dense<0.000000e+00> : vector<8xf32>
    %1474 = vector.multi_reduction <add>, %1261, %cst_446 [1] : vector<8x32xf32> to vector<8xf32>
    %1475 = vector.shape_cast %1474 : vector<8xf32> to vector<8x1xf32>
    %cst_447 = arith.constant 3.200000e+01 : f32
    %1476 = vector.broadcast %cst_447 : f32 to vector<8x1xf32>
    %1477 = arith.divf %1475, %1476 : vector<8x1xf32>
    %1478 = arith.mulf %1261, %1261 : vector<8x32xf32>
    %cst_448 = arith.constant dense<0.000000e+00> : vector<8xf32>
    %1479 = vector.multi_reduction <add>, %1478, %cst_448 [1] : vector<8x32xf32> to vector<8xf32>
    %1480 = vector.shape_cast %1479 : vector<8xf32> to vector<8x1xf32>
    %cst_449 = arith.constant 3.200000e+01 : f32
    %1481 = vector.broadcast %cst_449 : f32 to vector<8x1xf32>
    %1482 = arith.divf %1480, %1481 : vector<8x1xf32>
    %1483 = arith.mulf %1477, %1477 : vector<8x1xf32>
    %1484 = arith.subf %1482, %1483 : vector<8x1xf32>
    %1485 = vector.broadcast %1477 : vector<8x1xf32> to vector<8x32xf32>
    %1486 = arith.subf %1261, %1485 : vector<8x32xf32>
    %cst_450 = arith.constant 9.99999974E-6 : f32
    %1487 = vector.broadcast %cst_450 : f32 to vector<8x1xf32>
    %1488 = arith.addf %1484, %1487 : vector<8x1xf32>
    %1489 = math.rsqrt %1488 : vector<8x1xf32>
    %1490 = vector.broadcast %1489 : vector<8x1xf32> to vector<8x32xf32>
    %1491 = arith.mulf %1486, %1490 : vector<8x32xf32>
    %1492 = vector.broadcast %1472 : vector<1x32xf32> to vector<8x32xf32>
    %1493 = arith.mulf %1491, %1492 : vector<8x32xf32>
    %1494 = vector.broadcast %1473 : vector<1x32xf32> to vector<8x32xf32>
    %1495 = arith.addf %1493, %1494 : vector<8x32xf32>
    %c2328 = arith.constant 2328 : index
    %c0_451 = arith.constant 0 : index
    %1496 = vector.load %arg3[%c2328, %c0_451] : memref<2768x128xf32, #tpu.memory_space<vmem>>, vector<1x32xf32>
    %c2336 = arith.constant 2336 : index
    %c0_452 = arith.constant 0 : index
    %1497 = vector.load %arg3[%c2336, %c0_452] : memref<2768x128xf32, #tpu.memory_space<vmem>>, vector<1x32xf32>
    %cst_453 = arith.constant dense<0.000000e+00> : vector<8xf32>
    %1498 = vector.multi_reduction <add>, %1471, %cst_453 [1] : vector<8x32xf32> to vector<8xf32>
    %1499 = vector.shape_cast %1498 : vector<8xf32> to vector<8x1xf32>
    %cst_454 = arith.constant 3.200000e+01 : f32
    %1500 = vector.broadcast %cst_454 : f32 to vector<8x1xf32>
    %1501 = arith.divf %1499, %1500 : vector<8x1xf32>
    %1502 = arith.mulf %1471, %1471 : vector<8x32xf32>
    %cst_455 = arith.constant dense<0.000000e+00> : vector<8xf32>
    %1503 = vector.multi_reduction <add>, %1502, %cst_455 [1] : vector<8x32xf32> to vector<8xf32>
    %1504 = vector.shape_cast %1503 : vector<8xf32> to vector<8x1xf32>
    %cst_456 = arith.constant 3.200000e+01 : f32
    %1505 = vector.broadcast %cst_456 : f32 to vector<8x1xf32>
    %1506 = arith.divf %1504, %1505 : vector<8x1xf32>
    %1507 = arith.mulf %1501, %1501 : vector<8x1xf32>
    %1508 = arith.subf %1506, %1507 : vector<8x1xf32>
    %1509 = vector.broadcast %1501 : vector<8x1xf32> to vector<8x32xf32>
    %1510 = arith.subf %1471, %1509 : vector<8x32xf32>
    %cst_457 = arith.constant 9.99999974E-6 : f32
    %1511 = vector.broadcast %cst_457 : f32 to vector<8x1xf32>
    %1512 = arith.addf %1508, %1511 : vector<8x1xf32>
    %1513 = math.rsqrt %1512 : vector<8x1xf32>
    %1514 = vector.broadcast %1513 : vector<8x1xf32> to vector<8x32xf32>
    %1515 = arith.mulf %1510, %1514 : vector<8x32xf32>
    %1516 = vector.broadcast %1496 : vector<1x32xf32> to vector<8x32xf32>
    %1517 = arith.mulf %1515, %1516 : vector<8x32xf32>
    %1518 = vector.broadcast %1497 : vector<1x32xf32> to vector<8x32xf32>
    %1519 = arith.addf %1517, %1518 : vector<8x32xf32>
    %c2344 = arith.constant 2344 : index
    %c0_458 = arith.constant 0 : index
    %1520 = vector.load %arg3[%c2344, %c0_458] : memref<2768x128xf32, #tpu.memory_space<vmem>>, vector<32x32xf32>
    %c2376 = arith.constant 2376 : index
    %c0_459 = arith.constant 0 : index
    %1521 = vector.load %arg3[%c2376, %c0_459] : memref<2768x128xf32, #tpu.memory_space<vmem>>, vector<1x32xf32>
    %cst_460 = arith.constant dense<0.000000e+00> : vector<8x32xf32>
    %1522 = tpu.matmul %1495, %1520, %cst_460 {dimension_numbers = #tpu.dot_dimension_numbers<[1], [0], [0], [1], [0, 0, 1, 1], [], []>} : vector<8x32xf32>, vector<32x32xf32>, vector<8x32xf32> -> vector<8x32xf32>
    %1523 = vector.broadcast %1521 : vector<1x32xf32> to vector<8x32xf32>
    %1524 = arith.addf %1522, %1523 : vector<8x32xf32>
    %c2384 = arith.constant 2384 : index
    %c0_461 = arith.constant 0 : index
    %1525 = vector.load %arg3[%c2384, %c0_461] : memref<2768x128xf32, #tpu.memory_space<vmem>>, vector<32x64xf32>
    %c2416 = arith.constant 2416 : index
    %c0_462 = arith.constant 0 : index
    %1526 = vector.load %arg3[%c2416, %c0_462] : memref<2768x128xf32, #tpu.memory_space<vmem>>, vector<1x64xf32>
    %cst_463 = arith.constant dense<0.000000e+00> : vector<8x64xf32>
    %1527 = tpu.matmul %1519, %1525, %cst_463 {dimension_numbers = #tpu.dot_dimension_numbers<[1], [0], [0], [1], [0, 0, 1, 1], [], []>} : vector<8x32xf32>, vector<32x64xf32>, vector<8x64xf32> -> vector<8x64xf32>
    %1528 = vector.broadcast %1526 : vector<1x64xf32> to vector<8x64xf32>
    %1529 = arith.addf %1527, %1528 : vector<8x64xf32>
    %1530 = vector.extract_strided_slice %1529 {offsets = [0, 0], sizes = [8, 32], strides = [1, 1]} : vector<8x64xf32> to vector<8x32xf32>
    %1531 = vector.extract_strided_slice %1529 {offsets = [0, 32], sizes = [8, 32], strides = [1, 1]} : vector<8x64xf32> to vector<8x32xf32>
    %1532 = tpu.iota {dimensions = array<i32: 1>} : vector<1x32xi32>
    %c0_i32_464 = arith.constant 0 : i32
    %1533 = vector.broadcast %c0_i32_464 : i32 to vector<1x32xi32>
    %1534 = arith.cmpi sge, %1532, %1533 : vector<1x32xi32>
    %c8_i32_465 = arith.constant 8 : i32
    %1535 = vector.broadcast %c8_i32_465 : i32 to vector<1x32xi32>
    %1536 = arith.cmpi slt, %1532, %1535 : vector<1x32xi32>
    %1537 = arith.andi %1534, %1536 : vector<1x32xi1>
    %1538 = arith.extui %1537 : vector<1x32xi1> to vector<1x32xi32>
    %1539 = arith.sitofp %1538 : vector<1x32xi32> to vector<1x32xf32>
    %1540 = vector.broadcast %1539 : vector<1x32xf32> to vector<8x32xf32>
    %1541 = arith.mulf %1524, %1540 : vector<8x32xf32>
    %cst_466 = arith.constant dense<0.000000e+00> : vector<8x8xf32>
    %1542 = tpu.matmul %1541, %1530, %cst_466 {dimension_numbers = #tpu.dot_dimension_numbers<[1], [1], [0], [0], [0, 0, 1, 0], [], []>} : vector<8x32xf32>, vector<8x32xf32>, vector<8x8xf32> -> vector<8x8xf32>
    %cst_467 = arith.constant dense<0xFF800000> : vector<8xf32>
    %1543 = vector.multi_reduction <maximumf>, %1542, %cst_467 [1] : vector<8x8xf32> to vector<8xf32>
    %1544 = vector.shape_cast %1543 : vector<8xf32> to vector<8x1xf32>
    %1545 = vector.broadcast %1544 : vector<8x1xf32> to vector<8x8xf32>
    %1546 = arith.subf %1542, %1545 : vector<8x8xf32>
    %1547 = math.exp %1546 : vector<8x8xf32>
    %cst_468 = arith.constant dense<0.000000e+00> : vector<8xf32>
    %1548 = vector.multi_reduction <add>, %1547, %cst_468 [1] : vector<8x8xf32> to vector<8xf32>
    %1549 = vector.shape_cast %1548 : vector<8xf32> to vector<8x1xf32>
    %1550 = tpu.reciprocal %1549 {approx = true} : vector<8x1xf32> -> vector<8x1xf32>
    %1551 = vector.broadcast %1550 : vector<8x1xf32> to vector<8x8xf32>
    %1552 = arith.mulf %1547, %1551 : vector<8x8xf32>
    %1553 = vector.broadcast %1539 : vector<1x32xf32> to vector<8x32xf32>
    %1554 = arith.mulf %1531, %1553 : vector<8x32xf32>
    %cst_469 = arith.constant dense<0.000000e+00> : vector<8x32xf32>
    %1555 = tpu.matmul %1552, %1554, %cst_469 {dimension_numbers = #tpu.dot_dimension_numbers<[1], [0], [0], [1], [0, 0, 1, 1], [], []>} : vector<8x8xf32>, vector<8x32xf32>, vector<8x32xf32> -> vector<8x32xf32>
    %c8_i32_470 = arith.constant 8 : i32
    %1556 = vector.broadcast %c8_i32_470 : i32 to vector<1x32xi32>
    %1557 = arith.cmpi sge, %1532, %1556 : vector<1x32xi32>
    %c16_i32_471 = arith.constant 16 : i32
    %1558 = vector.broadcast %c16_i32_471 : i32 to vector<1x32xi32>
    %1559 = arith.cmpi slt, %1532, %1558 : vector<1x32xi32>
    %1560 = arith.andi %1557, %1559 : vector<1x32xi1>
    %1561 = arith.extui %1560 : vector<1x32xi1> to vector<1x32xi32>
    %1562 = arith.sitofp %1561 : vector<1x32xi32> to vector<1x32xf32>
    %1563 = vector.broadcast %1562 : vector<1x32xf32> to vector<8x32xf32>
    %1564 = arith.mulf %1524, %1563 : vector<8x32xf32>
    %cst_472 = arith.constant dense<0.000000e+00> : vector<8x8xf32>
    %1565 = tpu.matmul %1564, %1530, %cst_472 {dimension_numbers = #tpu.dot_dimension_numbers<[1], [1], [0], [0], [0, 0, 1, 0], [], []>} : vector<8x32xf32>, vector<8x32xf32>, vector<8x8xf32> -> vector<8x8xf32>
    %cst_473 = arith.constant dense<0xFF800000> : vector<8xf32>
    %1566 = vector.multi_reduction <maximumf>, %1565, %cst_473 [1] : vector<8x8xf32> to vector<8xf32>
    %1567 = vector.shape_cast %1566 : vector<8xf32> to vector<8x1xf32>
    %1568 = vector.broadcast %1567 : vector<8x1xf32> to vector<8x8xf32>
    %1569 = arith.subf %1565, %1568 : vector<8x8xf32>
    %1570 = math.exp %1569 : vector<8x8xf32>
    %cst_474 = arith.constant dense<0.000000e+00> : vector<8xf32>
    %1571 = vector.multi_reduction <add>, %1570, %cst_474 [1] : vector<8x8xf32> to vector<8xf32>
    %1572 = vector.shape_cast %1571 : vector<8xf32> to vector<8x1xf32>
    %1573 = tpu.reciprocal %1572 {approx = true} : vector<8x1xf32> -> vector<8x1xf32>
    %1574 = vector.broadcast %1573 : vector<8x1xf32> to vector<8x8xf32>
    %1575 = arith.mulf %1570, %1574 : vector<8x8xf32>
    %1576 = vector.broadcast %1562 : vector<1x32xf32> to vector<8x32xf32>
    %1577 = arith.mulf %1531, %1576 : vector<8x32xf32>
    %cst_475 = arith.constant dense<0.000000e+00> : vector<8x32xf32>
    %1578 = tpu.matmul %1575, %1577, %cst_475 {dimension_numbers = #tpu.dot_dimension_numbers<[1], [0], [0], [1], [0, 0, 1, 1], [], []>} : vector<8x8xf32>, vector<8x32xf32>, vector<8x32xf32> -> vector<8x32xf32>
    %1579 = arith.addf %1555, %1578 : vector<8x32xf32>
    %c16_i32_476 = arith.constant 16 : i32
    %1580 = vector.broadcast %c16_i32_476 : i32 to vector<1x32xi32>
    %1581 = arith.cmpi sge, %1532, %1580 : vector<1x32xi32>
    %c24_i32_477 = arith.constant 24 : i32
    %1582 = vector.broadcast %c24_i32_477 : i32 to vector<1x32xi32>
    %1583 = arith.cmpi slt, %1532, %1582 : vector<1x32xi32>
    %1584 = arith.andi %1581, %1583 : vector<1x32xi1>
    %1585 = arith.extui %1584 : vector<1x32xi1> to vector<1x32xi32>
    %1586 = arith.sitofp %1585 : vector<1x32xi32> to vector<1x32xf32>
    %1587 = vector.broadcast %1586 : vector<1x32xf32> to vector<8x32xf32>
    %1588 = arith.mulf %1524, %1587 : vector<8x32xf32>
    %cst_478 = arith.constant dense<0.000000e+00> : vector<8x8xf32>
    %1589 = tpu.matmul %1588, %1530, %cst_478 {dimension_numbers = #tpu.dot_dimension_numbers<[1], [1], [0], [0], [0, 0, 1, 0], [], []>} : vector<8x32xf32>, vector<8x32xf32>, vector<8x8xf32> -> vector<8x8xf32>
    %cst_479 = arith.constant dense<0xFF800000> : vector<8xf32>
    %1590 = vector.multi_reduction <maximumf>, %1589, %cst_479 [1] : vector<8x8xf32> to vector<8xf32>
    %1591 = vector.shape_cast %1590 : vector<8xf32> to vector<8x1xf32>
    %1592 = vector.broadcast %1591 : vector<8x1xf32> to vector<8x8xf32>
    %1593 = arith.subf %1589, %1592 : vector<8x8xf32>
    %1594 = math.exp %1593 : vector<8x8xf32>
    %cst_480 = arith.constant dense<0.000000e+00> : vector<8xf32>
    %1595 = vector.multi_reduction <add>, %1594, %cst_480 [1] : vector<8x8xf32> to vector<8xf32>
    %1596 = vector.shape_cast %1595 : vector<8xf32> to vector<8x1xf32>
    %1597 = tpu.reciprocal %1596 {approx = true} : vector<8x1xf32> -> vector<8x1xf32>
    %1598 = vector.broadcast %1597 : vector<8x1xf32> to vector<8x8xf32>
    %1599 = arith.mulf %1594, %1598 : vector<8x8xf32>
    %1600 = vector.broadcast %1586 : vector<1x32xf32> to vector<8x32xf32>
    %1601 = arith.mulf %1531, %1600 : vector<8x32xf32>
    %cst_481 = arith.constant dense<0.000000e+00> : vector<8x32xf32>
    %1602 = tpu.matmul %1599, %1601, %cst_481 {dimension_numbers = #tpu.dot_dimension_numbers<[1], [0], [0], [1], [0, 0, 1, 1], [], []>} : vector<8x8xf32>, vector<8x32xf32>, vector<8x32xf32> -> vector<8x32xf32>
    %1603 = arith.addf %1579, %1602 : vector<8x32xf32>
    %c24_i32_482 = arith.constant 24 : i32
    %1604 = vector.broadcast %c24_i32_482 : i32 to vector<1x32xi32>
    %1605 = arith.cmpi sge, %1532, %1604 : vector<1x32xi32>
    %c32_i32_483 = arith.constant 32 : i32
    %1606 = vector.broadcast %c32_i32_483 : i32 to vector<1x32xi32>
    %1607 = arith.cmpi slt, %1532, %1606 : vector<1x32xi32>
    %1608 = arith.andi %1605, %1607 : vector<1x32xi1>
    %1609 = arith.extui %1608 : vector<1x32xi1> to vector<1x32xi32>
    %1610 = arith.sitofp %1609 : vector<1x32xi32> to vector<1x32xf32>
    %1611 = vector.broadcast %1610 : vector<1x32xf32> to vector<8x32xf32>
    %1612 = arith.mulf %1524, %1611 : vector<8x32xf32>
    %cst_484 = arith.constant dense<0.000000e+00> : vector<8x8xf32>
    %1613 = tpu.matmul %1612, %1530, %cst_484 {dimension_numbers = #tpu.dot_dimension_numbers<[1], [1], [0], [0], [0, 0, 1, 0], [], []>} : vector<8x32xf32>, vector<8x32xf32>, vector<8x8xf32> -> vector<8x8xf32>
    %cst_485 = arith.constant dense<0xFF800000> : vector<8xf32>
    %1614 = vector.multi_reduction <maximumf>, %1613, %cst_485 [1] : vector<8x8xf32> to vector<8xf32>
    %1615 = vector.shape_cast %1614 : vector<8xf32> to vector<8x1xf32>
    %1616 = vector.broadcast %1615 : vector<8x1xf32> to vector<8x8xf32>
    %1617 = arith.subf %1613, %1616 : vector<8x8xf32>
    %1618 = math.exp %1617 : vector<8x8xf32>
    %cst_486 = arith.constant dense<0.000000e+00> : vector<8xf32>
    %1619 = vector.multi_reduction <add>, %1618, %cst_486 [1] : vector<8x8xf32> to vector<8xf32>
    %1620 = vector.shape_cast %1619 : vector<8xf32> to vector<8x1xf32>
    %1621 = tpu.reciprocal %1620 {approx = true} : vector<8x1xf32> -> vector<8x1xf32>
    %1622 = vector.broadcast %1621 : vector<8x1xf32> to vector<8x8xf32>
    %1623 = arith.mulf %1618, %1622 : vector<8x8xf32>
    %1624 = vector.broadcast %1610 : vector<1x32xf32> to vector<8x32xf32>
    %1625 = arith.mulf %1531, %1624 : vector<8x32xf32>
    %cst_487 = arith.constant dense<0.000000e+00> : vector<8x32xf32>
    %1626 = tpu.matmul %1623, %1625, %cst_487 {dimension_numbers = #tpu.dot_dimension_numbers<[1], [0], [0], [1], [0, 0, 1, 1], [], []>} : vector<8x8xf32>, vector<8x32xf32>, vector<8x32xf32> -> vector<8x32xf32>
    %1627 = arith.addf %1603, %1626 : vector<8x32xf32>
    %c2424 = arith.constant 2424 : index
    %c0_488 = arith.constant 0 : index
    %1628 = vector.load %arg3[%c2424, %c0_488] : memref<2768x128xf32, #tpu.memory_space<vmem>>, vector<32x32xf32>
    %c2456 = arith.constant 2456 : index
    %c0_489 = arith.constant 0 : index
    %1629 = vector.load %arg3[%c2456, %c0_489] : memref<2768x128xf32, #tpu.memory_space<vmem>>, vector<1x32xf32>
    %cst_490 = arith.constant dense<0.000000e+00> : vector<8x32xf32>
    %1630 = tpu.matmul %1627, %1628, %cst_490 {dimension_numbers = #tpu.dot_dimension_numbers<[1], [0], [0], [1], [0, 0, 1, 1], [], []>} : vector<8x32xf32>, vector<32x32xf32>, vector<8x32xf32> -> vector<8x32xf32>
    %1631 = vector.broadcast %1629 : vector<1x32xf32> to vector<8x32xf32>
    %1632 = arith.addf %1630, %1631 : vector<8x32xf32>
    %1633 = arith.addf %1261, %1632 : vector<8x32xf32>
    %c2464 = arith.constant 2464 : index
    %c0_491 = arith.constant 0 : index
    %1634 = vector.load %arg3[%c2464, %c0_491] : memref<2768x128xf32, #tpu.memory_space<vmem>>, vector<1x32xf32>
    %c2472 = arith.constant 2472 : index
    %c0_492 = arith.constant 0 : index
    %1635 = vector.load %arg3[%c2472, %c0_492] : memref<2768x128xf32, #tpu.memory_space<vmem>>, vector<1x32xf32>
    %cst_493 = arith.constant dense<0.000000e+00> : vector<8xf32>
    %1636 = vector.multi_reduction <add>, %1633, %cst_493 [1] : vector<8x32xf32> to vector<8xf32>
    %1637 = vector.shape_cast %1636 : vector<8xf32> to vector<8x1xf32>
    %cst_494 = arith.constant 3.200000e+01 : f32
    %1638 = vector.broadcast %cst_494 : f32 to vector<8x1xf32>
    %1639 = arith.divf %1637, %1638 : vector<8x1xf32>
    %1640 = arith.mulf %1633, %1633 : vector<8x32xf32>
    %cst_495 = arith.constant dense<0.000000e+00> : vector<8xf32>
    %1641 = vector.multi_reduction <add>, %1640, %cst_495 [1] : vector<8x32xf32> to vector<8xf32>
    %1642 = vector.shape_cast %1641 : vector<8xf32> to vector<8x1xf32>
    %cst_496 = arith.constant 3.200000e+01 : f32
    %1643 = vector.broadcast %cst_496 : f32 to vector<8x1xf32>
    %1644 = arith.divf %1642, %1643 : vector<8x1xf32>
    %1645 = arith.mulf %1639, %1639 : vector<8x1xf32>
    %1646 = arith.subf %1644, %1645 : vector<8x1xf32>
    %1647 = vector.broadcast %1639 : vector<8x1xf32> to vector<8x32xf32>
    %1648 = arith.subf %1633, %1647 : vector<8x32xf32>
    %cst_497 = arith.constant 9.99999974E-6 : f32
    %1649 = vector.broadcast %cst_497 : f32 to vector<8x1xf32>
    %1650 = arith.addf %1646, %1649 : vector<8x1xf32>
    %1651 = math.rsqrt %1650 : vector<8x1xf32>
    %1652 = vector.broadcast %1651 : vector<8x1xf32> to vector<8x32xf32>
    %1653 = arith.mulf %1648, %1652 : vector<8x32xf32>
    %1654 = vector.broadcast %1634 : vector<1x32xf32> to vector<8x32xf32>
    %1655 = arith.mulf %1653, %1654 : vector<8x32xf32>
    %1656 = vector.broadcast %1635 : vector<1x32xf32> to vector<8x32xf32>
    %1657 = arith.addf %1655, %1656 : vector<8x32xf32>
    %c2480 = arith.constant 2480 : index
    %c0_498 = arith.constant 0 : index
    %1658 = vector.load %arg3[%c2480, %c0_498] : memref<2768x128xf32, #tpu.memory_space<vmem>>, vector<32x128xf32>
    %c2512 = arith.constant 2512 : index
    %c0_499 = arith.constant 0 : index
    %1659 = vector.load %arg3[%c2512, %c0_499] : memref<2768x128xf32, #tpu.memory_space<vmem>>, vector<1x128xf32>
    %cst_500 = arith.constant dense<0.000000e+00> : vector<8x128xf32>
    %1660 = tpu.matmul %1657, %1658, %cst_500 {dimension_numbers = #tpu.dot_dimension_numbers<[1], [0], [0], [1], [0, 0, 1, 1], [], []>} : vector<8x32xf32>, vector<32x128xf32>, vector<8x128xf32> -> vector<8x128xf32>
    %1661 = vector.broadcast %1659 : vector<1x128xf32> to vector<8x128xf32>
    %1662 = arith.addf %1660, %1661 : vector<8x128xf32>
    %1663 = arith.mulf %1662, %1662 : vector<8x128xf32>
    %1664 = arith.mulf %1662, %1663 : vector<8x128xf32>
    %cst_501 = arith.constant 4.471500e-02 : f32
    %1665 = vector.broadcast %cst_501 : f32 to vector<8x128xf32>
    %1666 = arith.mulf %1665, %1664 : vector<8x128xf32>
    %1667 = arith.addf %1662, %1666 : vector<8x128xf32>
    %cst_502 = arith.constant 0.797884583 : f32
    %1668 = vector.broadcast %cst_502 : f32 to vector<8x128xf32>
    %1669 = arith.mulf %1668, %1667 : vector<8x128xf32>
    %1670 = math.tanh %1669 : vector<8x128xf32>
    %cst_503 = arith.constant 1.000000e+00 : f32
    %1671 = vector.broadcast %cst_503 : f32 to vector<8x128xf32>
    %1672 = arith.addf %1671, %1670 : vector<8x128xf32>
    %cst_504 = arith.constant 5.000000e-01 : f32
    %1673 = vector.broadcast %cst_504 : f32 to vector<8x128xf32>
    %1674 = arith.mulf %1673, %1672 : vector<8x128xf32>
    %1675 = arith.mulf %1662, %1674 : vector<8x128xf32>
    %c2520 = arith.constant 2520 : index
    %c0_505 = arith.constant 0 : index
    %1676 = vector.load %arg3[%c2520, %c0_505] : memref<2768x128xf32, #tpu.memory_space<vmem>>, vector<128x32xf32>
    %c2648 = arith.constant 2648 : index
    %c0_506 = arith.constant 0 : index
    %1677 = vector.load %arg3[%c2648, %c0_506] : memref<2768x128xf32, #tpu.memory_space<vmem>>, vector<1x32xf32>
    %cst_507 = arith.constant dense<0.000000e+00> : vector<8x32xf32>
    %1678 = tpu.matmul %1675, %1676, %cst_507 {dimension_numbers = #tpu.dot_dimension_numbers<[1], [0], [0], [1], [0, 0, 1, 1], [], []>} : vector<8x128xf32>, vector<128x32xf32>, vector<8x32xf32> -> vector<8x32xf32>
    %1679 = vector.broadcast %1677 : vector<1x32xf32> to vector<8x32xf32>
    %1680 = arith.addf %1678, %1679 : vector<8x32xf32>
    %1681 = arith.addf %1633, %1680 : vector<8x32xf32>
    %c2656 = arith.constant 2656 : index
    %c0_508 = arith.constant 0 : index
    %1682 = vector.load %arg3[%c2656, %c0_508] : memref<2768x128xf32, #tpu.memory_space<vmem>>, vector<1x32xf32>
    %c2664 = arith.constant 2664 : index
    %c0_509 = arith.constant 0 : index
    %1683 = vector.load %arg3[%c2664, %c0_509] : memref<2768x128xf32, #tpu.memory_space<vmem>>, vector<1x32xf32>
    %cst_510 = arith.constant dense<0.000000e+00> : vector<8xf32>
    %1684 = vector.multi_reduction <add>, %1471, %cst_510 [1] : vector<8x32xf32> to vector<8xf32>
    %1685 = vector.shape_cast %1684 : vector<8xf32> to vector<8x1xf32>
    %cst_511 = arith.constant 3.200000e+01 : f32
    %1686 = vector.broadcast %cst_511 : f32 to vector<8x1xf32>
    %1687 = arith.divf %1685, %1686 : vector<8x1xf32>
    %1688 = arith.mulf %1471, %1471 : vector<8x32xf32>
    %cst_512 = arith.constant dense<0.000000e+00> : vector<8xf32>
    %1689 = vector.multi_reduction <add>, %1688, %cst_512 [1] : vector<8x32xf32> to vector<8xf32>
    %1690 = vector.shape_cast %1689 : vector<8xf32> to vector<8x1xf32>
    %cst_513 = arith.constant 3.200000e+01 : f32
    %1691 = vector.broadcast %cst_513 : f32 to vector<8x1xf32>
    %1692 = arith.divf %1690, %1691 : vector<8x1xf32>
    %1693 = arith.mulf %1687, %1687 : vector<8x1xf32>
    %1694 = arith.subf %1692, %1693 : vector<8x1xf32>
    %1695 = vector.broadcast %1687 : vector<8x1xf32> to vector<8x32xf32>
    %1696 = arith.subf %1471, %1695 : vector<8x32xf32>
    %cst_514 = arith.constant 9.99999974E-6 : f32
    %1697 = vector.broadcast %cst_514 : f32 to vector<8x1xf32>
    %1698 = arith.addf %1694, %1697 : vector<8x1xf32>
    %1699 = math.rsqrt %1698 : vector<8x1xf32>
    %1700 = vector.broadcast %1699 : vector<8x1xf32> to vector<8x32xf32>
    %1701 = arith.mulf %1696, %1700 : vector<8x32xf32>
    %1702 = vector.broadcast %1682 : vector<1x32xf32> to vector<8x32xf32>
    %1703 = arith.mulf %1701, %1702 : vector<8x32xf32>
    %1704 = vector.broadcast %1683 : vector<1x32xf32> to vector<8x32xf32>
    %1705 = arith.addf %1703, %1704 : vector<8x32xf32>
    %c2672 = arith.constant 2672 : index
    %c0_515 = arith.constant 0 : index
    %1706 = vector.load %arg3[%c2672, %c0_515] : memref<2768x128xf32, #tpu.memory_space<vmem>>, vector<32x1xf32>
    %c2704 = arith.constant 2704 : index
    %c0_516 = arith.constant 0 : index
    %1707 = vector.load %arg3[%c2704, %c0_516] : memref<2768x128xf32, #tpu.memory_space<vmem>>, vector<1x1xf32>
    %cst_517 = arith.constant dense<0.000000e+00> : vector<8x1xf32>
    %1708 = tpu.matmul %1705, %1706, %cst_517 {dimension_numbers = #tpu.dot_dimension_numbers<[1], [0], [0], [1], [0, 0, 1, 1], [], []>} : vector<8x32xf32>, vector<32x1xf32>, vector<8x1xf32> -> vector<8x1xf32>
    %1709 = vector.broadcast %1707 : vector<1x1xf32> to vector<8x1xf32>
    %1710 = arith.addf %1708, %1709 : vector<8x1xf32>
    %c2712 = arith.constant 2712 : index
    %c0_518 = arith.constant 0 : index
    %1711 = vector.load %arg3[%c2712, %c0_518] : memref<2768x128xf32, #tpu.memory_space<vmem>>, vector<1x32xf32>
    %c2720 = arith.constant 2720 : index
    %c0_519 = arith.constant 0 : index
    %1712 = vector.load %arg3[%c2720, %c0_519] : memref<2768x128xf32, #tpu.memory_space<vmem>>, vector<1x32xf32>
    %cst_520 = arith.constant dense<0.000000e+00> : vector<8xf32>
    %1713 = vector.multi_reduction <add>, %1681, %cst_520 [1] : vector<8x32xf32> to vector<8xf32>
    %1714 = vector.shape_cast %1713 : vector<8xf32> to vector<8x1xf32>
    %cst_521 = arith.constant 3.200000e+01 : f32
    %1715 = vector.broadcast %cst_521 : f32 to vector<8x1xf32>
    %1716 = arith.divf %1714, %1715 : vector<8x1xf32>
    %1717 = arith.mulf %1681, %1681 : vector<8x32xf32>
    %cst_522 = arith.constant dense<0.000000e+00> : vector<8xf32>
    %1718 = vector.multi_reduction <add>, %1717, %cst_522 [1] : vector<8x32xf32> to vector<8xf32>
    %1719 = vector.shape_cast %1718 : vector<8xf32> to vector<8x1xf32>
    %cst_523 = arith.constant 3.200000e+01 : f32
    %1720 = vector.broadcast %cst_523 : f32 to vector<8x1xf32>
    %1721 = arith.divf %1719, %1720 : vector<8x1xf32>
    %1722 = arith.mulf %1716, %1716 : vector<8x1xf32>
    %1723 = arith.subf %1721, %1722 : vector<8x1xf32>
    %1724 = vector.broadcast %1716 : vector<8x1xf32> to vector<8x32xf32>
    %1725 = arith.subf %1681, %1724 : vector<8x32xf32>
    %cst_524 = arith.constant 9.99999974E-6 : f32
    %1726 = vector.broadcast %cst_524 : f32 to vector<8x1xf32>
    %1727 = arith.addf %1723, %1726 : vector<8x1xf32>
    %1728 = math.rsqrt %1727 : vector<8x1xf32>
    %1729 = vector.broadcast %1728 : vector<8x1xf32> to vector<8x32xf32>
    %1730 = arith.mulf %1725, %1729 : vector<8x32xf32>
    %1731 = vector.broadcast %1711 : vector<1x32xf32> to vector<8x32xf32>
    %1732 = arith.mulf %1730, %1731 : vector<8x32xf32>
    %1733 = vector.broadcast %1712 : vector<1x32xf32> to vector<8x32xf32>
    %1734 = arith.addf %1732, %1733 : vector<8x32xf32>
    %c2728 = arith.constant 2728 : index
    %c0_525 = arith.constant 0 : index
    %1735 = vector.load %arg3[%c2728, %c0_525] : memref<2768x128xf32, #tpu.memory_space<vmem>>, vector<32x1xf32>
    %c2760 = arith.constant 2760 : index
    %c0_526 = arith.constant 0 : index
    %1736 = vector.load %arg3[%c2760, %c0_526] : memref<2768x128xf32, #tpu.memory_space<vmem>>, vector<1x1xf32>
    %cst_527 = arith.constant dense<0.000000e+00> : vector<8x1xf32>
    %1737 = tpu.matmul %1734, %1735, %cst_527 {dimension_numbers = #tpu.dot_dimension_numbers<[1], [0], [0], [1], [0, 0, 1, 1], [], []>} : vector<8x32xf32>, vector<32x1xf32>, vector<8x1xf32> -> vector<8x1xf32>
    %1738 = vector.broadcast %1736 : vector<1x1xf32> to vector<8x1xf32>
    %1739 = arith.addf %1737, %1738 : vector<8x1xf32>
    %1740 = tpu.concatenate %1710, %1739 in 0 : vector<8x1xf32>, vector<8x1xf32> -> vector<16x1xf32>
    %c0_528 = arith.constant 0 : index
    %c0_529 = arith.constant 0 : index
    %c0_530 = arith.constant 0 : index
    %1741 = vector.load %arg4[%c0_528, %c0_529, %c0_530] : memref<1x16x1xf32, #tpu.memory_space<vmem>>, vector<1x16x1xf32>
    %1742 = vector.shape_cast %1741 : vector<1x16x1xf32> to vector<16x1xf32>
    %1743 = vector.shape_cast %1740 : vector<16x1xf32> to vector<1x16x1xf32>
    tpu.vector_store %arg4[%c0_528, %c0_529, %c0_530], %1743 {strides = array<i32>} : memref<1x16x1xf32, #tpu.memory_space<vmem>>, vector<1x16x1xf32>,
    return
  }
  func.func @transform_0(%arg0: i32) -> (i32, i32, i32) {
    %c0_i32 = arith.constant 0 : i32
    %c0_i32_0 = arith.constant 0 : i32
    %c0_i32_1 = arith.constant 0 : i32
    return %arg0, %c0_i32, %c0_i32_0 : i32, i32, i32
  }
  func.func @transform_1(%arg0: i32) -> (i32, i32, i32) {
    %c0_i32 = arith.constant 0 : i32
    %c0_i32_0 = arith.constant 0 : i32
    %c0_i32_1 = arith.constant 0 : i32
    return %arg0, %c0_i32, %c0_i32_0 : i32, i32, i32
  }
  func.func @transform_2(%arg0: i32) -> (i32, i32) {
    %c0_i32 = arith.constant 0 : i32
    %c0_i32_0 = arith.constant 0 : i32
    %c0_i32_1 = arith.constant 0 : i32
    return %c0_i32, %c0_i32_0 : i32, i32
  }
  func.func @transform_3(%arg0: i32) -> (i32, i32, i32) {
    %c0_i32 = arith.constant 0 : i32
    %c0_i32_0 = arith.constant 0 : i32
    %c0_i32_1 = arith.constant 0 : i32
    return %arg0, %c0_i32, %c0_i32_0 : i32, i32, i32
  }
}

</mosaic_0001>

<bundles_post_ra>
// kernel: _lambda_.1
= control target key start
LH: loop header
LB: loop body
LE: loop exit
PB: predicated region body
PF: predicated region fallthrough
CT: control target
= control target key end

     0   :  { %8 = vsyncpa [#allocation3], 0  ;;  %s6007_s0 = inlined_call_operand.hbm [shape: f32[2,8,16], index: 0, kind: input, shape index: {}]   ;;  %s6008_s1 = inlined_call_operand.hbm [shape: f32[2,8,16], index: 1, kind: input, shape index: {}]   ;;  %s6009_s2 = inlined_call_operand.hbm [shape: f32[2768,128], index: 2, kind: input, shape index: {}]   ;;  %s6010_s3 = inlined_call_operand.vmem [shape: f32[2,16,1], index: 3, kind: output, shape index: {}]  }
   0x1   :  { %10 = vsyncpa [#allocation3 + $0x1], 0 }
   0x2   :  { %11 = vsyncpa [#allocation5], 0 }
   0x3   :  { %13 = vsyncpa [#allocation5 + $0x1], 0  ;;  %s5153_s12 = smov 0   ;;  %s5155_s13 = smov 0  }
   0x4   :  { %s5157_s14 = smov 0   ;;  %s5159_s15 = smov 0  }
   0x5 LB: > { %s134_s18 = sshll.u32 %s6009_s2, 4  ;;  %s5175_s19 = sadd.s32 4294967295, %s5122_s15   ;;  %s5122_s15 = sphi %s5159_s15, %s6017_s15   ;;  %s5118_s14 = sphi %s5157_s14, %s6016_s14   ;;  %s5114_s13 = sphi %s5155_s13, %s6015_s13   ;;  %s5110_s12 = sphi %s5153_s12, %s6014_s12   ;;  %s135_s18 = int_to_ptr.hbm [resolvable:$true] %s134_s18 }
   0x6   : > { %p4485_p0 = scmp.ge.s32.totalorder %s5122_s15, 1  ;;  %p40_p1 = scmp.eq.s32.totalorder %s5175_s19, 0 }
   0x7   : > { %p123_p2 = scmp.lt.s32.totalorder %s5122_s15, 3  ;;  %s5124_s21 = smov [#allocation6]  }
   0x8   : > { %s136_s22 = sshll.u32 %s5124_s21, 4  ;;  %s5125_s23 = smov 128   ;;  %s137_s22 = int_to_ptr.vmem [resolvable:$true] %s136_s22 }
   0x9   : > { %p5180_p3 = pnand %p4485_p0, %p123_p2  ;;  %s5126_s24 = smov 8  }
   0xa   : > { %s5189_s25 = sadd.s32 1, %s5122_s15   ;;  %s26_s27 = sadd.s32 1, %s5118_s14 }
   0xb   : > { %p4641_p4 = pneg %p5180_p3  ;;  %s23_s26 = ssub.s32 %s5122_s15, %s5189_s25 }
   0xc   : > { %p24_p6 = scmp.eq.s32.totalorder %s23_s26, 0  ;;  %p33_p7 = scmp.ne.s32.totalorder %s5118_s14, %s5114_s13 }
   0xd   : > { %p4642_p5 = pnand %p4641_p4, %p40_p1  ;;  %p34_p8 = scmp.eq.s32.totalorder %s5122_s15, 0 }
   0xe   : > { %p39_p9 = scmp.ne.s32.totalorder %s5114_s13, %s5110_s12  ;;  %p4653_p12 = scmp.lt.s32.totalorder %s5122_s15, 2 }
   0xf   : > { %4644 = dma.hbm_to_vmem [thread:$0]  (!%p4642_p5), %s135_s18, 44288, %s137_s22, [#allocation5], %s5125_s23, %s5125_s23, %s5126_s24  }
  0x10   : > { %s5199_s28 = scalar_select %p24_p6, %s5118_s14, %s26_s27  }
  0x11   : > { %p35_p10 = por %p34_p8, %p33_p7  ;;  %p5203_p11 = por %p40_p1, %p39_p9 }
  0x12   : > { %s150_s30 = sand.u32 1, %s5118_s14   ;;  %s4489_s5 = sshll.u32 %s5122_s15, 3 }
  0x13   : > { %s5209_s4 = sshll.u32 %s150_s30, 3  ;;  %s158_s8 = scalar_lea.hbm %s6007_s0, %s4489_s5 }
  0x14   : > { %s154_s9 = scalar_lea.vmem [#allocation2], %s5209_s4  ;;  %s160_s11 = sshll.u32 %s158_s8, 4  ;;  %s161_s11 = int_to_ptr.hbm [resolvable:$true] %s160_s11 }
  0x15   : > { %s162_s10 = sshll.u32 %s154_s9, 4  ;;  %p5216_p13 = pnand %p4653_p12, %p35_p10  ;;  %s163_s10 = int_to_ptr.vmem [resolvable:$true] %s162_s10 }
  0x16   : > { %s177_s18 = scalar_lea.hbm %s6008_s1, %s4489_s5  ;;  %s169_s21 = sand.u32 1, %s5122_s15  }
  0x17   : > { %s151_s22 = scalar_lea.sflag [#allocation3], %s150_s30  ;;  %s5020_s23 = sshra.s32 %s161_s11, 4  ;;  %s5021_s23 = int_to_ptr.hbm [resolvable:$true] %s5020_s23 }
  0x18   : > { %s5022_s24 = scalar_lea.hbm %s5021_s23, 8  ;;  %p5024_p2 = pneg %p5216_p13 }
  0x19   : > { %p5023_p0 = scmp.ne.s32.totalorder %s5021_s23, %s5022_s24  ;;  %s5027_s6 = scalar_lea.hbm %s6007_s0, 16 }
  0x1a   : > { %p5028_p6 = scmp.lt.s32.totalorder %s5021_s23, %s6007_s0  ;;  %p5029_p7 = scmp.lt.s32.totalorder %s5027_s6, %s5022_s24 }
  0x1b   : > { %p5025_p4 = pnand %p5024_p2, %p5023_p0 }
  0x1c   : > { %p5030_p8 = por %p5029_p7, %p5028_p6 }
  0x1d   : > { %p5026_p5 = pneg %p5025_p4 }
  0x1f   : > { %p5031_p9 = pnand %p5030_p8, %p5026_p5 }
  0x21   : > { %5034 = shalt.err (!%p5031_p9)
}
  0x22   : > { %4648 = dma.hbm_to_vmem [thread:$0]  (!%p5216_p13), %s161_s11, 128, %s163_s10, %s151_s22  }
  0x23   : > { %s179_s15 = sshll.u32 %s177_s18, 4  ;;  %s173_s30 = scalar_lea.vmem [#allocation4], %s5209_s4  ;;  %s180_s15 = int_to_ptr.hbm [resolvable:$true] %s179_s15 }
  0x24   : > { %s181_s5 = sshll.u32 %s173_s30, 4  ;;  %s170_s9 = scalar_lea.sflag [#allocation5], %s169_s21  ;;  %s182_s5 = int_to_ptr.vmem [resolvable:$true] %s181_s5 }
  0x25   : > { %s5050_s16 = sshra.s32 %s180_s15, 4  ;;  %s5057_s26 = scalar_lea.hbm %s6008_s1, 16  ;;  %s5051_s16 = int_to_ptr.hbm [resolvable:$true] %s5050_s16 }
  0x26   : > { %s5052_s17 = scalar_lea.hbm %s5051_s16, 8  ;;  %p5058_p4 = scmp.lt.s32.totalorder %s5051_s16, %s6008_s1 }
  0x27   : > { %p5053_p10 = scmp.ne.s32.totalorder %s5051_s16, %s5052_s17  ;;  %p5059_p5 = scmp.lt.s32.totalorder %s5057_s26, %s5052_s17 }
  0x29   : > { %p5055_p12 = pnand %p5053_p10, %p5024_p2  ;;  %p5060_p6 = por %p5059_p5, %p5058_p4 }
  0x2b   : > { %p5056_p0 = pneg %p5055_p12 }
  0x2d   : > { %p5061_p7 = pnand %p5060_p6, %p5056_p0 }
  0x2f   : > { %5064 = shalt.err (!%p5061_p7)
}
  0x30   : > { %4651 = dma.hbm_to_vmem [thread:$0]  (!%p5216_p13), %s180_s15, 128, %s182_s5, %s170_s9  }
  0x31   : > { %190 = sbr.rel (%p5180_p3) target bundleno = 12807 (0x3207), region = 32  ;;  %s192_s4 = sand.u32 (!%p5180_p3), 1, %s5114_s13  }
  0x32   : > { %s5252_s11 = sshll.u32 (!%p5180_p3), %s192_s4, 3  ;;  %s193_s18 = scalar_lea.sflag (!%p5180_p3), [#allocation3], %s192_s4 }
  0x33   : > { %s196_s21 = scalar_lea.vmem (!%p5180_p3), [#allocation2], %s5252_s11 }
  0x36   : > { %5097 = dma.done.wait (%p5203_p11), %s193_s18, 128  }
  0x37   : > { %5099 = vsyncadd (%p5203_p11), %s193_s18, 4294967168  ;;  %s202_s12 = sand.u32 1, %s5175_s19   ;;  %s206_s20 = scalar_lea.vmem [#allocation4], %s5252_s11 }
  0x38   : > { %s203_s22 = scalar_lea.sflag [#allocation5], %s202_s12 }
  0x39   : > { %5101 = dma.done.wait (%p5203_p11), %s203_s22, 128  }
  0x3a   : > { %5103 = vsyncadd (%p5203_p11), %s203_s22, 4294967168 }
  0x3b   : > { %5105 = dma.done.wait (%p40_p1), [#allocation5], 44288  }
  0x3c   : > { %5107 = vsyncadd (%p40_p1), [#allocation5], 4294923008  ;;  %vm248_vm0 = vcmask 130048   ;;  %v245_v0 = vld [vmem:[%s196_s21] sm:$0xff]  ;;  %v5127_v4 = vmov 16.0   ;;  %v285_v9 = vld [vmem:[#allocation6 + $0x18] sm:$0xff] }
  0x3d   : > { %v249_v1 = vsel %vm248_vm0, %v245_v0, 0.0  ;;  %v260_v2 = vmul.f32 %v245_v0, %v245_v0  ;;  %4798 = vrcp.f32 %v5127_v4  ;;  %v284_v10 = vld [vmem:[#allocation6 + $0x10] sm:$0xff]  ;;  %305 = vmatpush.msra.mxu0 %v285_v9  ;;  %v4706_v27 = vld [vmem:[#allocation6] ss:$0 sm:$0xff]  ;;  %v4707_v30 = vld [vmem:[#allocation6 + $0x8] ss:$0 sm:$0xff] }
  0x3e   : > { %250 = vadd.xlane.f32.xlu0 %v249_v1  ;;  %v4708_v33 = vld [vmem:[#allocation6 + $0x20] ss:$0 sm:$0xff]  ;;  %vm313_vm5 = vcmask 261120   ;;  %v5128_v39 = vmov 32.0   ;;  %v4709_v60 = vld [vmem:[#allocation6 + $0x28] ss:$0 sm:$0xff] }
  0x3f   : > { %v261_v3 = vsel %vm248_vm0, %v260_v2, 0.0  ;;  %306 = vmatpush.msra.mxu0 %v284_v10  ;;  %v4710_v63 = vld [vmem:[#allocation6 + $0x30] ss:$0 sm:$0xff]  ;;  %v472_v10 = vld [vmem:[#allocation6 + $0x98] sm:$0xff]  ;;  %s5130_s29 = smov 64   ;;  %s5131_s6 = smov 96  }
  0x40   : > { %v349_v1 = vld [vmem:[#allocation6 + $0x70] sm:$0xff]  ;;  %s5132_s7 = smov 32   ;;  %p240_p1 = scmp.lt.s32.totalorder %s5175_s19, 1 }
  0x42   : > { %s6019_s19 = smov (!%p240_p1, %s5175_s19), 1 }
  0x43   : > { %v4799_v5 = vpop.eup %4798  ;;  %s4632_s8 = sshll.u32 %s6019_s19, 4 }
  0x44   : > { %v253_v6 = vmul.f32 16.0, %v4799_v5  ;;  %vm257_vm1 = vweird.f32 %v4799_v5  ;;  %s5970_s5 = scalar_lea.vmem %s6010_s3, %s4632_s8 }
  0x46   : > { %262 = vadd.xlane.f32.xlu0 %v261_v3  ;;  %v254_v7 = vsub.f32 1.0, %v253_v6 }
  0x48   : > { %v255_v8 = vmul.f32 %v4799_v5, %v254_v7  ;;  %v474_v7 = vld [vmem:[#allocation6 + $0xa8] sm:$0xff] }
  0x49   : > { %492 = vmatpush.msra.mxu2 %v474_v7 }
  0x4a   : > { %v256_v11 = vadd.f32 %v4799_v5, %v255_v8  ;;  %v473_v8 = vld [vmem:[#allocation6 + $0xa0] sm:$0xff] }
  0x4b   : > { %493 = vmatpush.msra.mxu2 %v473_v8 }
  0x4c   : > { %v5271_v13 = vsel %vm257_vm1, %v4799_v5, %v256_v11  ;;  %v471_v11 = vld [vmem:[#allocation6 + $0x90] sm:$0xff] }
  0x4d   : > { %494 = vmatpush.msra.mxu2 %v472_v10 }
  0x4f   : > { %495 = vmatpush.msra.mxu2 %v471_v11 }
  0xb1   : > { %v251_v12 = vpop.xlane.xlu0 %250 }
  0xb2   : > { %v259_v14 = vmul.f32 %v5271_v13, %v251_v12 }
  0xb4   : > { %v265_v16 = vmul.f32 %v259_v14, %v259_v14  ;;  %v267_v26 = vsub.f32 %v245_v0, %v259_v14  ;;  %v5292_v14 = vld [vmem:[%s206_s20] sm:$0xff] }
  0xb9   : > { %v263_v15 = vpop.xlane.xlu0 %262 }
  0xba   : > { %v264_v17 = vmul.f32 %v263_v15, %v5271_v13 }
  0xbc   : > { %v266_v18 = vsub.f32 %v264_v17, %v265_v16  ;;  %v358_v16 = vmul.f32 %v5292_v14, %v5292_v14  ;;  %v354_v17 = vsel %vm248_vm0, %v5292_v14, 0.0 }
  0xbe   : > { %v268_v19 = vadd.f32 1e-05, %v266_v18 }
  0xc0   : > { %4800 = vrsqrt.f32 %v268_v19  ;;  %vm275_vm3 = vweird.f32 %v268_v19 }
  0xc1   : > { %4802 = vrcp.f32 %v5128_v39 }
  0xc6   : > { %v4801_v20 = vpop.eup %4800 }
  0xc7   : > { %v270_v21 = vmul.f32 %v4801_v20, %v268_v19  ;;  %vm276_vm2 = vweird.f32 %v4801_v20  ;;  %v4803_v40 = vpop.eup %4802 }
  0xc8   : > { %vm277_vm4 = vmor %vm275_vm3, %vm276_vm2  ;;  %v318_v41 = vmul.f32 32.0, %v4803_v40  ;;  %vm322_vm6 = vweird.f32 %v4803_v40 }
  0xc9   : > { %v271_v22 = vmul.f32 %v4801_v20, %v270_v21 }
  0xca   : > { %v319_v42 = vsub.f32 1.0, %v318_v41 }
  0xcb   : > { %v272_v23 = vmul.f32 0.5, %v271_v22 }
  0xcc   : > { %v320_v43 = vmul.f32 %v4803_v40, %v319_v42  ;;  %v383_v42 = vld [vmem:[#allocation6 + $0x50] sm:$0xff] }
  0xcd   : > { %v273_v24 = vsub.f32 1.5, %v272_v23  ;;  %v500_v23 = vlaneseq  ;;  %403 = vmatpush.msra.mxu1 %v383_v42 }
  0xce   : > { %v321_v44 = vadd.f32 %v4803_v40, %v320_v43  ;;  %v382_v43 = vld [vmem:[#allocation6 + $0x48] sm:$0xff] }
  0xcf   : > { %v274_v25 = vmul.f32 %v4801_v20, %v273_v24  ;;  %404 = vmatpush.msra.mxu1 %v382_v43 }
  0xd0   : > { %v5278_v46 = vsel %vm322_vm6, %v4803_v40, %v321_v44 }
  0xd1   : > { %v278_v28 = vsel %vm277_vm4, %v4801_v20, %v274_v25  ;;  %v359_v20 = vsel %vm248_vm0, %v358_v16, 0.0 }
  0xd2   : > { %v279_v29 = vmul.f32 %v278_v28, %v267_v26  ;;  %v5300_v26 = vand.u32 127, %v500_v23 }
  0xd4   : > { %v281_v31 = vmul.f32 %v4706_v27, %v279_v29  ;;  %vm553_vm10 = vcmp.ge.s32.totalorder %v5300_v26, 8  ;;  %vm554_vm11 = vcmp.lt.s32.totalorder %v5300_v26, 16  ;;  %vm503_vm4 = vcmp.lt.s32.totalorder %v5300_v26, 8 }
  0xd5   : > { %vm555_vm13 = vmand %vm553_vm10, %vm554_vm11  ;;  %vm725_vm6 = vcmp.ge.s32.totalorder %v5300_v26, 24  ;;  %vm653_vm10 = vcmp.lt.s32.totalorder %v5300_v26, 24 }
  0xd6   : > { %v283_v32 = vadd.f32 %v4707_v30, %v281_v31 }
  0xd8   : > { %4498 = vmatmul.msk.f32.vlgmr.msra.gmra.mxu0 %vm248_vm0, %v283_v32  ;;  %v4711_v32 = vld [vmem:[#allocation6 + $0x80] ss:$0 sm:$0xff] }
 0x155   : > { %v308_v34 = vpop.f32.mrf.mxu0 }
 0x156   : > { %v309_v35 = vadd.f32 %v4708_v33, %v308_v34  ;;  %v5129_v34 = vmov 0.0  }
 0x158   : > { %v314_v36 = vsel %vm313_vm5, %v309_v35, 0.0  ;;  %v325_v37 = vmul.f32 %v309_v35, %v309_v35 }
 0x159   : > { %315 = vadd.xlane.f32.xlu1 %v314_v36 }
 0x15a   : > { %v326_v38 = vsel %vm313_vm5, %v325_v37, 0.0  ;;  %v4712_v37 = vld [vmem:[#allocation6 + $0x88] ss:$0 sm:$0xff] }
 0x161   : > { %327 = vadd.xlane.f32.xlu1 %v326_v38 }
 0x169   : > { %355 = vadd.xlane.f32.xlu1 %v354_v17 }
 0x1cc   : > { %v316_v45 = vpop.xlane.xlu1 %315 }
 0x1cd   : > { %v324_v47 = vmul.f32 %v5278_v46, %v316_v45 }
 0x1cf   : > { %v330_v49 = vmul.f32 %v324_v47, %v324_v47  ;;  %v332_v59 = vsub.f32 %v309_v35, %v324_v47  ;;  %v5306_v35 = vsel %vm555_vm13, 1.0, %v5129_v34 }
 0x1d4   : > { %v328_v48 = vpop.xlane.xlu1 %327 }
 0x1d5   : > { %v329_v50 = vmul.f32 %v328_v48, %v5278_v46 }
 0x1d7   : > { %v331_v51 = vsub.f32 %v329_v50, %v330_v49 }
 0x1d9   : > { %v333_v52 = vadd.f32 1e-05, %v331_v51 }
 0x1db   : > { %4804 = vrsqrt.f32 %v333_v52  ;;  %vm340_vm8 = vweird.f32 %v333_v52 }
 0x1dc   : > { %v356_v41 = vpop.xlane.xlu1 %355 }
 0x1dd   : > { %v357_v45 = vmul.f32 %v356_v41, %v5271_v13 }
 0x1df   : > { %v363_v47 = vmul.f32 %v357_v45, %v357_v45 }
 0x1e1   : > { %v4805_v53 = vpop.eup %4804 }
 0x1e2   : > { %v335_v54 = vmul.f32 %v4805_v53, %v333_v52  ;;  %vm341_vm7 = vweird.f32 %v4805_v53 }
 0x1e3   : > { %vm342_vm9 = vmor %vm340_vm8, %vm341_vm7  ;;  %vm726_vm7 = vcmp.lt.s32.totalorder %v5300_v26, 32 }
 0x1e4   : > { %v336_v55 = vmul.f32 %v4805_v53, %v335_v54  ;;  %vm727_vm8 = vmand %vm725_vm6, %vm726_vm7 }
 0x1e6   : > { %v337_v56 = vmul.f32 0.5, %v336_v55  ;;  %v365_v55 = vsub.f32 %v5292_v14, %v357_v45 }
 0x1e8   : > { %v338_v57 = vsub.f32 1.5, %v337_v56 }
 0x1ea   : > { %v339_v58 = vmul.f32 %v4805_v53, %v338_v57  ;;  %v4714_v57 = vld [vmem:[#allocation6 + $0x38] ss:$0 sm:$0xff] }
 0x1ec   : > { %v343_v61 = vsel %vm342_vm9, %v4805_v53, %v339_v58  ;;  %v4713_v58 = vld [vmem:[#allocation6 + $0xb0] ss:$0 sm:$0xff]  ;;  %vm652_vm9 = vcmp.ge.s32.totalorder %v5300_v26, 16 }
 0x1ed   : > { %v344_v62 = vmul.f32 %v343_v61, %v332_v59  ;;  %vm654_vm11 = vmand %vm652_vm9, %vm653_vm10 }
 0x1ef   : > { %v346_v0 = vmul.f32 %v4709_v60, %v344_v62  ;;  %v4715_v60 = vld [vmem:[#allocation6 + $0x40] ss:$0 sm:$0xff] }
 0x1f1   : > { %v348_v2 = vadd.f32 %v4710_v63, %v346_v0 }
 0x1f3   : > { %v5282_v3 = vadd.f32 %v349_v1, %v348_v2  ;;  %v5321_v1 = vsel %vm503_vm4, 1.0, %v5129_v34 }
 0x1f5   : > { %v443_v4 = vsel %vm313_vm5, %v5282_v3, 0.0  ;;  %v447_v5 = vmul.f32 %v5282_v3, %v5282_v3 }
 0x1f6   : > { %444 = vadd.xlane.f32.xlu2 %v443_v4 }
 0x1f7   : > { %v448_v6 = vsel %vm313_vm5, %v447_v5, 0.0 }
 0x1fe   : > { %449 = vadd.xlane.f32.xlu2 %v448_v6 }
 0x206   : > { %360 = vadd.xlane.f32.xlu2 %v359_v20 }
 0x21e   : > { %594 = vrot.lane.b32.xlu2 %v5306_v35, %s5130_s29 }
 0x269   : > { %v445_v9 = vpop.xlane.xlu2 %444 }
 0x26a   : > { %v446_v12 = vmul.f32 %v445_v9, %v5278_v46 }
 0x26c   : > { %v452_v18 = vmul.f32 %v446_v12, %v446_v12  ;;  %v454_v31 = vsub.f32 %v5282_v3, %v446_v12 }
 0x271   : > { %v450_v15 = vpop.xlane.xlu2 %449 }
 0x272   : > { %v451_v19 = vmul.f32 %v450_v15, %v5278_v46 }
 0x274   : > { %v453_v21 = vsub.f32 %v451_v19, %v452_v18  ;;  %v4716_v18 = vld [vmem:[#allocation6 + $0x58] ss:$0 sm:$0xff] }
 0x276   : > { %v455_v22 = vadd.f32 1e-05, %v453_v21 }
 0x278   : > { %4806 = vrsqrt.f32 %v455_v22  ;;  %vm462_vm14 = vweird.f32 %v455_v22 }
 0x279   : > { %v361_v40 = vpop.xlane.xlu2 %360 }
 0x27a   : > { %v362_v44 = vmul.f32 %v361_v40, %v5271_v13 }
 0x27c   : > { %v364_v48 = vsub.f32 %v362_v44, %v363_v47 }
 0x27e   : > { %v4807_v24 = vpop.eup %4806  ;;  %v366_v49 = vadd.f32 1e-05, %v364_v48 }
 0x27f   : > { %v457_v25 = vmul.f32 %v4807_v24, %v455_v22  ;;  %vm463_vm12 = vweird.f32 %v4807_v24 }
 0x280   : > { %vm464_vm15 = vmor %vm462_vm14, %vm463_vm12  ;;  %4808 = vrsqrt.f32 %v366_v49  ;;  %vm373_vm1 = vweird.f32 %v366_v49 }
 0x281   : > { %v458_v27 = vmul.f32 %v4807_v24, %v457_v25  ;;  %v5337_v11 = vpop.permute.xlu2 %594 }
 0x283   : > { %v459_v28 = vmul.f32 0.5, %v458_v27 }
 0x285   : > { %v460_v29 = vsub.f32 1.5, %v459_v28 }
 0x286   : > { %v4809_v50 = vpop.eup %4808 }
 0x287   : > { %v461_v30 = vmul.f32 %v4807_v24, %v460_v29  ;;  %v368_v51 = vmul.f32 %v4809_v50, %v366_v49  ;;  %vm374_vm2 = vweird.f32 %v4809_v50  ;;  %v5381_v49 = vsel %vm654_vm11, 1.0, %v5129_v34 }
 0x288   : > { %vm375_vm3 = vmor %vm373_vm1, %vm374_vm2 }
 0x289   : > { %v465_v33 = vsel %vm464_vm15, %v4807_v24, %v461_v30  ;;  %v369_v52 = vmul.f32 %v4809_v50, %v368_v51 }
 0x28a   : > { %v466_v36 = vmul.f32 %v465_v33, %v454_v31 }
 0x28b   : > { %v370_v53 = vmul.f32 0.5, %v369_v52 }
 0x28c   : > { %v468_v38 = vmul.f32 %v4711_v32, %v466_v36  ;;  %v5360_v36 = vsel %vm727_vm8, 1.0, %v5129_v34 }
 0x28d   : > { %v371_v54 = vsub.f32 1.5, %v370_v53 }
 0x28e   : > { %v470_v39 = vadd.f32 %v4712_v37, %v468_v38 }
 0x28f   : > { %v372_v56 = vmul.f32 %v4809_v50, %v371_v54 }
 0x290   : > { %4500 = vmatmul.msk.f32.vlgmr.msra.gmra.mxu2 %vm313_vm5, %v470_v39 }
 0x291   : > { %v376_v13 = vsel %vm375_vm3, %v4809_v50, %v372_v56 }
 0x292   : > { %v377_v59 = vmul.f32 %v376_v13, %v365_v55 }
 0x294   : > { %v379_v62 = vmul.f32 %v4714_v57, %v377_v59 }
 0x296   : > { %v381_v0 = vadd.f32 %v4715_v60, %v379_v62 }
 0x298   : > { %4499 = vmatmul.msk.f32.vlgmr.msra.gmra.mxu1 %vm248_vm0, %v381_v0  ;;  %vm536_vm0 = vcmask 64512  }
 0x313   : > { %v497_v61 = vpop.f32.mrf.mxu2 }
 0x314   : > { %v5314_v63 = vadd.f32 %v4713_v58, %v497_v61 }
 0x315   : > { %v406_v6 = vpop.f32.mrf.mxu1 }
 0x316   : > { %509 = vrot.lane.b32.xlu0 %v5314_v63, %s5131_s6  ;;  %v507_v4 = vmul.f32 %v5321_v1, %v5314_v63  ;;  %v558_v5 = vmul.f32 %v5306_v35, %v5314_v63  ;;  %v597_v12 = vmul.f32 %v5337_v11, %v5314_v63  ;;  %v5343_v23 = vadd.f32 %v4716_v18, %v406_v6  ;;  %v4718_v6 = vld [vmem:[#allocation6 + $0x68] ss:$0 sm:$0xff] }
 0x317   : > { %v730_v43 = vmul.f32 %v5360_v36, %v5314_v63  ;;  %v657_v50 = vmul.f32 %v5381_v49, %v5314_v63 }
 0x318   : > { %v4696_v14 = vpack.i.bf16 %v597_v12, %v5321_v1  ;;  %v415_v25 = vmul.f32 %v5343_v23, %v5343_v23  ;;  %v411_v37 = vsel %vm313_vm5, %v5343_v23, 0.0  ;;  %v439_v12 = vld [vmem:[#allocation6 + $0x78] sm:$0xff] }
 0x31a   : > { %v416_v28 = vsel %vm313_vm5, %v415_v25, 0.0 }
 0x388   : > { %v5323_v2 = vpop.permute.xlu0 %509 }
 0x389   : > { %4502 = vmatpush.xpose.msk.msrb.mxu1 %vm313_vm5, %v5323_v2  ;;  %4505 = vmatpush.xpose.msk.msrb.mxu0 %vm313_vm5, %v5323_v2 }
 0x38c   : > { %4503 = vmatmul.msk.f32.vlgmr.msrb.gmra.mxu1 %vm313_vm5, %v507_v4  ;;  %4506 = vmatmul.msk.f32.vlgmr.msrb.gmra.mxu0 %vm313_vm5, %v558_v5  ;;  %v4717_v4 = vld [vmem:[#allocation6 + $0x60] ss:$0 sm:$0xff] }
 0x409   : > { %v579_v7 = vpop.f32.mrf.mxu0  ;;  %v533_v9 = vpop.f32.mrf.mxu1 }
 0x40a   : > { %v582_v8 = vsel %vm536_vm0, %v579_v7, -inf  ;;  %v537_v10 = vsel %vm536_vm0, %v533_v9, -inf }
 0x40b   : > { %583 = vmax.xlane.f32.xlu1 %v582_v8 }
 0x413   : > { %538 = vmax.xlane.f32.xlu1 %v537_v10 }
 0x42c   : > { %4697 = vrot.lane.b32.xlu1 %v4696_v14, %s5130_s29 }
 0x47e   : > { %v584_v15 = vpop.xlane.xlu1 %583 }
 0x47f   : > { %v585_v16 = vsub.f32 %v579_v7, %v584_v15 }
 0x481   : > { %v586_v17 = vmul.f32 1.442695, %v585_v16 }
 0x483   : > { %4810 = vpow2.f32 %v586_v17 }
 0x486   : > { %v539_v19 = vpop.xlane.xlu1 %538 }
 0x487   : > { %v540_v20 = vsub.f32 %v533_v9, %v539_v19 }
 0x489   : > { %v4811_v21 = vpop.eup %4810  ;;  %v541_v22 = vmul.f32 1.442695, %v540_v20 }
 0x48a   : > { %v588_v24 = vsel %vm536_vm0, %v4811_v21, 0.0 }
 0x48b   : > { %4812 = vpow2.f32 %v541_v22  ;;  %589 = vadd.xlane.f32.xlu0 %v588_v24 }
 0x491   : > { %v4813_v27 = vpop.eup %4812 }
 0x492   : > { %v543_v29 = vsel %vm536_vm0, %v4813_v27, 0.0 }
 0x493   : > { %417 = vadd.xlane.f32.xlu0 %v416_v28  ;;  %544 = vadd.xlane.f32.xlu2 %v543_v29 }
 0x49e   : > { %v4698_v30 = vpop.permute.xlu1 %4697 }
 0x49f   : > { %v4700_v31 = vunpack.i.h.bf16 %v4698_v30  ;;  %v5350_v32 = vunpack.i.l.bf16 %v4698_v30 }
 0x4a1   : > { %620 = vmatpush.msra.mxu1 %v4700_v31  ;;  %v552_v33 = vmul.f32 %v5350_v32, %v5314_v63 }
 0x4a3   : > { %4514 = vmatpush.xpose.msk.msrb.mxu1 %vm313_vm5, %v5323_v2  ;;  %626 = vrot.lane.b32.xlu1 %v552_v33, %s5130_s29 }
 0x4ab   : > { %766 = vrot.lane.b32.xlu2 %v5360_v36, %s5130_s29 }
 0x4cd   : > { %412 = vadd.xlane.f32.xlu1 %v411_v37 }
 0x4fe   : > { %v590_v38 = vpop.xlane.xlu0 %589 }
 0x4ff   : > { %4814 = vrcp.f32 %v590_v38 }
 0x505   : > { %v4815_v39 = vpop.eup %4814 }
 0x506   : > { %v592_v40 = vmul.f32 %v4815_v39, %v4811_v21  ;;  %v545_v41 = vpop.xlane.xlu2 %544  ;;  %v418_v52 = vpop.xlane.xlu0 %417 }
 0x507   : > { %4816 = vrcp.f32 %v545_v41  ;;  %v419_v54 = vmul.f32 %v418_v52, %v5278_v46 }
 0x508   : > { %4507 = vmatmul.msk.f32.vlgmr.msra.gmra.mxu1 %vm536_vm0, %v592_v40 }
 0x50d   : > { %v4817_v45 = vpop.eup %4816 }
 0x50e   : > { %v5367_v42 = vpop.permute.xlu2 %766  ;;  %v547_v48 = vmul.f32 %v4817_v45, %v4813_v27 }
 0x50f   : > { %v769_v44 = vmul.f32 %v5367_v42, %v5314_v63 }
 0x510   : > { %4515 = vmatmul.msk.f32.vlgmr.msrb.gmra.mxu1 %vm313_vm5, %v730_v43 }
 0x511   : > { %771 = vrot.lane.b32.xlu1 %v769_v44, %s5130_s29 }
 0x515   : > { %v627_v47 = vpop.permute.xlu1 %626 }
 0x516   : > { %647 = vmatpush.msrb.mxu2 %v627_v47 }
 0x517   : > { %4508 = vmatmul.msk.f32.vlgmr.msrb.gmra.mxu2 %vm536_vm0, %v547_v48 }
 0x518   : > { %4510 = vmatpush.xpose.msk.msra.mxu2 %vm313_vm5, %v5323_v2 }
 0x51f   : > { %4511 = vmatmul.msk.f32.vlgmr.msra.gmra.mxu2 %vm313_vm5, %v657_v50 }
 0x540   : > { %v413_v51 = vpop.xlane.xlu1 %412 }
 0x541   : > { %v414_v26 = vmul.f32 %v413_v51, %v5278_v46 }
 0x543   : > { %v420_v53 = vmul.f32 %v414_v26, %v414_v26  ;;  %v422_v0 = vsub.f32 %v5343_v23, %v414_v26 }
 0x545   : > { %v421_v55 = vsub.f32 %v419_v54, %v420_v53 }
 0x547   : > { %v423_v56 = vadd.f32 1e-05, %v421_v55 }
 0x549   : > { %4818 = vrsqrt.f32 %v423_v56  ;;  %vm430_vm13 = vweird.f32 %v423_v56 }
 0x54f   : > { %v4819_v57 = vpop.eup %4818 }
 0x550   : > { %v425_v58 = vmul.f32 %v4819_v57, %v423_v56  ;;  %vm431_vm12 = vweird.f32 %v4819_v57  ;;  %v968_v56 = vld [vmem:[#allocation6 + $0x1c8] sm:$0xff] }
 0x551   : > { %vm432_vm14 = vmor %vm430_vm13, %vm431_vm12 }
 0x552   : > { %v426_v13 = vmul.f32 %v4819_v57, %v425_v58  ;;  %v966_v58 = vld [vmem:[#allocation6 + $0x1b8] sm:$0xff] }
 0x554   : > { %v427_v34 = vmul.f32 0.5, %v426_v13  ;;  %v965_v13 = vld [vmem:[#allocation6 + $0x1b0] sm:$0xff] }
 0x556   : > { %v428_v59 = vsub.f32 1.5, %v427_v34 }
 0x558   : > { %v429_v60 = vmul.f32 %v4819_v57, %v428_v59 }
 0x55a   : > { %v433_v61 = vsel %vm432_vm14, %v4819_v57, %v429_v60  ;;  %v967_v57 = vld [vmem:[#allocation6 + $0x1c0] sm:$0xff] }
 0x55b   : > { %v434_v5 = vmul.f32 %v433_v61, %v422_v0  ;;  %v4719_v61 = vld [vmem:[#allocation6 + $0x1a0] ss:$0 sm:$0xff]  ;;  %v4720_v0 = vld [vmem:[#allocation6 + $0x1a8] ss:$0 sm:$0xff] }
 0x55d   : > { %v436_v7 = vmul.f32 %v4717_v4, %v434_v5 }
 0x55f   : > { %v438_v9 = vadd.f32 %v4718_v6, %v436_v7 }
 0x561   : > { %v5392_v14 = vadd.f32 %v439_v12, %v438_v9  ;;  %v800_v9 = vld [vmem:[#allocation6 + $0xc8] sm:$0xff]  ;;  %v798_v12 = vld [vmem:[#allocation6 + $0xb8] sm:$0xff] }
 0x563   : > { %v937_v15 = vsel %vm313_vm5, %v5392_v14, 0.0  ;;  %v941_v17 = vmul.f32 %v5392_v14, %v5392_v14 }
 0x565   : > { %v942_v18 = vsel %vm313_vm5, %v941_v17, 0.0  ;;  %v860_v17 = vld [vmem:[#allocation6 + $0x100] sm:$0xff] }
 0x583   : > { %v772_v62 = vpop.permute.xlu1 %771 }
 0x584   : > { %792 = vmatpush.msra.mxu3 %v772_v62 }
 0x585   : > { %v5389_v2 = vpop.f32.mrf.mxu1 }
 0x586   : > { %986 = vmatpush.msrb.mxu3 %v968_v56 }
 0x588   : > { %987 = vmatpush.msrb.mxu3 %v967_v57 }
 0x58a   : > { %988 = vmatpush.msrb.mxu3 %v966_v58 }
 0x58c   : > { %989 = vmatpush.msrb.mxu3 %v965_v13 }
 0x58d   : > { %v751_v8 = vpop.f32.mrf.mxu1 }
 0x58e   : > { %v754_v10 = vsel %vm536_vm0, %v751_v8, -inf }
 0x58f   : > { %755 = vmax.xlane.f32.xlu0 %v754_v10  ;;  %v799_v10 = vld [vmem:[#allocation6 + $0xc0] sm:$0xff] }
 0x597   : > { %938 = vadd.xlane.f32.xlu0 %v937_v15  ;;  %v861_v15 = vld [vmem:[#allocation6 + $0x108] sm:$0xff] }
 0x59a   : > { %v5396_v16 = vpop.f32.mrf.mxu2 }
 0x59f   : > { %943 = vadd.xlane.f32.xlu0 %v942_v18  ;;  %v859_v18 = vld [vmem:[#allocation6 + $0xf8] sm:$0xff] }
 0x5a2   : > { %v678_v19 = vpop.f32.mrf.mxu2 }
 0x5a3   : > { %v681_v20 = vsel %vm536_vm0, %v678_v19, -inf }
 0x5a7   : > { %682 = vmax.xlane.f32.xlu0 %v681_v20 }
 0x5bb   : > { %693 = vrot.lane.b32.xlu0 %v5381_v49, %s5130_s29 }
 0x602   : > { %v756_v21 = vpop.xlane.xlu0 %755 }
 0x603   : > { %v757_v22 = vsub.f32 %v751_v8, %v756_v21  ;;  %v801_v8 = vld [vmem:[#allocation6 + $0xd0] sm:$0xff] }
 0x604   : > { %819 = vmatpush.msrb.mxu2 %v801_v8  ;;  %v4721_v21 = vld [vmem:[#allocation6 + $0x1d0] ss:$0 sm:$0xff] }
 0x605   : > { %v758_v23 = vmul.f32 1.442695, %v757_v22 }
 0x606   : > { %820 = vmatpush.msrb.mxu2 %v800_v9  ;;  %v911_v9 = vld [vmem:[#allocation6 + $0x190] sm:$0xff] }
 0x607   : > { %4820 = vpow2.f32 %v758_v23  ;;  %914 = vmatpush.msra.mxu1 %v911_v9  ;;  %v4726_v9 = vld [vmem:[#allocation6 + $0x198] ss:$0 sm:$0xff] }
 0x608   : > { %821 = vmatpush.msrb.mxu2 %v799_v10  ;;  %v910_v10 = vld [vmem:[#allocation6 + $0x188] sm:$0xff] }
 0x609   : > { %915 = vmatpush.msra.mxu1 %v910_v10 }
 0x60a   : > { %v939_v24 = vpop.xlane.xlu0 %938  ;;  %822 = vmatpush.msrb.mxu2 %v798_v12  ;;  %v909_v12 = vld [vmem:[#allocation6 + $0x180] sm:$0xff] }
 0x60b   : > { %v940_v28 = vmul.f32 %v939_v24, %v5278_v46  ;;  %v650_v24 = vadd.f32 %v5396_v16, %v5389_v2  ;;  %916 = vmatpush.msra.mxu1 %v909_v12 }
 0x60d   : > { %v4821_v25 = vpop.eup %4820  ;;  %v946_v30 = vmul.f32 %v940_v28, %v940_v28  ;;  %v948_v26 = vsub.f32 %v5392_v14, %v940_v28 }
 0x60e   : > { %v760_v27 = vsel %vm536_vm0, %v4821_v25, 0.0 }
 0x60f   : > { %761 = vadd.xlane.f32.xlu2 %v760_v27 }
 0x612   : > { %v944_v29 = vpop.xlane.xlu0 %943 }
 0x613   : > { %v945_v31 = vmul.f32 %v944_v29, %v5278_v46 }
 0x615   : > { %v947_v33 = vsub.f32 %v945_v31, %v946_v30  ;;  %v4722_v31 = vld [vmem:[#allocation6 + $0xd8] ss:$0 sm:$0xff] }
 0x617   : > { %v949_v37 = vadd.f32 1e-05, %v947_v33 }
 0x619   : > { %4822 = vrsqrt.f32 %v949_v37  ;;  %vm956_vm1 = vweird.f32 %v949_v37 }
 0x61a   : > { %v683_v38 = vpop.xlane.xlu0 %682 }
 0x61b   : > { %v684_v39 = vsub.f32 %v678_v19, %v683_v38  ;;  %v858_v19 = vld [vmem:[#allocation6 + $0xf0] sm:$0xff] }
 0x61d   : > { %v685_v40 = vmul.f32 1.442695, %v684_v39 }
 0x61f   : > { %v4823_v41 = vpop.eup %4822  ;;  %4824 = vpow2.f32 %v685_v40 }
 0x620   : > { %v951_v43 = vmul.f32 %v4823_v41, %v949_v37  ;;  %vm957_vm15 = vweird.f32 %v4823_v41 }
 0x621   : > { %vm958_vm2 = vmor %vm956_vm1, %vm957_vm15 }
 0x622   : > { %v952_v44 = vmul.f32 %v4823_v41, %v951_v43 }
 0x624   : > { %v953_v45 = vmul.f32 0.5, %v952_v44 }
 0x625   : > { %v4825_v47 = vpop.eup %4824 }
 0x626   : > { %v954_v48 = vsub.f32 1.5, %v953_v45  ;;  %v687_v50 = vsel %vm536_vm0, %v4825_v47, 0.0 }
 0x627   : > { %688 = vadd.xlane.f32.xlu0 %v687_v50 }
 0x628   : > { %v955_v51 = vmul.f32 %v4823_v41, %v954_v48 }
 0x62a   : > { %v959_v52 = vsel %vm958_vm2, %v4823_v41, %v955_v51 }
 0x62b   : > { %v960_v53 = vmul.f32 %v959_v52, %v948_v26 }
 0x62d   : > { %v5409_v54 = vpop.permute.xlu0 %693  ;;  %v962_v62 = vmul.f32 %v4719_v61, %v960_v53  ;;  %v4723_v61 = vld [vmem:[#allocation6 + $0xe0] ss:$0 sm:$0xff] }
 0x62e   : > { %v696_v55 = vmul.f32 %v5409_v54, %v5314_v63 }
 0x62f   : > { %v964_v63 = vadd.f32 %v4720_v0, %v962_v62 }
 0x630   : > { %698 = vrot.lane.b32.xlu1 %v696_v55, %s5130_s29 }
 0x682   : > { %v762_v34 = vpop.xlane.xlu2 %761 }
 0x683   : > { %4826 = vrcp.f32 %v762_v34 }
 0x689   : > { %v4827_v59 = vpop.eup %4826 }
 0x68a   : > { %v764_v60 = vmul.f32 %v4827_v59, %v4821_v25 }
 0x68c   : > { %4516 = vmatmul.msk.f32.vlgmr.msra.gmra.mxu3 %vm536_vm0, %v764_v60 }
 0x694   : > { %4519 = vmatmul.msk.f32.vlgmr.msrb.gmra.mxu3 %vm313_vm5, %v964_v63  ;;  %v4724_v63 = vld [vmem:[#allocation6 + $0xe8] ss:$0 sm:$0xff] }
 0x69a   : > { %v689_v4 = vpop.xlane.xlu0 %688 }
 0x69b   : > { %4828 = vrcp.f32 %v689_v4 }
 0x6a1   : > { %v4829_v5 = vpop.eup %4828 }
 0x6a2   : > { %v691_v6 = vmul.f32 %v4829_v5, %v4825_v47  ;;  %v699_v7 = vpop.permute.xlu1 %698 }
 0x6a3   : > { %719 = vmatpush.msra.mxu0 %v699_v7 }
 0x6a4   : > { %4512 = vmatmul.msk.f32.vlgmr.msra.gmra.mxu0 %vm536_vm0, %v691_v6 }
 0x6a5   : > { %879 = vmatpush.msrb.mxu0 %v861_v15 }
 0x6a7   : > { %880 = vmatpush.msrb.mxu0 %v860_v17  ;;  %v908_v17 = vld [vmem:[#allocation6 + $0x178] sm:$0xff] }
 0x6a8   : > { %917 = vmatpush.msra.mxu1 %v908_v17 }
 0x6a9   : > { %881 = vmatpush.msrb.mxu0 %v859_v18 }
 0x6ab   : > { %882 = vmatpush.msrb.mxu0 %v858_v19  ;;  %v907_v19 = vld [vmem:[#allocation6 + $0x170] sm:$0xff] }
 0x6ac   : > { %918 = vmatpush.msra.mxu1 %v907_v19 }
 0x70f   : > { %v794_v20 = vpop.f32.mrf.mxu3 }
 0x717   : > { %v991_v22 = vpop.f32.mrf.mxu3 }
 0x718   : > { %v5417_v23 = vadd.f32 %v4721_v21, %v991_v22  ;;  %v906_v22 = vld [vmem:[#allocation6 + $0x168] sm:$0xff] }
 0x719   : > { %919 = vmatpush.msra.mxu1 %v906_v22 }
 0x71a   : > { %996 = vrot.lane.b32.xlu1 %v5417_v23, %s5131_s6  ;;  %v994_v30 = vmul.f32 %v5321_v1, %v5417_v23  ;;  %v1034_v5 = vmul.f32 %v5350_v32, %v5417_v23  ;;  %v1035_v7 = vmul.f32 %v5306_v35, %v5417_v23  ;;  %v1125_v8 = vmul.f32 %v5381_v49, %v5417_v23 }
 0x721   : > { %v721_v25 = vpop.f32.mrf.mxu0 }
 0x722   : > { %v724_v27 = vadd.f32 %v721_v25, %v650_v24  ;;  %v905_v24 = vld [vmem:[#allocation6 + $0x160] sm:$0xff]  ;;  %v904_v25 = vld [vmem:[#allocation6 + $0x158] sm:$0xff] }
 0x723   : > { %920 = vmatpush.msra.mxu1 %v905_v24 }
 0x724   : > { %v797_v28 = vadd.f32 %v794_v20, %v724_v27  ;;  %v903_v27 = vld [vmem:[#allocation6 + $0x150] sm:$0xff] }
 0x725   : > { %921 = vmatpush.msra.mxu1 %v904_v25 }
 0x726   : > { %4517 = vmatmul.msk.f32.vlgmr.msrb.gmra.mxu2 %vm313_vm5, %v797_v28  ;;  %v1189_v28 = vmul.f32 %v5360_v36, %v5417_v23 }
 0x727   : > { %922 = vmatpush.msra.mxu1 %v903_v27 }
 0x78c   : > { %v5424_v29 = vpop.permute.xlu1 %996 }
 0x78d   : > { %4520 = vmatpush.xpose.msk.msra.mxu2 %vm313_vm5, %v5424_v29  ;;  %4522 = vmatpush.xpose.msk.msra.mxu0 %vm313_vm5, %v5424_v29 }
 0x790   : > { %4521 = vmatmul.msk.f32.vlgmr.msra.gmra.mxu2 %vm313_vm5, %v994_v30  ;;  %v902_v30 = vld [vmem:[#allocation6 + $0x148] sm:$0xff] }
 0x791   : > { %923 = vmatpush.msra.mxu1 %v902_v30  ;;  %v1160_v30 = vmul.f32 %v5417_v23, %v5409_v54 }
 0x7a9   : > { %v824_v2 = vpop.f32.mrf.mxu2 }
 0x7aa   : > { %v825_v16 = vadd.f32 %v4722_v31, %v824_v2  ;;  %v901_v31 = vld [vmem:[#allocation6 + $0x140] sm:$0xff]  ;;  %v900_v2 = vld [vmem:[#allocation6 + $0x138] sm:$0xff] }
 0x7ab   : > { %924 = vmatpush.msra.mxu1 %v901_v31 }
 0x7ac   : > { %v5434_v33 = vadd.f32 %v825_v16, %v5282_v3  ;;  %v899_v16 = vld [vmem:[#allocation6 + $0x130] sm:$0xff] }
 0x7ad   : > { %925 = vmatpush.msra.mxu1 %v900_v2 }
 0x7ae   : > { %v830_v37 = vsel %vm313_vm5, %v5434_v33, 0.0  ;;  %v834_v40 = vmul.f32 %v5434_v33, %v5434_v33 }
 0x7af   : > { %831 = vadd.xlane.f32.xlu1 %v830_v37  ;;  %v898_v37 = vld [vmem:[#allocation6 + $0x128] sm:$0xff]  ;;  %926 = vmatpush.msra.mxu1 %v899_v16 }
 0x7b0   : > { %v835_v41 = vsel %vm313_vm5, %v834_v40, 0.0 }
 0x7b1   : > { %927 = vmatpush.msra.mxu1 %v898_v37 }
 0x813   : > { %v1020_v38 = vpop.f32.mrf.mxu2 }
 0x814   : > { %v1023_v39 = vsel %vm536_vm0, %v1020_v38, -inf }
 0x815   : > { %1024 = vmax.xlane.f32.xlu2 %v1023_v39  ;;  %v4725_v39 = vld [vmem:[#allocation6 + $0x110] ss:$0 sm:$0xff] }
 0x81d   : > { %836 = vadd.xlane.f32.xlu2 %v835_v41 }
 0x822   : > { %v832_v45 = vpop.xlane.xlu1 %831 }
 0x823   : > { %v833_v3 = vmul.f32 %v832_v45, %v5278_v46 }
 0x825   : > { %v839_v50 = vmul.f32 %v833_v3, %v833_v3  ;;  %v841_v60 = vsub.f32 %v5434_v33, %v833_v3 }
 0x888   : > { %v1025_v43 = vpop.xlane.xlu2 %1024 }
 0x889   : > { %v1026_v44 = vsub.f32 %v1020_v38, %v1025_v43  ;;  %v896_v38 = vld [vmem:[#allocation6 + $0x118] sm:$0xff] }
 0x88b   : > { %v1027_v47 = vmul.f32 1.442695, %v1026_v44 }
 0x88d   : > { %4830 = vpow2.f32 %v1027_v47 }
 0x890   : > { %v837_v48 = vpop.xlane.xlu2 %836 }
 0x891   : > { %v838_v51 = vmul.f32 %v837_v48, %v5278_v46 }
 0x893   : > { %v4831_v26 = vpop.eup %4830  ;;  %v840_v52 = vsub.f32 %v838_v51, %v839_v50 }
 0x894   : > { %v1029_v53 = vsel %vm536_vm0, %v4831_v26, 0.0 }
 0x895   : > { %v842_v55 = vadd.f32 1e-05, %v840_v52  ;;  %1030 = vadd.xlane.f32.xlu2 %v1029_v53 }
 0x897   : > { %4832 = vrsqrt.f32 %v842_v55  ;;  %vm849_vm4 = vweird.f32 %v842_v55 }
 0x89d   : > { %v4833_v56 = vpop.eup %4832 }
 0x89e   : > { %v844_v57 = vmul.f32 %v4833_v56, %v842_v55  ;;  %vm850_vm3 = vweird.f32 %v4833_v56 }
 0x89f   : > { %vm851_vm6 = vmor %vm849_vm4, %vm850_vm3 }
 0x8a0   : > { %v845_v58 = vmul.f32 %v4833_v56, %v844_v57 }
 0x8a2   : > { %v846_v13 = vmul.f32 0.5, %v845_v58 }
 0x8a4   : > { %v847_v34 = vsub.f32 1.5, %v846_v13 }
 0x8a6   : > { %v848_v59 = vmul.f32 %v4833_v56, %v847_v34 }
 0x8a8   : > { %v852_v62 = vsel %vm851_vm6, %v4833_v56, %v848_v59 }
 0x8a9   : > { %v853_v0 = vmul.f32 %v852_v62, %v841_v60  ;;  %v1070_v62 = vmul.f32 %v5417_v23, %v5337_v11 }
 0x8ab   : > { %v855_v4 = vmul.f32 %v4723_v61, %v853_v0 }
 0x8ad   : > { %1099 = vrot.lane.b32.xlu2 %v1034_v5, %s5130_s29  ;;  %v857_v6 = vadd.f32 %v4724_v63, %v855_v4 }
 0x8af   : > { %4518 = vmatmul.msk.f32.vlgmr.msrb.gmra.mxu0 %vm313_vm5, %v857_v6  ;;  %v1224_v6 = vmul.f32 %v5417_v23, %v5367_v42  ;;  %v1254_v23 = vld [vmem:[#allocation6 + $0x1e0] sm:$0xff] }
 0x8b0   : > { %4526 = vmatpush.xpose.msk.msrb.mxu0 %vm313_vm5, %v5424_v29 }
 0x8b7   : > { %4523 = vmatmul.msk.f32.vlgmr.msra.gmra.mxu0 %vm313_vm5, %v1035_v7 }
 0x8bf   : > { %4527 = vmatmul.msk.f32.vlgmr.msrb.gmra.mxu0 %vm313_vm5, %v1125_v8 }
 0x908   : > { %v1031_v15 = vpop.xlane.xlu2 %1030 }
 0x909   : > { %4834 = vrcp.f32 %v1031_v15 }
 0x90f   : > { %v4835_v18 = vpop.eup %4834 }
 0x910   : > { %v1033_v20 = vmul.f32 %v4835_v18, %v4831_v26  ;;  %v1100_v21 = vpop.permute.xlu2 %1099 }
 0x911   : > { %1120 = vmatpush.msrb.mxu2 %v1100_v21 }
 0x912   : > { %4525 = vmatmul.msk.f32.vlgmr.msrb.gmra.mxu2 %vm536_vm0, %v1033_v20 }
 0x913   : > { %4529 = vmatpush.xpose.msk.msra.mxu2 %vm313_vm5, %v5424_v29  ;;  %v897_v29 = vld [vmem:[#allocation6 + $0x120] sm:$0xff] }
 0x914   : > { %928 = vmatpush.msra.mxu1 %v897_v29 }
 0x916   : > { %929 = vmatpush.msra.mxu1 %v896_v38 }
 0x91a   : > { %4530 = vmatmul.msk.f32.vlgmr.msra.gmra.mxu2 %vm313_vm5, %v1189_v28 }
 0x92c   : > { %v884_v40 = vpop.f32.mrf.mxu0 }
 0x92d   : > { %v885_v41 = vadd.f32 %v4725_v39, %v884_v40  ;;  %v1256_v40 = vld [vmem:[#allocation6 + $0x1f0] sm:$0xff] }
 0x92f   : > { %v887_v43 = vmul.f32 %v885_v41, %v885_v41 }
 0x931   : > { %v888_v44 = vmul.f32 %v887_v43, %v885_v41  ;;  %v1253_v43 = vld [vmem:[#allocation6 + $0x1d8] sm:$0xff] }
 0x933   : > { %v889_v45 = vmul.f32 0.044715, %v888_v44 }
 0x934   : > { %v1056_v47 = vpop.f32.mrf.mxu0 }
 0x935   : > { %v890_v3 = vadd.f32 %v889_v45, %v885_v41  ;;  %v1059_v48 = vsel %vm536_vm0, %v1056_v47, -inf }
 0x936   : > { %1060 = vmax.xlane.f32.xlu0 %v1059_v48 }
 0x937   : > { %v891_v50 = vmul.f32 0.7978846, %v890_v3 }
 0x939   : > { %4836 = vtanh.f32 %v891_v50 }
 0x93c   : > { %v1146_v51 = vpop.f32.mrf.mxu0 }
 0x93d   : > { %v1149_v26 = vsel %vm536_vm0, %v1146_v51, -inf }
 0x93e   : > { %1150 = vmax.xlane.f32.xlu0 %v1149_v26 }
 0x93f   : > { %v4837_v52 = vpop.eup %4836 }
 0x940   : > { %v893_v53 = vadd.f32 1.0, %v4837_v52 }
 0x942   : > { %v894_v55 = vmul.f32 0.5, %v893_v53 }
 0x944   : > { %v895_v56 = vmul.f32 %v894_v55, %v885_v41  ;;  %v1255_v41 = vld [vmem:[#allocation6 + $0x1e8] sm:$0xff] }
 0x946   : > { %930 = vmatmul.f32.vlgmr.msra.gmra.mxu1 %v895_v56 }
 0x995   : > { %v5466_v57 = vpop.f32.mrf.mxu2 }
 0x99d   : > { %v1210_v58 = vpop.f32.mrf.mxu2 }
 0x99e   : > { %v1213_v13 = vsel %vm536_vm0, %v1210_v58, -inf }
 0x99f   : > { %1214 = vmax.xlane.f32.xlu0 %v1213_v13  ;;  %v1315_v13 = vld [vmem:[#allocation6 + $0x220] sm:$0xff] }
 0x9a9   : > { %v1061_v34 = vpop.xlane.xlu0 %1060 }
 0x9aa   : > { %v1062_v59 = vsub.f32 %v1056_v47, %v1061_v34  ;;  %v1314_v34 = vld [vmem:[#allocation6 + $0x218] sm:$0xff] }
 0x9ac   : > { %v1063_v60 = vmul.f32 1.442695, %v1062_v59  ;;  %v1313_v59 = vld [vmem:[#allocation6 + $0x210] sm:$0xff] }
 0x9ae   : > { %4838 = vpow2.f32 %v1063_v60 }
 0x9b1   : > { %v1151_v61 = vpop.xlane.xlu0 %1150 }
 0x9b2   : > { %v1152_v0 = vsub.f32 %v1146_v51, %v1151_v61  ;;  %v4727_v51 = vld [vmem:[#allocation6 + $0x1f8] ss:$0 sm:$0xff]  ;;  %v1366_v61 = vld [vmem:[#allocation6 + $0x2b0] sm:$0xff] }
 0x9b3   : > { %1072 = vrot.lane.b32.xlu0 %v1070_v62, %s5130_s29  ;;  %v1365_v62 = vld [vmem:[#allocation6 + $0x2a8] sm:$0xff] }
 0x9b4   : > { %v4839_v63 = vpop.eup %4838  ;;  %v1153_v4 = vmul.f32 1.442695, %v1152_v0 }
 0x9b5   : > { %v1065_v5 = vsel %vm536_vm0, %v4839_v63, 0.0 }
 0x9b6   : > { %4840 = vpow2.f32 %v1153_v4  ;;  %1066 = vadd.xlane.f32.xlu1 %v1065_v5  ;;  %v1364_v5 = vld [vmem:[#allocation6 + $0x2a0] sm:$0xff] }
 0x9bb   : > { %1226 = vrot.lane.b32.xlu0 %v1224_v6, %s5130_s29 }
 0x9bc   : > { %v4841_v7 = vpop.eup %4840 }
 0x9bd   : > { %v1155_v8 = vsel %vm536_vm0, %v4841_v7, 0.0 }
 0x9be   : > { %1156 = vadd.xlane.f32.xlu2 %v1155_v8 }
 0x9c3   : > { %v931_v10 = vpop.f32.mrf.mxu1 }
 0x9c4   : > { %v932_v12 = vadd.f32 %v4726_v9, %v931_v10 }
 0x9c6   : > { %v5478_v15 = vadd.f32 %v932_v12, %v5434_v33 }
 0x9c8   : > { %v1392_v17 = vsel %vm313_vm5, %v5478_v15, 0.0 }
 0x9c9   : > { %1393 = vadd.xlane.f32.xlu2 %v1392_v17 }
 0xa12   : > { %v1215_v18 = vpop.xlane.xlu0 %1214 }
 0xa13   : > { %v1216_v19 = vsub.f32 %v1210_v58, %v1215_v18  ;;  %v1316_v58 = vld [vmem:[#allocation6 + $0x228] sm:$0xff] }
 0xa14   : > { %1334 = vmatpush.msrb.mxu2 %v1316_v58 }
 0xa15   : > { %v1217_v20 = vmul.f32 1.442695, %v1216_v19 }
 0xa16   : > { %1335 = vmatpush.msrb.mxu2 %v1315_v13 }
 0xa17   : > { %4842 = vpow2.f32 %v1217_v20  ;;  %v4728_v20 = vld [vmem:[#allocation6 + $0x200] ss:$0 sm:$0xff] }
 0xa18   : > { %1336 = vmatpush.msrb.mxu2 %v1314_v34 }
 0xa1a   : > { %1337 = vmatpush.msrb.mxu2 %v1313_v59 }
 0xa1d   : > { %v4843_v21 = vpop.eup %4842 }
 0xa1e   : > { %v1219_v22 = vsel %vm536_vm0, %v4843_v21, 0.0 }
 0xa1f   : > { %1220 = vadd.xlane.f32.xlu1 %v1219_v22 }
 0xa25   : > { %v1073_v24 = vpop.permute.xlu0 %1072 }
 0xa26   : > { %1093 = vmatpush.msra.mxu3 %v1073_v24  ;;  %v4729_v24 = vld [vmem:[#allocation6 + $0x208] ss:$0 sm:$0xff] }
 0xa29   : > { %v1067_v25 = vpop.xlane.xlu1 %1066 }
 0xa2a   : > { %4844 = vrcp.f32 %v1067_v25 }
 0xa2d   : > { %v1227_v27 = vpop.permute.xlu0 %1226 }
 0xa2e   : > { %1247 = vmatpush.msra.mxu0 %v1227_v27 }
 0xa30   : > { %v4845_v33 = vpop.eup %4844  ;;  %1369 = vmatpush.msrb.mxu0 %v1366_v61  ;;  %v1396_v61 = vmul.f32 %v5478_v15, %v5478_v15 }
 0xa31   : > { %v1069_v28 = vmul.f32 %v4845_v33, %v4839_v63  ;;  %v1157_v37 = vpop.xlane.xlu2 %1156  ;;  %v1363_v33 = vld [vmem:[#allocation6 + $0x298] sm:$0xff] }
 0xa32   : > { %1370 = vmatpush.msrb.mxu0 %v1365_v62  ;;  %v1397_v62 = vsel %vm313_vm5, %v1396_v61, 0.0 }
 0xa33   : > { %4524 = vmatmul.msk.f32.vlgmr.msra.gmra.mxu3 %vm536_vm0, %v1069_v28  ;;  %v1362_v28 = vld [vmem:[#allocation6 + $0x290] sm:$0xff] }
 0xa34   : > { %1371 = vmatpush.msrb.mxu0 %v1364_v5  ;;  %v1480_v5 = vld [vmem:[#allocation6 + $0x310] sm:$0xff] }
 0xa36   : > { %1372 = vmatpush.msrb.mxu0 %v1363_v33 }
 0xa38   : > { %1162 = vrot.lane.b32.xlu1 %v1160_v30, %s5130_s29  ;;  %1373 = vmatpush.msrb.mxu0 %v1362_v28  ;;  %v1361_v30 = vld [vmem:[#allocation6 + $0x288] sm:$0xff] }
 0xa3a   : > { %1374 = vmatpush.msrb.mxu0 %v1361_v30 }
 0xa92   : > { %v1221_v31 = vpop.xlane.xlu1 %1220 }
 0xa93   : > { %4846 = vrcp.f32 %v1221_v31  ;;  %v1360_v31 = vld [vmem:[#allocation6 + $0x280] sm:$0xff] }
 0xa94   : > { %4848 = vrcp.f32 %v1157_v37  ;;  %1375 = vmatpush.msrb.mxu0 %v1360_v31  ;;  %v1357_v37 = vld [vmem:[#allocation6 + $0x268] sm:$0xff] }
 0xa99   : > { %v4847_v2 = vpop.eup %4846 }
 0xa9a   : > { %v1223_v16 = vmul.f32 %v4847_v2, %v4843_v21  ;;  %v4849_v29 = vpop.eup %4848  ;;  %v1359_v2 = vld [vmem:[#allocation6 + $0x278] sm:$0xff] }
 0xa9b   : > { %v1159_v38 = vmul.f32 %v4849_v29, %v4841_v7  ;;  %1376 = vmatpush.msrb.mxu0 %v1359_v2  ;;  %v1356_v29 = vld [vmem:[#allocation6 + $0x260] sm:$0xff] }
 0xa9c   : > { %4531 = vmatmul.msk.f32.vlgmr.msra.gmra.mxu0 %vm536_vm0, %v1223_v16  ;;  %v1358_v16 = vld [vmem:[#allocation6 + $0x270] sm:$0xff] }
 0xa9d   : > { %1377 = vmatpush.msrb.mxu0 %v1358_v16 }
 0xa9f   : > { %1378 = vmatpush.msrb.mxu0 %v1357_v37 }
 0xaa1   : > { %1379 = vmatpush.msrb.mxu0 %v1356_v29 }
 0xaaa   : > { %v1163_v39 = vpop.permute.xlu1 %1162 }
 0xaab   : > { %1183 = vmatpush.msrb.mxu3 %v1163_v39  ;;  %v1354_v39 = vld [vmem:[#allocation6 + $0x250] sm:$0xff] }
 0xaac   : > { %4528 = vmatmul.msk.f32.vlgmr.msrb.gmra.mxu3 %vm536_vm0, %v1159_v38  ;;  %v1355_v38 = vld [vmem:[#allocation6 + $0x258] sm:$0xff] }
 0xaad   : > { %1274 = vmatpush.msra.mxu3 %v1256_v40  ;;  %1380 = vmatpush.msrb.mxu0 %v1355_v38  ;;  %v1353_v40 = vld [vmem:[#allocation6 + $0x248] sm:$0xff] }
 0xaaf   : > { %1275 = vmatpush.msra.mxu3 %v1255_v41  ;;  %1381 = vmatpush.msrb.mxu0 %v1354_v39  ;;  %v1352_v41 = vld [vmem:[#allocation6 + $0x240] sm:$0xff] }
 0xab1   : > { %1276 = vmatpush.msra.mxu3 %v1254_v23  ;;  %1382 = vmatpush.msrb.mxu0 %v1353_v40  ;;  %v1351_v23 = vld [vmem:[#allocation6 + $0x238] sm:$0xff] }
 0xab3   : > { %1277 = vmatpush.msra.mxu3 %v1253_v43  ;;  %1383 = vmatpush.msrb.mxu0 %v1352_v41  ;;  %v4730_v43 = vld [vmem:[#allocation6 + $0x230] ss:$0 sm:$0xff] }
 0xab4   : > { %v4732_v41 = vld [vmem:[#allocation6 + $0x2d0] ss:$0 sm:$0xff] }
 0xab5   : > { %1384 = vmatpush.msrb.mxu0 %v1351_v23 }
 0xab6   : > { %v1095_v44 = vpop.f32.mrf.mxu3 }
 0xab7   : > { %v1123_v45 = vadd.f32 %v5466_v57, %v1095_v44 }
 0xb19   : > { %v1249_v48 = vpop.f32.mrf.mxu0 }
 0xb2f   : > { %v1185_v47 = vpop.f32.mrf.mxu3 }
 0xb30   : > { %v1188_v3 = vadd.f32 %v1185_v47, %v1123_v45 }
 0xb32   : > { %v1252_v50 = vadd.f32 %v1249_v48, %v1188_v3 }
 0xb34   : > { %4532 = vmatmul.msk.f32.vlgmr.msra.gmra.mxu3 %vm313_vm5, %v1252_v50 }
 0xbb7   : > { %v1279_v26 = vpop.f32.mrf.mxu3 }
 0xbb8   : > { %v1280_v52 = vadd.f32 %v4727_v51, %v1279_v26 }
 0xbba   : > { %v5492_v53 = vadd.f32 %v1280_v52, %v5392_v14 }
 0xbbc   : > { %v1285_v55 = vsel %vm313_vm5, %v5492_v53, 0.0  ;;  %v1289_v56 = vmul.f32 %v5492_v53, %v5492_v53 }
 0xbbd   : > { %1286 = vadd.xlane.f32.xlu0 %v1285_v55 }
 0xbbe   : > { %v1290_v57 = vsel %vm313_vm5, %v1289_v56, 0.0 }
 0xbbf   : > { %1291 = vadd.xlane.f32.xlu1 %v1290_v57  ;;  %v4731_v57 = vld [vmem:[#allocation6 + $0x2b8] ss:$0 sm:$0xff] }
 0xc30   : > { %v1287_v60 = vpop.xlane.xlu0 %1286 }
 0xc31   : > { %v1288_v14 = vmul.f32 %v1287_v60, %v5278_v46 }
 0xc32   : > { %v1292_v0 = vpop.xlane.xlu1 %1291 }
 0xc33   : > { %v1294_v63 = vmul.f32 %v1288_v14, %v1288_v14  ;;  %v1293_v4 = vmul.f32 %v1292_v0, %v5278_v46  ;;  %v1296_v19 = vsub.f32 %v5492_v53, %v1288_v14 }
 0xc35   : > { %v1295_v6 = vsub.f32 %v1293_v4, %v1294_v63  ;;  %v1482_v63 = vld [vmem:[#allocation6 + $0x320] sm:$0xff]  ;;  %v1481_v4 = vld [vmem:[#allocation6 + $0x318] sm:$0xff] }
 0xc36   : > { %1500 = vmatpush.msrb.mxu3 %v1482_v63 }
 0xc37   : > { %v1297_v7 = vadd.f32 1e-05, %v1295_v6 }
 0xc38   : > { %1501 = vmatpush.msrb.mxu3 %v1481_v4 }
 0xc39   : > { %4850 = vrsqrt.f32 %v1297_v7  ;;  %vm1304_vm8 = vweird.f32 %v1297_v7 }
 0xc3a   : > { %1502 = vmatpush.msrb.mxu3 %v1480_v5 }
 0xc3f   : > { %v4851_v8 = vpop.eup %4850 }
 0xc40   : > { %v1299_v9 = vmul.f32 %v4851_v8, %v1297_v7  ;;  %vm1305_vm7 = vweird.f32 %v4851_v8  ;;  %v1479_v7 = vld [vmem:[#allocation6 + $0x308] sm:$0xff] }
 0xc41   : > { %vm1306_vm9 = vmor %vm1304_vm8, %vm1305_vm7  ;;  %1503 = vmatpush.msrb.mxu3 %v1479_v7 }
 0xc42   : > { %v1300_v10 = vmul.f32 %v4851_v8, %v1299_v9  ;;  %v1453_v9 = vld [vmem:[#allocation6 + $0x2f8] sm:$0xff] }
 0xc43   : > { %1471 = vmatpush.msrb.mxu1 %v1453_v9  ;;  %v4701_v9 = vpack.i.bf16 %v5381_v49, %v5306_v35 }
 0xc44   : > { %v1301_v12 = vmul.f32 0.5, %v1300_v10 }
 0xc46   : > { %v1302_v17 = vsub.f32 1.5, %v1301_v12 }
 0xc48   : > { %v1303_v18 = vmul.f32 %v4851_v8, %v1302_v17  ;;  %v1452_v17 = vld [vmem:[#allocation6 + $0x2f0] sm:$0xff] }
 0xc49   : > { %1472 = vmatpush.msrb.mxu1 %v1452_v17 }
 0xc4a   : > { %v1307_v21 = vsel %vm1306_vm9, %v4851_v8, %v1303_v18 }
 0xc4b   : > { %v1308_v22 = vmul.f32 %v1307_v21, %v1296_v19  ;;  %v1451_v19 = vld [vmem:[#allocation6 + $0x2e8] sm:$0xff] }
 0xc4c   : > { %1473 = vmatpush.msrb.mxu1 %v1451_v19 }
 0xc4d   : > { %v1310_v25 = vmul.f32 %v4728_v20, %v1308_v22  ;;  %v1450_v20 = vld [vmem:[#allocation6 + $0x2e0] sm:$0xff] }
 0xc4e   : > { %1474 = vmatpush.msrb.mxu1 %v1450_v20 }
 0xc4f   : > { %v1312_v27 = vadd.f32 %v4729_v24, %v1310_v25 }
 0xc51   : > { %4533 = vmatmul.msk.f32.vlgmr.msrb.gmra.mxu2 %vm313_vm5, %v1312_v27 }
 0xcd4   : > { %v1339_v44 = vpop.f32.mrf.mxu2 }
 0xcd5   : > { %v1340_v45 = vadd.f32 %v4730_v43, %v1339_v44 }
 0xcd7   : > { %v1342_v47 = vmul.f32 %v1340_v45, %v1340_v45 }
 0xcd9   : > { %v1343_v3 = vmul.f32 %v1342_v47, %v1340_v45 }
 0xcdb   : > { %v1344_v48 = vmul.f32 0.044715, %v1343_v3 }
 0xcdd   : > { %v1345_v50 = vadd.f32 %v1344_v48, %v1340_v45 }
 0xcdf   : > { %v1346_v51 = vmul.f32 0.7978846, %v1345_v50 }
 0xce1   : > { %4852 = vtanh.f32 %v1346_v51 }
 0xce7   : > { %v4853_v26 = vpop.eup %4852 }
 0xce8   : > { %v1348_v52 = vadd.f32 1.0, %v4853_v26 }
 0xcea   : > { %v1349_v55 = vmul.f32 0.5, %v1348_v52  ;;  %v4734_v52 = vld [vmem:[#allocation6 + $0x2c0] ss:$0 sm:$0xff] }
 0xcec   : > { %v1350_v56 = vmul.f32 %v1349_v55, %v1340_v45  ;;  %v4735_v45 = vld [vmem:[#allocation6 + $0x2d8] ss:$0 sm:$0xff] }
 0xcee   : > { %1385 = vmatmul.f32.vlgmr.msrb.gmra.mxu0 %v1350_v56 }
 0xd6b   : > { %v1386_v58 = vpop.f32.mrf.mxu0 }
 0xd6c   : > { %v1387_v13 = vadd.f32 %v4731_v57, %v1386_v58  ;;  %v4736_v57 = vld [vmem:[#allocation6 + $0x2c8] ss:$0 sm:$0xff] }
 0xd6e   : > { %v5504_v34 = vadd.f32 %v1387_v13, %v5492_v53  ;;  %v1394_v53 = vpop.xlane.xlu2 %1393 }
 0xd6f   : > { %v1395_v21 = vmul.f32 %v1394_v53, %v5278_v46 }
 0xd70   : > { %v1422_v59 = vsel %vm313_vm5, %v5504_v34, 0.0  ;;  %v1426_v60 = vmul.f32 %v5504_v34, %v5504_v34 }
 0xd71   : > { %1423 = vadd.xlane.f32.xlu2 %v1422_v59  ;;  %v1401_v25 = vmul.f32 %v1395_v21, %v1395_v21  ;;  %v1403_v26 = vsub.f32 %v5478_v15, %v1395_v21  ;;  %v4737_v59 = vld [vmem:[#allocation6 + $0x328] ss:$0 sm:$0xff] }
 0xd72   : > { %v1427_v14 = vsel %vm313_vm5, %v1426_v60, 0.0  ;;  %v4738_v60 = vld [vmem:[#allocation6 + $0x300] ss:$0 sm:$0xff] }
 0xd79   : > { %1428 = vadd.xlane.f32.xlu2 %v1427_v14 }
 0xd81   : > { %1398 = vadd.xlane.f32.xlu2 %v1397_v62 }
 0xd99   : > { %1546 = vrot.lane.b32.xlu2 %v5321_v1, %s5132_s7 }
 0xde4   : > { %v1424_v0 = vpop.xlane.xlu2 %1423 }
 0xde5   : > { %v1425_v6 = vmul.f32 %v1424_v0, %v5278_v46 }
 0xde7   : > { %v1431_v10 = vmul.f32 %v1425_v6, %v1425_v6  ;;  %v1433_v40 = vsub.f32 %v5504_v34, %v1425_v6 }
 0xdec   : > { %v1429_v8 = vpop.xlane.xlu2 %1428 }
 0xded   : > { %v1430_v12 = vmul.f32 %v1429_v8, %v5278_v46 }
 0xdef   : > { %v1432_v18 = vsub.f32 %v1430_v12, %v1431_v10 }
 0xdf1   : > { %v1434_v22 = vadd.f32 1e-05, %v1432_v18 }
 0xdf3   : > { %4854 = vrsqrt.f32 %v1434_v22  ;;  %vm1441_vm11 = vweird.f32 %v1434_v22 }
 0xdf4   : > { %v1399_v24 = vpop.xlane.xlu2 %1398 }
 0xdf5   : > { %v1400_v27 = vmul.f32 %v1399_v24, %v5278_v46 }
 0xdf7   : > { %v1402_v33 = vsub.f32 %v1400_v27, %v1401_v25 }
 0xdf9   : > { %v4855_v28 = vpop.eup %4854  ;;  %v1404_v30 = vadd.f32 1e-05, %v1402_v33 }
 0xdfa   : > { %v1436_v31 = vmul.f32 %v4855_v28, %v1434_v22  ;;  %vm1442_vm10 = vweird.f32 %v4855_v28 }
 0xdfb   : > { %4856 = vrsqrt.f32 %v1404_v30  ;;  %vm1443_vm12 = vmor %vm1441_vm11, %vm1442_vm10  ;;  %vm1411_vm14 = vweird.f32 %v1404_v30 }
 0xdfc   : > { %v1437_v2 = vmul.f32 %v4855_v28, %v1436_v31  ;;  %v5542_v7 = vpop.permute.xlu2 %1546 }
 0xdfe   : > { %v1438_v16 = vmul.f32 0.5, %v1437_v2 }
 0xe00   : > { %v1439_v37 = vsub.f32 1.5, %v1438_v16 }
 0xe01   : > { %v4857_v29 = vpop.eup %4856 }
 0xe02   : > { %v1440_v38 = vmul.f32 %v4855_v28, %v1439_v37  ;;  %v1406_v39 = vmul.f32 %v4857_v29, %v1404_v30  ;;  %vm1412_vm13 = vweird.f32 %v4857_v29 }
 0xe03   : > { %vm1413_vm15 = vmor %vm1411_vm14, %vm1412_vm13 }
 0xe04   : > { %v1444_v23 = vsel %vm1443_vm12, %v4855_v28, %v1440_v38  ;;  %v1407_v43 = vmul.f32 %v4857_v29, %v1406_v39 }
 0xe05   : > { %v5521_v44 = vmul.f32 %v1444_v23, %v1433_v40 }
 0xe06   : > { %v1408_v47 = vmul.f32 0.5, %v1407_v43 }
 0xe07   : > { %v1447_v3 = vmul.f32 %v4732_v41, %v5521_v44 }
 0xe08   : > { %v1409_v48 = vsub.f32 1.5, %v1408_v47 }
 0xe09   : > { %v1449_v50 = vadd.f32 %v4735_v45, %v1447_v3 }
 0xe0a   : > { %v1410_v51 = vmul.f32 %v4857_v29, %v1409_v48 }
 0xe0b   : > { %4535 = vmatmul.msk.f32.vlgmr.msrb.gmra.mxu3 %vm313_vm5, %v1449_v50 }
 0xe0c   : > { %v1414_v55 = vsel %vm1413_vm15, %v4857_v29, %v1410_v51 }
 0xe0d   : > { %v1415_v56 = vmul.f32 %v1414_v55, %v1403_v26 }
 0xe0f   : > { %v1417_v58 = vmul.f32 %v4734_v52, %v1415_v56 }
 0xe11   : > { %v1419_v13 = vadd.f32 %v4736_v57, %v1417_v58 }
 0xe13   : > { %4534 = vmatmul.msk.f32.vlgmr.msrb.gmra.mxu1 %vm313_vm5, %v1419_v13 }
 0xe8e   : > { %v1505_v14 = vpop.f32.mrf.mxu3 }
 0xe8f   : > { %v5527_v61 = vadd.f32 %v4737_v59, %v1505_v14 }
 0xe90   : > { %v1476_v62 = vpop.f32.mrf.mxu1 }
 0xe91   : > { %v1477_v53 = vadd.f32 %v4738_v60, %v1476_v62  ;;  %4536 = vmatpush.xpose.msk.msra.mxu2 %vm313_vm5, %v5527_v61  ;;  %4538 = vmatpush.xpose.msk.msra.mxu1 %vm313_vm5, %v5527_v61  ;;  %v1549_v8 = vmul.f32 %v5542_v7, %v5527_v61 }
 0xe93   : > { %v1508_v0 = vmul.f32 %v5321_v1, %v1477_v53  ;;  %v1550_v63 = vmul.f32 %v5306_v35, %v1477_v53  ;;  %v1643_v4 = vmul.f32 %v5381_v49, %v1477_v53  ;;  %v1710_v16 = vmul.f32 %v5360_v36, %v1477_v53 }
 0xe95   : > { %4542 = vmatpush.xpose.msk.msrb.mxu1 %vm313_vm5, %v5527_v61  ;;  %4537 = vmatmul.msk.f32.vlgmr.msra.gmra.mxu2 %vm313_vm5, %v1508_v0 }
 0xe96   : > { %4539 = vmatmul.msk.f32.vlgmr.msra.gmra.mxu1 %vm313_vm5, %v1550_v63  ;;  %v1953_v63 = vld [vmem:[#allocation6 + $0x450] sm:$0xff] }
 0xe9e   : > { %4543 = vmatmul.msk.f32.vlgmr.msrb.gmra.mxu1 %vm313_vm5, %v1643_v4  ;;  %v1952_v4 = vld [vmem:[#allocation6 + $0x448] sm:$0xff] }
 0xf13   : > { %v1571_v20 = vpop.f32.mrf.mxu1 }
 0xf14   : > { %v1574_v22 = vsel %vm536_vm0, %v1571_v20, -inf }
 0xf18   : > { %v1532_v5 = vpop.f32.mrf.mxu2 }
 0xf19   : > { %v1535_v6 = vsel %vm536_vm0, %v1532_v5, -inf }
 0xf1a   : > { %1536 = vmax.xlane.f32.xlu0 %v1535_v6  ;;  %v1950_v6 = vld [vmem:[#allocation6 + $0x438] sm:$0xff] }
 0xf1b   : > { %v1664_v24 = vpop.f32.mrf.mxu1 }
 0xf1c   : > { %v1667_v25 = vsel %vm536_vm0, %v1664_v24, -inf }
 0xf2e   : > { %1617 = vrot.lane.b32.xlu0 %v1549_v8, %s5131_s6 }
 0xf36   : > { %4702 = vrot.lane.b32.xlu0 %v4701_v9, %s5132_s7 }
 0xf8d   : > { %v1537_v10 = vpop.xlane.xlu0 %1536 }
 0xf8e   : > { %v1538_v12 = vsub.f32 %v1532_v5, %v1537_v10  ;;  %v1951_v5 = vld [vmem:[#allocation6 + $0x440] sm:$0xff] }
 0xf90   : > { %v1539_v17 = vmul.f32 1.442695, %v1538_v12  ;;  %v4733_v12 = vld [vmem:[#allocation6 + $0x418] ss:$0 sm:$0xff] }
 0xf92   : > { %4858 = vpow2.f32 %v1539_v17 }
 0xf98   : > { %v4859_v18 = vpop.eup %4858 }
 0xf99   : > { %v1541_v19 = vsel %vm536_vm0, %v4859_v18, 0.0 }
 0xf9a   : > { %1542 = vadd.xlane.f32.xlu1 %v1541_v19 }
 0xfa0   : > { %v1618_v21 = vpop.permute.xlu0 %1617 }
 0xfa1   : > { %1638 = vmatpush.msrb.mxu2 %v1618_v21 }
 0xfa2   : > { %1575 = vmax.xlane.f32.xlu1 %v1574_v22 }
 0xfa3   : > { %4545 = vmatpush.xpose.msk.msra.mxu2 %vm313_vm5, %v5527_v61 }
 0xfa8   : > { %v4703_v3 = vpop.permute.xlu0 %4702 }
 0xfa9   : > { %v5565_v48 = vunpack.i.l.bf16 %v4703_v3  ;;  %v5577_v53 = vunpack.i.h.bf16 %v4703_v3  ;;  %v1837_v3 = vld [vmem:[#allocation6 + $0x368] sm:$0xff] }
 0xfaa   : > { %1668 = vmax.xlane.f32.xlu1 %v1667_v25  ;;  %v1779_v25 = vld [vmem:[#allocation6 + $0x340] sm:$0xff] }
 0xfab   : > { %v1588_v50 = vmul.f32 %v5565_v48, %v5527_v61  ;;  %v1681_v0 = vmul.f32 %v5577_v53, %v5527_v61 }
 0xfc3   : > { %1745 = vrot.lane.b32.xlu1 %v5360_v36, %s5132_s7 }
0x100d   : > { %v1543_v27 = vpop.xlane.xlu1 %1542 }
0x100e   : > { %4860 = vrcp.f32 %v1543_v27  ;;  %v1778_v27 = vld [vmem:[#allocation6 + $0x338] sm:$0xff] }
0x1014   : > { %v4861_v33 = vpop.eup %4860 }
0x1015   : > { %v1545_v28 = vmul.f32 %v4861_v33, %v4859_v18  ;;  %v1576_v30 = vpop.xlane.xlu1 %1575  ;;  %v4739_v18 = vld [vmem:[#allocation6 + $0x420] ss:$0 sm:$0xff]  ;;  %v1777_v33 = vld [vmem:[#allocation6 + $0x330] sm:$0xff] }
0x1016   : > { %v1577_v31 = vsub.f32 %v1571_v20, %v1576_v30 }
0x1017   : > { %4541 = vmatmul.msk.f32.vlgmr.msrb.gmra.mxu2 %vm536_vm0, %v1545_v28 }
0x1018   : > { %v1578_v2 = vmul.f32 1.442695, %v1577_v31 }
0x101a   : > { %4862 = vpow2.f32 %v1578_v2 }
0x101d   : > { %v1669_v37 = vpop.xlane.xlu1 %1668 }
0x101e   : > { %v1670_v29 = vsub.f32 %v1664_v24, %v1669_v37  ;;  %v1780_v24 = vld [vmem:[#allocation6 + $0x348] sm:$0xff]  ;;  %v4741_v37 = vld [vmem:[#allocation6 + $0x350] ss:$0 sm:$0xff] }
0x101f   : > { %4546 = vmatmul.msk.f32.vlgmr.msra.gmra.mxu2 %vm313_vm5, %v1710_v16 }
0x1020   : > { %v4863_v38 = vpop.eup %4862  ;;  %v1671_v39 = vmul.f32 1.442695, %v1670_v29 }
0x1021   : > { %v1580_v40 = vsel %vm536_vm0, %v4863_v38, 0.0 }
0x1022   : > { %4864 = vpow2.f32 %v1671_v39  ;;  %1581 = vadd.xlane.f32.xlu0 %v1580_v40 }
0x1028   : > { %v4865_v41 = vpop.eup %4864 }
0x1029   : > { %v1673_v23 = vsel %vm536_vm0, %v4865_v41, 0.0 }
0x102a   : > { %1674 = vadd.xlane.f32.xlu1 %v1673_v23 }
0x1035   : > { %v5570_v51 = vpop.permute.xlu1 %1745 }
0x1036   : > { %v1748_v26 = vmul.f32 %v5570_v51, %v5527_v61  ;;  %v1917_v61 = vmul.f32 %v4733_v12, %v5521_v44 }
0x1038   : > { %v1919_v20 = vadd.f32 %v4739_v18, %v1917_v61  ;;  %v1887_v61 = vld [vmem:[#allocation6 + $0x3f0] sm:$0xff]  ;;  %v1886_v18 = vld [vmem:[#allocation6 + $0x3e8] sm:$0xff] }
0x1095   : > { %v1582_v52 = vpop.xlane.xlu0 %1581 }
0x1096   : > { %4866 = vrcp.f32 %v1582_v52  ;;  %v1889_v52 = vld [vmem:[#allocation6 + $0x400] sm:$0xff] }
0x109a   : > { %v5562_v43 = vpop.f32.mrf.mxu2 }
0x109c   : > { %v4867_v58 = vpop.eup %4866 }
0x109d   : > { %v1584_v13 = vmul.f32 %v4867_v58, %v4863_v38  ;;  %v1675_v10 = vpop.xlane.xlu1 %1674  ;;  %v1888_v58 = vld [vmem:[#allocation6 + $0x3f8] sm:$0xff] }
0x10a2   : > { %v1731_v45 = vpop.f32.mrf.mxu2 }
0x10a3   : > { %v1734_v47 = vsel %vm536_vm0, %v1731_v45, -inf }
0x10a4   : > { %1735 = vmax.xlane.f32.xlu2 %v1734_v47  ;;  %v1838_v47 = vld [vmem:[#allocation6 + $0x370] sm:$0xff] }
0x10bc   : > { %1590 = vrot.lane.b32.xlu2 %v1588_v50, %s5131_s6 }
0x10c4   : > { %1750 = vrot.lane.b32.xlu2 %v1748_v26, %s5131_s6  ;;  %v1890_v26 = vld [vmem:[#allocation6 + $0x408] sm:$0xff] }
0x10c5   : > { %1893 = vmatpush.msra.mxu0 %v1890_v26 }
0x10c7   : > { %1894 = vmatpush.msra.mxu0 %v1889_v52 }
0x10c9   : > { %1895 = vmatpush.msra.mxu0 %v1888_v58  ;;  %v1981_v58 = vld [vmem:[#allocation6 + $0x470] sm:$0xff] }
0x10cb   : > { %1896 = vmatpush.msra.mxu0 %v1887_v61  ;;  %v4746_v61 = vld [vmem:[#allocation6 + $0x428] ss:$0 sm:$0xff] }
0x10cd   : > { %1897 = vmatpush.msra.mxu0 %v1886_v18 }
0x1117   : > { %v1736_v55 = vpop.xlane.xlu2 %1735 }
0x1118   : > { %v1737_v56 = vsub.f32 %v1731_v45, %v1736_v55  ;;  %v1839_v45 = vld [vmem:[#allocation6 + $0x378] sm:$0xff] }
0x111a   : > { %v1738_v57 = vmul.f32 1.442695, %v1737_v56 }
0x111c   : > { %4868 = vpow2.f32 %v1738_v57 }
0x111f   : > { %v1591_v59 = vpop.permute.xlu2 %1590 }
0x1120   : > { %1611 = vmatpush.msra.mxu3 %v1591_v59 }
0x1121   : > { %4540 = vmatmul.msk.f32.vlgmr.msra.gmra.mxu3 %vm536_vm0, %v1584_v13 }
0x1122   : > { %v4869_v60 = vpop.eup %4868 }
0x1123   : > { %v1740_v14 = vsel %vm536_vm0, %v4869_v60, 0.0 }
0x1124   : > { %1741 = vadd.xlane.f32.xlu0 %v1740_v14 }
0x1127   : > { %v1751_v62 = vpop.permute.xlu2 %1750 }
0x1128   : > { %1771 = vmatpush.msra.mxu1 %v1751_v62 }
0x112a   : > { %1971 = vmatpush.msrb.mxu1 %v1953_v63 }
0x112c   : > { %1972 = vmatpush.msrb.mxu1 %v1952_v4 }
0x112e   : > { %1973 = vmatpush.msrb.mxu1 %v1951_v5 }
0x1130   : > { %1974 = vmatpush.msrb.mxu1 %v1950_v6  ;;  %v4742_v6 = vld [vmem:[#allocation6 + $0x358] ss:$0 sm:$0xff] }
0x1138   : > { %1683 = vrot.lane.b32.xlu0 %v1681_v0, %s5131_s6 }
0x1197   : > { %v1742_v8 = vpop.xlane.xlu0 %1741 }
0x1198   : > { %4870 = vrcp.f32 %v1742_v8 }
0x1199   : > { %4872 = vrcp.f32 %v1675_v10  ;;  %v4743_v10 = vld [vmem:[#allocation6 + $0x360] ss:$0 sm:$0xff] }
0x119e   : > { %v4871_v9 = vpop.eup %4870 }
0x119f   : > { %v1744_v17 = vmul.f32 %v4871_v9, %v4869_v60  ;;  %v4873_v19 = vpop.eup %4872 }
0x11a0   : > { %v1677_v21 = vmul.f32 %v4873_v19, %v4865_v41  ;;  %v1885_v19 = vld [vmem:[#allocation6 + $0x3e0] sm:$0xff] }
0x11a1   : > { %4547 = vmatmul.msk.f32.vlgmr.msra.gmra.mxu1 %vm536_vm0, %v1744_v17  ;;  %1898 = vmatpush.msra.mxu0 %v1885_v19 }
0x11a4   : > { %v1613_v28 = vpop.f32.mrf.mxu3 }
0x11a5   : > { %v1641_v44 = vadd.f32 %v5562_v43, %v1613_v28  ;;  %v1840_v43 = vld [vmem:[#allocation6 + $0x380] sm:$0xff] }
0x11a6   : > { %1858 = vmatpush.msrb.mxu2 %v1840_v43  ;;  %v1877_v28 = vld [vmem:[#allocation6 + $0x3a0] sm:$0xff] }
0x11a8   : > { %1859 = vmatpush.msrb.mxu2 %v1839_v45 }
0x11a9   : > { %4550 = vmatmul.msk.f32.vlgmr.msrb.gmra.mxu1 %vm313_vm5, %v1919_v20  ;;  %v1884_v20 = vld [vmem:[#allocation6 + $0x3d8] sm:$0xff] }
0x11aa   : > { %v1684_v22 = vpop.permute.xlu0 %1683  ;;  %1860 = vmatpush.msrb.mxu2 %v1838_v47  ;;  %1899 = vmatpush.msra.mxu0 %v1884_v20  ;;  %v4748_v20 = vld [vmem:[#allocation6 + $0x430] ss:$0 sm:$0xff] }
0x11ab   : > { %1704 = vmatpush.msrb.mxu3 %v1684_v22  ;;  %v1882_v22 = vld [vmem:[#allocation6 + $0x3c8] sm:$0xff] }
0x11ac   : > { %4544 = vmatmul.msk.f32.vlgmr.msrb.gmra.mxu3 %vm536_vm0, %v1677_v21  ;;  %1861 = vmatpush.msrb.mxu2 %v1837_v3  ;;  %v1883_v21 = vld [vmem:[#allocation6 + $0x3d0] sm:$0xff] }
0x11ad   : > { %1798 = vmatpush.msra.mxu3 %v1780_v24  ;;  %1900 = vmatpush.msra.mxu0 %v1883_v21  ;;  %v1881_v24 = vld [vmem:[#allocation6 + $0x3c0] sm:$0xff]  ;;  %v4745_v3 = vld [vmem:[#allocation6 + $0x410] ss:$0 sm:$0xff] }
0x11af   : > { %1799 = vmatpush.msra.mxu3 %v1779_v25  ;;  %1901 = vmatpush.msra.mxu0 %v1882_v22  ;;  %v1880_v25 = vld [vmem:[#allocation6 + $0x3b8] sm:$0xff] }
0x11b1   : > { %1800 = vmatpush.msra.mxu3 %v1778_v27  ;;  %1902 = vmatpush.msra.mxu0 %v1881_v24  ;;  %v1879_v27 = vld [vmem:[#allocation6 + $0x3b0] sm:$0xff]  ;;  %v4740_v24 = vld [vmem:[#allocation6 + $0x458] ss:$0 sm:$0xff] }
0x11b3   : > { %1801 = vmatpush.msra.mxu3 %v1777_v33  ;;  %1903 = vmatpush.msra.mxu0 %v1880_v25  ;;  %v1878_v33 = vld [vmem:[#allocation6 + $0x3a8] sm:$0xff] }
0x11b5   : > { %1904 = vmatpush.msra.mxu0 %v1879_v27  ;;  %v4749_v27 = vld [vmem:[#allocation6 + $0x480] ss:$0 sm:$0xff] }
0x11b7   : > { %1905 = vmatpush.msra.mxu0 %v1878_v33 }
0x11b9   : > { %1906 = vmatpush.msra.mxu0 %v1877_v28 }
0x121e   : > { %v1773_v2 = vpop.f32.mrf.mxu1 }
0x1226   : > { %v1976_v25 = vpop.f32.mrf.mxu1 }
0x1227   : > { %v1977_v33 = vadd.f32 %v4740_v24, %v1976_v25 }
0x122f   : > { %v1706_v30 = vpop.f32.mrf.mxu3 }
0x1230   : > { %v1709_v31 = vadd.f32 %v1706_v30, %v1641_v44  ;;  %v1876_v44 = vld [vmem:[#allocation6 + $0x398] sm:$0xff]  ;;  %v1875_v30 = vld [vmem:[#allocation6 + $0x390] sm:$0xff] }
0x1231   : > { %1907 = vmatpush.msra.mxu0 %v1876_v44 }
0x1232   : > { %v1776_v16 = vadd.f32 %v1773_v2, %v1709_v31  ;;  %v4744_v31 = vld [vmem:[#allocation6 + $0x388] ss:$0 sm:$0xff] }
0x1233   : > { %1908 = vmatpush.msra.mxu0 %v1875_v30  ;;  %v2008_v30 = vmul.f32 %v5321_v1, %v1977_v33 }
0x1234   : > { %4548 = vmatmul.msk.f32.vlgmr.msra.gmra.mxu3 %vm313_vm5, %v1776_v16 }
0x12b7   : > { %v1803_v29 = vpop.f32.mrf.mxu3 }
0x12b8   : > { %v1804_v38 = vadd.f32 %v4741_v37, %v1803_v29 }
0x12ba   : > { %v5589_v39 = vadd.f32 %v1804_v38, %v5478_v15 }
0x12bc   : > { %v1809_v40 = vsel %vm313_vm5, %v5589_v39, 0.0  ;;  %v1813_v41 = vmul.f32 %v5589_v39, %v5589_v39 }
0x12bd   : > { %1810 = vadd.xlane.f32.xlu1 %v1809_v40 }
0x12be   : > { %v1814_v23 = vsel %vm313_vm5, %v1813_v41, 0.0 }
0x12bf   : > { %1815 = vadd.xlane.f32.xlu2 %v1814_v23 }
0x1330   : > { %v1811_v50 = vpop.xlane.xlu1 %1810 }
0x1331   : > { %v1812_v15 = vmul.f32 %v1811_v50, %v5278_v46 }
0x1332   : > { %v1816_v55 = vpop.xlane.xlu2 %1815 }
0x1333   : > { %v1818_v56 = vmul.f32 %v1812_v15, %v1812_v15  ;;  %v1817_v57 = vmul.f32 %v1816_v55, %v5278_v46  ;;  %v1820_v5 = vsub.f32 %v5589_v39, %v1812_v15 }
0x1335   : > { %v1819_v13 = vsub.f32 %v1817_v57, %v1818_v56  ;;  %v1982_v57 = vld [vmem:[#allocation6 + $0x478] sm:$0xff] }
0x1336   : > { %2000 = vmatpush.msrb.mxu3 %v1982_v57 }
0x1337   : > { %v1821_v59 = vadd.f32 1e-05, %v1819_v13  ;;  %v1980_v13 = vld [vmem:[#allocation6 + $0x468] sm:$0xff] }
0x1338   : > { %2001 = vmatpush.msrb.mxu3 %v1981_v58 }
0x1339   : > { %4874 = vrsqrt.f32 %v1821_v59  ;;  %vm1828_vm2 = vweird.f32 %v1821_v59 }
0x133a   : > { %2002 = vmatpush.msrb.mxu3 %v1980_v13 }
0x133f   : > { %v4875_v60 = vpop.eup %4874 }
0x1340   : > { %v1823_v14 = vmul.f32 %v4875_v60, %v1821_v59  ;;  %vm1829_vm1 = vweird.f32 %v4875_v60  ;;  %v1979_v59 = vld [vmem:[#allocation6 + $0x460] sm:$0xff] }
0x1341   : > { %vm1830_vm3 = vmor %vm1828_vm2, %vm1829_vm1  ;;  %2003 = vmatpush.msrb.mxu3 %v1979_v59 }
0x1342   : > { %v1824_v62 = vmul.f32 %v4875_v60, %v1823_v14 }
0x1344   : > { %v1825_v0 = vmul.f32 0.5, %v1824_v62 }
0x1346   : > { %v1826_v63 = vsub.f32 1.5, %v1825_v0 }
0x1348   : > { %v1827_v4 = vmul.f32 %v4875_v60, %v1826_v63 }
0x134a   : > { %v1831_v8 = vsel %vm1830_vm3, %v4875_v60, %v1827_v4 }
0x134b   : > { %v1832_v9 = vmul.f32 %v1831_v8, %v1820_v5 }
0x134d   : > { %v1834_v12 = vmul.f32 %v4742_v6, %v1832_v9 }
0x134f   : > { %v1836_v17 = vadd.f32 %v4743_v10, %v1834_v12 }
0x1351   : > { %4549 = vmatmul.msk.f32.vlgmr.msrb.gmra.mxu2 %vm313_vm5, %v1836_v17 }
0x13d4   : > { %v1863_v2 = vpop.f32.mrf.mxu2 }
0x13d5   : > { %v1864_v16 = vadd.f32 %v4744_v31, %v1863_v2  ;;  %v2047_v31 = vmul.f32 %v5306_v35, %v1977_v33  ;;  %v2137_v2 = vmul.f32 %v5381_v49, %v1977_v33 }
0x13d7   : > { %v1866_v37 = vmul.f32 %v1864_v16, %v1864_v16 }
0x13d9   : > { %v1867_v29 = vmul.f32 %v1866_v37, %v1864_v16 }
0x13db   : > { %v1868_v38 = vmul.f32 0.044715, %v1867_v29 }
0x13dd   : > { %v1869_v40 = vadd.f32 %v1868_v38, %v1864_v16 }
0x13df   : > { %v1870_v41 = vmul.f32 0.7978846, %v1869_v40 }
0x13e1   : > { %4876 = vtanh.f32 %v1870_v41 }
0x13e7   : > { %v4877_v23 = vpop.eup %4876 }
0x13e8   : > { %v1872_v43 = vadd.f32 1.0, %v4877_v23 }
0x13ea   : > { %v1873_v45 = vmul.f32 0.5, %v1872_v43 }
0x13ec   : > { %v1874_v47 = vmul.f32 %v1873_v45, %v1864_v16 }
0x13ee   : > { %1909 = vmatmul.f32.vlgmr.msra.gmra.mxu0 %v1874_v47 }
0x146b   : > { %v1910_v50 = vpop.f32.mrf.mxu0 }
0x146c   : > { %v1911_v15 = vadd.f32 %v4745_v3, %v1910_v50 }
0x146e   : > { %v5601_v26 = vadd.f32 %v1911_v15, %v5589_v39 }
0x1470   : > { %v1922_v52 = vsel %vm313_vm5, %v5601_v26, 0.0  ;;  %v1926_v55 = vmul.f32 %v5601_v26, %v5601_v26 }
0x1471   : > { %1923 = vadd.xlane.f32.xlu0 %v1922_v52 }
0x1472   : > { %v1927_v56 = vsel %vm313_vm5, %v1926_v55, 0.0 }
0x1473   : > { %1928 = vadd.xlane.f32.xlu1 %v1927_v56 }
0x14e4   : > { %v1924_v60 = vpop.xlane.xlu0 %1923 }
0x14e5   : > { %v1925_v39 = vmul.f32 %v1924_v60, %v5278_v46 }
0x14e6   : > { %v1929_v14 = vpop.xlane.xlu1 %1928 }
0x14e7   : > { %v1931_v62 = vmul.f32 %v1925_v39, %v1925_v39  ;;  %v1930_v0 = vmul.f32 %v1929_v14, %v5278_v46  ;;  %v1933_v17 = vsub.f32 %v5601_v26, %v1925_v39 }
0x14e9   : > { %v1932_v63 = vsub.f32 %v1930_v0, %v1931_v62 }
0x14eb   : > { %v1934_v4 = vadd.f32 1e-05, %v1932_v63 }
0x14ed   : > { %4878 = vrsqrt.f32 %v1934_v4  ;;  %vm1941_vm6 = vweird.f32 %v1934_v4 }
0x14f3   : > { %v4879_v5 = vpop.eup %4878 }
0x14f4   : > { %v1936_v6 = vmul.f32 %v4879_v5, %v1934_v4  ;;  %vm1942_vm4 = vweird.f32 %v4879_v5  ;;  %v2201_v4 = vmul.f32 %v5360_v36, %v1977_v33 }
0x14f5   : > { %vm1943_vm7 = vmor %vm1941_vm6, %vm1942_vm4 }
0x14f6   : > { %v1937_v8 = vmul.f32 %v4879_v5, %v1936_v6 }
0x14f8   : > { %v1938_v9 = vmul.f32 0.5, %v1937_v8 }
0x14fa   : > { %v1939_v10 = vsub.f32 1.5, %v1938_v9 }
0x14fc   : > { %v1940_v12 = vmul.f32 %v4879_v5, %v1939_v10 }
0x14fe   : > { %v1944_v18 = vsel %vm1943_vm7, %v4879_v5, %v1940_v12 }
0x14ff   : > { %v5611_v19 = vmul.f32 %v1944_v18, %v1933_v17 }
0x1501   : > { %v1947_v21 = vmul.f32 %v4746_v61, %v5611_v19 }
0x1503   : > { %v1949_v22 = vadd.f32 %v4748_v20, %v1947_v21 }
0x1505   : > { %4551 = vmatmul.msk.f32.vlgmr.msrb.gmra.mxu3 %vm313_vm5, %v1949_v22 }
0x1588   : > { %v2005_v28 = vpop.f32.mrf.mxu3 }
0x1589   : > { %v5615_v44 = vadd.f32 %v4749_v27, %v2005_v28  ;;  %v2411_v28 = vld [vmem:[#allocation6 + $0x598] sm:$0xff] }
0x158b   : > { %4552 = vmatpush.xpose.msk.msra.mxu2 %vm313_vm5, %v5615_v44  ;;  %4554 = vmatpush.xpose.msk.msra.mxu1 %vm313_vm5, %v5615_v44  ;;  %v2046_v58 = vmul.f32 %v5615_v44, %v5542_v7  ;;  %v2082_v9 = vmul.f32 %v5565_v48, %v5615_v44  ;;  %v2236_v10 = vmul.f32 %v5615_v44, %v5570_v51 }
0x158c   : > { %v2172_v33 = vmul.f32 %v5577_v53, %v5615_v44 }
0x158e   : > { %4553 = vmatmul.msk.f32.vlgmr.msra.gmra.mxu2 %vm313_vm5, %v2008_v30  ;;  %4555 = vmatmul.msk.f32.vlgmr.msra.gmra.mxu1 %vm313_vm5, %v2047_v31  ;;  %v2410_v30 = vld [vmem:[#allocation6 + $0x590] sm:$0xff]  ;;  %v2409_v31 = vld [vmem:[#allocation6 + $0x588] sm:$0xff] }
0x158f   : > { %4558 = vmatpush.xpose.msk.msrb.mxu1 %vm313_vm5, %v5615_v44 }
0x1596   : > { %4559 = vmatmul.msk.f32.vlgmr.msrb.gmra.mxu1 %vm313_vm5, %v2137_v2  ;;  %v2408_v2 = vld [vmem:[#allocation6 + $0x580] sm:$0xff] }
0x160b   : > { %v2068_v16 = vpop.f32.mrf.mxu1 }
0x160c   : > { %v2071_v37 = vsel %vm536_vm0, %v2068_v16, -inf }
0x160d   : > { %2072 = vmax.xlane.f32.xlu2 %v2071_v37 }
0x1611   : > { %v2032_v29 = vpop.f32.mrf.mxu2 }
0x1612   : > { %v2035_v38 = vsel %vm536_vm0, %v2032_v29, -inf }
0x1613   : > { %v2158_v40 = vpop.f32.mrf.mxu1  ;;  %2036 = vmax.xlane.f32.xlu1 %v2035_v38 }
0x1614   : > { %v2161_v41 = vsel %vm536_vm0, %v2158_v40, -inf }
0x1615   : > { %2162 = vmax.xlane.f32.xlu2 %v2161_v41 }
0x1680   : > { %v2073_v23 = vpop.xlane.xlu2 %2072 }
0x1681   : > { %v2074_v13 = vsub.f32 %v2068_v16, %v2073_v23 }
0x1683   : > { %v2075_v59 = vmul.f32 1.442695, %v2074_v13 }
0x1686   : > { %v2037_v43 = vpop.xlane.xlu1 %2036 }
0x1687   : > { %v2038_v45 = vsub.f32 %v2032_v29, %v2037_v43 }
0x1688   : > { %v2163_v47 = vpop.xlane.xlu2 %2162 }
0x1689   : > { %v2039_v3 = vmul.f32 1.442695, %v2038_v45  ;;  %v2164_v50 = vsub.f32 %v2158_v40, %v2163_v47  ;;  %v4747_v40 = vld [vmem:[#allocation6 + $0x570] ss:$0 sm:$0xff]  ;;  %v4750_v45 = vld [vmem:[#allocation6 + $0x578] ss:$0 sm:$0xff] }
0x168a   : > { %v2405_v43 = vmul.f32 %v4747_v40, %v5611_v19 }
0x168b   : > { %4880 = vpow2.f32 %v2039_v3  ;;  %v2165_v15 = vmul.f32 1.442695, %v2164_v50  ;;  %v2268_v3 = vld [vmem:[#allocation6 + $0x4a0] sm:$0xff]  ;;  %v2267_v50 = vld [vmem:[#allocation6 + $0x498] sm:$0xff] }
0x168c   : > { %v2407_v47 = vadd.f32 %v4750_v45, %v2405_v43 }
0x168d   : > { %4882 = vpow2.f32 %v2165_v15  ;;  %v2266_v15 = vld [vmem:[#allocation6 + $0x490] sm:$0xff] }
0x168e   : > { %4884 = vpow2.f32 %v2075_v59 }
0x1691   : > { %v4881_v52 = vpop.eup %4880 }
0x1692   : > { %v2041_v55 = vsel %vm536_vm0, %v4881_v52, 0.0 }
0x1693   : > { %v5633_v56 = vpop.eup %4882  ;;  %2042 = vadd.xlane.f32.xlu1 %v2041_v55  ;;  %v2328_v55 = vld [vmem:[#allocation6 + $0x4d8] sm:$0xff] }
0x1694   : > { %v2167_v57 = vsel %vm536_vm0, %v5633_v56, 0.0  ;;  %v4885_v60 = vpop.eup %4884 }
0x1695   : > { %2168 = vadd.xlane.f32.xlu2 %v2167_v57  ;;  %v2077_v39 = vsel %vm536_vm0, %v4885_v60, 0.0  ;;  %v2326_v57 = vld [vmem:[#allocation6 + $0x4c8] sm:$0xff] }
0x16ac   : > { %2111 = vrot.lane.b32.xlu1 %v2046_v58, %s5131_s6  ;;  %v2325_v58 = vld [vmem:[#allocation6 + $0x4c0] sm:$0xff] }
0x16d6   : > { %2078 = vadd.xlane.f32.xlu1 %v2077_v39 }
0x1706   : > { %v2043_v14 = vpop.xlane.xlu1 %2042 }
0x1707   : > { %4886 = vrcp.f32 %v2043_v14 }
0x1708   : > { %v2169_v16 = vpop.xlane.xlu2 %2168 }
0x170d   : > { %v4887_v62 = vpop.eup %4886 }
0x170e   : > { %v2045_v0 = vmul.f32 %v4887_v62, %v4881_v52  ;;  %v2265_v52 = vld [vmem:[#allocation6 + $0x488] sm:$0xff] }
0x171e   : > { %v2112_v63 = vpop.permute.xlu1 %2111 }
0x171f   : > { %2132 = vmatpush.msrb.mxu2 %v2112_v63 }
0x1720   : > { %4557 = vmatmul.msk.f32.vlgmr.msrb.gmra.mxu2 %vm536_vm0, %v2045_v0 }
0x1721   : > { %4561 = vmatpush.xpose.msk.msra.mxu2 %vm313_vm5, %v5615_v44 }
0x1725   : > { %2346 = vmatpush.msrb.mxu2 %v2328_v55  ;;  %v2377_v55 = vld [vmem:[#allocation6 + $0x558] sm:$0xff] }
0x1728   : > { %4562 = vmatmul.msk.f32.vlgmr.msra.gmra.mxu2 %vm313_vm5, %v2201_v4 }
0x1749   : > { %v2079_v18 = vpop.xlane.xlu1 %2078 }
0x17a3   : > { %v5646_v5 = vpop.f32.mrf.mxu2 }
0x17ab   : > { %v2222_v6 = vpop.f32.mrf.mxu2 }
0x17ac   : > { %v2225_v8 = vsel %vm536_vm0, %v2222_v6, -inf }
0x17ad   : > { %2226 = vmax.xlane.f32.xlu0 %v2225_v8 }
0x17c1   : > { %2084 = vrot.lane.b32.xlu0 %v2082_v9, %s5131_s6 }
0x17c9   : > { %2238 = vrot.lane.b32.xlu0 %v2236_v10, %s5131_s6 }
0x1820   : > { %v2227_v12 = vpop.xlane.xlu0 %2226 }
0x1821   : > { %v2228_v17 = vsub.f32 %v2222_v6, %v2227_v12  ;;  %v4752_v6 = vld [vmem:[#allocation6 + $0x4a8] ss:$0 sm:$0xff] }
0x1823   : > { %v2229_v61 = vmul.f32 1.442695, %v2228_v17 }
0x1825   : > { %4888 = vpow2.f32 %v2229_v61 }
0x1826   : > { %4890 = vrcp.f32 %v2079_v18 }
0x1827   : > { %4892 = vrcp.f32 %v2169_v16 }
0x182b   : > { %v4889_v20 = vpop.eup %4888 }
0x182c   : > { %v2231_v21 = vsel %vm536_vm0, %v4889_v20, 0.0  ;;  %v4891_v22 = vpop.eup %4890 }
0x182d   : > { %2232 = vadd.xlane.f32.xlu2 %v2231_v21  ;;  %v2081_v24 = vmul.f32 %v4891_v22, %v4885_v60  ;;  %v4893_v29 = vpop.eup %4892  ;;  %v4751_v60 = vld [vmem:[#allocation6 + $0x5a0] ss:$0 sm:$0xff] }
0x182e   : > { %v2171_v41 = vmul.f32 %v4893_v29, %v5633_v56  ;;  %v2327_v56 = vld [vmem:[#allocation6 + $0x4d0] sm:$0xff] }
0x182f   : > { %2347 = vmatpush.msrb.mxu2 %v2327_v56  ;;  %v2376_v56 = vld [vmem:[#allocation6 + $0x550] sm:$0xff] }
0x1831   : > { %2348 = vmatpush.msrb.mxu2 %v2326_v57 }
0x1833   : > { %v2085_v25 = vpop.permute.xlu0 %2084  ;;  %2349 = vmatpush.msrb.mxu2 %v2325_v58 }
0x1834   : > { %2105 = vmatpush.msra.mxu3 %v2085_v25 }
0x1835   : > { %4556 = vmatmul.msk.f32.vlgmr.msra.gmra.mxu3 %vm536_vm0, %v2081_v24 }
0x183b   : > { %v2239_v27 = vpop.permute.xlu0 %2238 }
0x183c   : > { %2259 = vmatpush.msra.mxu1 %v2239_v27 }
0x183e   : > { %2429 = vmatpush.msrb.mxu1 %v2411_v28 }
0x1840   : > { %2430 = vmatpush.msrb.mxu1 %v2410_v30 }
0x1842   : > { %2431 = vmatpush.msrb.mxu1 %v2409_v31 }
0x1844   : > { %2432 = vmatpush.msrb.mxu1 %v2408_v2 }
0x1845   : > { %2174 = vrot.lane.b32.xlu2 %v2172_v33, %s5131_s6 }
0x18a0   : > { %v2233_v37 = vpop.xlane.xlu2 %2232 }
0x18a1   : > { %4894 = vrcp.f32 %v2233_v37 }
0x18a7   : > { %v4895_v38 = vpop.eup %4894 }
0x18a8   : > { %v2235_v44 = vmul.f32 %v4895_v38, %v4889_v20  ;;  %v2175_v23 = vpop.permute.xlu2 %2174  ;;  %v4753_v38 = vld [vmem:[#allocation6 + $0x4b0] ss:$0 sm:$0xff] }
0x18a9   : > { %2195 = vmatpush.msrb.mxu3 %v2175_v23 }
0x18aa   : > { %4560 = vmatmul.msk.f32.vlgmr.msrb.gmra.mxu3 %vm536_vm0, %v2171_v41  ;;  %4563 = vmatmul.msk.f32.vlgmr.msra.gmra.mxu1 %vm536_vm0, %v2235_v44  ;;  %v4754_v44 = vld [vmem:[#allocation6 + $0x4b8] ss:$0 sm:$0xff] }
0x18ab   : > { %2286 = vmatpush.msra.mxu3 %v2268_v3 }
0x18ad   : > { %2287 = vmatpush.msra.mxu3 %v2267_v50 }
0x18af   : > { %2288 = vmatpush.msra.mxu3 %v2266_v15 }
0x18b1   : > { %2289 = vmatpush.msra.mxu3 %v2265_v52  ;;  %v2378_v52 = vld [vmem:[#allocation6 + $0x560] sm:$0xff] }
0x18b2   : > { %4566 = vmatmul.msk.f32.vlgmr.msrb.gmra.mxu1 %vm313_vm5, %v2407_v47  ;;  %2381 = vmatpush.msrb.mxu0 %v2378_v52 }
0x18b4   : > { %2382 = vmatpush.msrb.mxu0 %v2377_v55 }
0x18b6   : > { %2383 = vmatpush.msrb.mxu0 %v2376_v56 }
0x18b8   : > { %v2107_v19 = vpop.f32.mrf.mxu3 }
0x18b9   : > { %v2135_v59 = vadd.f32 %v5646_v5, %v2107_v19  ;;  %v2375_v19 = vld [vmem:[#allocation6 + $0x548] sm:$0xff] }
0x18ba   : > { %2384 = vmatpush.msrb.mxu0 %v2375_v19 }
0x1927   : > { %v2261_v13 = vpop.f32.mrf.mxu1 }
0x192d   : > { %v2197_v39 = vpop.f32.mrf.mxu3 }
0x192e   : > { %v2200_v14 = vadd.f32 %v2197_v39, %v2135_v59  ;;  %v2373_v59 = vld [vmem:[#allocation6 + $0x538] sm:$0xff]  ;;  %v2371_v39 = vld [vmem:[#allocation6 + $0x528] sm:$0xff] }
0x192f   : > { %v2434_v62 = vpop.f32.mrf.mxu1 }
0x1930   : > { %v2264_v0 = vadd.f32 %v2261_v13, %v2200_v14  ;;  %v5666_v63 = vadd.f32 %v4751_v60, %v2434_v62  ;;  %v2374_v13 = vld [vmem:[#allocation6 + $0x540] sm:$0xff]  ;;  %v2372_v60 = vld [vmem:[#allocation6 + $0x530] sm:$0xff]  ;;  %v2369_v62 = vld [vmem:[#allocation6 + $0x518] sm:$0xff] }
0x1931   : > { %2385 = vmatpush.msrb.mxu0 %v2374_v13  ;;  %v2370_v14 = vld [vmem:[#allocation6 + $0x520] sm:$0xff] }
0x1932   : > { %2439 = vrot.lane.b32.xlu0 %v5666_v63, %s5131_s6  ;;  %4564 = vmatmul.msk.f32.vlgmr.msra.gmra.mxu3 %vm313_vm5, %v2264_v0  ;;  %v2437_v5 = vmul.f32 %v5321_v1, %v5666_v63  ;;  %v2478_v45 = vmul.f32 %v5306_v35, %v5666_v63  ;;  %v2568_v47 = vmul.f32 %v5381_v49, %v5666_v63  ;;  %v2368_v0 = vld [vmem:[#allocation6 + $0x510] sm:$0xff] }
0x1933   : > { %2386 = vmatpush.msrb.mxu0 %v2373_v59  ;;  %v2866_v59 = vld [vmem:[#allocation6 + $0x6b8] sm:$0xff] }
0x1935   : > { %2387 = vmatpush.msrb.mxu0 %v2372_v60  ;;  %v2865_v60 = vld [vmem:[#allocation6 + $0x6b0] sm:$0xff] }
0x1937   : > { %2388 = vmatpush.msrb.mxu0 %v2371_v39  ;;  %v2864_v39 = vld [vmem:[#allocation6 + $0x6a8] sm:$0xff] }
0x1939   : > { %2389 = vmatpush.msrb.mxu0 %v2370_v14  ;;  %v2863_v14 = vld [vmem:[#allocation6 + $0x6a0] sm:$0xff] }
0x193b   : > { %2390 = vmatpush.msrb.mxu0 %v2369_v62 }
0x193d   : > { %2391 = vmatpush.msrb.mxu0 %v2368_v0 }
0x19a4   : > { %v5671_v4 = vpop.permute.xlu0 %2439 }
0x19a5   : > { %4567 = vmatpush.xpose.msk.msrb.mxu3 %vm313_vm5, %v5671_v4  ;;  %4569 = vmatpush.xpose.msk.msra.mxu2 %vm313_vm5, %v5671_v4 }
0x19a8   : > { %4568 = vmatmul.msk.f32.vlgmr.msrb.gmra.mxu3 %vm313_vm5, %v2437_v5  ;;  %v2367_v5 = vld [vmem:[#allocation6 + $0x508] sm:$0xff] }
0x19a9   : > { %2392 = vmatpush.msrb.mxu0 %v2367_v5 }
0x19b5   : > { %v2291_v8 = vpop.f32.mrf.mxu3 }
0x19b6   : > { %v2292_v9 = vadd.f32 %v4752_v6, %v2291_v8  ;;  %v2366_v6 = vld [vmem:[#allocation6 + $0x500] sm:$0xff]  ;;  %v2477_v8 = vmul.f32 %v5350_v32, %v5666_v63 }
0x19b7   : > { %2393 = vmatpush.msrb.mxu0 %v2366_v6 }
0x19b8   : > { %v5681_v10 = vadd.f32 %v2292_v9, %v5504_v34  ;;  %v2365_v9 = vld [vmem:[#allocation6 + $0x4f8] sm:$0xff] }
0x19b9   : > { %2394 = vmatpush.msrb.mxu0 %v2365_v9 }
0x19ba   : > { %v2297_v12 = vsel %vm313_vm5, %v5681_v10, 0.0  ;;  %v2301_v17 = vmul.f32 %v5681_v10, %v5681_v10 }
0x19bb   : > { %2298 = vadd.xlane.f32.xlu0 %v2297_v12  ;;  %v2364_v12 = vld [vmem:[#allocation6 + $0x4f0] sm:$0xff] }
0x19bc   : > { %v2302_v61 = vsel %vm313_vm5, %v2301_v17, 0.0  ;;  %v2363_v17 = vld [vmem:[#allocation6 + $0x4e8] sm:$0xff]  ;;  %2395 = vmatpush.msrb.mxu0 %v2364_v12 }
0x19bd   : > { %2303 = vadd.xlane.f32.xlu2 %v2302_v61  ;;  %v4755_v61 = vld [vmem:[#allocation6 + $0x4e0] ss:$0 sm:$0xff] }
0x19be   : > { %2396 = vmatpush.msrb.mxu0 %v2363_v17 }
0x19c0   : > { %2884 = vmatpush.msra.mxu0 %v2866_v59 }
0x19c2   : > { %2885 = vmatpush.msra.mxu0 %v2865_v60 }
0x19c4   : > { %2886 = vmatpush.msra.mxu0 %v2864_v39  ;;  %v2699_v39 = vld [vmem:[#allocation6 + $0x5c0] sm:$0xff] }
0x19c6   : > { %2887 = vmatpush.msra.mxu0 %v2863_v14 }
0x1a2b   : > { %v2463_v18 = vpop.f32.mrf.mxu3 }
0x1a2c   : > { %v2466_v20 = vsel %vm536_vm0, %v2463_v18, -inf }
0x1a2d   : > { %2467 = vmax.xlane.f32.xlu1 %v2466_v20 }
0x1a2e   : > { %v2299_v21 = vpop.xlane.xlu0 %2298 }
0x1a2f   : > { %v2300_v22 = vmul.f32 %v2299_v21, %v5278_v46 }
0x1a30   : > { %v2304_v24 = vpop.xlane.xlu2 %2303 }
0x1a31   : > { %v2306_v34 = vmul.f32 %v2300_v22, %v2300_v22  ;;  %v2305_v25 = vmul.f32 %v2304_v24, %v5278_v46  ;;  %v2308_v29 = vsub.f32 %v5681_v10, %v2300_v22 }
0x1a33   : > { %v2307_v27 = vsub.f32 %v2305_v25, %v2306_v34 }
0x1a35   : > { %v2309_v33 = vadd.f32 1e-05, %v2307_v27 }
0x1a37   : > { %4896 = vrsqrt.f32 %v2309_v33  ;;  %vm2316_vm9 = vweird.f32 %v2309_v33 }
0x1a3d   : > { %v4897_v28 = vpop.eup %4896 }
0x1a3e   : > { %v2311_v30 = vmul.f32 %v4897_v28, %v2309_v33  ;;  %vm2317_vm8 = vweird.f32 %v4897_v28 }
0x1a3f   : > { %vm2318_vm10 = vmor %vm2316_vm9, %vm2317_vm8 }
0x1a40   : > { %v2312_v31 = vmul.f32 %v4897_v28, %v2311_v30 }
0x1a42   : > { %v2313_v2 = vmul.f32 0.5, %v2312_v31 }
0x1a44   : > { %v2314_v16 = vsub.f32 1.5, %v2313_v2 }
0x1a46   : > { %v2315_v37 = vmul.f32 %v4897_v28, %v2314_v16 }
0x1a48   : > { %v2319_v40 = vsel %vm2318_vm10, %v4897_v28, %v2315_v37 }
0x1a49   : > { %v2320_v41 = vmul.f32 %v2319_v40, %v2308_v29  ;;  %v2632_v40 = vmul.f32 %v5360_v36, %v5666_v63 }
0x1a4b   : > { %v2322_v23 = vmul.f32 %v4753_v38, %v2320_v41 }
0x1a4d   : > { %v2324_v43 = vadd.f32 %v4754_v44, %v2322_v23  ;;  %v4756_v44 = vld [vmem:[#allocation6 + $0x568] ss:$0 sm:$0xff] }
0x1a4f   : > { %4565 = vmatmul.msk.f32.vlgmr.msrb.gmra.mxu2 %vm313_vm5, %v2324_v43 }
0x1a50   : > { %4573 = vmatpush.xpose.msk.msrb.mxu2 %vm313_vm5, %v5671_v4 }
0x1a57   : > { %4570 = vmatmul.msk.f32.vlgmr.msra.gmra.mxu2 %vm313_vm5, %v2478_v45 }
0x1a5f   : > { %4574 = vmatmul.msk.f32.vlgmr.msrb.gmra.mxu2 %vm313_vm5, %v2568_v47 }
0x1aa0   : > { %v2468_v3 = vpop.xlane.xlu1 %2467 }
0x1aa1   : > { %v2469_v50 = vsub.f32 %v2463_v18, %v2468_v3 }
0x1aa3   : > { %v2470_v15 = vmul.f32 1.442695, %v2469_v50 }
0x1aa5   : > { %4898 = vpow2.f32 %v2470_v15 }
0x1aab   : > { %v4899_v57 = vpop.eup %4898 }
0x1aac   : > { %v2472_v58 = vsel %vm536_vm0, %v4899_v57, 0.0 }
0x1aad   : > { %2473 = vadd.xlane.f32.xlu1 %v2472_v58 }
0x1ac6   : > { %2542 = vrot.lane.b32.xlu1 %v2477_v8, %s5130_s29 }
0x1ad2   : > { %v2351_v18 = vpop.f32.mrf.mxu2 }
0x1ad3   : > { %v2352_v20 = vadd.f32 %v4755_v61, %v2351_v18 }
0x1ad5   : > { %v2354_v21 = vmul.f32 %v2352_v20, %v2352_v20 }
0x1ad7   : > { %v2355_v22 = vmul.f32 %v2354_v21, %v2352_v20 }
0x1ad9   : > { %v2356_v24 = vmul.f32 0.044715, %v2355_v22 }
0x1ada   : > { %v2499_v34 = vpop.f32.mrf.mxu2 }
0x1adb   : > { %v2357_v25 = vadd.f32 %v2356_v24, %v2352_v20  ;;  %v2502_v27 = vsel %vm536_vm0, %v2499_v34, -inf }
0x1adc   : > { %2503 = vmax.xlane.f32.xlu0 %v2502_v27 }
0x1add   : > { %v2358_v33 = vmul.f32 0.7978846, %v2357_v25 }
0x1adf   : > { %4900 = vtanh.f32 %v2358_v33  ;;  %v4758_v33 = vld [vmem:[#allocation6 + $0x698] ss:$0 sm:$0xff] }
0x1ae2   : > { %v2589_v19 = vpop.f32.mrf.mxu2 }
0x1ae3   : > { %v2592_v13 = vsel %vm536_vm0, %v2589_v19, -inf }
0x1ae5   : > { %v4901_v28 = vpop.eup %4900 }
0x1ae6   : > { %v2360_v30 = vadd.f32 1.0, %v4901_v28 }
0x1ae8   : > { %v2361_v31 = vmul.f32 0.5, %v2360_v30 }
0x1aea   : > { %v2362_v2 = vmul.f32 %v2361_v31, %v2352_v20 }
0x1aec   : > { %2397 = vmatmul.f32.vlgmr.msrb.gmra.mxu0 %v2362_v2 }
0x1b20   : > { %v2474_v16 = vpop.xlane.xlu1 %2473 }
0x1b21   : > { %4902 = vrcp.f32 %v2474_v16 }
0x1b27   : > { %v4903_v37 = vpop.eup %4902 }
0x1b28   : > { %v2476_v29 = vmul.f32 %v4903_v37, %v4899_v57 }
0x1b38   : > { %v2543_v38 = vpop.permute.xlu1 %2542 }
0x1b39   : > { %2563 = vmatpush.msra.mxu3 %v2543_v38 }
0x1b3a   : > { %4572 = vmatmul.msk.f32.vlgmr.msra.gmra.mxu3 %vm536_vm0, %v2476_v29 }
0x1b3b   : > { %4576 = vmatpush.xpose.msk.msrb.mxu3 %vm313_vm5, %v5671_v4 }
0x1b42   : > { %4577 = vmatmul.msk.f32.vlgmr.msrb.gmra.mxu3 %vm313_vm5, %v2632_v40 }
0x1b4f   : > { %v2504_v41 = vpop.xlane.xlu0 %2503 }
0x1b50   : > { %v2505_v23 = vsub.f32 %v2499_v34, %v2504_v41  ;;  %v4757_v34 = vld [vmem:[#allocation6 + $0x690] ss:$0 sm:$0xff] }
0x1b52   : > { %v2506_v47 = vmul.f32 1.442695, %v2505_v23 }
0x1b54   : > { %4904 = vpow2.f32 %v2506_v47  ;;  %v4759_v47 = vld [vmem:[#allocation6 + $0x6c0] ss:$0 sm:$0xff] }
0x1b5a   : > { %v5720_v52 = vpop.eup %4904 }
0x1b5b   : > { %v2508_v55 = vsel %vm536_vm0, %v5720_v52, 0.0 }
0x1b69   : > { %v2398_v43 = vpop.f32.mrf.mxu0 }
0x1b6a   : > { %v2399_v45 = vadd.f32 %v4756_v44, %v2398_v43  ;;  %v2513_v43 = vmul.f32 %v5666_v63, %v5337_v11 }
0x1b6c   : > { %v5713_v3 = vadd.f32 %v2399_v45, %v5681_v10  ;;  %v2603_v10 = vmul.f32 %v5666_v63, %v5409_v54  ;;  %v2667_v45 = vmul.f32 %v5666_v63, %v5367_v42 }
0x1b6e   : > { %v2835_v50 = vsel %vm313_vm5, %v5713_v3, 0.0  ;;  %v2839_v4 = vmul.f32 %v5713_v3, %v5713_v3 }
0x1b6f   : > { %2836 = vadd.xlane.f32.xlu1 %v2835_v50 }
0x1b70   : > { %v2840_v15 = vsel %vm313_vm5, %v2839_v4, 0.0 }
0x1b71   : > { %2841 = vadd.xlane.f32.xlu0 %v2840_v15 }
0x1b79   : > { %2509 = vadd.xlane.f32.xlu0 %v2508_v55  ;;  %v2759_v55 = vld [vmem:[#allocation6 + $0x5f8] sm:$0xff] }
0x1b7a   : > { %2777 = vmatpush.msra.mxu3 %v2759_v55 }
0x1b88   : > { %2605 = vrot.lane.b32.xlu1 %v2603_v10, %s5130_s29  ;;  %v2758_v10 = vld [vmem:[#allocation6 + $0x5f0] sm:$0xff] }
0x1b89   : > { %2778 = vmatpush.msra.mxu3 %v2758_v10 }
0x1bbd   : > { %v5727_v56 = vpop.f32.mrf.mxu3 }
0x1bc5   : > { %v2653_v57 = vpop.f32.mrf.mxu3 }
0x1bc6   : > { %v2656_v58 = vsel %vm536_vm0, %v2653_v57, -inf }
0x1bc7   : > { %2657 = vmax.xlane.f32.xlu2 %v2656_v58 }
0x1bcf   : > { %2593 = vmax.xlane.f32.xlu2 %v2592_v13 }
0x1be2   : > { %v2837_v62 = vpop.xlane.xlu1 %2836 }
0x1be3   : > { %v2838_v0 = vmul.f32 %v2837_v62, %v5278_v46  ;;  %v2698_v62 = vld [vmem:[#allocation6 + $0x5b8] sm:$0xff] }
0x1be4   : > { %v2842_v5 = vpop.xlane.xlu0 %2841 }
0x1be5   : > { %v2844_v6 = vmul.f32 %v2838_v0, %v2838_v0  ;;  %v2843_v8 = vmul.f32 %v2842_v5, %v5278_v46  ;;  %v2846_v24 = vsub.f32 %v5713_v3, %v2838_v0  ;;  %v2697_v0 = vld [vmem:[#allocation6 + $0x5b0] sm:$0xff] }
0x1be7   : > { %v2845_v9 = vsub.f32 %v2843_v8, %v2844_v6  ;;  %v2696_v8 = vld [vmem:[#allocation6 + $0x5a8] sm:$0xff] }
0x1be9   : > { %v2847_v12 = vadd.f32 1e-05, %v2845_v9 }
0x1beb   : > { %4906 = vrsqrt.f32 %v2847_v12  ;;  %vm2854_vm12 = vweird.f32 %v2847_v12 }
0x1bec   : > { %v2510_v15 = vpop.xlane.xlu0 %2509 }
0x1bf1   : > { %v4907_v17 = vpop.eup %4906 }
0x1bf2   : > { %v2849_v61 = vmul.f32 %v4907_v17, %v2847_v12  ;;  %vm2855_vm11 = vweird.f32 %v4907_v17 }
0x1bf3   : > { %vm2856_vm13 = vmor %vm2854_vm12, %vm2855_vm11 }
0x1bf4   : > { %v2850_v18 = vmul.f32 %v4907_v17, %v2849_v61 }
0x1bf6   : > { %v2851_v20 = vmul.f32 0.5, %v2850_v18 }
0x1bf8   : > { %v2852_v21 = vsub.f32 1.5, %v2851_v20 }
0x1bfa   : > { %v2853_v22 = vmul.f32 %v4907_v17, %v2852_v21  ;;  %v2606_v14 = vpop.permute.xlu1 %2605 }
0x1bfc   : > { %v2857_v25 = vsel %vm2856_vm13, %v4907_v17, %v2853_v22 }
0x1bfd   : > { %v2858_v27 = vmul.f32 %v2857_v25, %v2846_v24  ;;  %v4760_v25 = vld [vmem:[#allocation6 + $0x5c8] ss:$0 sm:$0xff] }
0x1bff   : > { %v2860_v28 = vmul.f32 %v4757_v34, %v2858_v27 }
0x1c01   : > { %v2862_v30 = vadd.f32 %v4758_v33, %v2860_v28 }
0x1c03   : > { %4581 = vmatmul.msk.f32.vlgmr.msra.gmra.mxu0 %vm313_vm5, %v2862_v30 }
0x1c3a   : > { %v2658_v31 = vpop.xlane.xlu2 %2657 }
0x1c3b   : > { %v2659_v2 = vsub.f32 %v2653_v57, %v2658_v31  ;;  %v2757_v57 = vld [vmem:[#allocation6 + $0x5e8] sm:$0xff] }
0x1c3c   : > { %2779 = vmatpush.msra.mxu3 %v2757_v57 }
0x1c3d   : > { %v2660_v16 = vmul.f32 1.442695, %v2659_v2 }
0x1c3f   : > { %4908 = vpow2.f32 %v2660_v16 }
0x1c42   : > { %v2594_v37 = vpop.xlane.xlu2 %2593 }
0x1c43   : > { %v2595_v29 = vsub.f32 %v2589_v19, %v2594_v37  ;;  %v2756_v19 = vld [vmem:[#allocation6 + $0x5e0] sm:$0xff] }
0x1c44   : > { %2780 = vmatpush.msra.mxu3 %v2756_v19 }
0x1c45   : > { %v4909_v38 = vpop.eup %4908  ;;  %v2596_v40 = vmul.f32 1.442695, %v2595_v29 }
0x1c46   : > { %v2662_v41 = vsel %vm536_vm0, %v4909_v38, 0.0 }
0x1c47   : > { %4910 = vpow2.f32 %v2596_v40  ;;  %2663 = vadd.xlane.f32.xlu2 %v2662_v41 }
0x1c48   : > { %4912 = vrcp.f32 %v2510_v15 }
0x1c4d   : > { %v4911_v44 = vpop.eup %4910 }
0x1c4e   : > { %v2598_v23 = vsel %vm536_vm0, %v4911_v44, 0.0  ;;  %v4913_v63 = vpop.eup %4912 }
0x1c4f   : > { %2599 = vadd.xlane.f32.xlu0 %v2598_v23  ;;  %v2512_v13 = vmul.f32 %v4913_v63, %v5720_v52 }
0x1c5f   : > { %2515 = vrot.lane.b32.xlu2 %v2513_v43, %s5130_s29 }
0x1c63   : > { %2669 = vrot.lane.b32.xlu0 %v2667_v45, %s5130_s29 }
0x1c80   : > { %v2889_v50 = vpop.f32.mrf.mxu0 }
0x1c81   : > { %v5743_v4 = vadd.f32 %v4759_v47, %v2889_v50 }
0x1c83   : > { %2894 = vrot.lane.b32.xlu2 %v5743_v4, %s5131_s6  ;;  %v2892_v34 = vmul.f32 %v5321_v1, %v5743_v4  ;;  %v2932_v37 = vmul.f32 %v5350_v32, %v5743_v4 }
0x1cba   : > { %v2664_v58 = vpop.xlane.xlu2 %2663 }
0x1cc2   : > { %v2516_v59 = vpop.permute.xlu2 %2515  ;;  %v2600_v60 = vpop.xlane.xlu0 %2599 }
0x1cc3   : > { %4914 = vrcp.f32 %v2600_v60  ;;  %2536 = vmatpush.msra.mxu1 %v2516_v59  ;;  %v4761_v59 = vld [vmem:[#allocation6 + $0x5d0] ss:$0 sm:$0xff] }
0x1cc4   : > { %4571 = vmatmul.msk.f32.vlgmr.msra.gmra.mxu1 %vm536_vm0, %v2512_v13  ;;  %4916 = vrcp.f32 %v2664_v58 }
0x1cc5   : > { %2626 = vmatpush.msrb.mxu1 %v2606_v14  ;;  %v4762_v14 = vld [vmem:[#allocation6 + $0x5d8] ss:$0 sm:$0xff] }
0x1cc7   : > { %2717 = vmatpush.msra.mxu1 %v2699_v39 }
0x1cc9   : > { %2718 = vmatpush.msra.mxu1 %v2698_v62  ;;  %v4915_v5 = vpop.eup %4914 }
0x1cca   : > { %v2602_v6 = vmul.f32 %v4915_v5, %v4911_v44  ;;  %v4917_v52 = vpop.eup %4916  ;;  %v2933_v5 = vmul.f32 %v5306_v35, %v5743_v4 }
0x1ccb   : > { %2719 = vmatpush.msra.mxu1 %v2697_v0  ;;  %v2666_v9 = vmul.f32 %v4917_v52, %v4909_v38  ;;  %v2808_v52 = vld [vmem:[#allocation6 + $0x678] sm:$0xff] }
0x1ccc   : > { %4575 = vmatmul.msk.f32.vlgmr.msrb.gmra.mxu1 %vm536_vm0, %v2602_v6  ;;  %v3023_v6 = vmul.f32 %v5381_v49, %v5743_v4 }
0x1ccd   : > { %2720 = vmatpush.msra.mxu1 %v2696_v8  ;;  %v2809_v8 = vld [vmem:[#allocation6 + $0x680] sm:$0xff] }
0x1cd5   : > { %v2670_v12 = vpop.permute.xlu0 %2669 }
0x1cd6   : > { %2690 = vmatpush.msra.mxu2 %v2670_v12 }
0x1cd7   : > { %4578 = vmatmul.msk.f32.vlgmr.msra.gmra.mxu2 %vm536_vm0, %v2666_v9  ;;  %v2807_v9 = vld [vmem:[#allocation6 + $0x670] sm:$0xff] }
0x1cd8   : > { %2812 = vmatpush.msrb.mxu2 %v2809_v8  ;;  %v4764_v8 = vld [vmem:[#allocation6 + $0x688] ss:$0 sm:$0xff] }
0x1cda   : > { %2813 = vmatpush.msrb.mxu2 %v2808_v52  ;;  %v2968_v52 = vmul.f32 %v5743_v4, %v5337_v11 }
0x1cdc   : > { %2814 = vmatpush.msrb.mxu2 %v2807_v9 }
0x1cdd   : > { %v2895_v17 = vpop.permute.xlu2 %2894 }
0x1cde   : > { %4582 = vmatpush.xpose.msk.msrb.mxu1 %vm313_vm5, %v2895_v17  ;;  %4584 = vmatpush.xpose.msk.msrb.mxu3 %vm313_vm5, %v2895_v17 }
0x1d41   : > { %v2538_v61 = vpop.f32.mrf.mxu1 }
0x1d42   : > { %v2566_v20 = vadd.f32 %v5727_v56, %v2538_v61  ;;  %v2806_v61 = vld [vmem:[#allocation6 + $0x668] sm:$0xff] }
0x1d43   : > { %2815 = vmatpush.msrb.mxu2 %v2806_v61 }
0x1d49   : > { %v2628_v18 = vpop.f32.mrf.mxu1 }
0x1d4a   : > { %v2631_v21 = vadd.f32 %v2628_v18, %v2566_v20  ;;  %v2804_v18 = vld [vmem:[#allocation6 + $0x658] sm:$0xff] }
0x1d5a   : > { %v2692_v22 = vpop.f32.mrf.mxu2 }
0x1d5b   : > { %v2695_v24 = vadd.f32 %v2692_v22, %v2631_v21  ;;  %v2803_v21 = vld [vmem:[#allocation6 + $0x650] sm:$0xff] }
0x1d5d   : > { %4579 = vmatmul.msk.f32.vlgmr.msra.gmra.mxu1 %vm313_vm5, %v2695_v24  ;;  %v2802_v24 = vld [vmem:[#allocation6 + $0x648] sm:$0xff] }
0x1d65   : > { %4583 = vmatmul.msk.f32.vlgmr.msrb.gmra.mxu1 %vm313_vm5, %v2892_v34  ;;  %v2801_v34 = vld [vmem:[#allocation6 + $0x640] sm:$0xff] }
0x1dda   : > { %v2722_v27 = vpop.f32.mrf.mxu1 }
0x1ddb   : > { %v2723_v33 = vadd.f32 %v4760_v25, %v2722_v27  ;;  %v2800_v25 = vld [vmem:[#allocation6 + $0x638] sm:$0xff]  ;;  %v2799_v27 = vld [vmem:[#allocation6 + $0x630] sm:$0xff] }
0x1ddd   : > { %v5759_v28 = vadd.f32 %v2723_v33, %v5601_v26  ;;  %v2798_v33 = vld [vmem:[#allocation6 + $0x628] sm:$0xff] }
0x1ddf   : > { %v2728_v30 = vsel %vm313_vm5, %v5759_v28, 0.0  ;;  %v2732_v56 = vmul.f32 %v5759_v28, %v5759_v28 }
0x1de0   : > { %2729 = vadd.xlane.f32.xlu2 %v2728_v30  ;;  %v3087_v30 = vmul.f32 %v5360_v36, %v5743_v4 }
0x1de1   : > { %v2733_v31 = vsel %vm313_vm5, %v2732_v56, 0.0  ;;  %v2797_v56 = vld [vmem:[#allocation6 + $0x620] sm:$0xff] }
0x1de2   : > { %v2918_v2 = vpop.f32.mrf.mxu1  ;;  %2734 = vadd.xlane.f32.xlu1 %v2733_v31  ;;  %v2796_v31 = vld [vmem:[#allocation6 + $0x618] sm:$0xff] }
0x1de3   : > { %v2921_v16 = vsel %vm536_vm0, %v2918_v2, -inf }
0x1de4   : > { %2922 = vmax.xlane.f32.xlu0 %v2921_v16  ;;  %v2794_v16 = vld [vmem:[#allocation6 + $0x608] sm:$0xff] }
0x1df8   : > { %2997 = vrot.lane.b32.xlu2 %v2932_v37, %s5130_s29  ;;  %v4763_v37 = vld [vmem:[#allocation6 + $0x600] ss:$0 sm:$0xff] }
0x1e53   : > { %v2730_v26 = vpop.xlane.xlu2 %2729 }
0x1e54   : > { %v2731_v29 = vmul.f32 %v2730_v26, %v5278_v46 }
0x1e55   : > { %v2735_v38 = vpop.xlane.xlu1 %2734 }
0x1e56   : > { %v2737_v40 = vmul.f32 %v2731_v29, %v2731_v29  ;;  %v2736_v41 = vmul.f32 %v2735_v38, %v5278_v46  ;;  %v2739_v13 = vsub.f32 %v5759_v28, %v2731_v29 }
0x1e57   : > { %v2923_v44 = vpop.xlane.xlu0 %2922 }
0x1e58   : > { %v2738_v23 = vsub.f32 %v2736_v41, %v2737_v40  ;;  %v2924_v43 = vsub.f32 %v2918_v2, %v2923_v44  ;;  %v2795_v2 = vld [vmem:[#allocation6 + $0x610] sm:$0xff] }
0x1e5a   : > { %v2740_v45 = vadd.f32 1e-05, %v2738_v23  ;;  %v2925_v47 = vmul.f32 1.442695, %v2924_v43 }
0x1e5b   : > { %v2998_v50 = vpop.permute.xlu2 %2997 }
0x1e5c   : > { %4918 = vrsqrt.f32 %v2740_v45  ;;  %3018 = vmatpush.msra.mxu1 %v2998_v50  ;;  %vm2747_vm15 = vweird.f32 %v2740_v45 }
0x1e5d   : > { %4920 = vpow2.f32 %v2925_v47 }
0x1e5e   : > { %4591 = vmatpush.xpose.msk.msrb.mxu1 %vm313_vm5, %v2895_v17 }
0x1e62   : > { %v4919_v32 = vpop.eup %4918 }
0x1e63   : > { %v4921_v15 = vpop.eup %4920  ;;  %v2742_v55 = vmul.f32 %v4919_v32, %v2740_v45  ;;  %vm2748_vm14 = vweird.f32 %v4919_v32 }
0x1e64   : > { %v2927_v10 = vsel %vm536_vm0, %v4921_v15, 0.0  ;;  %vm2749_vm1 = vmor %vm2747_vm15, %vm2748_vm14 }
0x1e65   : > { %v2743_v57 = vmul.f32 %v4919_v32, %v2742_v55  ;;  %2928 = vadd.xlane.f32.xlu0 %v2927_v10 }
0x1e67   : > { %v2744_v58 = vmul.f32 0.5, %v2743_v57 }
0x1e69   : > { %v2745_v19 = vsub.f32 1.5, %v2744_v58 }
0x1e6b   : > { %v2746_v63 = vmul.f32 %v4919_v32, %v2745_v19 }
0x1e6d   : > { %v2750_v60 = vsel %vm2749_vm1, %v4919_v32, %v2746_v63 }
0x1e6e   : > { %v2751_v39 = vmul.f32 %v2750_v60, %v2739_v13 }
0x1e70   : > { %v2753_v62 = vmul.f32 %v4761_v59, %v2751_v39 }
0x1e72   : > { %v2755_v0 = vadd.f32 %v4762_v14, %v2753_v62 }
0x1e74   : > { %4580 = vmatmul.msk.f32.vlgmr.msra.gmra.mxu3 %vm313_vm5, %v2755_v0 }
0x1e75   : > { %4588 = vmatpush.xpose.msk.msra.mxu3 %vm313_vm5, %v2895_v17  ;;  %v2805_v17 = vld [vmem:[#allocation6 + $0x660] sm:$0xff] }
0x1e76   : > { %2816 = vmatpush.msrb.mxu2 %v2805_v17 }
0x1e78   : > { %2817 = vmatpush.msrb.mxu2 %v2804_v18  ;;  %v3058_v18 = vmul.f32 %v5743_v4, %v5409_v54  ;;  %v3122_v54 = vmul.f32 %v5743_v4, %v5367_v42  ;;  %v3348_v4 = vld [vmem:[#allocation6 + $0x7d0] sm:$0xff] }
0x1e7a   : > { %2818 = vmatpush.msrb.mxu2 %v2803_v21 }
0x1e7c   : > { %4585 = vmatmul.msk.f32.vlgmr.msrb.gmra.mxu3 %vm313_vm5, %v2933_v5  ;;  %2819 = vmatpush.msrb.mxu2 %v2802_v24 }
0x1e7e   : > { %2820 = vmatpush.msrb.mxu2 %v2801_v34 }
0x1e80   : > { %2821 = vmatpush.msrb.mxu2 %v2800_v25 }
0x1e82   : > { %2822 = vmatpush.msrb.mxu2 %v2799_v27 }
0x1e84   : > { %4589 = vmatmul.msk.f32.vlgmr.msra.gmra.mxu3 %vm313_vm5, %v3023_v6  ;;  %2823 = vmatpush.msrb.mxu2 %v2798_v33 }
0x1e86   : > { %2824 = vmatpush.msrb.mxu2 %v2797_v56 }
0x1e88   : > { %2825 = vmatpush.msrb.mxu2 %v2796_v31 }
0x1e8a   : > { %2826 = vmatpush.msrb.mxu2 %v2795_v2 }
0x1e8c   : > { %2827 = vmatpush.msrb.mxu2 %v2794_v16  ;;  %v3351_v16 = vld [vmem:[#allocation6 + $0x7e8] sm:$0xff] }
0x1e8e   : > { %3369 = vmatpush.msra.mxu2 %v3351_v16 }
0x1ed8   : > { %v2929_v12 = vpop.xlane.xlu0 %2928 }
0x1ed9   : > { %4922 = vrcp.f32 %v2929_v12 }
0x1edf   : > { %v4923_v20 = vpop.eup %4922 }
0x1ee0   : > { %v2931_v22 = vmul.f32 %v4923_v20, %v4921_v15 }
0x1ee2   : > { %4587 = vmatmul.msk.f32.vlgmr.msra.gmra.mxu1 %vm536_vm0, %v2931_v22 }
0x1eea   : > { %4592 = vmatmul.msk.f32.vlgmr.msrb.gmra.mxu1 %vm313_vm5, %v3087_v30 }
0x1ef7   : > { %v2782_v26 = vpop.f32.mrf.mxu3 }
0x1ef8   : > { %v2783_v29 = vadd.f32 %v4763_v37, %v2782_v26 }
0x1efa   : > { %v2785_v38 = vmul.f32 %v2783_v29, %v2783_v29 }
0x1efc   : > { %v2786_v40 = vmul.f32 %v2785_v38, %v2783_v29  ;;  %v3349_v38 = vld [vmem:[#allocation6 + $0x7d8] sm:$0xff] }
0x1efe   : > { %v2787_v41 = vmul.f32 0.044715, %v2786_v40 }
0x1eff   : > { %v2954_v44 = vpop.f32.mrf.mxu3 }
0x1f00   : > { %v2788_v23 = vadd.f32 %v2787_v41, %v2783_v29  ;;  %v2957_v43 = vsel %vm536_vm0, %v2954_v44, -inf }
0x1f01   : > { %2958 = vmax.xlane.f32.xlu0 %v2957_v43 }
0x1f02   : > { %v2789_v45 = vmul.f32 0.7978846, %v2788_v23 }
0x1f04   : > { %4924 = vtanh.f32 %v2789_v45 }
0x1f07   : > { %v3044_v47 = vpop.f32.mrf.mxu3 }
0x1f08   : > { %v3047_v50 = vsel %vm536_vm0, %v3044_v47, -inf }
0x1f09   : > { %3048 = vmax.xlane.f32.xlu1 %v3047_v50 }
0x1f0a   : > { %v4925_v32 = vpop.eup %4924 }
0x1f0b   : > { %v2791_v15 = vadd.f32 1.0, %v4925_v32 }
0x1f0d   : > { %v2792_v55 = vmul.f32 0.5, %v2791_v15 }
0x1f0f   : > { %v2793_v10 = vmul.f32 %v2792_v55, %v2783_v29  ;;  %v3350_v29 = vld [vmem:[#allocation6 + $0x7e0] sm:$0xff] }
0x1f10   : > { %3370 = vmatpush.msra.mxu2 %v3350_v29  ;;  %v3262_v29 = vld [vmem:[#allocation6 + $0x790] sm:$0xff] }
0x1f11   : > { %2828 = vmatmul.f32.vlgmr.msrb.gmra.mxu2 %v2793_v10 }
0x1f12   : > { %3371 = vmatpush.msra.mxu2 %v3349_v38 }
0x1f14   : > { %3372 = vmatpush.msra.mxu2 %v3348_v4 }
0x1f5f   : > { %v5789_v57 = vpop.f32.mrf.mxu1 }
0x1f67   : > { %v3108_v58 = vpop.f32.mrf.mxu1 }
0x1f68   : > { %v3111_v19 = vsel %vm536_vm0, %v3108_v58, -inf }
0x1f69   : > { %3112 = vmax.xlane.f32.xlu0 %v3111_v19 }
0x1f74   : > { %v2959_v63 = vpop.xlane.xlu0 %2958 }
0x1f75   : > { %v2960_v13 = vsub.f32 %v2954_v44, %v2959_v63 }
0x1f77   : > { %v2961_v59 = vmul.f32 1.442695, %v2960_v13  ;;  %v4766_v13 = vld [vmem:[#allocation6 + $0x7b8] ss:$0 sm:$0xff] }
0x1f79   : > { %4926 = vpow2.f32 %v2961_v59 }
0x1f7c   : > { %v3049_v60 = vpop.xlane.xlu1 %3048 }
0x1f7d   : > { %v3050_v39 = vsub.f32 %v3044_v47, %v3049_v60 }
0x1f7f   : > { %v4927_v14 = vpop.eup %4926  ;;  %v3051_v62 = vmul.f32 1.442695, %v3050_v39 }
0x1f80   : > { %v2963_v0 = vsel %vm536_vm0, %v4927_v14, 0.0 }
0x1f81   : > { %4928 = vpow2.f32 %v3051_v62  ;;  %2964 = vadd.xlane.f32.xlu0 %v2963_v0 }
0x1f87   : > { %v4929_v5 = vpop.eup %4928 }
0x1f88   : > { %v3053_v6 = vsel %vm536_vm0, %v4929_v5, 0.0 }
0x1f89   : > { %3054 = vadd.xlane.f32.xlu2 %v3053_v6  ;;  %v3153_v6 = vld [vmem:[#allocation6 + $0x6d8] sm:$0xff] }
0x1f94   : > { %v2829_v9 = vpop.f32.mrf.mxu2 }
0x1f95   : > { %v2830_v12 = vadd.f32 %v4764_v8, %v2829_v9  ;;  %2970 = vrot.lane.b32.xlu0 %v2968_v52, %s5130_s29  ;;  %v3152_v8 = vld [vmem:[#allocation6 + $0x6d0] sm:$0xff]  ;;  %v3151_v52 = vld [vmem:[#allocation6 + $0x6c8] sm:$0xff] }
0x1f97   : > { %v5798_v61 = vadd.f32 %v2830_v12, %v5759_v28 }
0x1f99   : > { %v3290_v17 = vsel %vm313_vm5, %v5798_v61, 0.0  ;;  %v3294_v20 = vmul.f32 %v5798_v61, %v5798_v61 }
0x1f9a   : > { %3291 = vadd.xlane.f32.xlu2 %v3290_v17 }
0x1f9b   : > { %v3295_v11 = vsel %vm313_vm5, %v3294_v20, 0.0 }
0x1f9d   : > { %3060 = vrot.lane.b32.xlu0 %v3058_v18, %s5130_s29 }
0x1fa2   : > { %3296 = vadd.xlane.f32.xlu2 %v3295_v11 }
0x1fdc   : > { %v3113_v21 = vpop.xlane.xlu0 %3112 }
0x1fdd   : > { %v3114_v22 = vsub.f32 %v3108_v58, %v3113_v21  ;;  %v4765_v58 = vld [vmem:[#allocation6 + $0x7b0] ss:$0 sm:$0xff]  ;;  %v4768_v21 = vld [vmem:[#allocation6 + $0x6e8] ss:$0 sm:$0xff] }
0x1fdf   : > { %v3115_v24 = vmul.f32 1.442695, %v3114_v22 }
0x1fe1   : > { %4930 = vpow2.f32 %v3115_v24 }
0x1fe7   : > { %v4931_v28 = vpop.eup %4930 }
0x1fe8   : > { %v3117_v34 = vsel %vm536_vm0, %v4931_v28, 0.0 }
0x1fe9   : > { %3118 = vadd.xlane.f32.xlu1 %v3117_v34 }
0x1ff4   : > { %v2965_v25 = vpop.xlane.xlu0 %2964 }
0x1ff5   : > { %4932 = vrcp.f32 %v2965_v25 }
0x1ffb   : > { %v4933_v33 = vpop.eup %4932 }
0x1ffc   : > { %v3055_v27 = vpop.xlane.xlu2 %3054  ;;  %v2967_v30 = vmul.f32 %v4933_v33, %v4927_v14  ;;  %v3212_v33 = vld [vmem:[#allocation6 + $0x708] sm:$0xff] }
0x1ffd   : > { %4934 = vrcp.f32 %v3055_v27  ;;  %v3213_v27 = vld [vmem:[#allocation6 + $0x710] sm:$0xff] }
0x2002   : > { %3124 = vrot.lane.b32.xlu1 %v3122_v54, %s5130_s29  ;;  %v3214_v54 = vld [vmem:[#allocation6 + $0x718] sm:$0xff] }
0x2003   : > { %v4935_v31 = vpop.eup %4934  ;;  %3232 = vmatpush.msra.mxu1 %v3214_v54 }
0x2004   : > { %v3057_v37 = vmul.f32 %v4935_v31, %v4929_v5  ;;  %v3154_v5 = vld [vmem:[#allocation6 + $0x6e0] sm:$0xff] }
0x2005   : > { %3233 = vmatpush.msra.mxu1 %v3213_v27  ;;  %v3264_v31 = vld [vmem:[#allocation6 + $0x7a0] sm:$0xff] }
0x2007   : > { %v2971_v56 = vpop.permute.xlu0 %2970  ;;  %3234 = vmatpush.msra.mxu1 %v3212_v33 }
0x2008   : > { %2991 = vmatpush.msrb.mxu0 %v2971_v56 }
0x2009   : > { %4586 = vmatmul.msk.f32.vlgmr.msrb.gmra.mxu0 %vm536_vm0, %v2967_v30  ;;  %v3211_v30 = vld [vmem:[#allocation6 + $0x700] sm:$0xff] }
0x200a   : > { %3235 = vmatpush.msra.mxu1 %v3211_v30 }
0x200d   : > { %v3292_v2 = vpop.xlane.xlu2 %3291 }
0x200e   : > { %v3293_v42 = vmul.f32 %v3292_v2, %v5278_v46  ;;  %v3263_v2 = vld [vmem:[#allocation6 + $0x798] sm:$0xff] }
0x200f   : > { %v3061_v26 = vpop.permute.xlu0 %3060 }
0x2010   : > { %3081 = vmatpush.msra.mxu0 %v3061_v26  ;;  %v3299_v41 = vmul.f32 %v3293_v42, %v3293_v42  ;;  %v3301_v10 = vsub.f32 %v5798_v61, %v3293_v42 }
0x2011   : > { %4590 = vmatmul.msk.f32.vlgmr.msra.gmra.mxu0 %vm536_vm0, %v3057_v37 }
0x2012   : > { %3172 = vmatpush.msrb.mxu0 %v3154_v5  ;;  %v3251_v5 = vld [vmem:[#allocation6 + $0x738] sm:$0xff] }
0x2014   : > { %3173 = vmatpush.msrb.mxu0 %v3153_v6  ;;  %v3250_v6 = vld [vmem:[#allocation6 + $0x730] sm:$0xff] }
0x2015   : > { %v3297_v40 = vpop.xlane.xlu2 %3296 }
0x2016   : > { %v3298_v44 = vmul.f32 %v3297_v40, %v5278_v46  ;;  %3174 = vmatpush.msrb.mxu0 %v3152_v8  ;;  %v3249_v8 = vld [vmem:[#allocation6 + $0x728] sm:$0xff] }
0x2018   : > { %v3300_v23 = vsub.f32 %v3298_v44, %v3299_v41  ;;  %3175 = vmatpush.msrb.mxu0 %v3151_v52  ;;  %v4771_v52 = vld [vmem:[#allocation6 + $0x720] ss:$0 sm:$0xff] }
0x201a   : > { %v3302_v43 = vadd.f32 1e-05, %v3300_v23 }
0x201c   : > { %4936 = vrsqrt.f32 %v3302_v43  ;;  %vm3309_vm3 = vweird.f32 %v3302_v43 }
0x2022   : > { %v4937_v45 = vpop.eup %4936 }
0x2023   : > { %v3304_v47 = vmul.f32 %v4937_v45, %v3302_v43  ;;  %vm3310_vm2 = vweird.f32 %v4937_v45 }
0x2024   : > { %vm3311_vm4 = vmor %vm3309_vm3, %vm3310_vm2 }
0x2025   : > { %v3305_v50 = vmul.f32 %v4937_v45, %v3304_v47  ;;  %v4769_v47 = vld [vmem:[#allocation6 + $0x6f0] ss:$0 sm:$0xff] }
0x2027   : > { %v3306_v32 = vmul.f32 0.5, %v3305_v50 }
0x2029   : > { %v3307_v15 = vsub.f32 1.5, %v3306_v32 }
0x202b   : > { %v3308_v55 = vmul.f32 %v4937_v45, %v3307_v15  ;;  %v4770_v15 = vld [vmem:[#allocation6 + $0x6f8] ss:$0 sm:$0xff] }
0x202d   : > { %v3312_v19 = vsel %vm3311_vm4, %v4937_v45, %v3308_v55 }
0x202e   : > { %v3313_v63 = vmul.f32 %v3312_v19, %v3301_v10  ;;  %v3260_v19 = vld [vmem:[#allocation6 + $0x780] sm:$0xff] }
0x2030   : > { %v3315_v59 = vmul.f32 %v4765_v58, %v3313_v63  ;;  %v3261_v58 = vld [vmem:[#allocation6 + $0x788] sm:$0xff]  ;;  %v3259_v63 = vld [vmem:[#allocation6 + $0x778] sm:$0xff] }
0x2032   : > { %v3317_v60 = vadd.f32 %v4766_v13, %v3315_v59  ;;  %v3258_v13 = vld [vmem:[#allocation6 + $0x770] sm:$0xff]  ;;  %v3257_v59 = vld [vmem:[#allocation6 + $0x768] sm:$0xff] }
0x2034   : > { %4596 = vmatmul.msk.f32.vlgmr.msra.gmra.mxu2 %vm313_vm5, %v3317_v60  ;;  %v3256_v60 = vld [vmem:[#allocation6 + $0x760] sm:$0xff] }
0x205c   : > { %v3119_v39 = vpop.xlane.xlu1 %3118 }
0x205d   : > { %4938 = vrcp.f32 %v3119_v39  ;;  %v3255_v39 = vld [vmem:[#allocation6 + $0x758] sm:$0xff] }
0x2063   : > { %v4939_v14 = vpop.eup %4938 }
0x2064   : > { %v3121_v62 = vmul.f32 %v4939_v14, %v4931_v28  ;;  %v3254_v14 = vld [vmem:[#allocation6 + $0x750] sm:$0xff] }
0x2074   : > { %v3125_v0 = vpop.permute.xlu1 %3124 }
0x2075   : > { %3145 = vmatpush.msrb.mxu3 %v3125_v0  ;;  %v3252_v0 = vld [vmem:[#allocation6 + $0x740] sm:$0xff] }
0x2076   : > { %4593 = vmatmul.msk.f32.vlgmr.msrb.gmra.mxu3 %vm536_vm0, %v3121_v62  ;;  %v3253_v62 = vld [vmem:[#allocation6 + $0x748] sm:$0xff] }
0x2077   : > { %3267 = vmatpush.msra.mxu3 %v3264_v31 }
0x2079   : > { %3268 = vmatpush.msra.mxu3 %v3263_v2  ;;  %v3380_v2 = vld [vmem:[#allocation6 + $0x810] sm:$0xff] }
0x207a   : > { %3398 = vmatpush.msra.mxu0 %v3380_v2 }
0x207b   : > { %3269 = vmatpush.msra.mxu3 %v3262_v29 }
0x207d   : > { %3270 = vmatpush.msra.mxu3 %v3261_v58 }
0x207f   : > { %3271 = vmatpush.msra.mxu3 %v3260_v19 }
0x2081   : > { %3272 = vmatpush.msra.mxu3 %v3259_v63  ;;  %v4767_v63 = vld [vmem:[#allocation6 + $0x7f0] ss:$0 sm:$0xff] }
0x2083   : > { %3273 = vmatpush.msra.mxu3 %v3258_v13 }
0x2085   : > { %3274 = vmatpush.msra.mxu3 %v3257_v59  ;;  %v4777_v59 = vld [vmem:[#allocation6 + $0x818] ss:$0 sm:$0xff] }
0x2086   : > { %v2993_v9 = vpop.f32.mrf.mxu0 }
0x2087   : > { %v3021_v17 = vadd.f32 %v5789_v57, %v2993_v9  ;;  %3275 = vmatpush.msra.mxu3 %v3256_v60 }
0x2089   : > { %3276 = vmatpush.msra.mxu3 %v3255_v39 }
0x208b   : > { %3277 = vmatpush.msra.mxu3 %v3254_v14 }
0x208d   : > { %3278 = vmatpush.msra.mxu3 %v3253_v62 }
0x208e   : > { %v3083_v12 = vpop.f32.mrf.mxu0 }
0x208f   : > { %v3086_v18 = vadd.f32 %v3083_v12, %v3021_v17  ;;  %3279 = vmatpush.msra.mxu3 %v3252_v0 }
0x2091   : > { %3280 = vmatpush.msra.mxu3 %v3251_v5 }
0x2093   : > { %3281 = vmatpush.msra.mxu3 %v3250_v6 }
0x2095   : > { %3282 = vmatpush.msra.mxu3 %v3249_v8 }
0x20b7   : > { %v3374_v13 = vpop.f32.mrf.mxu2 }
0x20b8   : > { %v3375_v60 = vadd.f32 %v4767_v63, %v3374_v13 }
0x20ba   : > { %v3406_v0 = vmul.f32 %v5321_v1, %v3375_v60  ;;  %v3445_v5 = vmul.f32 %v5306_v35, %v3375_v60  ;;  %v3535_v8 = vmul.f32 %v5381_v49, %v3375_v60 }
0x20f9   : > { %v3147_v20 = vpop.f32.mrf.mxu3 }
0x20fa   : > { %v3150_v11 = vadd.f32 %v3147_v20, %v3086_v18 }
0x20fc   : > { %4594 = vmatmul.msk.f32.vlgmr.msrb.gmra.mxu0 %vm313_vm5, %v3150_v11 }
0x2179   : > { %v3177_v22 = vpop.f32.mrf.mxu0 }
0x217a   : > { %v3178_v24 = vadd.f32 %v4768_v21, %v3177_v22 }
0x217c   : > { %v5822_v28 = vadd.f32 %v3178_v24, %v5713_v3 }
0x217e   : > { %v3183_v34 = vsel %vm313_vm5, %v5822_v28, 0.0  ;;  %v3187_v25 = vmul.f32 %v5822_v28, %v5822_v28 }
0x217f   : > { %3184 = vadd.xlane.f32.xlu0 %v3183_v34 }
0x2180   : > { %v3188_v57 = vsel %vm313_vm5, %v3187_v25, 0.0 }
0x2181   : > { %3189 = vadd.xlane.f32.xlu1 %v3188_v57  ;;  %v4772_v57 = vld [vmem:[#allocation6 + $0x7a8] ss:$0 sm:$0xff] }
0x21f2   : > { %v3185_v56 = vpop.xlane.xlu0 %3184 }
0x21f3   : > { %v3186_v3 = vmul.f32 %v3185_v56, %v5278_v46 }
0x21f4   : > { %v3190_v16 = vpop.xlane.xlu1 %3189 }
0x21f5   : > { %v3192_v37 = vmul.f32 %v3186_v3, %v3186_v3  ;;  %v3191_v26 = vmul.f32 %v3190_v16, %v5278_v46  ;;  %v3194_v45 = vsub.f32 %v5822_v28, %v3186_v3  ;;  %v3379_v16 = vld [vmem:[#allocation6 + $0x808] sm:$0xff] }
0x21f6   : > { %3399 = vmatpush.msra.mxu0 %v3379_v16 }
0x21f7   : > { %v3193_v38 = vsub.f32 %v3191_v26, %v3192_v37  ;;  %v3378_v37 = vld [vmem:[#allocation6 + $0x800] sm:$0xff] }
0x21f8   : > { %3400 = vmatpush.msra.mxu0 %v3378_v37 }
0x21f9   : > { %v3195_v42 = vadd.f32 1e-05, %v3193_v38 }
0x21fb   : > { %4940 = vrsqrt.f32 %v3195_v42  ;;  %vm3202_vm7 = vweird.f32 %v3195_v42 }
0x2201   : > { %v4941_v4 = vpop.eup %4940 }
0x2202   : > { %v3197_v40 = vmul.f32 %v4941_v4, %v3195_v42  ;;  %vm3203_vm6 = vweird.f32 %v4941_v4 }
0x2203   : > { %vm3204_vm8 = vmor %vm3202_vm7, %vm3203_vm6 }
0x2204   : > { %v3198_v41 = vmul.f32 %v4941_v4, %v3197_v40 }
0x2206   : > { %v3199_v44 = vmul.f32 0.5, %v3198_v41 }
0x2208   : > { %v3200_v23 = vsub.f32 1.5, %v3199_v44 }
0x220a   : > { %v3201_v43 = vmul.f32 %v4941_v4, %v3200_v23 }
0x220c   : > { %v3205_v50 = vsel %vm3204_vm8, %v4941_v4, %v3201_v43 }
0x220d   : > { %v3206_v32 = vmul.f32 %v3205_v50, %v3194_v45 }
0x220f   : > { %v3208_v55 = vmul.f32 %v4769_v47, %v3206_v32  ;;  %v4773_v32 = vld [vmem:[#allocation6 + $0x7c0] ss:$0 sm:$0xff] }
0x2211   : > { %v3210_v10 = vadd.f32 %v4770_v15, %v3208_v55 }
0x2213   : > { %4595 = vmatmul.msk.f32.vlgmr.msra.gmra.mxu1 %vm313_vm5, %v3210_v10  ;;  %v4776_v10 = vld [vmem:[#allocation6 + $0x7c8] ss:$0 sm:$0xff] }
0x2290   : > { %v3237_v9 = vpop.f32.mrf.mxu1 }
0x2291   : > { %v3238_v12 = vadd.f32 %v4771_v52, %v3237_v9 }
0x2293   : > { %v3240_v17 = vmul.f32 %v3238_v12, %v3238_v12 }
0x2295   : > { %v3241_v18 = vmul.f32 %v3240_v17, %v3238_v12 }
0x2297   : > { %v3242_v20 = vmul.f32 0.044715, %v3241_v18 }
0x2299   : > { %v3243_v11 = vadd.f32 %v3242_v20, %v3238_v12 }
0x229b   : > { %v3244_v21 = vmul.f32 0.7978846, %v3243_v11 }
0x229d   : > { %4942 = vtanh.f32 %v3244_v21 }
0x22a3   : > { %v4943_v22 = vpop.eup %4942 }
0x22a4   : > { %v3246_v24 = vadd.f32 1.0, %v4943_v22 }
0x22a6   : > { %v3247_v34 = vmul.f32 0.5, %v3246_v24 }
0x22a8   : > { %v3248_v25 = vmul.f32 %v3247_v34, %v3238_v12 }
0x22aa   : > { %3283 = vmatmul.f32.vlgmr.msra.gmra.mxu3 %v3248_v25 }
0x232d   : > { %v3284_v54 = vpop.f32.mrf.mxu3 }
0x232e   : > { %v3285_v27 = vadd.f32 %v4772_v57, %v3284_v54 }
0x2330   : > { %v5834_v33 = vadd.f32 %v3285_v27, %v5822_v28  ;;  %v3377_v28 = vld [vmem:[#allocation6 + $0x7f8] sm:$0xff] }
0x2331   : > { %3401 = vmatpush.msra.mxu0 %v3377_v28 }
0x2332   : > { %v3320_v30 = vsel %vm313_vm5, %v5834_v33, 0.0  ;;  %v3324_v56 = vmul.f32 %v5834_v33, %v5834_v33 }
0x2333   : > { %3321 = vadd.xlane.f32.xlu2 %v3320_v30 }
0x2334   : > { %v3325_v3 = vsel %vm313_vm5, %v3324_v56, 0.0  ;;  %v3599_v56 = vmul.f32 %v5360_v36, %v3375_v60 }
0x233b   : > { %3326 = vadd.xlane.f32.xlu2 %v3325_v3 }
0x23a6   : > { %v3322_v31 = vpop.xlane.xlu2 %3321 }
0x23a7   : > { %v3323_v26 = vmul.f32 %v3322_v31, %v5278_v46 }
0x23a9   : > { %v3329_v38 = vmul.f32 %v3323_v26, %v3323_v26  ;;  %v3331_v50 = vsub.f32 %v5834_v33, %v3323_v26 }
0x23ae   : > { %v3327_v29 = vpop.xlane.xlu2 %3326 }
0x23af   : > { %v3328_v42 = vmul.f32 %v3327_v29, %v5278_v46 }
0x23b1   : > { %v3330_v4 = vsub.f32 %v3328_v42, %v3329_v38 }
0x23b3   : > { %v3332_v40 = vadd.f32 1e-05, %v3330_v4 }
0x23b5   : > { %4944 = vrsqrt.f32 %v3332_v40  ;;  %vm3339_vm10 = vweird.f32 %v3332_v40 }
0x23bb   : > { %v4945_v41 = vpop.eup %4944 }
0x23bc   : > { %v3334_v44 = vmul.f32 %v4945_v41, %v3332_v40  ;;  %vm3340_vm9 = vweird.f32 %v4945_v41 }
0x23bd   : > { %vm3341_vm11 = vmor %vm3339_vm10, %vm3340_vm9 }
0x23be   : > { %v3335_v23 = vmul.f32 %v4945_v41, %v3334_v44 }
0x23c0   : > { %v3336_v43 = vmul.f32 0.5, %v3335_v23 }
0x23c2   : > { %v3337_v45 = vsub.f32 1.5, %v3336_v43 }
0x23c4   : > { %v3338_v47 = vmul.f32 %v4945_v41, %v3337_v45 }
0x23c6   : > { %v3342_v15 = vsel %vm3341_vm11, %v4945_v41, %v3338_v47 }
0x23c7   : > { %v5844_v55 = vmul.f32 %v3342_v15, %v3331_v50 }
0x23c9   : > { %v3345_v58 = vmul.f32 %v4773_v32, %v5844_v55 }
0x23cb   : > { %v3347_v19 = vadd.f32 %v4776_v10, %v3345_v58 }
0x23cd   : > { %4597 = vmatmul.msk.f32.vlgmr.msra.gmra.mxu0 %vm313_vm5, %v3347_v19 }
0x244a   : > { %v3403_v39 = vpop.f32.mrf.mxu0 }
0x244b   : > { %v5848_v14 = vadd.f32 %v4777_v59, %v3403_v39  ;;  %v3666_v39 = vld [vmem:[#allocation6 + $0x838] sm:$0xff] }
0x244d   : > { %4598 = vmatpush.xpose.msk.msrb.mxu1 %vm313_vm5, %v5848_v14  ;;  %4600 = vmatpush.xpose.msk.msrb.mxu2 %vm313_vm5, %v5848_v14  ;;  %v3444_v62 = vmul.f32 %v5848_v14, %v5542_v7  ;;  %v3480_v6 = vmul.f32 %v5565_v48, %v5848_v14  ;;  %v3570_v44 = vmul.f32 %v5577_v53, %v5848_v14 }
0x244e   : > { %v3634_v19 = vmul.f32 %v5848_v14, %v5570_v51 }
0x244f   : > { %3509 = vrot.lane.b32.xlu2 %v3444_v62, %s5131_s6  ;;  %v3665_v62 = vld [vmem:[#allocation6 + $0x830] sm:$0xff] }
0x2450   : > { %4599 = vmatmul.msk.f32.vlgmr.msrb.gmra.mxu1 %vm313_vm5, %v3406_v0  ;;  %4601 = vmatmul.msk.f32.vlgmr.msrb.gmra.mxu2 %vm313_vm5, %v3445_v5  ;;  %v4774_v5 = vld [vmem:[#allocation6 + $0x908] ss:$0 sm:$0xff] }
0x2451   : > { %4604 = vmatpush.xpose.msk.msra.mxu2 %vm313_vm5, %v5848_v14 }
0x2457   : > { %3482 = vrot.lane.b32.xlu2 %v3480_v6, %s5131_s6 }
0x2458   : > { %4605 = vmatmul.msk.f32.vlgmr.msra.gmra.mxu2 %vm313_vm5, %v3535_v8 }
0x24a9   : > { %v3510_v52 = vpop.permute.xlu2 %3509 }
0x24aa   : > { %3530 = vmatpush.msra.mxu1 %v3510_v52  ;;  %v3839_v52 = vld [vmem:[#allocation6 + $0x940] sm:$0xff] }
0x24ac   : > { %4607 = vmatpush.xpose.msk.msrb.mxu1 %vm313_vm5, %v5848_v14  ;;  %v3838_v14 = vld [vmem:[#allocation6 + $0x938] sm:$0xff] }
0x24b1   : > { %v3483_v9 = vpop.permute.xlu2 %3482 }
0x24b2   : > { %3503 = vmatpush.msrb.mxu0 %v3483_v9  ;;  %v4775_v9 = vld [vmem:[#allocation6 + $0x910] ss:$0 sm:$0xff] }
0x24cd   : > { %v3430_v12 = vpop.f32.mrf.mxu1 }
0x24ce   : > { %v3433_v17 = vsel %vm536_vm0, %v3430_v12, -inf }
0x24cf   : > { %3434 = vmax.xlane.f32.xlu0 %v3433_v17  ;;  %v3837_v17 = vld [vmem:[#allocation6 + $0x930] sm:$0xff] }
0x24d3   : > { %v3466_v18 = vpop.f32.mrf.mxu2 }
0x24d4   : > { %v3469_v20 = vsel %vm536_vm0, %v3466_v18, -inf }
0x24d7   : > { %3470 = vmax.xlane.f32.xlu0 %v3469_v20 }
0x24db   : > { %v3556_v11 = vpop.f32.mrf.mxu2 }
0x24dc   : > { %v3559_v21 = vsel %vm536_vm0, %v3556_v11, -inf }
0x24df   : > { %3560 = vmax.xlane.f32.xlu0 %v3559_v21  ;;  %v3663_v21 = vld [vmem:[#allocation6 + $0x820] sm:$0xff] }
0x2542   : > { %v3435_v22 = vpop.xlane.xlu0 %3434 }
0x2543   : > { %v3436_v24 = vsub.f32 %v3430_v12, %v3435_v22  ;;  %v3803_v12 = vmul.f32 %v4774_v5, %v5844_v55  ;;  %v4779_v55 = vld [vmem:[#allocation6 + $0x840] ss:$0 sm:$0xff]  ;;  %v3771_v5 = vld [vmem:[#allocation6 + $0x8d0] sm:$0xff] }
0x2545   : > { %v3437_v34 = vmul.f32 1.442695, %v3436_v24  ;;  %v3805_v20 = vadd.f32 %v4775_v9, %v3803_v12  ;;  %v3766_v9 = vld [vmem:[#allocation6 + $0x8a8] sm:$0xff]  ;;  %v3765_v12 = vld [vmem:[#allocation6 + $0x8a0] sm:$0xff] }
0x2547   : > { %4946 = vpow2.f32 %v3437_v34 }
0x254a   : > { %v3471_v3 = vpop.xlane.xlu0 %3470 }
0x254b   : > { %v3472_v31 = vsub.f32 %v3466_v18, %v3471_v3  ;;  %v3836_v18 = vld [vmem:[#allocation6 + $0x928] sm:$0xff] }
0x254d   : > { %v4947_v25 = vpop.eup %4946  ;;  %v3473_v16 = vmul.f32 1.442695, %v3472_v31 }
0x254e   : > { %v3439_v57 = vsel %vm536_vm0, %v4947_v25, 0.0 }
0x254f   : > { %3440 = vadd.xlane.f32.xlu1 %v3439_v57 }
0x2552   : > { %v3561_v37 = vpop.xlane.xlu0 %3560 }
0x2553   : > { %v3562_v26 = vsub.f32 %v3556_v11, %v3561_v37  ;;  %v3664_v11 = vld [vmem:[#allocation6 + $0x828] sm:$0xff] }
0x2554   : > { %v3725_v37 = vld [vmem:[#allocation6 + $0x868] sm:$0xff] }
0x2555   : > { %v3563_v38 = vmul.f32 1.442695, %v3562_v26  ;;  %v3724_v26 = vld [vmem:[#allocation6 + $0x860] sm:$0xff] }
0x25c2   : > { %v3441_v54 = vpop.xlane.xlu1 %3440 }
0x25c3   : > { %4948 = vrcp.f32 %v3441_v54 }
0x25c4   : > { %4950 = vpow2.f32 %v3473_v16  ;;  %v3726_v16 = vld [vmem:[#allocation6 + $0x870] sm:$0xff] }
0x25c5   : > { %4952 = vpow2.f32 %v3563_v38  ;;  %v3776_v38 = vld [vmem:[#allocation6 + $0x8f8] sm:$0xff] }
0x25c6   : > { %3779 = vmatpush.msrb.mxu3 %v3776_v38  ;;  %v3868_v38 = vld [vmem:[#allocation6 + $0x968] sm:$0xff] }
0x25c9   : > { %v4949_v27 = vpop.eup %4948 }
0x25ca   : > { %v3443_v30 = vmul.f32 %v4949_v27, %v4947_v25  ;;  %v4951_v42 = vpop.eup %4950 }
0x25cb   : > { %v3475_v4 = vsel %vm536_vm0, %v4951_v42, 0.0  ;;  %v4953_v40 = vpop.eup %4952 }
0x25cc   : > { %4603 = vmatmul.msk.f32.vlgmr.msra.gmra.mxu1 %vm536_vm0, %v3443_v30  ;;  %v3565_v41 = vsel %vm536_vm0, %v4953_v40, 0.0 }
0x25cd   : > { %3744 = vmatpush.msra.mxu1 %v3726_v16 }
0x25cf   : > { %3745 = vmatpush.msra.mxu1 %v3725_v37 }
0x25d1   : > { %3746 = vmatpush.msra.mxu1 %v3724_v26 }
0x25d4   : > { %4608 = vmatmul.msk.f32.vlgmr.msrb.gmra.mxu1 %vm313_vm5, %v3599_v56 }
0x2649   : > { %v5877_v2 = vpop.f32.mrf.mxu1 }
0x2651   : > { %v3620_v28 = vpop.f32.mrf.mxu1 }
0x2652   : > { %v3623_v29 = vsel %vm536_vm0, %v3620_v28, -inf }
0x2653   : > { %3624 = vmax.xlane.f32.xlu1 %v3623_v29 }
0x265b   : > { %3476 = vadd.xlane.f32.xlu1 %v3475_v4 }
0x2663   : > { %3566 = vadd.xlane.f32.xlu1 %v3565_v41 }
0x267c   : > { %3572 = vrot.lane.b32.xlu1 %v3570_v44, %s5131_s6  ;;  %v3774_v44 = vld [vmem:[#allocation6 + $0x8e8] sm:$0xff] }
0x26c6   : > { %v3625_v23 = vpop.xlane.xlu1 %3624 }
0x26c7   : > { %v3626_v43 = vsub.f32 %v3620_v28, %v3625_v23  ;;  %v3723_v28 = vld [vmem:[#allocation6 + $0x858] sm:$0xff] }
0x26c8   : > { %3747 = vmatpush.msra.mxu1 %v3723_v28 }
0x26c9   : > { %v3627_v45 = vmul.f32 1.442695, %v3626_v43 }
0x26cb   : > { %4954 = vpow2.f32 %v3627_v45 }
0x26ce   : > { %v3477_v47 = vpop.xlane.xlu1 %3476 }
0x26cf   : > { %4956 = vrcp.f32 %v3477_v47 }
0x26d1   : > { %v4955_v50 = vpop.eup %4954 }
0x26d2   : > { %v3629_v32 = vsel %vm536_vm0, %v4955_v50, 0.0 }
0x26d3   : > { %3630 = vadd.xlane.f32.xlu0 %v3629_v32 }
0x26d5   : > { %v4957_v15 = vpop.eup %4956 }
0x26d6   : > { %v3479_v10 = vmul.f32 %v4957_v15, %v4951_v42  ;;  %v3567_v58 = vpop.xlane.xlu1 %3566  ;;  %v3775_v42 = vld [vmem:[#allocation6 + $0x8f0] sm:$0xff] }
0x26d7   : > { %4958 = vrcp.f32 %v3567_v58  ;;  %3780 = vmatpush.msrb.mxu3 %v3775_v42  ;;  %v3867_v42 = vld [vmem:[#allocation6 + $0x960] sm:$0xff] }
0x26d8   : > { %4602 = vmatmul.msk.f32.vlgmr.msrb.gmra.mxu0 %vm536_vm0, %v3479_v10 }
0x26d9   : > { %3781 = vmatpush.msrb.mxu3 %v3774_v44 }
0x26dd   : > { %v4959_v63 = vpop.eup %4958 }
0x26de   : > { %v3569_v13 = vmul.f32 %v4959_v63, %v4953_v40 }
0x26e7   : > { %3636 = vrot.lane.b32.xlu0 %v3634_v19, %s5131_s6  ;;  %v4780_v19 = vld [vmem:[#allocation6 + $0x848] ss:$0 sm:$0xff] }
0x26ee   : > { %v3573_v59 = vpop.permute.xlu1 %3572 }
0x26ef   : > { %3593 = vmatpush.msra.mxu0 %v3573_v59 }
0x26f0   : > { %4606 = vmatmul.msk.f32.vlgmr.msra.gmra.mxu0 %vm536_vm0, %v3569_v13  ;;  %v4781_v13 = vld [vmem:[#allocation6 + $0x850] ss:$0 sm:$0xff] }
0x26f1   : > { %3684 = vmatpush.msrb.mxu0 %v3666_v39 }
0x26f3   : > { %3685 = vmatpush.msrb.mxu0 %v3665_v62  ;;  %v3773_v62 = vld [vmem:[#allocation6 + $0x8e0] sm:$0xff] }
0x26f4   : > { %3782 = vmatpush.msrb.mxu3 %v3773_v62 }
0x26f5   : > { %3686 = vmatpush.msrb.mxu0 %v3664_v11  ;;  %v3761_v11 = vld [vmem:[#allocation6 + $0x880] sm:$0xff] }
0x26f7   : > { %3687 = vmatpush.msrb.mxu0 %v3663_v21  ;;  %v4782_v21 = vld [vmem:[#allocation6 + $0x878] ss:$0 sm:$0xff] }
0x26f9   : > { %3886 = vmatpush.msra.mxu0 %v3868_v38 }
0x26fb   : > { %3887 = vmatpush.msra.mxu0 %v3867_v42 }
0x2746   : > { %v3631_v60 = vpop.xlane.xlu0 %3630 }
0x2747   : > { %4960 = vrcp.f32 %v3631_v60 }
0x274d   : > { %v4961_v0 = vpop.eup %4960 }
0x274e   : > { %v3633_v6 = vmul.f32 %v4961_v0, %v4955_v50  ;;  %v3772_v0 = vld [vmem:[#allocation6 + $0x8d8] sm:$0xff] }
0x274f   : > { %3783 = vmatpush.msrb.mxu3 %v3772_v0 }
0x2751   : > { %3784 = vmatpush.msrb.mxu3 %v3771_v5  ;;  %v4778_v5 = vld [vmem:[#allocation6 + $0x948] ss:$0 sm:$0xff] }
0x2755   : > { %v3505_v22 = vpop.f32.mrf.mxu0 }
0x2756   : > { %v3533_v34 = vadd.f32 %v5877_v2, %v3505_v22 }
0x2759   : > { %v3637_v8 = vpop.permute.xlu0 %3636 }
0x275a   : > { %3657 = vmatpush.msrb.mxu2 %v3637_v8  ;;  %v3769_v8 = vld [vmem:[#allocation6 + $0x8c0] sm:$0xff] }
0x275b   : > { %4609 = vmatmul.msk.f32.vlgmr.msrb.gmra.mxu2 %vm536_vm0, %v3633_v6  ;;  %v3770_v6 = vld [vmem:[#allocation6 + $0x8c8] sm:$0xff] }
0x275c   : > { %3857 = vmatpush.msra.mxu2 %v3839_v52  ;;  %3785 = vmatpush.msrb.mxu3 %v3770_v6  ;;  %v3768_v52 = vld [vmem:[#allocation6 + $0x8b8] sm:$0xff] }
0x275e   : > { %3858 = vmatpush.msra.mxu2 %v3838_v14  ;;  %3786 = vmatpush.msrb.mxu3 %v3769_v8  ;;  %v3767_v14 = vld [vmem:[#allocation6 + $0x8b0] sm:$0xff] }
0x275f   : > { %v4788_v8 = vld [vmem:[#allocation6 + $0x970] ss:$0 sm:$0xff] }
0x2760   : > { %3859 = vmatpush.msra.mxu2 %v3837_v17  ;;  %3787 = vmatpush.msrb.mxu3 %v3768_v52  ;;  %v3764_v17 = vld [vmem:[#allocation6 + $0x898] sm:$0xff] }
0x2762   : > { %3860 = vmatpush.msra.mxu2 %v3836_v18  ;;  %3788 = vmatpush.msrb.mxu3 %v3767_v14  ;;  %v3763_v18 = vld [vmem:[#allocation6 + $0x890] sm:$0xff] }
0x2763   : > { %4612 = vmatmul.msk.f32.vlgmr.msra.gmra.mxu2 %vm313_vm5, %v3805_v20  ;;  %v3762_v20 = vld [vmem:[#allocation6 + $0x888] sm:$0xff] }
0x2764   : > { %3789 = vmatpush.msrb.mxu3 %v3766_v9 }
0x2766   : > { %3790 = vmatpush.msrb.mxu3 %v3765_v12 }
0x2768   : > { %3791 = vmatpush.msrb.mxu3 %v3764_v17 }
0x276a   : > { %3792 = vmatpush.msrb.mxu3 %v3763_v18 }
0x276c   : > { %3793 = vmatpush.msrb.mxu3 %v3762_v20 }
0x276d   : > { %v3595_v24 = vpop.f32.mrf.mxu0 }
0x276e   : > { %v3598_v25 = vadd.f32 %v3595_v24, %v3533_v34  ;;  %3794 = vmatpush.msrb.mxu3 %v3761_v11 }
0x27de   : > { %v3659_v57 = vpop.f32.mrf.mxu2 }
0x27df   : > { %v3662_v54 = vadd.f32 %v3659_v57, %v3598_v25 }
0x27e1   : > { %4610 = vmatmul.msk.f32.vlgmr.msrb.gmra.mxu0 %vm313_vm5, %v3662_v54 }
0x27e6   : > { %v3862_v6 = vpop.f32.mrf.mxu2 }
0x27e7   : > { %v3863_v52 = vadd.f32 %v4778_v5, %v3862_v6  ;;  %v4297_v5 = vld [vmem:[#allocation6 + $0xa88] sm:$0xff]  ;;  %v4154_v6 = vld [vmem:[#allocation6 + $0x990] sm:$0xff] }
0x27e9   : > { %v3894_v17 = vmul.f32 %v5321_v1, %v3863_v52  ;;  %v3933_v18 = vmul.f32 %v5306_v35, %v3863_v52  ;;  %v4023_v20 = vmul.f32 %v5381_v49, %v3863_v52 }
0x285e   : > { %v3689_v27 = vpop.f32.mrf.mxu0 }
0x285f   : > { %v3690_v30 = vadd.f32 %v4779_v55, %v3689_v27 }
0x2861   : > { %v5897_v56 = vadd.f32 %v3690_v30, %v5798_v61 }
0x2863   : > { %v3695_v3 = vsel %vm313_vm5, %v5897_v56, 0.0  ;;  %v3699_v31 = vmul.f32 %v5897_v56, %v5897_v56 }
0x2864   : > { %3696 = vadd.xlane.f32.xlu2 %v3695_v3 }
0x2865   : > { %v3700_v2 = vsel %vm313_vm5, %v3699_v31, 0.0 }
0x2866   : > { %3701 = vadd.xlane.f32.xlu0 %v3700_v2  ;;  %v4783_v2 = vld [vmem:[#allocation6 + $0x900] ss:$0 sm:$0xff] }
0x28d7   : > { %v3697_v29 = vpop.xlane.xlu2 %3696 }
0x28d8   : > { %v3698_v61 = vmul.f32 %v3697_v29, %v5278_v46 }
0x28d9   : > { %v3702_v4 = vpop.xlane.xlu0 %3701 }
0x28da   : > { %v3704_v40 = vmul.f32 %v3698_v61, %v3698_v61  ;;  %v3703_v41 = vmul.f32 %v3702_v4, %v5278_v46  ;;  %v3706_v58 = vsub.f32 %v5897_v56, %v3698_v61  ;;  %v3866_v4 = vld [vmem:[#allocation6 + $0x958] sm:$0xff] }
0x28db   : > { %3888 = vmatpush.msra.mxu0 %v3866_v4 }
0x28dc   : > { %v3705_v23 = vsub.f32 %v3703_v41, %v3704_v40  ;;  %v3865_v40 = vld [vmem:[#allocation6 + $0x950] sm:$0xff] }
0x28dd   : > { %3889 = vmatpush.msra.mxu0 %v3865_v40 }
0x28de   : > { %v3707_v43 = vadd.f32 1e-05, %v3705_v23 }
0x28e0   : > { %4962 = vrsqrt.f32 %v3707_v43  ;;  %vm3714_vm13 = vweird.f32 %v3707_v43 }
0x28e6   : > { %v4963_v45 = vpop.eup %4962 }
0x28e7   : > { %v3709_v47 = vmul.f32 %v4963_v45, %v3707_v43  ;;  %vm3715_vm12 = vweird.f32 %v4963_v45 }
0x28e8   : > { %vm3716_vm14 = vmor %vm3714_vm13, %vm3715_vm12 }
0x28e9   : > { %v3710_v50 = vmul.f32 %v4963_v45, %v3709_v47 }
0x28eb   : > { %v3711_v32 = vmul.f32 0.5, %v3710_v50 }
0x28ed   : > { %v3712_v15 = vsub.f32 1.5, %v3711_v32 }
0x28ef   : > { %v3713_v10 = vmul.f32 %v4963_v45, %v3712_v15 }
0x28f1   : > { %v3717_v63 = vsel %vm3716_vm14, %v4963_v45, %v3713_v10 }
0x28f2   : > { %v3718_v59 = vmul.f32 %v3717_v63, %v3706_v58 }
0x28f4   : > { %v3720_v60 = vmul.f32 %v4780_v19, %v3718_v59 }
0x28f6   : > { %v3722_v39 = vadd.f32 %v4781_v13, %v3720_v60  ;;  %v4784_v13 = vld [vmem:[#allocation6 + $0x918] ss:$0 sm:$0xff] }
0x28f8   : > { %4611 = vmatmul.msk.f32.vlgmr.msra.gmra.mxu1 %vm313_vm5, %v3722_v39  ;;  %v4787_v39 = vld [vmem:[#allocation6 + $0x920] ss:$0 sm:$0xff] }
0x2975   : > { %v3749_v22 = vpop.f32.mrf.mxu1 }
0x2976   : > { %v3750_v24 = vadd.f32 %v4782_v21, %v3749_v22 }
0x2978   : > { %v3752_v34 = vmul.f32 %v3750_v24, %v3750_v24 }
0x297a   : > { %v3753_v25 = vmul.f32 %v3752_v34, %v3750_v24 }
0x297c   : > { %v3754_v57 = vmul.f32 0.044715, %v3753_v25 }
0x297e   : > { %v3755_v54 = vadd.f32 %v3754_v57, %v3750_v24 }
0x2980   : > { %v3756_v55 = vmul.f32 0.7978846, %v3755_v54 }
0x2982   : > { %4964 = vtanh.f32 %v3756_v55 }
0x2988   : > { %v4965_v27 = vpop.eup %4964 }
0x2989   : > { %v3758_v30 = vadd.f32 1.0, %v4965_v27 }
0x298b   : > { %v3759_v3 = vmul.f32 0.5, %v3758_v30 }
0x298d   : > { %v3760_v31 = vmul.f32 %v3759_v3, %v3750_v24 }
0x298f   : > { %3795 = vmatmul.f32.vlgmr.msrb.gmra.mxu3 %v3760_v31  ;;  %v4087_v31 = vmul.f32 %v5360_v36, %v3863_v52  ;;  %v4786_v52 = vld [vmem:[#allocation6 + $0xa68] ss:$0 sm:$0xff] }
0x2a12   : > { %v3796_v16 = vpop.f32.mrf.mxu3 }
0x2a13   : > { %v3797_v37 = vadd.f32 %v4783_v2, %v3796_v16 }
0x2a15   : > { %v3799_v26 = vadd.f32 %v3797_v37, %v5897_v56 }
0x2a17   : > { %v3808_v28 = vsel %vm313_vm5, %v3799_v26, 0.0  ;;  %v3812_v29 = vmul.f32 %v3799_v26, %v3799_v26 }
0x2a18   : > { %3809 = vadd.xlane.f32.xlu1 %v3808_v28 }
0x2a19   : > { %v3813_v61 = vsel %vm313_vm5, %v3812_v29, 0.0 }
0x2a1a   : > { %3814 = vadd.xlane.f32.xlu2 %v3813_v61 }
0x2a8b   : > { %v3810_v41 = vpop.xlane.xlu1 %3809 }
0x2a8c   : > { %v3811_v44 = vmul.f32 %v3810_v41, %v5278_v46 }
0x2a8d   : > { %v3815_v23 = vpop.xlane.xlu2 %3814 }
0x2a8e   : > { %v3817_v56 = vmul.f32 %v3811_v44, %v3811_v44  ;;  %v3816_v43 = vmul.f32 %v3815_v23, %v5278_v46  ;;  %v3819_v63 = vsub.f32 %v3799_v26, %v3811_v44 }
0x2a90   : > { %v3818_v45 = vsub.f32 %v3816_v43, %v3817_v56 }
0x2a92   : > { %v3820_v47 = vadd.f32 1e-05, %v3818_v45 }
0x2a94   : > { %4966 = vrsqrt.f32 %v3820_v47  ;;  %vm3827_vm1 = vweird.f32 %v3820_v47 }
0x2a9a   : > { %v4967_v50 = vpop.eup %4966 }
0x2a9b   : > { %v3822_v32 = vmul.f32 %v4967_v50, %v3820_v47  ;;  %vm3828_vm15 = vweird.f32 %v4967_v50 }
0x2a9c   : > { %vm3829_vm2 = vmor %vm3827_vm1, %vm3828_vm15 }
0x2a9d   : > { %v3823_v15 = vmul.f32 %v4967_v50, %v3822_v32 }
0x2a9f   : > { %v3824_v10 = vmul.f32 0.5, %v3823_v15 }
0x2aa1   : > { %v3825_v58 = vsub.f32 1.5, %v3824_v10 }
0x2aa3   : > { %v3826_v19 = vmul.f32 %v4967_v50, %v3825_v58 }
0x2aa5   : > { %v3830_v59 = vsel %vm3829_vm2, %v4967_v50, %v3826_v19 }
0x2aa6   : > { %v5913_v60 = vmul.f32 %v3830_v59, %v3819_v63 }
0x2aa8   : > { %v3833_v62 = vmul.f32 %v4784_v13, %v5913_v60 }
0x2aaa   : > { %v3835_v0 = vadd.f32 %v4787_v39, %v3833_v62  ;;  %v4785_v39 = vld [vmem:[#allocation6 + $0xa60] ss:$0 sm:$0xff] }
0x2aac   : > { %4613 = vmatmul.msk.f32.vlgmr.msra.gmra.mxu0 %vm313_vm5, %v3835_v0 }
0x2b29   : > { %v3891_v14 = vpop.f32.mrf.mxu0 }
0x2b2a   : > { %v5917_v9 = vadd.f32 %v4788_v8, %v3891_v14  ;;  %v4153_v8 = vld [vmem:[#allocation6 + $0x988] sm:$0xff]  ;;  %v4291_v14 = vmul.f32 %v4785_v39, %v5913_v60 }
0x2b2b   : > { %v4255_v39 = vld [vmem:[#allocation6 + $0xa08] sm:$0xff] }
0x2b2c   : > { %4614 = vmatpush.xpose.msk.msrb.mxu1 %vm313_vm5, %v5917_v9  ;;  %4616 = vmatpush.xpose.msk.msrb.mxu2 %vm313_vm5, %v5917_v9  ;;  %v3932_v12 = vmul.f32 %v5917_v9, %v5542_v7  ;;  %v3968_v41 = vmul.f32 %v5565_v48, %v5917_v9  ;;  %v4058_v44 = vmul.f32 %v5577_v53, %v5917_v9 }
0x2b2d   : > { %v4122_v53 = vmul.f32 %v5917_v9, %v5570_v51  ;;  %v4296_v51 = vld [vmem:[#allocation6 + $0xa80] sm:$0xff] }
0x2b2e   : > { %3997 = vrot.lane.b32.xlu0 %v3932_v12, %s5131_s6  ;;  %v4294_v12 = vld [vmem:[#allocation6 + $0xa70] sm:$0xff] }
0x2b2f   : > { %4615 = vmatmul.msk.f32.vlgmr.msrb.gmra.mxu1 %vm313_vm5, %v3894_v17  ;;  %4617 = vmatmul.msk.f32.vlgmr.msrb.gmra.mxu2 %vm313_vm5, %v3933_v18  ;;  %v4293_v17 = vadd.f32 %v4786_v52, %v4291_v14  ;;  %v4152_v18 = vld [vmem:[#allocation6 + $0x980] sm:$0xff]  ;;  %v4793_v52 = vld [vmem:[#allocation6 + $0x9d0] ss:$0 sm:$0xff] }
0x2b30   : > { %4620 = vmatpush.xpose.msk.msra.mxu2 %vm313_vm5, %v5917_v9 }
0x2b37   : > { %4621 = vmatmul.msk.f32.vlgmr.msra.gmra.mxu2 %vm313_vm5, %v4023_v20  ;;  %v4151_v20 = vld [vmem:[#allocation6 + $0x978] sm:$0xff] }
0x2ba0   : > { %v3998_v11 = vpop.permute.xlu0 %3997 }
0x2ba1   : > { %4018 = vmatpush.msra.mxu1 %v3998_v11 }
0x2ba3   : > { %4623 = vmatpush.xpose.msk.msrb.mxu1 %vm313_vm5, %v5917_v9  ;;  %v4295_v9 = vld [vmem:[#allocation6 + $0xa78] sm:$0xff] }
0x2bac   : > { %v3918_v1 = vpop.f32.mrf.mxu1 }
0x2bad   : > { %v3921_v35 = vsel %vm536_vm0, %v3918_v1, -inf }
0x2bae   : > { %3922 = vmax.xlane.f32.xlu2 %v3921_v35 }
0x2bb2   : > { %v3954_v49 = vpop.f32.mrf.mxu2 }
0x2bb3   : > { %v3957_v25 = vsel %vm536_vm0, %v3954_v49, -inf }
0x2bba   : > { %v4044_v57 = vpop.f32.mrf.mxu2 }
0x2bbb   : > { %v4047_v54 = vsel %vm536_vm0, %v4044_v57, -inf }
0x2c21   : > { %v3923_v7 = vpop.xlane.xlu2 %3922 }
0x2c22   : > { %v3924_v21 = vsub.f32 %v3918_v1, %v3923_v7 }
0x2c24   : > { %v3925_v22 = vmul.f32 1.442695, %v3924_v21 }
0x2c26   : > { %4968 = vpow2.f32 %v3925_v22  ;;  %v4789_v22 = vld [vmem:[#allocation6 + $0xa90] ss:$0 sm:$0xff] }
0x2c2c   : > { %v4969_v24 = vpop.eup %4968 }
0x2c2d   : > { %v3927_v34 = vsel %vm536_vm0, %v4969_v24, 0.0 }
0x2c2e   : > { %3928 = vadd.xlane.f32.xlu2 %v3927_v34 }
0x2c36   : > { %3958 = vmax.xlane.f32.xlu2 %v3957_v25 }
0x2c3e   : > { %4048 = vmax.xlane.f32.xlu2 %v4047_v54 }
0x2ca1   : > { %v3929_v55 = vpop.xlane.xlu2 %3928 }
0x2ca2   : > { %4970 = vrcp.f32 %v3929_v55 }
0x2ca8   : > { %v4971_v27 = vpop.eup %4970 }
0x2ca9   : > { %v3931_v30 = vmul.f32 %v4971_v27, %v4969_v24  ;;  %v3959_v3 = vpop.xlane.xlu2 %3958 }
0x2caa   : > { %v3960_v29 = vsub.f32 %v3954_v49, %v3959_v3  ;;  %v4790_v49 = vld [vmem:[#allocation6 + $0x998] ss:$0 sm:$0xff]  ;;  %v4214_v3 = vld [vmem:[#allocation6 + $0x9c8] sm:$0xff] }
0x2cab   : > { %4619 = vmatmul.msk.f32.vlgmr.msra.gmra.mxu1 %vm536_vm0, %v3931_v30 }
0x2cac   : > { %v3961_v38 = vmul.f32 1.442695, %v3960_v29  ;;  %4232 = vmatpush.msra.mxu1 %v4214_v3  ;;  %v4354_v3 = vld [vmem:[#allocation6 + $0xab0] sm:$0xff] }
0x2cb1   : > { %v4049_v2 = vpop.xlane.xlu2 %4048 }
0x2cb2   : > { %v4050_v16 = vsub.f32 %v4044_v57, %v4049_v2  ;;  %v4212_v2 = vld [vmem:[#allocation6 + $0x9b8] sm:$0xff] }
0x2cb3   : > { %4624 = vmatmul.msk.f32.vlgmr.msrb.gmra.mxu1 %vm313_vm5, %v4087_v31  ;;  %v4213_v31 = vld [vmem:[#allocation6 + $0x9c0] sm:$0xff] }
0x2cb4   : > { %v4051_v37 = vmul.f32 1.442695, %v4050_v16  ;;  %4233 = vmatpush.msra.mxu1 %v4213_v31  ;;  %v4211_v16 = vld [vmem:[#allocation6 + $0x9b0] sm:$0xff]  ;;  %v4353_v31 = vld [vmem:[#allocation6 + $0xaa8] sm:$0xff] }
0x2cb6   : > { %4972 = vpow2.f32 %v4051_v37  ;;  %4234 = vmatpush.msra.mxu1 %v4212_v2 }
0x2cb7   : > { %4974 = vpow2.f32 %v3961_v38 }
0x2cb8   : > { %4235 = vmatpush.msra.mxu1 %v4211_v16 }
0x2cbc   : > { %v4973_v26 = vpop.eup %4972 }
0x2cbd   : > { %v4053_v28 = vsel %vm536_vm0, %v4973_v26, 0.0  ;;  %v4975_v36 = vpop.eup %4974 }
0x2cbe   : > { %4054 = vadd.xlane.f32.xlu0 %v4053_v28  ;;  %v3963_v40 = vsel %vm536_vm0, %v4975_v36, 0.0  ;;  %v4263_v28 = vld [vmem:[#allocation6 + $0xa48] sm:$0xff] }
0x2d28   : > { %v5944_v61 = vpop.f32.mrf.mxu1 }
0x2d30   : > { %v4108_v42 = vpop.f32.mrf.mxu1 }
0x2d31   : > { %v4111_v4 = vsel %vm536_vm0, %v4108_v42, -inf  ;;  %v4055_v32 = vpop.xlane.xlu0 %4054 }
0x2d32   : > { %4112 = vmax.xlane.f32.xlu1 %v4111_v4 }
0x2d3a   : > { %3964 = vadd.xlane.f32.xlu1 %v3963_v40 }
0x2d53   : > { %3970 = vrot.lane.b32.xlu1 %v3968_v41, %s5131_s6 }
0x2d5b   : > { %4060 = vrot.lane.b32.xlu1 %v4058_v44, %s5131_s6 }
0x2da5   : > { %v4113_v23 = vpop.xlane.xlu1 %4112 }
0x2da6   : > { %v4114_v56 = vsub.f32 %v4108_v42, %v4113_v23  ;;  %v4262_v42 = vld [vmem:[#allocation6 + $0xa40] sm:$0xff] }
0x2da8   : > { %v4115_v43 = vmul.f32 1.442695, %v4114_v56 }
0x2daa   : > { %4976 = vpow2.f32 %v4115_v43 }
0x2dad   : > { %v3965_v50 = vpop.xlane.xlu1 %3964 }
0x2dae   : > { %4978 = vrcp.f32 %v3965_v50 }
0x2daf   : > { %4980 = vrcp.f32 %v4055_v32  ;;  %v4792_v32 = vld [vmem:[#allocation6 + $0x9a8] ss:$0 sm:$0xff] }
0x2db0   : > { %v4977_v45 = vpop.eup %4976 }
0x2db1   : > { %v4117_v47 = vsel %vm536_vm0, %v4977_v45, 0.0 }
0x2db2   : > { %4118 = vadd.xlane.f32.xlu2 %v4117_v47  ;;  %v4791_v47 = vld [vmem:[#allocation6 + $0x9a0] ss:$0 sm:$0xff] }
0x2db4   : > { %v4979_v15 = vpop.eup %4978 }
0x2db5   : > { %v3967_v48 = vmul.f32 %v4979_v15, %v4975_v36  ;;  %v4981_v58 = vpop.eup %4980 }
0x2db6   : > { %v4057_v19 = vmul.f32 %v4981_v58, %v4973_v26  ;;  %v4264_v26 = vld [vmem:[#allocation6 + $0xa50] sm:$0xff] }
0x2db7   : > { %4267 = vmatpush.msra.mxu3 %v4264_v26  ;;  %v4260_v58 = vld [vmem:[#allocation6 + $0xa30] sm:$0xff] }
0x2db9   : > { %4268 = vmatpush.msra.mxu3 %v4263_v28 }
0x2dbb   : > { %4269 = vmatpush.msra.mxu3 %v4262_v42 }
0x2dc5   : > { %v3971_v10 = vpop.permute.xlu1 %3970 }
0x2dc6   : > { %3991 = vmatpush.msrb.mxu0 %v3971_v10 }
0x2dc7   : > { %4618 = vmatmul.msk.f32.vlgmr.msrb.gmra.mxu0 %vm536_vm0, %v3967_v48 }
0x2dca   : > { %4124 = vrot.lane.b32.xlu2 %v4122_v53, %s5131_s6  ;;  %v4261_v53 = vld [vmem:[#allocation6 + $0xa38] sm:$0xff] }
0x2dcb   : > { %4270 = vmatpush.msra.mxu3 %v4261_v53 }
0x2dcd   : > { %v4061_v63 = vpop.permute.xlu1 %4060  ;;  %4271 = vmatpush.msra.mxu3 %v4260_v58 }
0x2dce   : > { %4081 = vmatpush.msra.mxu0 %v4061_v63  ;;  %v4258_v63 = vld [vmem:[#allocation6 + $0xa20] sm:$0xff] }
0x2dcf   : > { %4622 = vmatmul.msk.f32.vlgmr.msra.gmra.mxu0 %vm536_vm0, %v4057_v19  ;;  %v4259_v19 = vld [vmem:[#allocation6 + $0xa28] sm:$0xff] }
0x2dd0   : > { %4172 = vmatpush.msrb.mxu0 %v4154_v6  ;;  %4272 = vmatpush.msra.mxu3 %v4259_v19  ;;  %v4251_v6 = vld [vmem:[#allocation6 + $0x9e8] sm:$0xff] }
0x2dd2   : > { %4173 = vmatpush.msrb.mxu0 %v4153_v8  ;;  %4273 = vmatpush.msra.mxu3 %v4258_v63  ;;  %v4250_v8 = vld [vmem:[#allocation6 + $0x9e0] sm:$0xff] }
0x2dd4   : > { %4174 = vmatpush.msrb.mxu0 %v4152_v18 }
0x2dd6   : > { %4175 = vmatpush.msrb.mxu0 %v4151_v20 }
0x2e25   : > { %v4119_v13 = vpop.xlane.xlu2 %4118 }
0x2e26   : > { %4982 = vrcp.f32 %v4119_v13  ;;  %v4257_v13 = vld [vmem:[#allocation6 + $0xa18] sm:$0xff] }
0x2e27   : > { %4274 = vmatpush.msra.mxu3 %v4257_v13 }
0x2e2c   : > { %v4983_v59 = vpop.eup %4982 }
0x2e2d   : > { %v4121_v62 = vmul.f32 %v4983_v59, %v4977_v45  ;;  %v4125_v0 = vpop.permute.xlu2 %4124  ;;  %v4256_v59 = vld [vmem:[#allocation6 + $0xa10] sm:$0xff] }
0x2e2e   : > { %4145 = vmatpush.msrb.mxu2 %v4125_v0  ;;  %4275 = vmatpush.msra.mxu3 %v4256_v59  ;;  %v4253_v0 = vld [vmem:[#allocation6 + $0x9f8] sm:$0xff] }
0x2e2f   : > { %4625 = vmatmul.msk.f32.vlgmr.msrb.gmra.mxu2 %vm536_vm0, %v4121_v62  ;;  %vm4382_vm0 = vcmask 7168   ;;  %v4254_v62 = vld [vmem:[#allocation6 + $0xa00] sm:$0xff] }
0x2e30   : > { %4315 = vmatpush.msra.mxu2 %v4297_v5  ;;  %4276 = vmatpush.msra.mxu3 %v4255_v39  ;;  %v4252_v5 = vld [vmem:[#allocation6 + $0x9f0] sm:$0xff] }
0x2e32   : > { %4316 = vmatpush.msra.mxu2 %v4296_v51  ;;  %4277 = vmatpush.msra.mxu3 %v4254_v62  ;;  %v4249_v51 = vld [vmem:[#allocation6 + $0x9d8] sm:$0xff] }
0x2e34   : > { %4317 = vmatpush.msra.mxu2 %v4295_v9  ;;  %4278 = vmatpush.msra.mxu3 %v4253_v0 }
0x2e36   : > { %4318 = vmatpush.msra.mxu2 %v4294_v12  ;;  %4279 = vmatpush.msra.mxu3 %v4252_v5 }
0x2e37   : > { %4628 = vmatmul.msk.f32.vlgmr.msra.gmra.mxu2 %vm313_vm5, %v4293_v17 }
0x2e38   : > { %4280 = vmatpush.msra.mxu3 %v4251_v6 }
0x2e3a   : > { %4281 = vmatpush.msra.mxu3 %v4250_v8 }
0x2e3c   : > { %4282 = vmatpush.msra.mxu3 %v4249_v51 }
0x2e44   : > { %v3993_v11 = vpop.f32.mrf.mxu0 }
0x2e45   : > { %v4021_v35 = vadd.f32 %v5944_v61, %v3993_v11 }
0x2e4c   : > { %v4083_v1 = vpop.f32.mrf.mxu0 }
0x2e4d   : > { %v4086_v7 = vadd.f32 %v4083_v1, %v4021_v35 }
0x2eb2   : > { %v4147_v60 = vpop.f32.mrf.mxu2 }
0x2eb3   : > { %v4150_v21 = vadd.f32 %v4147_v60, %v4086_v7 }
0x2eb5   : > { %4626 = vmatmul.msk.f32.vlgmr.msrb.gmra.mxu0 %vm313_vm5, %v4150_v21  ;;  %v4794_v21 = vld [vmem:[#allocation6 + $0xa58] ss:$0 sm:$0xff] }
0x2eba   : > { %v4320_v24 = vpop.f32.mrf.mxu2 }
0x2ebb   : > { %v4321_v34 = vadd.f32 %v4789_v22, %v4320_v24 }
0x2ebd   : > { %4383 = vst.msk [vmem:[%s5970_s5] sm:$0xff] %vm4382_vm0, %v4321_v34 }
0x2f32   : > { %v4177_v25 = vpop.f32.mrf.mxu0 }
0x2f33   : > { %v4178_v57 = vadd.f32 %v4790_v49, %v4177_v25 }
0x2f35   : > { %v5975_v54 = vadd.f32 %v4178_v57, %v5834_v33 }
0x2f37   : > { %v4183_v55 = vsel %vm313_vm5, %v5975_v54, 0.0  ;;  %v4187_v27 = vmul.f32 %v5975_v54, %v5975_v54 }
0x2f38   : > { %4184 = vadd.xlane.f32.xlu2 %v4183_v55 }
0x2f39   : > { %v4188_v30 = vsel %vm313_vm5, %v4187_v27, 0.0  ;;  %v4356_v27 = vld [vmem:[#allocation6 + $0xac0] sm:$0xff] }
0x2f3a   : > { %4189 = vadd.xlane.f32.xlu1 %v4188_v30  ;;  %4374 = vmatpush.msra.mxu0 %v4356_v27  ;;  %v4355_v30 = vld [vmem:[#allocation6 + $0xab8] sm:$0xff] }
0x2f3c   : > { %4375 = vmatpush.msra.mxu0 %v4355_v30 }
0x2f3e   : > { %4376 = vmatpush.msra.mxu0 %v4354_v3 }
0x2f40   : > { %4377 = vmatpush.msra.mxu0 %v4353_v31 }
0x2fab   : > { %v4185_v37 = vpop.xlane.xlu2 %4184 }
0x2fac   : > { %v4186_v33 = vmul.f32 %v4185_v37, %v5278_v46 }
0x2fad   : > { %v4190_v29 = vpop.xlane.xlu1 %4189 }
0x2fae   : > { %v4192_v61 = vmul.f32 %v4186_v33, %v4186_v33  ;;  %v4191_v38 = vmul.f32 %v4190_v29, %v5278_v46  ;;  %v4194_v45 = vsub.f32 %v5975_v54, %v4186_v33 }
0x2fb0   : > { %v4193_v4 = vsub.f32 %v4191_v38, %v4192_v61 }
0x2fb2   : > { %v4195_v36 = vadd.f32 1e-05, %v4193_v4 }
0x2fb4   : > { %4984 = vrsqrt.f32 %v4195_v36  ;;  %vm4202_vm4 = vweird.f32 %v4195_v36 }
0x2fba   : > { %v4985_v40 = vpop.eup %4984 }
0x2fbb   : > { %v4197_v41 = vmul.f32 %v4985_v40, %v4195_v36  ;;  %vm4203_vm3 = vweird.f32 %v4985_v40 }
0x2fbc   : > { %vm4204_vm6 = vmor %vm4202_vm4, %vm4203_vm3 }
0x2fbd   : > { %v4198_v44 = vmul.f32 %v4985_v40, %v4197_v41 }
0x2fbf   : > { %v4199_v23 = vmul.f32 0.5, %v4198_v44 }
0x2fc1   : > { %v4200_v56 = vsub.f32 1.5, %v4199_v23  ;;  %v4796_v23 = vld [vmem:[#allocation6 + $0xaa0] ss:$0 sm:$0xff] }
0x2fc3   : > { %v4201_v43 = vmul.f32 %v4985_v40, %v4200_v56 }
0x2fc5   : > { %v4205_v50 = vsel %vm4204_vm6, %v4985_v40, %v4201_v43  ;;  %v4795_v40 = vld [vmem:[#allocation6 + $0xa98] ss:$0 sm:$0xff]  ;;  %v4797_v43 = vld [vmem:[#allocation6 + $0xac8] ss:$0 sm:$0xff] }
0x2fc6   : > { %v4206_v15 = vmul.f32 %v4205_v50, %v4194_v45 }
0x2fc8   : > { %v4208_v48 = vmul.f32 %v4791_v47, %v4206_v15 }
0x2fca   : > { %v4210_v10 = vadd.f32 %v4792_v32, %v4208_v48 }
0x2fcc   : > { %4627 = vmatmul.msk.f32.vlgmr.msra.gmra.mxu1 %vm313_vm5, %v4210_v10 }
0x3049   : > { %v4237_v14 = vpop.f32.mrf.mxu1 }
0x304a   : > { %v4238_v9 = vadd.f32 %v4793_v52, %v4237_v14 }
0x304c   : > { %v4240_v12 = vmul.f32 %v4238_v9, %v4238_v9 }
0x304e   : > { %v4241_v17 = vmul.f32 %v4240_v12, %v4238_v9 }
0x3050   : > { %v4242_v18 = vmul.f32 0.044715, %v4241_v17 }
0x3052   : > { %v4243_v20 = vadd.f32 %v4242_v18, %v4238_v9 }
0x3054   : > { %v4244_v11 = vmul.f32 0.7978846, %v4243_v20 }
0x3056   : > { %4986 = vtanh.f32 %v4244_v11 }
0x305c   : > { %v4987_v1 = vpop.eup %4986 }
0x305d   : > { %v4246_v35 = vadd.f32 1.0, %v4987_v1 }
0x305f   : > { %v4247_v7 = vmul.f32 0.5, %v4246_v35 }
0x3061   : > { %v4248_v60 = vmul.f32 %v4247_v7, %v4238_v9 }
0x3063   : > { %4283 = vmatmul.f32.vlgmr.msra.gmra.mxu3 %v4248_v60 }
0x30e6   : > { %v4284_v22 = vpop.f32.mrf.mxu3 }
0x30e7   : > { %v4285_v24 = vadd.f32 %v4794_v21, %v4284_v22 }
0x30e9   : > { %v4287_v34 = vadd.f32 %v4285_v24, %v5975_v54 }
0x30eb   : > { %v4325_v49 = vsel %vm313_vm5, %v4287_v34, 0.0  ;;  %v4329_v25 = vmul.f32 %v4287_v34, %v4287_v34 }
0x30ec   : > { %4326 = vadd.xlane.f32.xlu0 %v4325_v49 }
0x30ed   : > { %v4330_v57 = vsel %vm313_vm5, %v4329_v25, 0.0 }
0x30f4   : > { %4331 = vadd.xlane.f32.xlu0 %v4330_v57 }
0x315f   : > { %v4327_v55 = vpop.xlane.xlu0 %4326 }
0x3160   : > { %v4328_v2 = vmul.f32 %v4327_v55, %v5278_v46 }
0x3162   : > { %v4334_v54 = vmul.f32 %v4328_v2, %v4328_v2  ;;  %v4336_v36 = vsub.f32 %v4287_v34, %v4328_v2 }
0x3167   : > { %v4332_v16 = vpop.xlane.xlu0 %4331 }
0x3168   : > { %v4333_v37 = vmul.f32 %v4332_v16, %v5278_v46 }
0x316a   : > { %v4335_v33 = vsub.f32 %v4333_v37, %v4334_v54 }
0x316c   : > { %v4337_v26 = vadd.f32 1e-05, %v4335_v33 }
0x316e   : > { %4988 = vrsqrt.f32 %v4337_v26  ;;  %vm4344_vm8 = vweird.f32 %v4337_v26 }
0x3174   : > { %v4989_v28 = vpop.eup %4988 }
0x3175   : > { %v4339_v29 = vmul.f32 %v4989_v28, %v4337_v26  ;;  %vm4345_vm7 = vweird.f32 %v4989_v28 }
0x3176   : > { %vm4346_vm9 = vmor %vm4344_vm8, %vm4345_vm7 }
0x3177   : > { %v4340_v61 = vmul.f32 %v4989_v28, %v4339_v29 }
0x3179   : > { %v4341_v38 = vmul.f32 0.5, %v4340_v61 }
0x317b   : > { %v4342_v42 = vsub.f32 1.5, %v4341_v38 }
0x317d   : > { %v4343_v4 = vmul.f32 %v4989_v28, %v4342_v42 }
0x317f   : > { %v4347_v41 = vsel %vm4346_vm9, %v4989_v28, %v4343_v4 }
0x3180   : > { %v4348_v44 = vmul.f32 %v4347_v41, %v4336_v36 }
0x3182   : > { %v4350_v56 = vmul.f32 %v4795_v40, %v4348_v44 }
0x3184   : > { %v4352_v46 = vadd.f32 %v4796_v23, %v4350_v56 }
0x3186   : > { %4629 = vmatmul.msk.f32.vlgmr.msra.gmra.mxu0 %vm313_vm5, %v4352_v46 }
0x3203   : > { %v4379_v45 = vpop.f32.mrf.mxu0 }
0x3204   : > { %v4380_v47 = vadd.f32 %v4797_v43, %v4379_v45 }
0x3206   : > { %4384 = vst.msk [vmem:[%s5970_s5 + $0x8] sm:$0xff] %vm4382_vm0, %v4380_v47 }
0x3207 PF: > { %p16_p3 = scmp.ge.s32.totalorder %s5189_s25, 4   ;;  %s6014_s12 = smov %s5114_s13 }
0x3208   : > { %s6015_s13 = smov %s5118_s14  ;;  %s6016_s14 = smov %s5199_s28 }
0x3209   : > { %s6017_s15 = smov %s5189_s25  ;;  %18 = sbr.rel (!%p16_p3) target bundleno = 5 (0x5), region = 89 }
0x320e   :  { %4406 = vsyncpa [#allocation3], 1 }
0x320f   :  { %4408 = vsyncpa [#allocation3 + $0x1], 1 }
0x3210   :  { %4409 = vsyncpa [#allocation5], 1 }
0x3211   :  { %4411 = vsyncpa [#allocation5 + $0x1], 1 }

</bundles_post_ra>
